<compile_context>
chip_gen: v6e
topology: v6e:2x2x1
jax: 0.10.0
libtpu: 0.0.40
codegen_flags: <defaults>
</compile_context>

<pallas_src>
import functools

import jax
import jax.numpy as jnp
from jax.experimental import pallas as pl
from jax.experimental.pallas import tpu as pltpu


# ----------------------------------------------------------------------------
# Pallas kernel: y = act(x @ w + b), bf16 operands, f32 accumulation
# ----------------------------------------------------------------------------
def _matmul_bias_act_kernel(x_ref, w_ref, b_ref, o_ref, acc_ref, *, activation):
    k = pl.program_id(2)

    @pl.when(k == 0)
    def _():
        acc_ref[...] = jnp.zeros_like(acc_ref)

    acc_ref[...] += jnp.dot(x_ref[...], w_ref[...],
                            preferred_element_type=jnp.float32)

    @pl.when(k == pl.num_programs(2) - 1)
    def _():
        out = acc_ref[...] + b_ref[...].astype(jnp.float32)
        if activation == "relu":
            out = jnp.maximum(out, 0.0)
        elif activation == "sigmoid":
            out = jax.nn.sigmoid(out)
        o_ref[...] = out.astype(o_ref.dtype)


def _round_up(x, m):
    return (x + m - 1) // m * m


def matmul_bias_act(x, w, b, activation="none", out_dtype=jnp.bfloat16,
                    tm_cap=512, tn_cap=512, tk_cap=2048):
    """y = act(x @ w + b).  x:(M,K), w:(K,N) (bf16 operands), b:(N,) f32."""
    M, K = x.shape
    K2, N = w.shape
    assert K == K2

    # Adaptive tile selection.  Single-tile dims use the "equal to full dim"
    # escape hatch of the (8,128) rule (avoids padding traffic); capped dims
    # use 8/128-aligned caps.
    tm = min(_round_up(M, 8), tm_cap)          # sublane-aligned, small for fc
    tn = N if N <= tn_cap else tn_cap          # lane dim
    tk = K if K <= tk_cap else tk_cap          # reduction dim
    Mp = _round_up(M, tm)
    Np = _round_up(N, tn)
    Kp = _round_up(K, tk)

    xp = x.astype(jnp.bfloat16)
    wp = w.astype(jnp.bfloat16)
    bp = b.astype(jnp.float32).reshape(1, -1)
    if (Mp, Kp) != (M, K):
        xp = jnp.pad(xp, ((0, Mp - M), (0, Kp - K)))
    if (Kp, Np) != (K, N):
        wp = jnp.pad(wp, ((0, Kp - K), (0, Np - N)))
    if Np != N:
        bp = jnp.pad(bp, ((0, 0), (0, Np - N)))

    grid = (Mp // tm, Np // tn, Kp // tk)
    out = pl.pallas_call(
        functools.partial(_matmul_bias_act_kernel, activation=activation),
        out_shape=jax.ShapeDtypeStruct((Mp, Np), out_dtype),
        grid_spec=pltpu.PrefetchScalarGridSpec(
            num_scalar_prefetch=0,
            grid=grid,
            in_specs=[
                pl.BlockSpec((tm, tk), lambda i, j, k: (i, k)),
                pl.BlockSpec((tk, tn), lambda i, j, k: (k, j)),
                pl.BlockSpec((1, tn), lambda i, j, k: (0, j)),
            ],
            out_specs=pl.BlockSpec((tm, tn), lambda i, j, k: (i, j)),
            scratch_shapes=[pltpu.VMEM((tm, tn), jnp.float32)],
        ),
        compiler_params=pltpu.CompilerParams(
            dimension_semantics=("parallel", "parallel", "arbitrary"),
            vmem_limit_bytes=32 * 1024 * 1024),
    )(xp, wp, bp)
    if (Mp, Np) != (M, N):
        out = out[:M, :N]
    return out


# ----------------------------------------------------------------------------
# Convs via NHWC im2col (JAX glue) + the Pallas matmul
# ----------------------------------------------------------------------------
# TODO(synk): fuse the im2col gather into the matmul kernel's index_map so the
# expanded cols tensor never hits HBM.
def _im2col_nhwc(x, kh, kw, stride, pad):
    """x: (B,H,W,C) -> (B*Ho*Wo, kh*kw*C) tap-major, channel-minor."""
    B, H, W, C = x.shape
    (p_top, p_bot), (p_left, p_right) = pad
    xp = jnp.pad(x, ((0, 0), (p_top, p_bot), (p_left, p_right), (0, 0)))
    Ho = (H + p_top + p_bot - kh) // stride + 1
    Wo = (W + p_left + p_right - kw) // stride + 1
    taps = []
    for i in range(kh):
        for j in range(kw):
            taps.append(xp[:, i:i + stride * Ho:stride,
                           j:j + stride * Wo:stride, :])       # (B,Ho,Wo,C)
    cols = jnp.stack(taps, axis=3)                             # (B,Ho,Wo,taps,C)
    return cols.reshape(B * Ho * Wo, kh * kw * C), Ho, Wo


def conv2d_nhwc(x, w_mat, b, kh, kw, stride, pad, activation,
                out_dtype=jnp.bfloat16):
    """Forward conv.  x NHWC, w_mat pre-reshaped (kh*kw*Cin, Cout)."""
    B = x.shape[0]
    cols, Ho, Wo = _im2col_nhwc(x, kh, kw, stride, pad)
    out = matmul_bias_act(cols, w_mat, b, activation, out_dtype=out_dtype)
    return out.reshape(B, Ho, Wo, -1)


def conv_transpose2d_subpixel(x, w_phases, b, activation, out_dtype):
    """ConvTranspose2d(k=4, s=2, p=1) as 4 phase-wise 2x2 stride-1 convs.

    Output phase (rh, rw) (rh/rw = parity of the output row/col) only touches
    2x2 of the 4x4 taps; w_phases holds the 4 pre-sliced (2*2*Cin, Cout) mats.
    """
    B, H, W, _ = x.shape
    phase_pad = {0: (1, 0), 1: (0, 1)}          # (pad_before, pad_after)
    outs = []
    for rh in (0, 1):
        for rw in (0, 1):
            y = conv2d_nhwc(x, w_phases[rh * 2 + rw], b, kh=2, kw=2, stride=1,
                            pad=(phase_pad[rh], phase_pad[rw]),
                            activation=activation, out_dtype=out_dtype)
            outs.append(y)
    y00, y01, y10, y11 = outs
    C = y00.shape[-1]
    row0 = jnp.stack([y00, y01], axis=3)        # (B,H,W,2,C)
    row1 = jnp.stack([y10, y11], axis=3)
    y = jnp.stack([row0, row1], axis=2)         # (B,H,2,W,2,C)
    return y.reshape(B, 2 * H, 2 * W, C)        # Y[:,2p+rh,2q+rw] = phase(rh,rw)


# ----------------------------------------------------------------------------
# VAE parameters & forward
# ----------------------------------------------------------------------------
ENC_CH = [(3, 64), (64, 128), (128, 256), (256, 512)]
DEC_CH = [(512, 256), (256, 128), (128, 64), (64, 3)]


def init_params(key, img_size, latent_dim):
    enc_hw = img_size // 16
    flattened = 512 * enc_hw * enc_hw
    keys = iter(jax.random.split(key, 32))

    def nrm(shape, scale=0.02):
        return (scale * jax.random.normal(next(keys), shape)).astype(jnp.float32)

    params = {}

    # Encoder Conv2d weights: (Cout,Cin,4,4) -> matmul-ready (16*Cin, Cout), bf16.
    for idx, (cin, cout) in enumerate(ENC_CH):
        w = nrm((cout, cin, 4, 4))
        params[f"enc{idx}_w"] = (w.transpose(2, 3, 1, 0)
                                  .reshape(16 * cin, cout).astype(jnp.bfloat16))
        params[f"enc{idx}_b"] = nrm((cout,))

    # Decoder ConvTranspose2d weights, PyTorch layout (Cin,Cout,4,4).
    # Pre-split into the 4 sub-pixel phase matrices (2*2*Cin, Cout), bf16.
    taps = {0: (3, 1), 1: (2, 0)}    # output parity -> kernel indices (low, high input tap)
    for idx, (cin, cout) in enumerate(DEC_CH):
        w = nrm((cin, cout, 4, 4))
        for rh in (0, 1):
            for rw in (0, 1):
                sub = w[:, :, jnp.array(taps[rh]), :][:, :, :, jnp.array(taps[rw])]
                params[f"dec{idx}_w{rh}{rw}"] = (
                    sub.transpose(2, 3, 0, 1)            # (dh,dw,Cin,Cout)
                       .reshape(4 * cin, cout).astype(jnp.bfloat16))
        params[f"dec{idx}_b"] = nrm((cout,))

    # FC layers: stored pre-transposed (K, N); fc_mu & fc_logvar fused along N.
    w_mu, b_mu = nrm((latent_dim, flattened)), nrm((latent_dim,))
    w_lv, b_lv = nrm((latent_dim, flattened)), nrm((latent_dim,))
    params["fc_mulogvar_w"] = jnp.concatenate([w_mu.T, w_lv.T], axis=1).astype(jnp.bfloat16)
    params["fc_mulogvar_b"] = jnp.concatenate([b_mu, b_lv])
    w_dec, b_dec = nrm((flattened, latent_dim)), nrm((flattened,))
    params["fc_decode_w"] = w_dec.T.astype(jnp.bfloat16)
    params["fc_decode_b"] = b_dec
    return params, flattened, enc_hw


def vae_forward(x_nchw, params, eps, *, enc_hw, latent_dim):
    B = x_nchw.shape[0]
    # Single layout conversion: NCHW f32 -> NHWC bf16.
    h = x_nchw.transpose(0, 2, 3, 1).astype(jnp.bfloat16)

    # ---- encode ----
    for idx in range(4):
        h = conv2d_nhwc(h, params[f"enc{idx}_w"], params[f"enc{idx}_b"],
                        kh=4, kw=4, stride=2, pad=((1, 1), (1, 1)),
                        activation="relu")

    # Flatten in PyTorch NCHW (C,H,W) order so fc weights map identically.
    flat = h.transpose(0, 3, 1, 2).reshape(B, -1)
    mu_logvar = matmul_bias_act(flat, params["fc_mulogvar_w"],
                                params["fc_mulogvar_b"], "none",
                                out_dtype=jnp.float32)
    mu = mu_logvar[:, :latent_dim]
    logvar = mu_logvar[:, latent_dim:]

    # ---- reparameterize (tiny elementwise op; left to XLA per perf review) ----
    z = mu + eps * jnp.exp(0.5 * logvar)

    # ---- decode ----
    d = matmul_bias_act(z, params["fc_decode_w"], params["fc_decode_b"], "none")
    d = d.reshape(B, 512, enc_hw, enc_hw).transpose(0, 2, 3, 1)   # NCHW view -> NHWC

    for idx in range(4):
        act = "sigmoid" if idx == 3 else "relu"
        out_dtype = jnp.float32 if idx == 3 else jnp.bfloat16
        w_phases = [params[f"dec{idx}_w{rh}{rw}"] for rh in (0, 1) for rw in (0, 1)]
        d = conv_transpose2d_subpixel(d, w_phases, params[f"dec{idx}_b"],
                                      act, out_dtype)

    recon = d.transpose(0, 3, 1, 2)                               # back to NCHW f32
    return recon, mu, logvar


# ----------------------------------------------------------------------------
if __name__ == "__main__":
    IMG_SIZE = 32        # small stand-in for 640 (must be multiple of 16)
    LATENT_DIM = 64      # small stand-in for 256
    BATCH = 2

    key = jax.random.PRNGKey(0)
    k_param, k_x, k_eps = jax.random.split(key, 3)

    params, flattened, enc_hw = init_params(k_param, IMG_SIZE, LATENT_DIM)
    x = jax.random.normal(k_x, (BATCH, 3, IMG_SIZE, IMG_SIZE), jnp.float32)
    eps = jax.random.normal(k_eps, (BATCH, LATENT_DIM), jnp.float32)

    fwd = jax.jit(functools.partial(vae_forward, enc_hw=enc_hw,
                                    latent_dim=LATENT_DIM))
    recon_x, mu, logvar = fwd(x, params, eps)
    jax.block_until_ready((recon_x, mu, logvar))

    assert recon_x.shape == (BATCH, 3, IMG_SIZE, IMG_SIZE)
    assert recon_x.dtype == jnp.float32
    assert mu.shape == (BATCH, LATENT_DIM)
    assert logvar.shape == (BATCH, LATENT_DIM)
    print("KERNEL_OK")
</pallas_src>

<mosaic_0001>
module attributes {stable_mosaic.version = 11 : i64} {
  func.func @_matmul_bias_act_kernel(%arg0: i32, %arg1: i32, %arg2: i32, %arg3: memref<512x48xbf16, #tpu.memory_space<vmem>>, %arg4: memref<48x64xbf16, #tpu.memory_space<vmem>>, %arg5: memref<1x64xf32, #tpu.memory_space<vmem>>, %arg6: memref<512x64xbf16, #tpu.memory_space<vmem>>, %arg7: memref<512x64xf32, #tpu.memory_space<vmem>>) attributes {dimension_semantics = [#tpu.dimension_semantics<parallel>, #tpu.dimension_semantics<parallel>, #tpu.dimension_semantics<arbitrary>], iteration_bounds = array<i64: 1, 1, 1>, scalar_prefetch = 0 : i64, scratch_operands = 1 : i64, tpu.core_type = #tpu.core_type<tc>, window_params = [{transform_indices = @transform_0, window_bounds = array<i64: 512, 48>}, {transform_indices = @transform_1, window_bounds = array<i64: 48, 64>}, {transform_indices = @transform_2, window_bounds = array<i64: 1, 64>}, {transform_indices = @transform_3, window_bounds = array<i64: 512, 64>}]} {
    %c0_i32 = arith.constant 0 : i32
    %0 = arith.cmpi eq, %arg2, %c0_i32 : i32
    %1 = arith.extui %0 : i1 to i32
    %c0_i32_0 = arith.constant 0 : i32
    %2 = arith.cmpi ne, %1, %c0_i32_0 : i32
    scf.if %2 {
      %cst_10 = arith.constant 0.000000e+00 : f32
      %12 = vector.broadcast %cst_10 : f32 to vector<512x64xf32>
      %c0_11 = arith.constant 0 : index
      %c0_12 = arith.constant 0 : index
      %13 = vector.load %arg7[%c0_11, %c0_12] : memref<512x64xf32, #tpu.memory_space<vmem>>, vector<512x64xf32>
      tpu.vector_store %arg7[%c0_11, %c0_12], %12 {strides = array<i32>} : memref<512x64xf32, #tpu.memory_space<vmem>>, vector<512x64xf32>,
    } else {
    }
    %c0 = arith.constant 0 : index
    %c0_1 = arith.constant 0 : index
    %3 = vector.load %arg7[%c0, %c0_1] : memref<512x64xf32, #tpu.memory_space<vmem>>, vector<512x64xf32>
    %c0_2 = arith.constant 0 : index
    %c0_3 = arith.constant 0 : index
    %4 = vector.load %arg3[%c0_2, %c0_3] : memref<512x48xbf16, #tpu.memory_space<vmem>>, vector<512x48xbf16>
    %c0_4 = arith.constant 0 : index
    %c0_5 = arith.constant 0 : index
    %5 = vector.load %arg4[%c0_4, %c0_5] : memref<48x64xbf16, #tpu.memory_space<vmem>>, vector<48x64xbf16>
    %cst = arith.constant dense<0.000000e+00> : vector<512x64xf32>
    %6 = tpu.matmul %4, %5, %cst {dimension_numbers = #tpu.dot_dimension_numbers<[1], [0], [0], [1], [0, 0, 1, 1], [], []>} : vector<512x48xbf16>, vector<48x64xbf16>, vector<512x64xf32> -> vector<512x64xf32>
    %7 = arith.addf %3, %6 : vector<512x64xf32>
    %c0_6 = arith.constant 0 : index
    %c0_7 = arith.constant 0 : index
    %8 = vector.load %arg7[%c0_6, %c0_7] : memref<512x64xf32, #tpu.memory_space<vmem>>, vector<512x64xf32>
    tpu.vector_store %arg7[%c0_6, %c0_7], %7 {strides = array<i32>} : memref<512x64xf32, #tpu.memory_space<vmem>>, vector<512x64xf32>,
    %c0_i32_8 = arith.constant 0 : i32
    %9 = arith.cmpi eq, %arg2, %c0_i32_8 : i32
    %10 = arith.extui %9 : i1 to i32
    %c0_i32_9 = arith.constant 0 : i32
    %11 = arith.cmpi ne, %10, %c0_i32_9 : i32
    scf.if %11 {
      %c0_10 = arith.constant 0 : index
      %c0_11 = arith.constant 0 : index
      %12 = vector.load %arg7[%c0_10, %c0_11] : memref<512x64xf32, #tpu.memory_space<vmem>>, vector<512x64xf32>
      %c0_12 = arith.constant 0 : index
      %c0_13 = arith.constant 0 : index
      %13 = vector.load %arg5[%c0_12, %c0_13] : memref<1x64xf32, #tpu.memory_space<vmem>>, vector<1x64xf32>
      %14 = vector.broadcast %13 : vector<1x64xf32> to vector<512x64xf32>
      %15 = arith.addf %12, %14 : vector<512x64xf32>
      %cst_14 = arith.constant 0.000000e+00 : f32
      %16 = vector.broadcast %cst_14 : f32 to vector<512x64xf32>
      %17 = arith.maximumf %15, %16 : vector<512x64xf32>
      %18 = arith.truncf %17 : vector<512x64xf32> to vector<512x64xbf16>
      %c0_15 = arith.constant 0 : index
      %c0_16 = arith.constant 0 : index
      %19 = vector.load %arg6[%c0_15, %c0_16] : memref<512x64xbf16, #tpu.memory_space<vmem>>, vector<512x64xbf16>
      tpu.vector_store %arg6[%c0_15, %c0_16], %18 {strides = array<i32>} : memref<512x64xbf16, #tpu.memory_space<vmem>>, vector<512x64xbf16>,
    } else {
    }
    return
  }
  func.func @transform_0(%arg0: i32, %arg1: i32, %arg2: i32) -> (i32, i32) {
    %c0_i32 = arith.constant 0 : i32
    return %arg0, %arg2 : i32, i32
  }
  func.func @transform_1(%arg0: i32, %arg1: i32, %arg2: i32) -> (i32, i32) {
    %c0_i32 = arith.constant 0 : i32
    return %arg2, %arg1 : i32, i32
  }
  func.func @transform_2(%arg0: i32, %arg1: i32, %arg2: i32) -> (i32, i32) {
    %c0_i32 = arith.constant 0 : i32
    %c0_i32_0 = arith.constant 0 : i32
    return %c0_i32, %arg1 : i32, i32
  }
  func.func @transform_3(%arg0: i32, %arg1: i32, %arg2: i32) -> (i32, i32) {
    %c0_i32 = arith.constant 0 : i32
    return %arg0, %arg1 : i32, i32
  }
}

module attributes {stable_mosaic.version = 11 : i64} {
  func.func @_matmul_bias_act_kernel(%arg0: i32, %arg1: i32, %arg2: i32, %arg3: memref<128x1024xbf16, #tpu.memory_space<vmem>>, %arg4: memref<1024x128xbf16, #tpu.memory_space<vmem>>, %arg5: memref<1x128xf32, #tpu.memory_space<vmem>>, %arg6: memref<128x128xbf16, #tpu.memory_space<vmem>>, %arg7: memref<128x128xf32, #tpu.memory_space<vmem>>) attributes {dimension_semantics = [#tpu.dimension_semantics<parallel>, #tpu.dimension_semantics<parallel>, #tpu.dimension_semantics<arbitrary>], iteration_bounds = array<i64: 1, 1, 1>, scalar_prefetch = 0 : i64, scratch_operands = 1 : i64, tpu.core_type = #tpu.core_type<tc>, window_params = [{transform_indices = @transform_0, window_bounds = array<i64: 128, 1024>}, {transform_indices = @transform_1, window_bounds = array<i64: 1024, 128>}, {transform_indices = @transform_2, window_bounds = array<i64: 1, 128>}, {transform_indices = @transform_3, window_bounds = array<i64: 128, 128>}]} {
    %c0_i32 = arith.constant 0 : i32
    %0 = arith.cmpi eq, %arg2, %c0_i32 : i32
    %1 = arith.extui %0 : i1 to i32
    %c0_i32_0 = arith.constant 0 : i32
    %2 = arith.cmpi ne, %1, %c0_i32_0 : i32
    scf.if %2 {
      %cst_10 = arith.constant 0.000000e+00 : f32
      %12 = vector.broadcast %cst_10 : f32 to vector<128x128xf32>
      %c0_11 = arith.constant 0 : index
      %c0_12 = arith.constant 0 : index
      %13 = vector.load %arg7[%c0_11, %c0_12] : memref<128x128xf32, #tpu.memory_space<vmem>>, vector<128x128xf32>
      tpu.vector_store %arg7[%c0_11, %c0_12], %12 {strides = array<i32>} : memref<128x128xf32, #tpu.memory_space<vmem>>, vector<128x128xf32>,
    } else {
    }
    %c0 = arith.constant 0 : index
    %c0_1 = arith.constant 0 : index
    %3 = vector.load %arg7[%c0, %c0_1] : memref<128x128xf32, #tpu.memory_space<vmem>>, vector<128x128xf32>
    %c0_2 = arith.constant 0 : index
    %c0_3 = arith.constant 0 : index
    %4 = vector.load %arg3[%c0_2, %c0_3] : memref<128x1024xbf16, #tpu.memory_space<vmem>>, vector<128x1024xbf16>
    %c0_4 = arith.constant 0 : index
    %c0_5 = arith.constant 0 : index
    %5 = vector.load %arg4[%c0_4, %c0_5] : memref<1024x128xbf16, #tpu.memory_space<vmem>>, vector<1024x128xbf16>
    %cst = arith.constant dense<0.000000e+00> : vector<128x128xf32>
    %6 = tpu.matmul %4, %5, %cst {dimension_numbers = #tpu.dot_dimension_numbers<[1], [0], [0], [1], [0, 0, 1, 1], [], []>} : vector<128x1024xbf16>, vector<1024x128xbf16>, vector<128x128xf32> -> vector<128x128xf32>
    %7 = arith.addf %3, %6 : vector<128x128xf32>
    %c0_6 = arith.constant 0 : index
    %c0_7 = arith.constant 0 : index
    %8 = vector.load %arg7[%c0_6, %c0_7] : memref<128x128xf32, #tpu.memory_space<vmem>>, vector<128x128xf32>
    tpu.vector_store %arg7[%c0_6, %c0_7], %7 {strides = array<i32>} : memref<128x128xf32, #tpu.memory_space<vmem>>, vector<128x128xf32>,
    %c0_i32_8 = arith.constant 0 : i32
    %9 = arith.cmpi eq, %arg2, %c0_i32_8 : i32
    %10 = arith.extui %9 : i1 to i32
    %c0_i32_9 = arith.constant 0 : i32
    %11 = arith.cmpi ne, %10, %c0_i32_9 : i32
    scf.if %11 {
      %c0_10 = arith.constant 0 : index
      %c0_11 = arith.constant 0 : index
      %12 = vector.load %arg7[%c0_10, %c0_11] : memref<128x128xf32, #tpu.memory_space<vmem>>, vector<128x128xf32>
      %c0_12 = arith.constant 0 : index
      %c0_13 = arith.constant 0 : index
      %13 = vector.load %arg5[%c0_12, %c0_13] : memref<1x128xf32, #tpu.memory_space<vmem>>, vector<1x128xf32>
      %14 = vector.broadcast %13 : vector<1x128xf32> to vector<128x128xf32>
      %15 = arith.addf %12, %14 : vector<128x128xf32>
      %cst_14 = arith.constant 0.000000e+00 : f32
      %16 = vector.broadcast %cst_14 : f32 to vector<128x128xf32>
      %17 = arith.maximumf %15, %16 : vector<128x128xf32>
      %18 = arith.truncf %17 : vector<128x128xf32> to vector<128x128xbf16>
      %c0_15 = arith.constant 0 : index
      %c0_16 = arith.constant 0 : index
      %19 = vector.load %arg6[%c0_15, %c0_16] : memref<128x128xbf16, #tpu.memory_space<vmem>>, vector<128x128xbf16>
      tpu.vector_store %arg6[%c0_15, %c0_16], %18 {strides = array<i32>} : memref<128x128xbf16, #tpu.memory_space<vmem>>, vector<128x128xbf16>,
    } else {
    }
    return
  }
  func.func @transform_0(%arg0: i32, %arg1: i32, %arg2: i32) -> (i32, i32) {
    %c0_i32 = arith.constant 0 : i32
    return %arg0, %arg2 : i32, i32
  }
  func.func @transform_1(%arg0: i32, %arg1: i32, %arg2: i32) -> (i32, i32) {
    %c0_i32 = arith.constant 0 : i32
    return %arg2, %arg1 : i32, i32
  }
  func.func @transform_2(%arg0: i32, %arg1: i32, %arg2: i32) -> (i32, i32) {
    %c0_i32 = arith.constant 0 : i32
    %c0_i32_0 = arith.constant 0 : i32
    return %c0_i32, %arg1 : i32, i32
  }
  func.func @transform_3(%arg0: i32, %arg1: i32, %arg2: i32) -> (i32, i32) {
    %c0_i32 = arith.constant 0 : i32
    return %arg0, %arg1 : i32, i32
  }
}

module attributes {stable_mosaic.version = 11 : i64} {
  func.func @_matmul_bias_act_kernel(%arg0: i32, %arg1: i32, %arg2: i32, %arg3: memref<32x2048xbf16, #tpu.memory_space<vmem>>, %arg4: memref<2048x256xbf16, #tpu.memory_space<vmem>>, %arg5: memref<1x256xf32, #tpu.memory_space<vmem>>, %arg6: memref<32x256xbf16, #tpu.memory_space<vmem>>, %arg7: memref<32x256xf32, #tpu.memory_space<vmem>>) attributes {dimension_semantics = [#tpu.dimension_semantics<parallel>, #tpu.dimension_semantics<parallel>, #tpu.dimension_semantics<arbitrary>], iteration_bounds = array<i64: 1, 1, 1>, scalar_prefetch = 0 : i64, scratch_operands = 1 : i64, tpu.core_type = #tpu.core_type<tc>, window_params = [{transform_indices = @transform_0, window_bounds = array<i64: 32, 2048>}, {transform_indices = @transform_1, window_bounds = array<i64: 2048, 256>}, {transform_indices = @transform_2, window_bounds = array<i64: 1, 256>}, {transform_indices = @transform_3, window_bounds = array<i64: 32, 256>}]} {
    %c0_i32 = arith.constant 0 : i32
    %0 = arith.cmpi eq, %arg2, %c0_i32 : i32
    %1 = arith.extui %0 : i1 to i32
    %c0_i32_0 = arith.constant 0 : i32
    %2 = arith.cmpi ne, %1, %c0_i32_0 : i32
    scf.if %2 {
      %cst_10 = arith.constant 0.000000e+00 : f32
      %12 = vector.broadcast %cst_10 : f32 to vector<32x256xf32>
      %c0_11 = arith.constant 0 : index
      %c0_12 = arith.constant 0 : index
      %13 = vector.load %arg7[%c0_11, %c0_12] : memref<32x256xf32, #tpu.memory_space<vmem>>, vector<32x256xf32>
      tpu.vector_store %arg7[%c0_11, %c0_12], %12 {strides = array<i32>} : memref<32x256xf32, #tpu.memory_space<vmem>>, vector<32x256xf32>,
    } else {
    }
    %c0 = arith.constant 0 : index
    %c0_1 = arith.constant 0 : index
    %3 = vector.load %arg7[%c0, %c0_1] : memref<32x256xf32, #tpu.memory_space<vmem>>, vector<32x256xf32>
    %c0_2 = arith.constant 0 : index
    %c0_3 = arith.constant 0 : index
    %4 = vector.load %arg3[%c0_2, %c0_3] : memref<32x2048xbf16, #tpu.memory_space<vmem>>, vector<32x2048xbf16>
    %c0_4 = arith.constant 0 : index
    %c0_5 = arith.constant 0 : index
    %5 = vector.load %arg4[%c0_4, %c0_5] : memref<2048x256xbf16, #tpu.memory_space<vmem>>, vector<2048x256xbf16>
    %cst = arith.constant dense<0.000000e+00> : vector<32x256xf32>
    %6 = tpu.matmul %4, %5, %cst {dimension_numbers = #tpu.dot_dimension_numbers<[1], [0], [0], [1], [0, 0, 1, 1], [], []>} : vector<32x2048xbf16>, vector<2048x256xbf16>, vector<32x256xf32> -> vector<32x256xf32>
    %7 = arith.addf %3, %6 : vector<32x256xf32>
    %c0_6 = arith.constant 0 : index
    %c0_7 = arith.constant 0 : index
    %8 = vector.load %arg7[%c0_6, %c0_7] : memref<32x256xf32, #tpu.memory_space<vmem>>, vector<32x256xf32>
    tpu.vector_store %arg7[%c0_6, %c0_7], %7 {strides = array<i32>} : memref<32x256xf32, #tpu.memory_space<vmem>>, vector<32x256xf32>,
    %c0_i32_8 = arith.constant 0 : i32
    %9 = arith.cmpi eq, %arg2, %c0_i32_8 : i32
    %10 = arith.extui %9 : i1 to i32
    %c0_i32_9 = arith.constant 0 : i32
    %11 = arith.cmpi ne, %10, %c0_i32_9 : i32
    scf.if %11 {
      %c0_10 = arith.constant 0 : index
      %c0_11 = arith.constant 0 : index
      %12 = vector.load %arg7[%c0_10, %c0_11] : memref<32x256xf32, #tpu.memory_space<vmem>>, vector<32x256xf32>
      %c0_12 = arith.constant 0 : index
      %c0_13 = arith.constant 0 : index
      %13 = vector.load %arg5[%c0_12, %c0_13] : memref<1x256xf32, #tpu.memory_space<vmem>>, vector<1x256xf32>
      %14 = vector.broadcast %13 : vector<1x256xf32> to vector<32x256xf32>
      %15 = arith.addf %12, %14 : vector<32x256xf32>
      %cst_14 = arith.constant 0.000000e+00 : f32
      %16 = vector.broadcast %cst_14 : f32 to vector<32x256xf32>
      %17 = arith.maximumf %15, %16 : vector<32x256xf32>
      %18 = arith.truncf %17 : vector<32x256xf32> to vector<32x256xbf16>
      %c0_15 = arith.constant 0 : index
      %c0_16 = arith.constant 0 : index
      %19 = vector.load %arg6[%c0_15, %c0_16] : memref<32x256xbf16, #tpu.memory_space<vmem>>, vector<32x256xbf16>
      tpu.vector_store %arg6[%c0_15, %c0_16], %18 {strides = array<i32>} : memref<32x256xbf16, #tpu.memory_space<vmem>>, vector<32x256xbf16>,
    } else {
    }
    return
  }
  func.func @transform_0(%arg0: i32, %arg1: i32, %arg2: i32) -> (i32, i32) {
    %c0_i32 = arith.constant 0 : i32
    return %arg0, %arg2 : i32, i32
  }
  func.func @transform_1(%arg0: i32, %arg1: i32, %arg2: i32) -> (i32, i32) {
    %c0_i32 = arith.constant 0 : i32
    return %arg2, %arg1 : i32, i32
  }
  func.func @transform_2(%arg0: i32, %arg1: i32, %arg2: i32) -> (i32, i32) {
    %c0_i32 = arith.constant 0 : i32
    %c0_i32_0 = arith.constant 0 : i32
    return %c0_i32, %arg1 : i32, i32
  }
  func.func @transform_3(%arg0: i32, %arg1: i32, %arg2: i32) -> (i32, i32) {
    %c0_i32 = arith.constant 0 : i32
    return %arg0, %arg1 : i32, i32
  }
}

module attributes {stable_mosaic.version = 11 : i64} {
  func.func @_matmul_bias_act_kernel(%arg0: i32, %arg1: i32, %arg2: i32, %arg3: memref<8x2048xbf16, #tpu.memory_space<vmem>>, %arg4: memref<2048x512xbf16, #tpu.memory_space<vmem>>, %arg5: memref<1x512xf32, #tpu.memory_space<vmem>>, %arg6: memref<8x512xbf16, #tpu.memory_space<vmem>>, %arg7: memref<8x512xf32, #tpu.memory_space<vmem>>) attributes {dimension_semantics = [#tpu.dimension_semantics<parallel>, #tpu.dimension_semantics<parallel>, #tpu.dimension_semantics<arbitrary>], iteration_bounds = array<i64: 1, 1, 2>, scalar_prefetch = 0 : i64, scratch_operands = 1 : i64, tpu.core_type = #tpu.core_type<tc>, window_params = [{transform_indices = @transform_0, window_bounds = array<i64: 8, 2048>}, {transform_indices = @transform_1, window_bounds = array<i64: 2048, 512>}, {transform_indices = @transform_2, window_bounds = array<i64: 1, 512>}, {transform_indices = @transform_3, window_bounds = array<i64: 8, 512>}]} {
    %c0_i32 = arith.constant 0 : i32
    %0 = arith.cmpi eq, %arg2, %c0_i32 : i32
    %1 = arith.extui %0 : i1 to i32
    %c0_i32_0 = arith.constant 0 : i32
    %2 = arith.cmpi ne, %1, %c0_i32_0 : i32
    scf.if %2 {
      %cst_9 = arith.constant 0.000000e+00 : f32
      %12 = vector.broadcast %cst_9 : f32 to vector<8x512xf32>
      %c0_10 = arith.constant 0 : index
      %c0_11 = arith.constant 0 : index
      %13 = vector.load %arg7[%c0_10, %c0_11] : memref<8x512xf32, #tpu.memory_space<vmem>>, vector<8x512xf32>
      tpu.vector_store %arg7[%c0_10, %c0_11], %12 {strides = array<i32>} : memref<8x512xf32, #tpu.memory_space<vmem>>, vector<8x512xf32>,
    } else {
    }
    %c0 = arith.constant 0 : index
    %c0_1 = arith.constant 0 : index
    %3 = vector.load %arg7[%c0, %c0_1] : memref<8x512xf32, #tpu.memory_space<vmem>>, vector<8x512xf32>
    %c0_2 = arith.constant 0 : index
    %c0_3 = arith.constant 0 : index
    %4 = vector.load %arg3[%c0_2, %c0_3] : memref<8x2048xbf16, #tpu.memory_space<vmem>>, vector<8x2048xbf16>
    %c0_4 = arith.constant 0 : index
    %c0_5 = arith.constant 0 : index
    %5 = vector.load %arg4[%c0_4, %c0_5] : memref<2048x512xbf16, #tpu.memory_space<vmem>>, vector<2048x512xbf16>
    %cst = arith.constant dense<0.000000e+00> : vector<8x512xf32>
    %6 = tpu.matmul %4, %5, %cst {dimension_numbers = #tpu.dot_dimension_numbers<[1], [0], [0], [1], [0, 0, 1, 1], [], []>} : vector<8x2048xbf16>, vector<2048x512xbf16>, vector<8x512xf32> -> vector<8x512xf32>
    %7 = arith.addf %3, %6 : vector<8x512xf32>
    %c0_6 = arith.constant 0 : index
    %c0_7 = arith.constant 0 : index
    %8 = vector.load %arg7[%c0_6, %c0_7] : memref<8x512xf32, #tpu.memory_space<vmem>>, vector<8x512xf32>
    tpu.vector_store %arg7[%c0_6, %c0_7], %7 {strides = array<i32>} : memref<8x512xf32, #tpu.memory_space<vmem>>, vector<8x512xf32>,
    %c1_i32 = arith.constant 1 : i32
    %9 = arith.cmpi eq, %arg2, %c1_i32 : i32
    %10 = arith.extui %9 : i1 to i32
    %c0_i32_8 = arith.constant 0 : i32
    %11 = arith.cmpi ne, %10, %c0_i32_8 : i32
    scf.if %11 {
      %c0_9 = arith.constant 0 : index
      %c0_10 = arith.constant 0 : index
      %12 = vector.load %arg7[%c0_9, %c0_10] : memref<8x512xf32, #tpu.memory_space<vmem>>, vector<8x512xf32>
      %c0_11 = arith.constant 0 : index
      %c0_12 = arith.constant 0 : index
      %13 = vector.load %arg5[%c0_11, %c0_12] : memref<1x512xf32, #tpu.memory_space<vmem>>, vector<1x512xf32>
      %14 = vector.broadcast %13 : vector<1x512xf32> to vector<8x512xf32>
      %15 = arith.addf %12, %14 : vector<8x512xf32>
      %cst_13 = arith.constant 0.000000e+00 : f32
      %16 = vector.broadcast %cst_13 : f32 to vector<8x512xf32>
      %17 = arith.maximumf %15, %16 : vector<8x512xf32>
      %18 = arith.truncf %17 : vector<8x512xf32> to vector<8x512xbf16>
      %c0_14 = arith.constant 0 : index
      %c0_15 = arith.constant 0 : index
      %19 = vector.load %arg6[%c0_14, %c0_15] : memref<8x512xbf16, #tpu.memory_space<vmem>>, vector<8x512xbf16>
      tpu.vector_store %arg6[%c0_14, %c0_15], %18 {strides = array<i32>} : memref<8x512xbf16, #tpu.memory_space<vmem>>, vector<8x512xbf16>,
    } else {
    }
    return
  }
  func.func @transform_0(%arg0: i32, %arg1: i32, %arg2: i32) -> (i32, i32) {
    %c0_i32 = arith.constant 0 : i32
    return %arg0, %arg2 : i32, i32
  }
  func.func @transform_1(%arg0: i32, %arg1: i32, %arg2: i32) -> (i32, i32) {
    %c0_i32 = arith.constant 0 : i32
    return %arg2, %arg1 : i32, i32
  }
  func.func @transform_2(%arg0: i32, %arg1: i32, %arg2: i32) -> (i32, i32) {
    %c0_i32 = arith.constant 0 : i32
    %c0_i32_0 = arith.constant 0 : i32
    return %c0_i32, %arg1 : i32, i32
  }
  func.func @transform_3(%arg0: i32, %arg1: i32, %arg2: i32) -> (i32, i32) {
    %c0_i32 = arith.constant 0 : i32
    return %arg0, %arg1 : i32, i32
  }
}

module attributes {stable_mosaic.version = 11 : i64} {
  func.func @_matmul_bias_act_kernel(%arg0: i32, %arg1: i32, %arg2: i32, %arg3: memref<8x2048xbf16, #tpu.memory_space<vmem>>, %arg4: memref<2048x128xbf16, #tpu.memory_space<vmem>>, %arg5: memref<1x128xf32, #tpu.memory_space<vmem>>, %arg6: memref<8x128xf32, #tpu.memory_space<vmem>>, %arg7: memref<8x128xf32, #tpu.memory_space<vmem>>) attributes {dimension_semantics = [#tpu.dimension_semantics<parallel>, #tpu.dimension_semantics<parallel>, #tpu.dimension_semantics<arbitrary>], iteration_bounds = array<i64: 1, 1, 1>, scalar_prefetch = 0 : i64, scratch_operands = 1 : i64, tpu.core_type = #tpu.core_type<tc>, window_params = [{transform_indices = @transform_0, window_bounds = array<i64: 8, 2048>}, {transform_indices = @transform_1, window_bounds = array<i64: 2048, 128>}, {transform_indices = @transform_2, window_bounds = array<i64: 1, 128>}, {transform_indices = @transform_3, window_bounds = array<i64: 8, 128>}]} {
    %c0_i32 = arith.constant 0 : i32
    %0 = arith.cmpi eq, %arg2, %c0_i32 : i32
    %1 = arith.extui %0 : i1 to i32
    %c0_i32_0 = arith.constant 0 : i32
    %2 = arith.cmpi ne, %1, %c0_i32_0 : i32
    scf.if %2 {
      %cst_10 = arith.constant 0.000000e+00 : f32
      %12 = vector.broadcast %cst_10 : f32 to vector<8x128xf32>
      %c0_11 = arith.constant 0 : index
      %c0_12 = arith.constant 0 : index
      %13 = vector.load %arg7[%c0_11, %c0_12] : memref<8x128xf32, #tpu.memory_space<vmem>>, vector<8x128xf32>
      tpu.vector_store %arg7[%c0_11, %c0_12], %12 {strides = array<i32>} : memref<8x128xf32, #tpu.memory_space<vmem>>, vector<8x128xf32>,
    } else {
    }
    %c0 = arith.constant 0 : index
    %c0_1 = arith.constant 0 : index
    %3 = vector.load %arg7[%c0, %c0_1] : memref<8x128xf32, #tpu.memory_space<vmem>>, vector<8x128xf32>
    %c0_2 = arith.constant 0 : index
    %c0_3 = arith.constant 0 : index
    %4 = vector.load %arg3[%c0_2, %c0_3] : memref<8x2048xbf16, #tpu.memory_space<vmem>>, vector<8x2048xbf16>
    %c0_4 = arith.constant 0 : index
    %c0_5 = arith.constant 0 : index
    %5 = vector.load %arg4[%c0_4, %c0_5] : memref<2048x128xbf16, #tpu.memory_space<vmem>>, vector<2048x128xbf16>
    %cst = arith.constant dense<0.000000e+00> : vector<8x128xf32>
    %6 = tpu.matmul %4, %5, %cst {dimension_numbers = #tpu.dot_dimension_numbers<[1], [0], [0], [1], [0, 0, 1, 1], [], []>} : vector<8x2048xbf16>, vector<2048x128xbf16>, vector<8x128xf32> -> vector<8x128xf32>
    %7 = arith.addf %3, %6 : vector<8x128xf32>
    %c0_6 = arith.constant 0 : index
    %c0_7 = arith.constant 0 : index
    %8 = vector.load %arg7[%c0_6, %c0_7] : memref<8x128xf32, #tpu.memory_space<vmem>>, vector<8x128xf32>
    tpu.vector_store %arg7[%c0_6, %c0_7], %7 {strides = array<i32>} : memref<8x128xf32, #tpu.memory_space<vmem>>, vector<8x128xf32>,
    %c0_i32_8 = arith.constant 0 : i32
    %9 = arith.cmpi eq, %arg2, %c0_i32_8 : i32
    %10 = arith.extui %9 : i1 to i32
    %c0_i32_9 = arith.constant 0 : i32
    %11 = arith.cmpi ne, %10, %c0_i32_9 : i32
    scf.if %11 {
      %c0_10 = arith.constant 0 : index
      %c0_11 = arith.constant 0 : index
      %12 = vector.load %arg7[%c0_10, %c0_11] : memref<8x128xf32, #tpu.memory_space<vmem>>, vector<8x128xf32>
      %c0_12 = arith.constant 0 : index
      %c0_13 = arith.constant 0 : index
      %13 = vector.load %arg5[%c0_12, %c0_13] : memref<1x128xf32, #tpu.memory_space<vmem>>, vector<1x128xf32>
      %14 = vector.broadcast %13 : vector<1x128xf32> to vector<8x128xf32>
      %15 = arith.addf %12, %14 : vector<8x128xf32>
      %c0_14 = arith.constant 0 : index
      %c0_15 = arith.constant 0 : index
      %16 = vector.load %arg6[%c0_14, %c0_15] : memref<8x128xf32, #tpu.memory_space<vmem>>, vector<8x128xf32>
      tpu.vector_store %arg6[%c0_14, %c0_15], %15 {strides = array<i32>} : memref<8x128xf32, #tpu.memory_space<vmem>>, vector<8x128xf32>,
    } else {
    }
    return
  }
  func.func @transform_0(%arg0: i32, %arg1: i32, %arg2: i32) -> (i32, i32) {
    %c0_i32 = arith.constant 0 : i32
    return %arg0, %arg2 : i32, i32
  }
  func.func @transform_1(%arg0: i32, %arg1: i32, %arg2: i32) -> (i32, i32) {
    %c0_i32 = arith.constant 0 : i32
    return %arg2, %arg1 : i32, i32
  }
  func.func @transform_2(%arg0: i32, %arg1: i32, %arg2: i32) -> (i32, i32) {
    %c0_i32 = arith.constant 0 : i32
    %c0_i32_0 = arith.constant 0 : i32
    return %c0_i32, %arg1 : i32, i32
  }
  func.func @transform_3(%arg0: i32, %arg1: i32, %arg2: i32) -> (i32, i32) {
    %c0_i32 = arith.constant 0 : i32
    return %arg0, %arg1 : i32, i32
  }
}

module attributes {stable_mosaic.version = 11 : i64} {
  func.func @_matmul_bias_act_kernel(%arg0: i32, %arg1: i32, %arg2: i32, %arg3: memref<8x64xbf16, #tpu.memory_space<vmem>>, %arg4: memref<64x512xbf16, #tpu.memory_space<vmem>>, %arg5: memref<1x512xf32, #tpu.memory_space<vmem>>, %arg6: memref<8x512xbf16, #tpu.memory_space<vmem>>, %arg7: memref<8x512xf32, #tpu.memory_space<vmem>>) attributes {dimension_semantics = [#tpu.dimension_semantics<parallel>, #tpu.dimension_semantics<parallel>, #tpu.dimension_semantics<arbitrary>], iteration_bounds = array<i64: 1, 4, 1>, scalar_prefetch = 0 : i64, scratch_operands = 1 : i64, tpu.core_type = #tpu.core_type<tc>, window_params = [{transform_indices = @transform_0, window_bounds = array<i64: 8, 64>}, {transform_indices = @transform_1, window_bounds = array<i64: 64, 512>}, {transform_indices = @transform_2, window_bounds = array<i64: 1, 512>}, {transform_indices = @transform_3, window_bounds = array<i64: 8, 512>}]} {
    %c0_i32 = arith.constant 0 : i32
    %0 = arith.cmpi eq, %arg2, %c0_i32 : i32
    %1 = arith.extui %0 : i1 to i32
    %c0_i32_0 = arith.constant 0 : i32
    %2 = arith.cmpi ne, %1, %c0_i32_0 : i32
    scf.if %2 {
      %cst_10 = arith.constant 0.000000e+00 : f32
      %12 = vector.broadcast %cst_10 : f32 to vector<8x512xf32>
      %c0_11 = arith.constant 0 : index
      %c0_12 = arith.constant 0 : index
      %13 = vector.load %arg7[%c0_11, %c0_12] : memref<8x512xf32, #tpu.memory_space<vmem>>, vector<8x512xf32>
      tpu.vector_store %arg7[%c0_11, %c0_12], %12 {strides = array<i32>} : memref<8x512xf32, #tpu.memory_space<vmem>>, vector<8x512xf32>,
    } else {
    }
    %c0 = arith.constant 0 : index
    %c0_1 = arith.constant 0 : index
    %3 = vector.load %arg7[%c0, %c0_1] : memref<8x512xf32, #tpu.memory_space<vmem>>, vector<8x512xf32>
    %c0_2 = arith.constant 0 : index
    %c0_3 = arith.constant 0 : index
    %4 = vector.load %arg3[%c0_2, %c0_3] : memref<8x64xbf16, #tpu.memory_space<vmem>>, vector<8x64xbf16>
    %c0_4 = arith.constant 0 : index
    %c0_5 = arith.constant 0 : index
    %5 = vector.load %arg4[%c0_4, %c0_5] : memref<64x512xbf16, #tpu.memory_space<vmem>>, vector<64x512xbf16>
    %cst = arith.constant dense<0.000000e+00> : vector<8x512xf32>
    %6 = tpu.matmul %4, %5, %cst {dimension_numbers = #tpu.dot_dimension_numbers<[1], [0], [0], [1], [0, 0, 1, 1], [], []>} : vector<8x64xbf16>, vector<64x512xbf16>, vector<8x512xf32> -> vector<8x512xf32>
    %7 = arith.addf %3, %6 : vector<8x512xf32>
    %c0_6 = arith.constant 0 : index
    %c0_7 = arith.constant 0 : index
    %8 = vector.load %arg7[%c0_6, %c0_7] : memref<8x512xf32, #tpu.memory_space<vmem>>, vector<8x512xf32>
    tpu.vector_store %arg7[%c0_6, %c0_7], %7 {strides = array<i32>} : memref<8x512xf32, #tpu.memory_space<vmem>>, vector<8x512xf32>,
    %c0_i32_8 = arith.constant 0 : i32
    %9 = arith.cmpi eq, %arg2, %c0_i32_8 : i32
    %10 = arith.extui %9 : i1 to i32
    %c0_i32_9 = arith.constant 0 : i32
    %11 = arith.cmpi ne, %10, %c0_i32_9 : i32
    scf.if %11 {
      %c0_10 = arith.constant 0 : index
      %c0_11 = arith.constant 0 : index
      %12 = vector.load %arg7[%c0_10, %c0_11] : memref<8x512xf32, #tpu.memory_space<vmem>>, vector<8x512xf32>
      %c0_12 = arith.constant 0 : index
      %c0_13 = arith.constant 0 : index
      %13 = vector.load %arg5[%c0_12, %c0_13] : memref<1x512xf32, #tpu.memory_space<vmem>>, vector<1x512xf32>
      %14 = vector.broadcast %13 : vector<1x512xf32> to vector<8x512xf32>
      %15 = arith.addf %12, %14 : vector<8x512xf32>
      %16 = arith.truncf %15 : vector<8x512xf32> to vector<8x512xbf16>
      %c0_14 = arith.constant 0 : index
      %c0_15 = arith.constant 0 : index
      %17 = vector.load %arg6[%c0_14, %c0_15] : memref<8x512xbf16, #tpu.memory_space<vmem>>, vector<8x512xbf16>
      tpu.vector_store %arg6[%c0_14, %c0_15], %16 {strides = array<i32>} : memref<8x512xbf16, #tpu.memory_space<vmem>>, vector<8x512xbf16>,
    } else {
    }
    return
  }
  func.func @transform_0(%arg0: i32, %arg1: i32, %arg2: i32) -> (i32, i32) {
    %c0_i32 = arith.constant 0 : i32
    return %arg0, %arg2 : i32, i32
  }
  func.func @transform_1(%arg0: i32, %arg1: i32, %arg2: i32) -> (i32, i32) {
    %c0_i32 = arith.constant 0 : i32
    return %arg2, %arg1 : i32, i32
  }
  func.func @transform_2(%arg0: i32, %arg1: i32, %arg2: i32) -> (i32, i32) {
    %c0_i32 = arith.constant 0 : i32
    %c0_i32_0 = arith.constant 0 : i32
    return %c0_i32, %arg1 : i32, i32
  }
  func.func @transform_3(%arg0: i32, %arg1: i32, %arg2: i32) -> (i32, i32) {
    %c0_i32 = arith.constant 0 : i32
    return %arg0, %arg1 : i32, i32
  }
}

module attributes {stable_mosaic.version = 11 : i64} {
  func.func @_matmul_bias_act_kernel(%arg0: i32, %arg1: i32, %arg2: i32, %arg3: memref<8x2048xbf16, #tpu.memory_space<vmem>>, %arg4: memref<2048x256xbf16, #tpu.memory_space<vmem>>, %arg5: memref<1x256xf32, #tpu.memory_space<vmem>>, %arg6: memref<8x256xbf16, #tpu.memory_space<vmem>>, %arg7: memref<8x256xf32, #tpu.memory_space<vmem>>) attributes {dimension_semantics = [#tpu.dimension_semantics<parallel>, #tpu.dimension_semantics<parallel>, #tpu.dimension_semantics<arbitrary>], iteration_bounds = array<i64: 1, 1, 1>, scalar_prefetch = 0 : i64, scratch_operands = 1 : i64, tpu.core_type = #tpu.core_type<tc>, window_params = [{transform_indices = @transform_0, window_bounds = array<i64: 8, 2048>}, {transform_indices = @transform_1, window_bounds = array<i64: 2048, 256>}, {transform_indices = @transform_2, window_bounds = array<i64: 1, 256>}, {transform_indices = @transform_3, window_bounds = array<i64: 8, 256>}]} {
    %c0_i32 = arith.constant 0 : i32
    %0 = arith.cmpi eq, %arg2, %c0_i32 : i32
    %1 = arith.extui %0 : i1 to i32
    %c0_i32_0 = arith.constant 0 : i32
    %2 = arith.cmpi ne, %1, %c0_i32_0 : i32
    scf.if %2 {
      %cst_10 = arith.constant 0.000000e+00 : f32
      %12 = vector.broadcast %cst_10 : f32 to vector<8x256xf32>
      %c0_11 = arith.constant 0 : index
      %c0_12 = arith.constant 0 : index
      %13 = vector.load %arg7[%c0_11, %c0_12] : memref<8x256xf32, #tpu.memory_space<vmem>>, vector<8x256xf32>
      tpu.vector_store %arg7[%c0_11, %c0_12], %12 {strides = array<i32>} : memref<8x256xf32, #tpu.memory_space<vmem>>, vector<8x256xf32>,
    } else {
    }
    %c0 = arith.constant 0 : index
    %c0_1 = arith.constant 0 : index
    %3 = vector.load %arg7[%c0, %c0_1] : memref<8x256xf32, #tpu.memory_space<vmem>>, vector<8x256xf32>
    %c0_2 = arith.constant 0 : index
    %c0_3 = arith.constant 0 : index
    %4 = vector.load %arg3[%c0_2, %c0_3] : memref<8x2048xbf16, #tpu.memory_space<vmem>>, vector<8x2048xbf16>
    %c0_4 = arith.constant 0 : index
    %c0_5 = arith.constant 0 : index
    %5 = vector.load %arg4[%c0_4, %c0_5] : memref<2048x256xbf16, #tpu.memory_space<vmem>>, vector<2048x256xbf16>
    %cst = arith.constant dense<0.000000e+00> : vector<8x256xf32>
    %6 = tpu.matmul %4, %5, %cst {dimension_numbers = #tpu.dot_dimension_numbers<[1], [0], [0], [1], [0, 0, 1, 1], [], []>} : vector<8x2048xbf16>, vector<2048x256xbf16>, vector<8x256xf32> -> vector<8x256xf32>
    %7 = arith.addf %3, %6 : vector<8x256xf32>
    %c0_6 = arith.constant 0 : index
    %c0_7 = arith.constant 0 : index
    %8 = vector.load %arg7[%c0_6, %c0_7] : memref<8x256xf32, #tpu.memory_space<vmem>>, vector<8x256xf32>
    tpu.vector_store %arg7[%c0_6, %c0_7], %7 {strides = array<i32>} : memref<8x256xf32, #tpu.memory_space<vmem>>, vector<8x256xf32>,
    %c0_i32_8 = arith.constant 0 : i32
    %9 = arith.cmpi eq, %arg2, %c0_i32_8 : i32
    %10 = arith.extui %9 : i1 to i32
    %c0_i32_9 = arith.constant 0 : i32
    %11 = arith.cmpi ne, %10, %c0_i32_9 : i32
    scf.if %11 {
      %c0_10 = arith.constant 0 : index
      %c0_11 = arith.constant 0 : index
      %12 = vector.load %arg7[%c0_10, %c0_11] : memref<8x256xf32, #tpu.memory_space<vmem>>, vector<8x256xf32>
      %c0_12 = arith.constant 0 : index
      %c0_13 = arith.constant 0 : index
      %13 = vector.load %arg5[%c0_12, %c0_13] : memref<1x256xf32, #tpu.memory_space<vmem>>, vector<1x256xf32>
      %14 = vector.broadcast %13 : vector<1x256xf32> to vector<8x256xf32>
      %15 = arith.addf %12, %14 : vector<8x256xf32>
      %cst_14 = arith.constant 0.000000e+00 : f32
      %16 = vector.broadcast %cst_14 : f32 to vector<8x256xf32>
      %17 = arith.maximumf %15, %16 : vector<8x256xf32>
      %18 = arith.truncf %17 : vector<8x256xf32> to vector<8x256xbf16>
      %c0_15 = arith.constant 0 : index
      %c0_16 = arith.constant 0 : index
      %19 = vector.load %arg6[%c0_15, %c0_16] : memref<8x256xbf16, #tpu.memory_space<vmem>>, vector<8x256xbf16>
      tpu.vector_store %arg6[%c0_15, %c0_16], %18 {strides = array<i32>} : memref<8x256xbf16, #tpu.memory_space<vmem>>, vector<8x256xbf16>,
    } else {
    }
    return
  }
  func.func @transform_0(%arg0: i32, %arg1: i32, %arg2: i32) -> (i32, i32) {
    %c0_i32 = arith.constant 0 : i32
    return %arg0, %arg2 : i32, i32
  }
  func.func @transform_1(%arg0: i32, %arg1: i32, %arg2: i32) -> (i32, i32) {
    %c0_i32 = arith.constant 0 : i32
    return %arg2, %arg1 : i32, i32
  }
  func.func @transform_2(%arg0: i32, %arg1: i32, %arg2: i32) -> (i32, i32) {
    %c0_i32 = arith.constant 0 : i32
    %c0_i32_0 = arith.constant 0 : i32
    return %c0_i32, %arg1 : i32, i32
  }
  func.func @transform_3(%arg0: i32, %arg1: i32, %arg2: i32) -> (i32, i32) {
    %c0_i32 = arith.constant 0 : i32
    return %arg0, %arg1 : i32, i32
  }
}

module attributes {stable_mosaic.version = 11 : i64} {
  func.func @_matmul_bias_act_kernel(%arg0: i32, %arg1: i32, %arg2: i32, %arg3: memref<32x1024xbf16, #tpu.memory_space<vmem>>, %arg4: memref<1024x128xbf16, #tpu.memory_space<vmem>>, %arg5: memref<1x128xf32, #tpu.memory_space<vmem>>, %arg6: memref<32x128xbf16, #tpu.memory_space<vmem>>, %arg7: memref<32x128xf32, #tpu.memory_space<vmem>>) attributes {dimension_semantics = [#tpu.dimension_semantics<parallel>, #tpu.dimension_semantics<parallel>, #tpu.dimension_semantics<arbitrary>], iteration_bounds = array<i64: 1, 1, 1>, scalar_prefetch = 0 : i64, scratch_operands = 1 : i64, tpu.core_type = #tpu.core_type<tc>, window_params = [{transform_indices = @transform_0, window_bounds = array<i64: 32, 1024>}, {transform_indices = @transform_1, window_bounds = array<i64: 1024, 128>}, {transform_indices = @transform_2, window_bounds = array<i64: 1, 128>}, {transform_indices = @transform_3, window_bounds = array<i64: 32, 128>}]} {
    %c0_i32 = arith.constant 0 : i32
    %0 = arith.cmpi eq, %arg2, %c0_i32 : i32
    %1 = arith.extui %0 : i1 to i32
    %c0_i32_0 = arith.constant 0 : i32
    %2 = arith.cmpi ne, %1, %c0_i32_0 : i32
    scf.if %2 {
      %cst_10 = arith.constant 0.000000e+00 : f32
      %12 = vector.broadcast %cst_10 : f32 to vector<32x128xf32>
      %c0_11 = arith.constant 0 : index
      %c0_12 = arith.constant 0 : index
      %13 = vector.load %arg7[%c0_11, %c0_12] : memref<32x128xf32, #tpu.memory_space<vmem>>, vector<32x128xf32>
      tpu.vector_store %arg7[%c0_11, %c0_12], %12 {strides = array<i32>} : memref<32x128xf32, #tpu.memory_space<vmem>>, vector<32x128xf32>,
    } else {
    }
    %c0 = arith.constant 0 : index
    %c0_1 = arith.constant 0 : index
    %3 = vector.load %arg7[%c0, %c0_1] : memref<32x128xf32, #tpu.memory_space<vmem>>, vector<32x128xf32>
    %c0_2 = arith.constant 0 : index
    %c0_3 = arith.constant 0 : index
    %4 = vector.load %arg3[%c0_2, %c0_3] : memref<32x1024xbf16, #tpu.memory_space<vmem>>, vector<32x1024xbf16>
    %c0_4 = arith.constant 0 : index
    %c0_5 = arith.constant 0 : index
    %5 = vector.load %arg4[%c0_4, %c0_5] : memref<1024x128xbf16, #tpu.memory_space<vmem>>, vector<1024x128xbf16>
    %cst = arith.constant dense<0.000000e+00> : vector<32x128xf32>
    %6 = tpu.matmul %4, %5, %cst {dimension_numbers = #tpu.dot_dimension_numbers<[1], [0], [0], [1], [0, 0, 1, 1], [], []>} : vector<32x1024xbf16>, vector<1024x128xbf16>, vector<32x128xf32> -> vector<32x128xf32>
    %7 = arith.addf %3, %6 : vector<32x128xf32>
    %c0_6 = arith.constant 0 : index
    %c0_7 = arith.constant 0 : index
    %8 = vector.load %arg7[%c0_6, %c0_7] : memref<32x128xf32, #tpu.memory_space<vmem>>, vector<32x128xf32>
    tpu.vector_store %arg7[%c0_6, %c0_7], %7 {strides = array<i32>} : memref<32x128xf32, #tpu.memory_space<vmem>>, vector<32x128xf32>,
    %c0_i32_8 = arith.constant 0 : i32
    %9 = arith.cmpi eq, %arg2, %c0_i32_8 : i32
    %10 = arith.extui %9 : i1 to i32
    %c0_i32_9 = arith.constant 0 : i32
    %11 = arith.cmpi ne, %10, %c0_i32_9 : i32
    scf.if %11 {
      %c0_10 = arith.constant 0 : index
      %c0_11 = arith.constant 0 : index
      %12 = vector.load %arg7[%c0_10, %c0_11] : memref<32x128xf32, #tpu.memory_space<vmem>>, vector<32x128xf32>
      %c0_12 = arith.constant 0 : index
      %c0_13 = arith.constant 0 : index
      %13 = vector.load %arg5[%c0_12, %c0_13] : memref<1x128xf32, #tpu.memory_space<vmem>>, vector<1x128xf32>
      %14 = vector.broadcast %13 : vector<1x128xf32> to vector<32x128xf32>
      %15 = arith.addf %12, %14 : vector<32x128xf32>
      %cst_14 = arith.constant 0.000000e+00 : f32
      %16 = vector.broadcast %cst_14 : f32 to vector<32x128xf32>
      %17 = arith.maximumf %15, %16 : vector<32x128xf32>
      %18 = arith.truncf %17 : vector<32x128xf32> to vector<32x128xbf16>
      %c0_15 = arith.constant 0 : index
      %c0_16 = arith.constant 0 : index
      %19 = vector.load %arg6[%c0_15, %c0_16] : memref<32x128xbf16, #tpu.memory_space<vmem>>, vector<32x128xbf16>
      tpu.vector_store %arg6[%c0_15, %c0_16], %18 {strides = array<i32>} : memref<32x128xbf16, #tpu.memory_space<vmem>>, vector<32x128xbf16>,
    } else {
    }
    return
  }
  func.func @transform_0(%arg0: i32, %arg1: i32, %arg2: i32) -> (i32, i32) {
    %c0_i32 = arith.constant 0 : i32
    return %arg0, %arg2 : i32, i32
  }
  func.func @transform_1(%arg0: i32, %arg1: i32, %arg2: i32) -> (i32, i32) {
    %c0_i32 = arith.constant 0 : i32
    return %arg2, %arg1 : i32, i32
  }
  func.func @transform_2(%arg0: i32, %arg1: i32, %arg2: i32) -> (i32, i32) {
    %c0_i32 = arith.constant 0 : i32
    %c0_i32_0 = arith.constant 0 : i32
    return %c0_i32, %arg1 : i32, i32
  }
  func.func @transform_3(%arg0: i32, %arg1: i32, %arg2: i32) -> (i32, i32) {
    %c0_i32 = arith.constant 0 : i32
    return %arg0, %arg1 : i32, i32
  }
}

module attributes {stable_mosaic.version = 11 : i64} {
  func.func @_matmul_bias_act_kernel(%arg0: i32, %arg1: i32, %arg2: i32, %arg3: memref<128x512xbf16, #tpu.memory_space<vmem>>, %arg4: memref<512x64xbf16, #tpu.memory_space<vmem>>, %arg5: memref<1x64xf32, #tpu.memory_space<vmem>>, %arg6: memref<128x64xbf16, #tpu.memory_space<vmem>>, %arg7: memref<128x64xf32, #tpu.memory_space<vmem>>) attributes {dimension_semantics = [#tpu.dimension_semantics<parallel>, #tpu.dimension_semantics<parallel>, #tpu.dimension_semantics<arbitrary>], iteration_bounds = array<i64: 1, 1, 1>, scalar_prefetch = 0 : i64, scratch_operands = 1 : i64, tpu.core_type = #tpu.core_type<tc>, window_params = [{transform_indices = @transform_0, window_bounds = array<i64: 128, 512>}, {transform_indices = @transform_1, window_bounds = array<i64: 512, 64>}, {transform_indices = @transform_2, window_bounds = array<i64: 1, 64>}, {transform_indices = @transform_3, window_bounds = array<i64: 128, 64>}]} {
    %c0_i32 = arith.constant 0 : i32
    %0 = arith.cmpi eq, %arg2, %c0_i32 : i32
    %1 = arith.extui %0 : i1 to i32
    %c0_i32_0 = arith.constant 0 : i32
    %2 = arith.cmpi ne, %1, %c0_i32_0 : i32
    scf.if %2 {
      %cst_10 = arith.constant 0.000000e+00 : f32
      %12 = vector.broadcast %cst_10 : f32 to vector<128x64xf32>
      %c0_11 = arith.constant 0 : index
      %c0_12 = arith.constant 0 : index
      %13 = vector.load %arg7[%c0_11, %c0_12] : memref<128x64xf32, #tpu.memory_space<vmem>>, vector<128x64xf32>
      tpu.vector_store %arg7[%c0_11, %c0_12], %12 {strides = array<i32>} : memref<128x64xf32, #tpu.memory_space<vmem>>, vector<128x64xf32>,
    } else {
    }
    %c0 = arith.constant 0 : index
    %c0_1 = arith.constant 0 : index
    %3 = vector.load %arg7[%c0, %c0_1] : memref<128x64xf32, #tpu.memory_space<vmem>>, vector<128x64xf32>
    %c0_2 = arith.constant 0 : index
    %c0_3 = arith.constant 0 : index
    %4 = vector.load %arg3[%c0_2, %c0_3] : memref<128x512xbf16, #tpu.memory_space<vmem>>, vector<128x512xbf16>
    %c0_4 = arith.constant 0 : index
    %c0_5 = arith.constant 0 : index
    %5 = vector.load %arg4[%c0_4, %c0_5] : memref<512x64xbf16, #tpu.memory_space<vmem>>, vector<512x64xbf16>
    %cst = arith.constant dense<0.000000e+00> : vector<128x64xf32>
    %6 = tpu.matmul %4, %5, %cst {dimension_numbers = #tpu.dot_dimension_numbers<[1], [0], [0], [1], [0, 0, 1, 1], [], []>} : vector<128x512xbf16>, vector<512x64xbf16>, vector<128x64xf32> -> vector<128x64xf32>
    %7 = arith.addf %3, %6 : vector<128x64xf32>
    %c0_6 = arith.constant 0 : index
    %c0_7 = arith.constant 0 : index
    %8 = vector.load %arg7[%c0_6, %c0_7] : memref<128x64xf32, #tpu.memory_space<vmem>>, vector<128x64xf32>
    tpu.vector_store %arg7[%c0_6, %c0_7], %7 {strides = array<i32>} : memref<128x64xf32, #tpu.memory_space<vmem>>, vector<128x64xf32>,
    %c0_i32_8 = arith.constant 0 : i32
    %9 = arith.cmpi eq, %arg2, %c0_i32_8 : i32
    %10 = arith.extui %9 : i1 to i32
    %c0_i32_9 = arith.constant 0 : i32
    %11 = arith.cmpi ne, %10, %c0_i32_9 : i32
    scf.if %11 {
      %c0_10 = arith.constant 0 : index
      %c0_11 = arith.constant 0 : index
      %12 = vector.load %arg7[%c0_10, %c0_11] : memref<128x64xf32, #tpu.memory_space<vmem>>, vector<128x64xf32>
      %c0_12 = arith.constant 0 : index
      %c0_13 = arith.constant 0 : index
      %13 = vector.load %arg5[%c0_12, %c0_13] : memref<1x64xf32, #tpu.memory_space<vmem>>, vector<1x64xf32>
      %14 = vector.broadcast %13 : vector<1x64xf32> to vector<128x64xf32>
      %15 = arith.addf %12, %14 : vector<128x64xf32>
      %cst_14 = arith.constant 0.000000e+00 : f32
      %16 = vector.broadcast %cst_14 : f32 to vector<128x64xf32>
      %17 = arith.maximumf %15, %16 : vector<128x64xf32>
      %18 = arith.truncf %17 : vector<128x64xf32> to vector<128x64xbf16>
      %c0_15 = arith.constant 0 : index
      %c0_16 = arith.constant 0 : index
      %19 = vector.load %arg6[%c0_15, %c0_16] : memref<128x64xbf16, #tpu.memory_space<vmem>>, vector<128x64xbf16>
      tpu.vector_store %arg6[%c0_15, %c0_16], %18 {strides = array<i32>} : memref<128x64xbf16, #tpu.memory_space<vmem>>, vector<128x64xbf16>,
    } else {
    }
    return
  }
  func.func @transform_0(%arg0: i32, %arg1: i32, %arg2: i32) -> (i32, i32) {
    %c0_i32 = arith.constant 0 : i32
    return %arg0, %arg2 : i32, i32
  }
  func.func @transform_1(%arg0: i32, %arg1: i32, %arg2: i32) -> (i32, i32) {
    %c0_i32 = arith.constant 0 : i32
    return %arg2, %arg1 : i32, i32
  }
  func.func @transform_2(%arg0: i32, %arg1: i32, %arg2: i32) -> (i32, i32) {
    %c0_i32 = arith.constant 0 : i32
    %c0_i32_0 = arith.constant 0 : i32
    return %c0_i32, %arg1 : i32, i32
  }
  func.func @transform_3(%arg0: i32, %arg1: i32, %arg2: i32) -> (i32, i32) {
    %c0_i32 = arith.constant 0 : i32
    return %arg0, %arg1 : i32, i32
  }
}

module attributes {stable_mosaic.version = 11 : i64} {
  func.func @_matmul_bias_act_kernel(%arg0: i32, %arg1: i32, %arg2: i32, %arg3: memref<512x256xbf16, #tpu.memory_space<vmem>>, %arg4: memref<256x3xbf16, #tpu.memory_space<vmem>>, %arg5: memref<1x3xf32, #tpu.memory_space<vmem>>, %arg6: memref<512x3xf32, #tpu.memory_space<vmem>>, %arg7: memref<512x3xf32, #tpu.memory_space<vmem>>) attributes {dimension_semantics = [#tpu.dimension_semantics<parallel>, #tpu.dimension_semantics<parallel>, #tpu.dimension_semantics<arbitrary>], iteration_bounds = array<i64: 1, 1, 1>, scalar_prefetch = 0 : i64, scratch_operands = 1 : i64, tpu.core_type = #tpu.core_type<tc>, window_params = [{transform_indices = @transform_0, window_bounds = array<i64: 512, 256>}, {transform_indices = @transform_1, window_bounds = array<i64: 256, 3>}, {transform_indices = @transform_2, window_bounds = array<i64: 1, 3>}, {transform_indices = @transform_3, window_bounds = array<i64: 512, 3>}]} {
    %c0_i32 = arith.constant 0 : i32
    %0 = arith.cmpi eq, %arg2, %c0_i32 : i32
    %1 = arith.extui %0 : i1 to i32
    %c0_i32_0 = arith.constant 0 : i32
    %2 = arith.cmpi ne, %1, %c0_i32_0 : i32
    scf.if %2 {
      %cst_10 = arith.constant 0.000000e+00 : f32
      %12 = vector.broadcast %cst_10 : f32 to vector<512x3xf32>
      %c0_11 = arith.constant 0 : index
      %c0_12 = arith.constant 0 : index
      %13 = vector.load %arg7[%c0_11, %c0_12] : memref<512x3xf32, #tpu.memory_space<vmem>>, vector<512x3xf32>
      tpu.vector_store %arg7[%c0_11, %c0_12], %12 {strides = array<i32>} : memref<512x3xf32, #tpu.memory_space<vmem>>, vector<512x3xf32>,
    } else {
    }
    %c0 = arith.constant 0 : index
    %c0_1 = arith.constant 0 : index
    %3 = vector.load %arg7[%c0, %c0_1] : memref<512x3xf32, #tpu.memory_space<vmem>>, vector<512x3xf32>
    %c0_2 = arith.constant 0 : index
    %c0_3 = arith.constant 0 : index
    %4 = vector.load %arg3[%c0_2, %c0_3] : memref<512x256xbf16, #tpu.memory_space<vmem>>, vector<512x256xbf16>
    %c0_4 = arith.constant 0 : index
    %c0_5 = arith.constant 0 : index
    %5 = vector.load %arg4[%c0_4, %c0_5] : memref<256x3xbf16, #tpu.memory_space<vmem>>, vector<256x3xbf16>
    %cst = arith.constant dense<0.000000e+00> : vector<512x3xf32>
    %6 = tpu.matmul %4, %5, %cst {dimension_numbers = #tpu.dot_dimension_numbers<[1], [0], [0], [1], [0, 0, 1, 1], [], []>} : vector<512x256xbf16>, vector<256x3xbf16>, vector<512x3xf32> -> vector<512x3xf32>
    %7 = arith.addf %3, %6 : vector<512x3xf32>
    %c0_6 = arith.constant 0 : index
    %c0_7 = arith.constant 0 : index
    %8 = vector.load %arg7[%c0_6, %c0_7] : memref<512x3xf32, #tpu.memory_space<vmem>>, vector<512x3xf32>
    tpu.vector_store %arg7[%c0_6, %c0_7], %7 {strides = array<i32>} : memref<512x3xf32, #tpu.memory_space<vmem>>, vector<512x3xf32>,
    %c0_i32_8 = arith.constant 0 : i32
    %9 = arith.cmpi eq, %arg2, %c0_i32_8 : i32
    %10 = arith.extui %9 : i1 to i32
    %c0_i32_9 = arith.constant 0 : i32
    %11 = arith.cmpi ne, %10, %c0_i32_9 : i32
    scf.if %11 {
      %c0_10 = arith.constant 0 : index
      %c0_11 = arith.constant 0 : index
      %12 = vector.load %arg7[%c0_10, %c0_11] : memref<512x3xf32, #tpu.memory_space<vmem>>, vector<512x3xf32>
      %c0_12 = arith.constant 0 : index
      %c0_13 = arith.constant 0 : index
      %13 = vector.load %arg5[%c0_12, %c0_13] : memref<1x3xf32, #tpu.memory_space<vmem>>, vector<1x3xf32>
      %14 = vector.broadcast %13 : vector<1x3xf32> to vector<512x3xf32>
      %15 = arith.addf %12, %14 : vector<512x3xf32>
      %16 = arith.negf %15 : vector<512x3xf32>
      %17 = math.exp %16 : vector<512x3xf32>
      %cst_14 = arith.constant 1.000000e+00 : f32
      %18 = vector.broadcast %cst_14 : f32 to vector<512x3xf32>
      %19 = arith.addf %18, %17 : vector<512x3xf32>
      %20 = arith.divf %18, %19 : vector<512x3xf32>
      %c0_15 = arith.constant 0 : index
      %c0_16 = arith.constant 0 : index
      %21 = vector.load %arg6[%c0_15, %c0_16] : memref<512x3xf32, #tpu.memory_space<vmem>>, vector<512x3xf32>
      tpu.vector_store %arg6[%c0_15, %c0_16], %20 {strides = array<i32>} : memref<512x3xf32, #tpu.memory_space<vmem>>, vector<512x3xf32>,
    } else {
    }
    return
  }
  func.func @transform_0(%arg0: i32, %arg1: i32, %arg2: i32) -> (i32, i32) {
    %c0_i32 = arith.constant 0 : i32
    return %arg0, %arg2 : i32, i32
  }
  func.func @transform_1(%arg0: i32, %arg1: i32, %arg2: i32) -> (i32, i32) {
    %c0_i32 = arith.constant 0 : i32
    return %arg2, %arg1 : i32, i32
  }
  func.func @transform_2(%arg0: i32, %arg1: i32, %arg2: i32) -> (i32, i32) {
    %c0_i32 = arith.constant 0 : i32
    %c0_i32_0 = arith.constant 0 : i32
    return %c0_i32, %arg1 : i32, i32
  }
  func.func @transform_3(%arg0: i32, %arg1: i32, %arg2: i32) -> (i32, i32) {
    %c0_i32 = arith.constant 0 : i32
    return %arg0, %arg1 : i32, i32
  }
}

</mosaic_0001>

<bundles_post_ra>
// kernel: vae_forward.22
= control target key start
LH: loop header
LB: loop body
LE: loop exit
PB: predicated region body
PF: predicated region fallthrough
CT: control target
= control target key end

     0   :  { %8 = vsyncpa [#allocation4], 0  ;;  %s2525_s0 = inlined_call_operand.vmem [shape: bf16[512,48], index: 0, kind: input, shape index: {}]   ;;  %s2526_s1 = inlined_call_operand.hbm [shape: bf16[48,64], index: 1, kind: input, shape index: {}]   ;;  %s2527_s2 = inlined_call_operand.hbm [shape: f32[1,64], index: 2, kind: input, shape index: {}]   ;;  %s2528_s3 = inlined_call_operand.vmem [shape: bf16[512,64], index: 3, kind: output, shape index: {}]  }
   0x1   :  { %9 = vsyncpa [#allocation6], 0  ;;  %s1858_s12 = smov [#allocation3]  }
   0x2   :  { %s17_s13 = sshll.u32 %s1858_s12, 4  ;;  %s18_s13 = int_to_ptr.vmem [resolvable:$true] %s17_s13 }
   0x3   :  { %s1822_s14 = scalar_lea.vmem %s18_s13, 384  ;;  %p1827_p1 = scmp.lt.s32.totalorder %s18_s13, %s18_s13 }
   0x4   :  { %p1823_p0 = scmp.ne.s32.totalorder %s18_s13, %s1822_s14  ;;  %p1828_p2 = scmp.lt.s32.totalorder %s1822_s14, %s1822_s14 }
   0x6   :  { %p1829_p3 = por %p1828_p2, %p1827_p1 }
   0x8   :  { %p1830_p4 = pnand %p1829_p3, %p1823_p0 }
   0xa   :  { %1833 = shalt.err (!%p1830_p4)
}
   0xb   :  { %s1859_s15 = smov 64   ;;  %s1860_s16 = smov 4  }
   0xc   :  { %23 = dma.hbm_to_vmem [thread:$0]  %s2526_s1, 384, %s18_s13, [#allocation4], %s1859_s15, %s1859_s15, %s1860_s16  }
   0xd   :  { %s1861_s19 = smov [#allocation5]  }
   0xe   :  { %s30_s20 = sshll.u32 %s1861_s19, 4  ;;  %s31_s20 = int_to_ptr.vmem [resolvable:$true] %s30_s20 }
   0xf   :  { %s1842_s21 = scalar_lea.vmem %s31_s20, 16  ;;  %s1846_s22 = scalar_lea.vmem %s31_s20, 32 }
  0x10   :  { %p1843_p5 = scmp.ne.s32.totalorder %s31_s20, %s1842_s21  ;;  %p1847_p6 = scmp.lt.s32.totalorder %s31_s20, %s31_s20 }
  0x11   :  { %p1848_p7 = scmp.lt.s32.totalorder %s1846_s22, %s1842_s21 }
  0x13   :  { %p1849_p8 = por %p1848_p7, %p1847_p6 }
  0x15   :  { %p1850_p9 = pnand %p1849_p8, %p1843_p5 }
  0x17   :  { %1853 = shalt.err (!%p1850_p9)
}
  0x18   :  { %33 = dma.hbm_to_vmem [thread:$0]  %s2527_s2, 16, %s31_s20, [#allocation6]  }
  0x19   :  { %1854 = dma.done.wait [#allocation4], 384  }
  0x1a   :  { %1855 = vsyncadd [#allocation4], 4294966912 }
  0x1b   :  { %1856 = dma.done.wait [#allocation6], 16  }
  0x1c   :  { %1857 = vsyncadd [#allocation6], 4294967280  ;;  %vm45_vm0 = vcmask 523264   ;;  %v1862_v0 = vmov 0.0   ;;  %v1778_v1 = vld [vmem:[#allocation3 + $0x10] sm:$0xff]   ;;  %v1779_v2 = vld [vmem:[#allocation3 + $0x8] sm:$0xff]  }
  0x1d   :  { %48 = vst.msk [vmem:[#allocation2 + $0x10] sm:$0xff] %vm45_vm0, %v1862_v0  ;;  %46 = vst.msk [vmem:[#allocation2] sm:$0xff] %vm45_vm0, %v1862_v0  ;;  %1697 = vmatprep.subr.bf16.mxu0 %v1778_v1  ;;  %1767 = vmatprep.subr.bf16.mxu1 %v1778_v1  ;;  %v1780_v3 = vld [vmem:[#allocation3] sm:$0xff]   ;;  %vm422_vm1 = vcmask 392192   ;;  %v1783_v6 = vld [vmem:[%s2525_s0 + $0x8] sm:$0xff]   ;;  %vm1395_vm2 = vcmask 519168  }
  0x1e   :  { %47 = vst.msk [vmem:[#allocation2 + $0x8] sm:$0xff] %vm45_vm0, %v1862_v0  ;;  %49 = vst.msk [vmem:[#allocation2 + $0x18] sm:$0xff] %vm45_vm0, %v1862_v0  ;;  %1698 = vmatpush3.bf16.msra.mxu0 %v1778_v1  ;;  %1770 = vmatpush3.bf16.msra.mxu1 %v1778_v1  ;;  %v1781_v4 = vld [vmem:[%s2525_s0] sm:$0xff]   ;;  %v1784_v7 = vld [vmem:[%s2525_s0 + $0x88] sm:$0xff]  }
  0x1f   :  { %50 = vst.msk [vmem:[#allocation2 + $0x20] sm:$0xff] %vm45_vm0, %v1862_v0  ;;  %51 = vst.msk [vmem:[#allocation2 + $0x28] sm:$0xff] %vm45_vm0, %v1862_v0  ;;  %1699 = vmatprep.subr.bf16.mxu0 %v1779_v2  ;;  %1768 = vmatprep.subr.bf16.mxu1 %v1779_v2  ;;  %v1782_v5 = vld [vmem:[%s2525_s0 + $0x80] sm:$0xff]   ;;  %v1785_v8 = vld [vmem:[%s2525_s0 + $0x10] sm:$0xff]  }
  0x20   :  { %52 = vst.msk [vmem:[#allocation2 + $0x30] sm:$0xff] %vm45_vm0, %v1862_v0  ;;  %53 = vst.msk [vmem:[#allocation2 + $0x38] sm:$0xff] %vm45_vm0, %v1862_v0  ;;  %1703 = vmatprep.mubr.msk.bf16.mxu0 %vm422_vm1, %v1781_v4  ;;  %1735 = vmatprep.mubr.msk.bf16.mxu1 %vm422_vm1, %v1782_v5  ;;  %v1786_v9 = vld [vmem:[%s2525_s0 + $0x90] sm:$0xff]   ;;  %v1787_v10 = vld [vmem:[%s2525_s0 + $0x18] sm:$0xff]  }
  0x21   :  { %54 = vst.msk [vmem:[#allocation2 + $0x40] sm:$0xff] %vm45_vm0, %v1862_v0  ;;  %55 = vst.msk [vmem:[#allocation2 + $0x48] sm:$0xff] %vm45_vm0, %v1862_v0  ;;  %v1788_v11 = vld [vmem:[%s2525_s0 + $0x98] sm:$0xff]   ;;  %v1789_v12 = vld [vmem:[%s2525_s0 + $0x20] sm:$0xff]  }
  0x22   :  { %56 = vst.msk [vmem:[#allocation2 + $0x50] sm:$0xff] %vm45_vm0, %v1862_v0  ;;  %57 = vst.msk [vmem:[#allocation2 + $0x58] sm:$0xff] %vm45_vm0, %v1862_v0  ;;  %1700 = vmatpush3.bf16.msra.mxu0 %v1779_v2  ;;  %1771 = vmatpush3.bf16.msra.mxu1 %v1779_v2  ;;  %v1790_v13 = vld [vmem:[%s2525_s0 + $0xa0] sm:$0xff]   ;;  %v1791_v14 = vld [vmem:[%s2525_s0 + $0x28] sm:$0xff]  }
  0x23   :  { %58 = vst.msk [vmem:[#allocation2 + $0x60] sm:$0xff] %vm45_vm0, %v1862_v0  ;;  %59 = vst.msk [vmem:[#allocation2 + $0x68] sm:$0xff] %vm45_vm0, %v1862_v0  ;;  %1701 = vmatprep.subr.bf16.mxu0 %v1780_v3  ;;  %1769 = vmatprep.subr.bf16.mxu1 %v1780_v3  ;;  %v1792_v15 = vld [vmem:[%s2525_s0 + $0xa8] sm:$0xff]   ;;  %v1793_v16 = vld [vmem:[%s2525_s0 + $0x30] sm:$0xff]  }
  0x24   :  { %60 = vst.msk [vmem:[#allocation2 + $0x70] sm:$0xff] %vm45_vm0, %v1862_v0  ;;  %61 = vst.msk [vmem:[#allocation2 + $0x78] sm:$0xff] %vm45_vm0, %v1862_v0  ;;  %v1794_v17 = vld [vmem:[%s2525_s0 + $0xb0] sm:$0xff]   ;;  %v1795_v18 = vld [vmem:[%s2525_s0 + $0x38] sm:$0xff]  }
  0x25   :  { %62 = vst.msk [vmem:[#allocation2 + $0x80] sm:$0xff] %vm45_vm0, %v1862_v0  ;;  %63 = vst.msk [vmem:[#allocation2 + $0x88] sm:$0xff] %vm45_vm0, %v1862_v0  ;;  %v1796_v19 = vld [vmem:[%s2525_s0 + $0xb8] sm:$0xff]   ;;  %v1797_v20 = vld [vmem:[%s2525_s0 + $0x40] sm:$0xff]  }
  0x26   :  { %64 = vst.msk [vmem:[#allocation2 + $0x90] sm:$0xff] %vm45_vm0, %v1862_v0  ;;  %65 = vst.msk [vmem:[#allocation2 + $0x98] sm:$0xff] %vm45_vm0, %v1862_v0  ;;  %1702 = vmatpush3.bf16.msra.mxu0 %v1780_v3  ;;  %1772 = vmatpush3.bf16.msra.mxu1 %v1780_v3  ;;  %v1798_v21 = vld [vmem:[%s2525_s0 + $0xc0] sm:$0xff]   ;;  %v1799_v22 = vld [vmem:[%s2525_s0 + $0x48] sm:$0xff]  }
  0x27   :  { %66 = vst.msk [vmem:[#allocation2 + $0xa0] sm:$0xff] %vm45_vm0, %v1862_v0  ;;  %67 = vst.msk [vmem:[#allocation2 + $0xa8] sm:$0xff] %vm45_vm0, %v1862_v0  ;;  %v1800_v23 = vld [vmem:[%s2525_s0 + $0xc8] sm:$0xff]   ;;  %v1801_v24 = vld [vmem:[%s2525_s0 + $0x50] sm:$0xff]  }
  0x28   :  { %68 = vst.msk [vmem:[#allocation2 + $0xb0] sm:$0xff] %vm45_vm0, %v1862_v0  ;;  %69 = vst.msk [vmem:[#allocation2 + $0xb8] sm:$0xff] %vm45_vm0, %v1862_v0  ;;  %v1802_v25 = vld [vmem:[%s2525_s0 + $0xd0] sm:$0xff]   ;;  %v1803_v26 = vld [vmem:[%s2525_s0 + $0x58] sm:$0xff]  }
  0x29   :  { %70 = vst.msk [vmem:[#allocation2 + $0xc0] sm:$0xff] %vm45_vm0, %v1862_v0  ;;  %71 = vst.msk [vmem:[#allocation2 + $0xc8] sm:$0xff] %vm45_vm0, %v1862_v0  ;;  %1704 = vmatmul.mubr.msk.bf16.vlgmr.msra.gmra.mxu0 %vm422_vm1, %v1783_v6  ;;  %1736 = vmatmul.mubr.msk.bf16.vlgmr.msra.gmra.mxu1 %vm422_vm1, %v1784_v7  ;;  %v1804_v27 = vld [vmem:[%s2525_s0 + $0xd8] sm:$0xff]   ;;  %v1805_v28 = vld [vmem:[%s2525_s0 + $0x60] sm:$0xff]  }
  0x2a   :  { %72 = vst.msk [vmem:[#allocation2 + $0xd0] sm:$0xff] %vm45_vm0, %v1862_v0  ;;  %73 = vst.msk [vmem:[#allocation2 + $0xd8] sm:$0xff] %vm45_vm0, %v1862_v0  ;;  %1707 = vmatprep.mubr.msk.bf16.mxu0 %vm422_vm1, %v1785_v8  ;;  %1739 = vmatprep.mubr.msk.bf16.mxu1 %vm422_vm1, %v1786_v9  ;;  %v1806_v29 = vld [vmem:[%s2525_s0 + $0xe0] sm:$0xff]   ;;  %v1807_v30 = vld [vmem:[%s2525_s0 + $0x68] sm:$0xff]  }
  0x2b   :  { %74 = vst.msk [vmem:[#allocation2 + $0xe0] sm:$0xff] %vm45_vm0, %v1862_v0  ;;  %75 = vst.msk [vmem:[#allocation2 + $0xe8] sm:$0xff] %vm45_vm0, %v1862_v0  ;;  %v1808_v31 = vld [vmem:[%s2525_s0 + $0xe8] sm:$0xff]   ;;  %v1809_v32 = vld [vmem:[%s2525_s0 + $0x70] sm:$0xff]  }
  0x2c   :  { %76 = vst.msk [vmem:[#allocation2 + $0xf0] sm:$0xff] %vm45_vm0, %v1862_v0  ;;  %77 = vst.msk [vmem:[#allocation2 + $0xf8] sm:$0xff] %vm45_vm0, %v1862_v0  ;;  %v1810_v33 = vld [vmem:[%s2525_s0 + $0xf0] sm:$0xff]   ;;  %v1811_v34 = vld [vmem:[%s2525_s0 + $0x78] sm:$0xff]  }
  0x2d   :  { %78 = vst.msk [vmem:[#allocation2 + $0x100] sm:$0xff] %vm45_vm0, %v1862_v0  ;;  %79 = vst.msk [vmem:[#allocation2 + $0x108] sm:$0xff] %vm45_vm0, %v1862_v0  ;;  %v1812_v35 = vld [vmem:[%s2525_s0 + $0xf8] sm:$0xff]   ;;  %v112_v36 = vld [vmem:[#allocation2 + $0x10] sm:$0xff] }
  0x2e   :  { %80 = vst.msk [vmem:[#allocation2 + $0x110] sm:$0xff] %vm45_vm0, %v1862_v0  ;;  %81 = vst.msk [vmem:[#allocation2 + $0x118] sm:$0xff] %vm45_vm0, %v1862_v0  ;;  %v110_v40 = vld [vmem:[#allocation2] sm:$0xff]  ;;  %v113_v46 = vld [vmem:[#allocation2 + $0x18] sm:$0xff] }
  0x2f   :  { %82 = vst.msk [vmem:[#allocation2 + $0x120] sm:$0xff] %vm45_vm0, %v1862_v0  ;;  %83 = vst.msk [vmem:[#allocation2 + $0x128] sm:$0xff] %vm45_vm0, %v1862_v0  ;;  %v111_v52 = vld [vmem:[#allocation2 + $0x8] sm:$0xff]  ;;  %v116_v58 = vld [vmem:[#allocation2 + $0x30] sm:$0xff] }
  0x30   :  { %84 = vst.msk [vmem:[#allocation2 + $0x130] sm:$0xff] %vm45_vm0, %v1862_v0  ;;  %85 = vst.msk [vmem:[#allocation2 + $0x138] sm:$0xff] %vm45_vm0, %v1862_v0  ;;  %v2151_v62 = vld [vmem:[#allocation5] ss:$0 sm:$0xff]  ;;  %v114_v1 = vld [vmem:[#allocation2 + $0x20] sm:$0xff] }
  0x31   :  { %86 = vst.msk [vmem:[#allocation2 + $0x140] sm:$0xff] %vm45_vm0, %v1862_v0  ;;  %87 = vst.msk [vmem:[#allocation2 + $0x148] sm:$0xff] %vm45_vm0, %v1862_v0  ;;  %1708 = vmatmul.mubr.msk.bf16.gmra.mxu0 %vm422_vm1, %v1787_v10  ;;  %1740 = vmatmul.mubr.msk.bf16.gmra.mxu1 %vm422_vm1, %v1788_v11 }
  0x32   :  { %88 = vst.msk [vmem:[#allocation2 + $0x150] sm:$0xff] %vm45_vm0, %v1862_v0  ;;  %89 = vst.msk [vmem:[#allocation2 + $0x158] sm:$0xff] %vm45_vm0, %v1862_v0  ;;  %1711 = vmatprep.mubr.msk.bf16.mxu0 %vm422_vm1, %v1789_v12  ;;  %1743 = vmatprep.mubr.msk.bf16.mxu1 %vm422_vm1, %v1790_v13  ;;  %v117_v13 = vld [vmem:[#allocation2 + $0x38] sm:$0xff] }
  0x33   :  { %90 = vst.msk [vmem:[#allocation2 + $0x160] sm:$0xff] %vm45_vm0, %v1862_v0  ;;  %91 = vst.msk [vmem:[#allocation2 + $0x168] sm:$0xff] %vm45_vm0, %v1862_v0 }
  0x34   :  { %92 = vst.msk [vmem:[#allocation2 + $0x170] sm:$0xff] %vm45_vm0, %v1862_v0  ;;  %93 = vst.msk [vmem:[#allocation2 + $0x178] sm:$0xff] %vm45_vm0, %v1862_v0  ;;  %v142_v41 = vld [vmem:[#allocation2 + $0x100] sm:$0xff]  ;;  %v143_v53 = vld [vmem:[#allocation2 + $0x108] sm:$0xff] }
  0x35   :  { %94 = vst.msk [vmem:[#allocation2 + $0x180] sm:$0xff] %vm45_vm0, %v1862_v0  ;;  %95 = vst.msk [vmem:[#allocation2 + $0x188] sm:$0xff] %vm45_vm0, %v1862_v0  ;;  %v144_v37 = vld [vmem:[#allocation2 + $0x110] sm:$0xff]  ;;  %v145_v47 = vld [vmem:[#allocation2 + $0x118] sm:$0xff] }
  0x36   :  { %96 = vst.msk [vmem:[#allocation2 + $0x190] sm:$0xff] %vm45_vm0, %v1862_v0  ;;  %97 = vst.msk [vmem:[#allocation2 + $0x198] sm:$0xff] %vm45_vm0, %v1862_v0  ;;  %v146_v2 = vld [vmem:[#allocation2 + $0x120] sm:$0xff] }
  0x37   :  { %98 = vst.msk [vmem:[#allocation2 + $0x1a0] sm:$0xff] %vm45_vm0, %v1862_v0  ;;  %99 = vst.msk [vmem:[#allocation2 + $0x1a8] sm:$0xff] %vm45_vm0, %v1862_v0  ;;  %v148_v59 = vld [vmem:[#allocation2 + $0x130] sm:$0xff] }
  0x38   :  { %100 = vst.msk [vmem:[#allocation2 + $0x1b0] sm:$0xff] %vm45_vm0, %v1862_v0  ;;  %101 = vst.msk [vmem:[#allocation2 + $0x1b8] sm:$0xff] %vm45_vm0, %v1862_v0 }
  0x39   :  { %102 = vst.msk [vmem:[#allocation2 + $0x1c0] sm:$0xff] %vm45_vm0, %v1862_v0  ;;  %103 = vst.msk [vmem:[#allocation2 + $0x1c8] sm:$0xff] %vm45_vm0, %v1862_v0  ;;  %1712 = vmatmul.mubr.msk.bf16.gmra.mxu0 %vm422_vm1, %v1791_v14  ;;  %1744 = vmatmul.mubr.msk.bf16.gmra.mxu1 %vm422_vm1, %v1792_v15  ;;  %v149_v14 = vld [vmem:[#allocation2 + $0x138] sm:$0xff] }
  0x3a   :  { %104 = vst.msk [vmem:[#allocation2 + $0x1d0] sm:$0xff] %vm45_vm0, %v1862_v0  ;;  %105 = vst.msk [vmem:[#allocation2 + $0x1d8] sm:$0xff] %vm45_vm0, %v1862_v0  ;;  %1715 = vmatprep.mubr.msk.bf16.mxu0 %vm422_vm1, %v1793_v16  ;;  %1747 = vmatprep.mubr.msk.bf16.mxu1 %vm422_vm1, %v1794_v17 }
  0x3b   :  { %106 = vst.msk [vmem:[#allocation2 + $0x1e0] sm:$0xff] %vm45_vm0, %v1862_v0  ;;  %107 = vst.msk [vmem:[#allocation2 + $0x1e8] sm:$0xff] %vm45_vm0, %v1862_v0 }
  0x3c   :  { %108 = vst.msk [vmem:[#allocation2 + $0x1f0] sm:$0xff] %vm45_vm0, %v1862_v0  ;;  %109 = vst.msk [vmem:[#allocation2 + $0x1f8] sm:$0xff] %vm45_vm0, %v1862_v0 }
  0x41   :  { %1716 = vmatmul.mubr.msk.bf16.gmra.mxu0 %vm422_vm1, %v1795_v18  ;;  %1748 = vmatmul.mubr.msk.bf16.gmra.mxu1 %vm422_vm1, %v1796_v19 }
  0x42   :  { %1719 = vmatprep.mubr.msk.bf16.mxu0 %vm422_vm1, %v1797_v20  ;;  %1751 = vmatprep.mubr.msk.bf16.mxu1 %vm422_vm1, %v1798_v21 }
  0x49   :  { %1720 = vmatmul.mubr.msk.bf16.gmra.mxu0 %vm422_vm1, %v1799_v22  ;;  %1752 = vmatmul.mubr.msk.bf16.gmra.mxu1 %vm422_vm1, %v1800_v23  ;;  %v115_v23 = vld [vmem:[#allocation2 + $0x28] sm:$0xff] }
  0x4a   :  { %1723 = vmatprep.mubr.msk.bf16.mxu0 %vm422_vm1, %v1801_v24  ;;  %1755 = vmatprep.mubr.msk.bf16.mxu1 %vm422_vm1, %v1802_v25  ;;  %v147_v24 = vld [vmem:[#allocation2 + $0x128] sm:$0xff] }
  0x51   :  { %1724 = vmatmul.mubr.msk.bf16.gmra.mxu0 %vm422_vm1, %v1803_v26  ;;  %1756 = vmatmul.mubr.msk.bf16.gmra.mxu1 %vm422_vm1, %v1804_v27 }
  0x52   :  { %1727 = vmatprep.mubr.msk.bf16.mxu0 %vm422_vm1, %v1805_v28  ;;  %1759 = vmatprep.mubr.msk.bf16.mxu1 %vm422_vm1, %v1806_v29 }
  0x59   :  { %1728 = vmatmul.mubr.msk.bf16.gmra.mxu0 %vm422_vm1, %v1807_v30  ;;  %1760 = vmatmul.mubr.msk.bf16.gmra.mxu1 %vm422_vm1, %v1808_v31 }
  0x5a   :  { %1731 = vmatprep.mubr.msk.bf16.mxu0 %vm422_vm1, %v1809_v32  ;;  %1763 = vmatprep.mubr.msk.bf16.mxu1 %vm422_vm1, %v1810_v33 }
  0x61   :  { %1732 = vmatmul.mubr.msk.bf16.gmra.mxu0 %vm422_vm1, %v1811_v34  ;;  %1764 = vmatmul.mubr.msk.bf16.gmra.mxu1 %vm422_vm1, %v1812_v35  ;;  %v120_v35 = vld [vmem:[#allocation2 + $0x50] sm:$0xff] }
  0xe9   :  { %v1705_v38 = vpop.f32.mrf.mxu0  ;;  %v1737_v39 = vpop.f32.mrf.mxu1 }
  0xea   :  { %v810_v42 = vadd.f32 %v1705_v38, %v112_v36  ;;  %v842_v43 = vadd.f32 %v1737_v39, %v144_v37  ;;  %v152_v36 = vld [vmem:[#allocation2 + $0x150] sm:$0xff] }
  0xeb   :  { %v553_v44 = vpop.f32.mrf.mxu0  ;;  %v681_v45 = vpop.f32.mrf.mxu1 }
  0xec   :  { %875 = vst.msk [vmem:[#allocation2 + $0x10] sm:$0xff] %vm45_vm0, %v810_v42  ;;  %907 = vst.msk [vmem:[#allocation2 + $0x110] sm:$0xff] %vm45_vm0, %v842_v43  ;;  %v808_v48 = vadd.f32 %v553_v44, %v110_v40  ;;  %v840_v49 = vadd.f32 %v681_v45, %v142_v41 }
  0xed   :  { %v1706_v50 = vpop.f32.mrf.mxu0  ;;  %v1738_v51 = vpop.f32.mrf.mxu1 }
  0xee   :  { %873 = vst.msk [vmem:[#allocation2] sm:$0xff] %vm45_vm0, %v808_v48  ;;  %905 = vst.msk [vmem:[#allocation2 + $0x100] sm:$0xff] %vm45_vm0, %v840_v49  ;;  %v811_v54 = vadd.f32 %v1706_v50, %v113_v46  ;;  %v843_v55 = vadd.f32 %v1738_v51, %v145_v47  ;;  %v118_v49 = vld [vmem:[#allocation2 + $0x40] sm:$0xff] }
  0xef   :  { %v556_v56 = vpop.f32.mrf.mxu0  ;;  %v684_v57 = vpop.f32.mrf.mxu1  ;;  %v150_v50 = vld [vmem:[#allocation2 + $0x140] sm:$0xff] }
  0xf0   :  { %876 = vst.msk [vmem:[#allocation2 + $0x18] sm:$0xff] %vm45_vm0, %v811_v54  ;;  %908 = vst.msk [vmem:[#allocation2 + $0x118] sm:$0xff] %vm45_vm0, %v843_v55  ;;  %v809_v60 = vadd.f32 %v556_v56, %v111_v52  ;;  %v841_v61 = vadd.f32 %v684_v57, %v143_v53 }
  0xf1   :  { %v1709_v63 = vpop.f32.mrf.mxu0  ;;  %v1741_v0 = vpop.f32.mrf.mxu1 }
  0xf2   :  { %874 = vst.msk [vmem:[#allocation2 + $0x8] sm:$0xff] %vm45_vm0, %v809_v60  ;;  %906 = vst.msk [vmem:[#allocation2 + $0x108] sm:$0xff] %vm45_vm0, %v841_v61  ;;  %v814_v3 = vadd.f32 %v1709_v63, %v116_v58  ;;  %v846_v4 = vadd.f32 %v1741_v0, %v148_v59  ;;  %v121_v0 = vld [vmem:[#allocation2 + $0x58] sm:$0xff] }
  0xf3   :  { %v942_v5 = vld [vmem:[#allocation2 + $0x10] sm:$0xff]  ;;  %v569_v7 = vpop.f32.mrf.mxu0  ;;  %v697_v8 = vpop.f32.mrf.mxu1 }
  0xf4   :  { %v974_v6 = vld [vmem:[#allocation2 + $0x110] sm:$0xff]  ;;  %v1013_v9 = vadd.f32 %v2151_v62, %v942_v5  ;;  %879 = vst.msk [vmem:[#allocation2 + $0x30] sm:$0xff] %vm45_vm0, %v814_v3  ;;  %911 = vst.msk [vmem:[#allocation2 + $0x130] sm:$0xff] %vm45_vm0, %v846_v4  ;;  %v812_v11 = vadd.f32 %v569_v7, %v114_v1  ;;  %v844_v12 = vadd.f32 %v697_v8, %v146_v2  ;;  %v153_v1 = vld [vmem:[#allocation2 + $0x158] sm:$0xff] }
  0xf5   :  { %v1045_v10 = vadd.f32 %v2151_v62, %v974_v6  ;;  %v940_v15 = vld [vmem:[#allocation2] sm:$0xff]  ;;  %v1710_v17 = vpop.f32.mrf.mxu0  ;;  %v1742_v18 = vpop.f32.mrf.mxu1  ;;  %v119_v2 = vld [vmem:[#allocation2 + $0x48] sm:$0xff] }
  0xf6   :  { %v972_v16 = vld [vmem:[#allocation2 + $0x100] sm:$0xff]  ;;  %v1077_v19 = vmax.f32 %v1013_v9, 0.0  ;;  %v1011_v21 = vadd.f32 %v2151_v62, %v940_v15  ;;  %877 = vst.msk [vmem:[#allocation2 + $0x20] sm:$0xff] %vm45_vm0, %v812_v11  ;;  %909 = vst.msk [vmem:[#allocation2 + $0x120] sm:$0xff] %vm45_vm0, %v844_v12  ;;  %v815_v27 = vadd.f32 %v1710_v17, %v117_v13  ;;  %v847_v28 = vadd.f32 %v1742_v18, %v149_v14  ;;  %v151_v11 = vld [vmem:[#allocation2 + $0x148] sm:$0xff] }
  0xf7   :  { %v1109_v20 = vmax.f32 %v1045_v10, 0.0  ;;  %v1043_v22 = vadd.f32 %v2151_v62, %v972_v16  ;;  %v943_v25 = vld [vmem:[#allocation2 + $0x18] sm:$0xff]  ;;  %v572_v29 = vpop.f32.mrf.mxu0  ;;  %v700_v30 = vpop.f32.mrf.mxu1 }
  0xf8   :  { %v975_v26 = vld [vmem:[#allocation2 + $0x118] sm:$0xff]  ;;  %v1600_v31 = vpack.c.bf16 %v1077_v19, %v1077_v19  ;;  %v1075_v33 = vmax.f32 %v1011_v21, 0.0  ;;  %v1014_v37 = vadd.f32 %v2151_v62, %v943_v25  ;;  %880 = vst.msk [vmem:[#allocation2 + $0x38] sm:$0xff] %vm45_vm0, %v815_v27  ;;  %912 = vst.msk [vmem:[#allocation2 + $0x138] sm:$0xff] %vm45_vm0, %v847_v28  ;;  %v813_v41 = vadd.f32 %v572_v29, %v115_v23  ;;  %v156_v23 = vld [vmem:[#allocation2 + $0x170] sm:$0xff] }
  0xf9   :  { %v1632_v32 = vpack.c.bf16 %v1109_v20, %v1109_v20  ;;  %v1107_v34 = vmax.f32 %v1043_v22, 0.0  ;;  %v1046_v38 = vadd.f32 %v2151_v62, %v975_v26  ;;  %v941_v39 = vld [vmem:[#allocation2 + $0x8] sm:$0xff]  ;;  %v845_v42 = vadd.f32 %v700_v30, %v147_v24  ;;  %v1713_v43 = vpop.f32.mrf.mxu0  ;;  %v1745_v44 = vpop.f32.mrf.mxu1  ;;  %v124_v22 = vld [vmem:[#allocation2 + $0x70] sm:$0xff] }
  0xfa   :  { %v973_v40 = vld [vmem:[#allocation2 + $0x108] sm:$0xff]  ;;  %1398 = vst.msk [vmem:[%s2528_s3 + $0x8] sm:$0xf] %vm1395_vm2, %v1600_v31  ;;  %v1598_v45 = vpack.c.bf16 %v1075_v33, %v1075_v33  ;;  %v1012_v47 = vadd.f32 %v2151_v62, %v941_v39  ;;  %v1078_v51 = vmax.f32 %v1014_v37, 0.0  ;;  %v818_v55 = vadd.f32 %v1713_v43, %v120_v35  ;;  %v154_v37 = vld [vmem:[#allocation2 + $0x160] sm:$0xff] }
  0xfb   :  { %1430 = vst.msk [vmem:[%s2528_s3 + $0x88] sm:$0xf] %vm1395_vm2, %v1632_v32  ;;  %v1630_v46 = vpack.c.bf16 %v1107_v34, %v1107_v34  ;;  %v1044_v48 = vadd.f32 %v2151_v62, %v973_v40  ;;  %v1110_v52 = vmax.f32 %v1046_v38, 0.0  ;;  %v946_v53 = vld [vmem:[#allocation2 + $0x30] sm:$0xff]  ;;  %v850_v56 = vadd.f32 %v1745_v44, %v152_v36  ;;  %v585_v57 = vpop.f32.mrf.mxu0  ;;  %v713_v58 = vpop.f32.mrf.mxu1  ;;  %v122_v36 = vld [vmem:[#allocation2 + $0x60] sm:$0xff] }
  0xfc   :  { %v978_v54 = vld [vmem:[#allocation2 + $0x130] sm:$0xff]  ;;  %878 = vst.msk [vmem:[#allocation2 + $0x28] sm:$0xff] %vm45_vm0, %v813_v41  ;;  %910 = vst.msk [vmem:[#allocation2 + $0x128] sm:$0xff] %vm45_vm0, %v845_v42  ;;  %v1076_v59 = vmax.f32 %v1012_v47, 0.0  ;;  %v1017_v61 = vadd.f32 %v2151_v62, %v946_v53  ;;  %v1601_v3 = vpack.c.bf16 %v1078_v51, %v1078_v51  ;;  %v816_v7 = vadd.f32 %v585_v57, %v118_v49  ;;  %v157_v49 = vld [vmem:[#allocation2 + $0x178] sm:$0xff] }
  0xfd   :  { %1396 = vst.msk [vmem:[%s2528_s3] sm:$0xf] %vm1395_vm2, %v1598_v45  ;;  %1428 = vst.msk [vmem:[%s2528_s3 + $0x80] sm:$0xf] %vm1395_vm2, %v1630_v46  ;;  %v1108_v60 = vmax.f32 %v1044_v48, 0.0  ;;  %v1049_v63 = vadd.f32 %v2151_v62, %v978_v54  ;;  %v1633_v4 = vpack.c.bf16 %v1110_v52, %v1110_v52  ;;  %v944_v5 = vld [vmem:[#allocation2 + $0x20] sm:$0xff]  ;;  %v848_v8 = vadd.f32 %v713_v58, %v150_v50  ;;  %v1714_v9 = vpop.f32.mrf.mxu0  ;;  %v1746_v10 = vpop.f32.mrf.mxu1 }
  0xfe   :  { %v976_v6 = vld [vmem:[#allocation2 + $0x120] sm:$0xff]  ;;  %883 = vst.msk [vmem:[#allocation2 + $0x50] sm:$0xff] %vm45_vm0, %v818_v55  ;;  %915 = vst.msk [vmem:[#allocation2 + $0x150] sm:$0xff] %vm45_vm0, %v850_v56  ;;  %v1599_v12 = vpack.c.bf16 %v1076_v59, %v1076_v59  ;;  %v1081_v14 = vmax.f32 %v1017_v61, 0.0  ;;  %v1015_v16 = vadd.f32 %v2151_v62, %v944_v5  ;;  %v819_v18 = vadd.f32 %v1714_v9, %v121_v0  ;;  %v125_v48 = vld [vmem:[#allocation2 + $0x78] sm:$0xff] }
  0xff   :  { %v1631_v13 = vpack.c.bf16 %v1108_v60, %v1108_v60  ;;  %v1113_v15 = vmax.f32 %v1049_v63, 0.0  ;;  %1399 = vst.msk [vmem:[%s2528_s3 + $0xc] sm:$0xf] %vm1395_vm2, %v1601_v3  ;;  %1431 = vst.msk [vmem:[%s2528_s3 + $0x8c] sm:$0xf] %vm1395_vm2, %v1633_v4  ;;  %v1047_v17 = vadd.f32 %v2151_v62, %v976_v6  ;;  %v851_v19 = vadd.f32 %v1746_v10, %v153_v1  ;;  %v588_v20 = vpop.f32.mrf.mxu0  ;;  %v716_v21 = vpop.f32.mrf.mxu1  ;;  %v947_v26 = vld [vmem:[#allocation2 + $0x38] sm:$0xff] }
 0x100   :  { %881 = vst.msk [vmem:[#allocation2 + $0x40] sm:$0xff] %vm45_vm0, %v816_v7  ;;  %913 = vst.msk [vmem:[#allocation2 + $0x140] sm:$0xff] %vm45_vm0, %v848_v8  ;;  %v1604_v24 = vpack.c.bf16 %v1081_v14, %v1081_v14  ;;  %v979_v27 = vld [vmem:[#allocation2 + $0x138] sm:$0xff]  ;;  %v817_v28 = vadd.f32 %v588_v20, %v119_v2  ;;  %v849_v29 = vadd.f32 %v716_v21, %v151_v11  ;;  %v1079_v30 = vmax.f32 %v1015_v16, 0.0  ;;  %v123_v63 = vld [vmem:[#allocation2 + $0x68] sm:$0xff] }
 0x101   :  { %1397 = vst.msk [vmem:[%s2528_s3 + $0x4] sm:$0xf] %vm1395_vm2, %v1599_v12  ;;  %1429 = vst.msk [vmem:[%s2528_s3 + $0x84] sm:$0xf] %vm1395_vm2, %v1631_v13  ;;  %v1636_v25 = vpack.c.bf16 %v1113_v15, %v1113_v15  ;;  %v1111_v31 = vmax.f32 %v1047_v17, 0.0  ;;  %v1018_v32 = vadd.f32 %v2151_v62, %v947_v26  ;;  %v1050_v33 = vadd.f32 %v2151_v62, %v979_v27  ;;  %v1717_v34 = vpop.f32.mrf.mxu0  ;;  %v1749_v35 = vpop.f32.mrf.mxu1  ;;  %v155_v0 = vld [vmem:[#allocation2 + $0x168] sm:$0xff] }
 0x102   :  { %884 = vst.msk [vmem:[#allocation2 + $0x58] sm:$0xff] %vm45_vm0, %v819_v18  ;;  %916 = vst.msk [vmem:[#allocation2 + $0x158] sm:$0xff] %vm45_vm0, %v851_v19  ;;  %v822_v40 = vadd.f32 %v1717_v34, %v124_v22  ;;  %v854_v41 = vadd.f32 %v1749_v35, %v156_v23  ;;  %v1602_v42 = vpack.c.bf16 %v1079_v30, %v1079_v30  ;;  %v128_v13 = vld [vmem:[#allocation2 + $0x90] sm:$0xff]  ;;  %v158_v34 = vld [vmem:[#allocation2 + $0x180] sm:$0xff] }
 0x103   :  { %1402 = vst.msk [vmem:[%s2528_s3 + $0x18] sm:$0xf] %vm1395_vm2, %v1604_v24  ;;  %1434 = vst.msk [vmem:[%s2528_s3 + $0x98] sm:$0xf] %vm1395_vm2, %v1636_v25  ;;  %v945_v38 = vld [vmem:[#allocation2 + $0x28] sm:$0xff]  ;;  %v1634_v43 = vpack.c.bf16 %v1111_v31, %v1111_v31  ;;  %v1082_v44 = vmax.f32 %v1018_v32, 0.0  ;;  %v601_v46 = vpop.f32.mrf.mxu0  ;;  %v729_v47 = vpop.f32.mrf.mxu1 }
 0x104   :  { %v977_v39 = vld [vmem:[#allocation2 + $0x128] sm:$0xff]  ;;  %882 = vst.msk [vmem:[#allocation2 + $0x48] sm:$0xff] %vm45_vm0, %v817_v28  ;;  %914 = vst.msk [vmem:[#allocation2 + $0x148] sm:$0xff] %vm45_vm0, %v849_v29  ;;  %v1114_v45 = vmax.f32 %v1050_v33, 0.0  ;;  %v1016_v50 = vadd.f32 %v2151_v62, %v945_v38  ;;  %v820_v54 = vadd.f32 %v601_v46, %v122_v36  ;;  %v852_v55 = vadd.f32 %v729_v47, %v154_v37  ;;  %v160_v20 = vld [vmem:[#allocation2 + $0x190] sm:$0xff] }
 0x105   :  { %v1048_v51 = vadd.f32 %v2151_v62, %v977_v39  ;;  %v950_v52 = vld [vmem:[#allocation2 + $0x50] sm:$0xff]  ;;  %887 = vst.msk [vmem:[#allocation2 + $0x70] sm:$0xff] %vm45_vm0, %v822_v40  ;;  %919 = vst.msk [vmem:[#allocation2 + $0x170] sm:$0xff] %vm45_vm0, %v854_v41  ;;  %v1605_v56 = vpack.c.bf16 %v1082_v44, %v1082_v44  ;;  %v1718_v60 = vpop.f32.mrf.mxu0  ;;  %v1750_v61 = vpop.f32.mrf.mxu1  ;;  %v126_v33 = vld [vmem:[#allocation2 + $0x80] sm:$0xff] }
 0x106   :  { %v982_v53 = vld [vmem:[#allocation2 + $0x150] sm:$0xff]  ;;  %1400 = vst.msk [vmem:[%s2528_s3 + $0x10] sm:$0xf] %vm1395_vm2, %v1602_v42  ;;  %1432 = vst.msk [vmem:[%s2528_s3 + $0x90] sm:$0xf] %vm1395_vm2, %v1634_v43  ;;  %v1637_v57 = vpack.c.bf16 %v1114_v45, %v1114_v45  ;;  %v1021_v58 = vadd.f32 %v2151_v62, %v950_v52  ;;  %v1080_v1 = vmax.f32 %v1016_v50, 0.0  ;;  %v823_v5 = vadd.f32 %v1718_v60, %v125_v48 }
 0x107   :  { %v1053_v59 = vadd.f32 %v2151_v62, %v982_v53  ;;  %v1112_v2 = vmax.f32 %v1048_v51, 0.0  ;;  %v948_v3 = vld [vmem:[#allocation2 + $0x40] sm:$0xff]  ;;  %885 = vst.msk [vmem:[#allocation2 + $0x60] sm:$0xff] %vm45_vm0, %v820_v54  ;;  %917 = vst.msk [vmem:[#allocation2 + $0x160] sm:$0xff] %vm45_vm0, %v852_v55  ;;  %v855_v6 = vadd.f32 %v1750_v61, %v157_v49  ;;  %v604_v11 = vpop.f32.mrf.mxu0  ;;  %v732_v12 = vpop.f32.mrf.mxu1  ;;  %v129_v47 = vld [vmem:[#allocation2 + $0x98] sm:$0xff] }
 0x108   :  { %v980_v4 = vld [vmem:[#allocation2 + $0x140] sm:$0xff]  ;;  %1403 = vst.msk [vmem:[%s2528_s3 + $0x1c] sm:$0xf] %vm1395_vm2, %v1605_v56  ;;  %1435 = vst.msk [vmem:[%s2528_s3 + $0x9c] sm:$0xf] %vm1395_vm2, %v1637_v57  ;;  %v1085_v7 = vmax.f32 %v1021_v58, 0.0  ;;  %v1019_v9 = vadd.f32 %v2151_v62, %v948_v3  ;;  %v1603_v14 = vpack.c.bf16 %v1080_v1, %v1080_v1  ;;  %v821_v18 = vadd.f32 %v604_v11, %v123_v63 }
 0x109   :  { %v1117_v8 = vmax.f32 %v1053_v59, 0.0  ;;  %v1051_v10 = vadd.f32 %v2151_v62, %v980_v4  ;;  %v1635_v15 = vpack.c.bf16 %v1112_v2, %v1112_v2  ;;  %v951_v16 = vld [vmem:[#allocation2 + $0x58] sm:$0xff]  ;;  %888 = vst.msk [vmem:[#allocation2 + $0x78] sm:$0xff] %vm45_vm0, %v823_v5  ;;  %920 = vst.msk [vmem:[#allocation2 + $0x178] sm:$0xff] %vm45_vm0, %v855_v6  ;;  %v853_v19 = vadd.f32 %v732_v12, %v155_v0  ;;  %v1721_v27 = vpop.f32.mrf.mxu0  ;;  %v1753_v28 = vpop.f32.mrf.mxu1  ;;  %v159_v11 = vld [vmem:[#allocation2 + $0x188] sm:$0xff] }
 0x10a   :  { %v983_v17 = vld [vmem:[#allocation2 + $0x158] sm:$0xff]  ;;  %v1608_v21 = vpack.c.bf16 %v1085_v7, %v1085_v7  ;;  %v1083_v23 = vmax.f32 %v1019_v9, 0.0  ;;  %1401 = vst.msk [vmem:[%s2528_s3 + $0x14] sm:$0xf] %vm1395_vm2, %v1603_v14  ;;  %v1022_v29 = vadd.f32 %v2151_v62, %v951_v16  ;;  %v826_v39 = vadd.f32 %v1721_v27, %v128_v13 }
 0x10b   :  { %v1640_v22 = vpack.c.bf16 %v1117_v8, %v1117_v8  ;;  %v1115_v24 = vmax.f32 %v1051_v10, 0.0  ;;  %v949_v25 = vld [vmem:[#allocation2 + $0x48] sm:$0xff]  ;;  %1433 = vst.msk [vmem:[%s2528_s3 + $0x94] sm:$0xf] %vm1395_vm2, %v1635_v15  ;;  %v1054_v30 = vadd.f32 %v2151_v62, %v983_v17  ;;  %v858_v40 = vadd.f32 %v1753_v28, %v160_v20  ;;  %v617_v41 = vpop.f32.mrf.mxu0  ;;  %v745_v42 = vpop.f32.mrf.mxu1  ;;  %v161_v55 = vld [vmem:[#allocation2 + $0x198] sm:$0xff] }
 0x10c   :  { %v981_v26 = vld [vmem:[#allocation2 + $0x148] sm:$0xff]  ;;  %v1020_v31 = vadd.f32 %v2151_v62, %v949_v25  ;;  %886 = vst.msk [vmem:[#allocation2 + $0x68] sm:$0xff] %vm45_vm0, %v821_v18  ;;  %918 = vst.msk [vmem:[#allocation2 + $0x168] sm:$0xff] %vm45_vm0, %v853_v19  ;;  %v1606_v35 = vpack.c.bf16 %v1083_v23, %v1083_v23  ;;  %v954_v37 = vld [vmem:[#allocation2 + $0x70] sm:$0xff]  ;;  %v1086_v43 = vmax.f32 %v1022_v29, 0.0  ;;  %v824_v52 = vadd.f32 %v617_v41, %v126_v33 }
 0x10d   :  { %v1052_v32 = vadd.f32 %v2151_v62, %v981_v26  ;;  %1406 = vst.msk [vmem:[%s2528_s3 + $0x28] sm:$0xf] %vm1395_vm2, %v1608_v21  ;;  %1438 = vst.msk [vmem:[%s2528_s3 + $0xa8] sm:$0xf] %vm1395_vm2, %v1640_v22  ;;  %v1638_v36 = vpack.c.bf16 %v1115_v24, %v1115_v24  ;;  %v986_v38 = vld [vmem:[#allocation2 + $0x170] sm:$0xff]  ;;  %v1118_v44 = vmax.f32 %v1054_v30, 0.0  ;;  %v1025_v48 = vadd.f32 %v2151_v62, %v954_v37  ;;  %v1722_v54 = vpop.f32.mrf.mxu0  ;;  %v1754_v56 = vpop.f32.mrf.mxu1 }
 0x10e   :  { %v1084_v45 = vmax.f32 %v1020_v31, 0.0  ;;  %1404 = vst.msk [vmem:[%s2528_s3 + $0x20] sm:$0xf] %vm1395_vm2, %v1606_v35  ;;  %v1057_v49 = vadd.f32 %v2151_v62, %v986_v38  ;;  %v952_v50 = vld [vmem:[#allocation2 + $0x60] sm:$0xff]  ;;  %v856_v53 = vadd.f32 %v745_v42, %v158_v34  ;;  %v1609_v57 = vpack.c.bf16 %v1086_v43, %v1086_v43  ;;  %v127_v10 = vld [vmem:[#allocation2 + $0x88] sm:$0xff]  ;;  %v132_v24 = vld [vmem:[#allocation2 + $0xb0] sm:$0xff] }
 0x10f   :  { %v1116_v46 = vmax.f32 %v1052_v32, 0.0  ;;  %1436 = vst.msk [vmem:[%s2528_s3 + $0xa0] sm:$0xf] %vm1395_vm2, %v1638_v36  ;;  %v984_v51 = vld [vmem:[#allocation2 + $0x160] sm:$0xff]  ;;  %v1641_v58 = vpack.c.bf16 %v1118_v44, %v1118_v44  ;;  %v1089_v61 = vmax.f32 %v1025_v48, 0.0  ;;  %v1023_v0 = vadd.f32 %v2151_v62, %v952_v50  ;;  %v620_v4 = vpop.f32.mrf.mxu0  ;;  %v748_v5 = vpop.f32.mrf.mxu1  ;;  %v164_v25 = vld [vmem:[#allocation2 + $0x1b0] sm:$0xff] }
 0x110   :  { %891 = vst.msk [vmem:[#allocation2 + $0x90] sm:$0xff] %vm45_vm0, %v826_v39  ;;  %923 = vst.msk [vmem:[#allocation2 + $0x190] sm:$0xff] %vm45_vm0, %v858_v40  ;;  %v1607_v59 = vpack.c.bf16 %v1084_v45, %v1084_v45  ;;  %v1121_v63 = vmax.f32 %v1057_v49, 0.0  ;;  %v1055_v1 = vadd.f32 %v2151_v62, %v984_v51  ;;  %v955_v2 = vld [vmem:[#allocation2 + $0x78] sm:$0xff]  ;;  %v827_v8 = vadd.f32 %v1722_v54, %v129_v47  ;;  %v130_v30 = vld [vmem:[#allocation2 + $0xa0] sm:$0xff] }
 0x111   :  { %v1639_v60 = vpack.c.bf16 %v1116_v46, %v1116_v46  ;;  %v987_v3 = vld [vmem:[#allocation2 + $0x178] sm:$0xff]  ;;  %889 = vst.msk [vmem:[#allocation2 + $0x80] sm:$0xff] %vm45_vm0, %v824_v52  ;;  %921 = vst.msk [vmem:[#allocation2 + $0x180] sm:$0xff] %vm45_vm0, %v856_v53  ;;  %v1026_v6 = vadd.f32 %v2151_v62, %v955_v2  ;;  %v859_v9 = vadd.f32 %v1754_v56, %v161_v55  ;;  %v1087_v14 = vmax.f32 %v1023_v0, 0.0  ;;  %v1725_v18 = vpop.f32.mrf.mxu0  ;;  %v1757_v19 = vpop.f32.mrf.mxu1  ;;  %v162_v32 = vld [vmem:[#allocation2 + $0x1a0] sm:$0xff] }
 0x112   :  { %1407 = vst.msk [vmem:[%s2528_s3 + $0x2c] sm:$0xf] %vm1395_vm2, %v1609_v57  ;;  %1439 = vst.msk [vmem:[%s2528_s3 + $0xac] sm:$0xf] %vm1395_vm2, %v1641_v58  ;;  %v1058_v7 = vadd.f32 %v2151_v62, %v987_v3  ;;  %v1612_v12 = vpack.c.bf16 %v1089_v61, %v1089_v61  ;;  %v1644_v13 = vpack.c.bf16 %v1121_v63, %v1121_v63  ;;  %v1119_v15 = vmax.f32 %v1055_v1, 0.0  ;;  %v133_v40 = vld [vmem:[#allocation2 + $0xb8] sm:$0xff] }
 0x113   :  { %1405 = vst.msk [vmem:[%s2528_s3 + $0x24] sm:$0xf] %vm1395_vm2, %v1607_v59  ;;  %1437 = vst.msk [vmem:[%s2528_s3 + $0xa4] sm:$0xf] %vm1395_vm2, %v1639_v60  ;;  %v953_v16 = vld [vmem:[#allocation2 + $0x68] sm:$0xff]  ;;  %v1090_v20 = vmax.f32 %v1026_v6, 0.0  ;;  %v1610_v26 = vpack.c.bf16 %v1087_v14, %v1087_v14  ;;  %v825_v28 = vadd.f32 %v620_v4, %v127_v10  ;;  %v857_v29 = vadd.f32 %v748_v5, %v159_v11  ;;  %v633_v31 = vpop.f32.mrf.mxu0  ;;  %v761_v33 = vpop.f32.mrf.mxu1 }
 0x114   :  { %v985_v17 = vld [vmem:[#allocation2 + $0x168] sm:$0xff]  ;;  %v1122_v21 = vmax.f32 %v1058_v7, 0.0  ;;  %v1024_v22 = vadd.f32 %v2151_v62, %v953_v16  ;;  %892 = vst.msk [vmem:[#allocation2 + $0x98] sm:$0xff] %vm45_vm0, %v827_v8  ;;  %924 = vst.msk [vmem:[#allocation2 + $0x198] sm:$0xff] %vm45_vm0, %v859_v9  ;;  %v1642_v27 = vpack.c.bf16 %v1119_v15, %v1119_v15  ;;  %v830_v43 = vadd.f32 %v1725_v18, %v132_v24  ;;  %v165_v46 = vld [vmem:[#allocation2 + $0x1b8] sm:$0xff] }
 0x115   :  { %v1056_v23 = vadd.f32 %v2151_v62, %v985_v17  ;;  %1410 = vst.msk [vmem:[%s2528_s3 + $0x38] sm:$0xf] %vm1395_vm2, %v1612_v12  ;;  %1442 = vst.msk [vmem:[%s2528_s3 + $0xb8] sm:$0xf] %vm1395_vm2, %v1644_v13  ;;  %v1613_v34 = vpack.c.bf16 %v1090_v20, %v1090_v20  ;;  %v862_v44 = vadd.f32 %v1757_v19, %v164_v25  ;;  %v1726_v45 = vpop.f32.mrf.mxu0  ;;  %v1758_v47 = vpop.f32.mrf.mxu1  ;;  %v131_v48 = vld [vmem:[#allocation2 + $0xa8] sm:$0xff]  ;;  %v136_v63 = vld [vmem:[#allocation2 + $0xd0] sm:$0xff] }
 0x116   :  { %v1645_v35 = vpack.c.bf16 %v1122_v21, %v1122_v21  ;;  %v1088_v36 = vmax.f32 %v1024_v22, 0.0  ;;  %1408 = vst.msk [vmem:[%s2528_s3 + $0x30] sm:$0xf] %vm1395_vm2, %v1610_v26  ;;  %1440 = vst.msk [vmem:[%s2528_s3 + $0xb0] sm:$0xf] %vm1395_vm2, %v1642_v27  ;;  %v163_v49 = vld [vmem:[#allocation2 + $0x1a8] sm:$0xff]  ;;  %v828_v54 = vadd.f32 %v633_v31, %v130_v30  ;;  %v860_v55 = vadd.f32 %v761_v33, %v162_v32 }
 0x117   :  { %v1120_v37 = vmax.f32 %v1056_v23, 0.0  ;;  %v958_v38 = vld [vmem:[#allocation2 + $0x90] sm:$0xff]  ;;  %890 = vst.msk [vmem:[#allocation2 + $0x88] sm:$0xff] %vm45_vm0, %v825_v28  ;;  %922 = vst.msk [vmem:[#allocation2 + $0x188] sm:$0xff] %vm45_vm0, %v857_v29  ;;  %v636_v60 = vpop.f32.mrf.mxu0  ;;  %v764_v61 = vpop.f32.mrf.mxu1  ;;  %v831_v1 = vadd.f32 %v1726_v45, %v133_v40  ;;  %v863_v2 = vadd.f32 %v1758_v47, %v165_v46  ;;  %v134_v5 = vld [vmem:[#allocation2 + $0xc0] sm:$0xff] }
 0x118   :  { %v990_v39 = vld [vmem:[#allocation2 + $0x190] sm:$0xff]  ;;  %v1029_v41 = vadd.f32 %v2151_v62, %v958_v38  ;;  %1411 = vst.msk [vmem:[%s2528_s3 + $0x3c] sm:$0xf] %vm1395_vm2, %v1613_v34  ;;  %1443 = vst.msk [vmem:[%s2528_s3 + $0xbc] sm:$0xf] %vm1395_vm2, %v1645_v35  ;;  %v1611_v50 = vpack.c.bf16 %v1088_v36, %v1088_v36  ;;  %v956_v52 = vld [vmem:[#allocation2 + $0x80] sm:$0xff]  ;;  %v829_v3 = vadd.f32 %v636_v60, %v131_v48 }
 0x119   :  { %v1061_v42 = vadd.f32 %v2151_v62, %v990_v39  ;;  %v1643_v51 = vpack.c.bf16 %v1120_v37, %v1120_v37  ;;  %v988_v53 = vld [vmem:[#allocation2 + $0x180] sm:$0xff]  ;;  %v1027_v58 = vadd.f32 %v2151_v62, %v956_v52  ;;  %895 = vst.msk [vmem:[#allocation2 + $0xb0] sm:$0xff] %vm45_vm0, %v830_v43  ;;  %927 = vst.msk [vmem:[#allocation2 + $0x1b0] sm:$0xff] %vm45_vm0, %v862_v44  ;;  %v168_v0 = vld [vmem:[#allocation2 + $0x1d0] sm:$0xff]  ;;  %v1729_v12 = vpop.f32.mrf.mxu0  ;;  %v1761_v13 = vpop.f32.mrf.mxu1 }
 0x11a   :  { %v1093_v56 = vmax.f32 %v1029_v41, 0.0  ;;  %v1059_v59 = vadd.f32 %v2151_v62, %v988_v53  ;;  %1409 = vst.msk [vmem:[%s2528_s3 + $0x34] sm:$0xf] %vm1395_vm2, %v1611_v50  ;;  %v861_v4 = vadd.f32 %v764_v61, %v163_v49  ;;  %v166_v14 = vld [vmem:[#allocation2 + $0x1c0] sm:$0xff]  ;;  %v834_v17 = vadd.f32 %v1729_v12, %v136_v63  ;;  %v137_v23 = vld [vmem:[#allocation2 + $0xd8] sm:$0xff]  ;;  %v135_v35 = vld [vmem:[#allocation2 + $0xc8] sm:$0xff] }
 0x11b   :  { %v1125_v57 = vmax.f32 %v1061_v42, 0.0  ;;  %1441 = vst.msk [vmem:[%s2528_s3 + $0xb4] sm:$0xf] %vm1395_vm2, %v1643_v51  ;;  %v1091_v8 = vmax.f32 %v1027_v58, 0.0  ;;  %v959_v10 = vld [vmem:[#allocation2 + $0x98] sm:$0xff]  ;;  %v866_v18 = vadd.f32 %v1761_v13, %v168_v0  ;;  %v649_v21 = vpop.f32.mrf.mxu0  ;;  %v777_v22 = vpop.f32.mrf.mxu1  ;;  %v167_v36 = vld [vmem:[#allocation2 + $0x1c8] sm:$0xff] }
 0x11c   :  { %893 = vst.msk [vmem:[#allocation2 + $0xa0] sm:$0xff] %vm45_vm0, %v828_v54  ;;  %925 = vst.msk [vmem:[#allocation2 + $0x1a0] sm:$0xff] %vm45_vm0, %v860_v55  ;;  %v1616_v6 = vpack.c.bf16 %v1093_v56, %v1093_v56  ;;  %v1123_v9 = vmax.f32 %v1059_v59, 0.0  ;;  %v991_v11 = vld [vmem:[#allocation2 + $0x198] sm:$0xff]  ;;  %v1030_v15 = vadd.f32 %v2151_v62, %v959_v10  ;;  %v832_v29 = vadd.f32 %v649_v21, %v134_v5 }
 0x11d   :  { %v1648_v7 = vpack.c.bf16 %v1125_v57, %v1125_v57  ;;  %v1062_v16 = vadd.f32 %v2151_v62, %v991_v11  ;;  %896 = vst.msk [vmem:[#allocation2 + $0xb8] sm:$0xff] %vm45_vm0, %v831_v1  ;;  %928 = vst.msk [vmem:[#allocation2 + $0x1b8] sm:$0xff] %vm45_vm0, %v863_v2  ;;  %v1614_v19 = vpack.c.bf16 %v1091_v8, %v1091_v8  ;;  %v169_v24 = vld [vmem:[#allocation2 + $0x1d8] sm:$0xff]  ;;  %v1730_v33 = vpop.f32.mrf.mxu0  ;;  %v1762_v34 = vpop.f32.mrf.mxu1 }
 0x11e   :  { %894 = vst.msk [vmem:[#allocation2 + $0xa8] sm:$0xff] %vm45_vm0, %v829_v3  ;;  %926 = vst.msk [vmem:[#allocation2 + $0x1a8] sm:$0xff] %vm45_vm0, %v861_v4  ;;  %v1646_v20 = vpack.c.bf16 %v1123_v9, %v1123_v9  ;;  %v1094_v25 = vmax.f32 %v1030_v15, 0.0  ;;  %v957_v27 = vld [vmem:[#allocation2 + $0x88] sm:$0xff]  ;;  %v864_v30 = vadd.f32 %v777_v22, %v166_v14  ;;  %v835_v41 = vadd.f32 %v1730_v33, %v137_v23 }
 0x11f   :  { %1414 = vst.msk [vmem:[%s2528_s3 + $0x48] sm:$0xf] %vm1395_vm2, %v1616_v6  ;;  %1446 = vst.msk [vmem:[%s2528_s3 + $0xc8] sm:$0xf] %vm1395_vm2, %v1648_v7  ;;  %v1126_v26 = vmax.f32 %v1062_v16, 0.0  ;;  %v989_v28 = vld [vmem:[#allocation2 + $0x188] sm:$0xff]  ;;  %v1028_v31 = vadd.f32 %v2151_v62, %v957_v27  ;;  %v867_v42 = vadd.f32 %v1762_v34, %v169_v24  ;;  %v652_v49 = vpop.f32.mrf.mxu0  ;;  %v780_v50 = vpop.f32.mrf.mxu1 }
 0x120   :  { %899 = vst.msk [vmem:[#allocation2 + $0xd0] sm:$0xff] %vm45_vm0, %v834_v17  ;;  %931 = vst.msk [vmem:[#allocation2 + $0x1d0] sm:$0xff] %vm45_vm0, %v866_v18  ;;  %v1060_v32 = vadd.f32 %v2151_v62, %v989_v28  ;;  %v1617_v37 = vpack.c.bf16 %v1094_v25, %v1094_v25  ;;  %v962_v39 = vld [vmem:[#allocation2 + $0xb0] sm:$0xff]  ;;  %v833_v53 = vadd.f32 %v652_v49, %v135_v35 }
 0x121   :  { %1412 = vst.msk [vmem:[%s2528_s3 + $0x40] sm:$0xf] %vm1395_vm2, %v1614_v19  ;;  %1444 = vst.msk [vmem:[%s2528_s3 + $0xc0] sm:$0xf] %vm1395_vm2, %v1646_v20  ;;  %v1649_v38 = vpack.c.bf16 %v1126_v26, %v1126_v26  ;;  %v994_v40 = vld [vmem:[#allocation2 + $0x1b0] sm:$0xff]  ;;  %v1092_v43 = vmax.f32 %v1028_v31, 0.0  ;;  %v1033_v45 = vadd.f32 %v2151_v62, %v962_v39  ;;  %v865_v54 = vadd.f32 %v780_v50, %v167_v36  ;;  %v1733_v63 = vpop.f32.mrf.mxu0  ;;  %v1765_v0 = vpop.f32.mrf.mxu1 }
 0x122   :  { %897 = vst.msk [vmem:[#allocation2 + $0xc0] sm:$0xff] %vm45_vm0, %v832_v29  ;;  %929 = vst.msk [vmem:[#allocation2 + $0x1c0] sm:$0xff] %vm45_vm0, %v864_v30  ;;  %v1124_v44 = vmax.f32 %v1060_v32, 0.0  ;;  %v1065_v46 = vadd.f32 %v2151_v62, %v994_v40  ;;  %v140_v28 = vld [vmem:[#allocation2 + $0xf0] sm:$0xff] }
 0x123   :  { %v960_v47 = vld [vmem:[#allocation2 + $0xa0] sm:$0xff]  ;;  %1415 = vst.msk [vmem:[%s2528_s3 + $0x4c] sm:$0xf] %vm1395_vm2, %v1617_v37  ;;  %1447 = vst.msk [vmem:[%s2528_s3 + $0xcc] sm:$0xf] %vm1395_vm2, %v1649_v38  ;;  %v1615_v55 = vpack.c.bf16 %v1092_v43, %v1092_v43  ;;  %v1097_v57 = vmax.f32 %v1033_v45, 0.0  ;;  %v665_v12 = vpop.f32.mrf.mxu0  ;;  %v793_v13 = vpop.f32.mrf.mxu1  ;;  %v838_v49 = vadd.f32 %v1733_v63, %v140_v28 }
 0x124   :  { %v992_v48 = vld [vmem:[#allocation2 + $0x1a0] sm:$0xff]  ;;  %v1031_v51 = vadd.f32 %v2151_v62, %v960_v47  ;;  %900 = vst.msk [vmem:[#allocation2 + $0xd8] sm:$0xff] %vm45_vm0, %v835_v41  ;;  %932 = vst.msk [vmem:[#allocation2 + $0x1d8] sm:$0xff] %vm45_vm0, %v867_v42  ;;  %v1647_v56 = vpack.c.bf16 %v1124_v44, %v1124_v44  ;;  %v1129_v58 = vmax.f32 %v1065_v46, 0.0  ;;  %v963_v59 = vld [vmem:[#allocation2 + $0xb8] sm:$0xff] }
 0x125   :  { %v1063_v52 = vadd.f32 %v2151_v62, %v992_v48  ;;  %v995_v60 = vld [vmem:[#allocation2 + $0x1b8] sm:$0xff]  ;;  %v961_v61 = vld [vmem:[#allocation2 + $0xa8] sm:$0xff]  ;;  %v1034_v3 = vadd.f32 %v2151_v62, %v963_v59  ;;  %898 = vst.msk [vmem:[#allocation2 + $0xc8] sm:$0xff] %vm45_vm0, %v833_v53  ;;  %930 = vst.msk [vmem:[#allocation2 + $0x1c8] sm:$0xff] %vm45_vm0, %v865_v54  ;;  %v1620_v6 = vpack.c.bf16 %v1097_v57, %v1097_v57  ;;  %v1734_v30 = vpop.f32.mrf.mxu0  ;;  %v1766_v31 = vpop.f32.mrf.mxu1 }
 0x126   :  { %v1095_v1 = vmax.f32 %v1031_v51, 0.0  ;;  %v1066_v4 = vadd.f32 %v2151_v62, %v995_v60  ;;  %v993_v5 = vld [vmem:[#allocation2 + $0x1a8] sm:$0xff]  ;;  %1413 = vst.msk [vmem:[%s2528_s3 + $0x44] sm:$0xf] %vm1395_vm2, %v1615_v55  ;;  %1445 = vst.msk [vmem:[%s2528_s3 + $0xc4] sm:$0xf] %vm1395_vm2, %v1647_v56  ;;  %v1652_v7 = vpack.c.bf16 %v1129_v58, %v1129_v58  ;;  %v1032_v8 = vadd.f32 %v2151_v62, %v961_v61 }
 0x127   :  { %v1127_v2 = vmax.f32 %v1063_v52, 0.0  ;;  %v1064_v9 = vadd.f32 %v2151_v62, %v993_v5  ;;  %v966_v10 = vld [vmem:[#allocation2 + $0xd0] sm:$0xff]  ;;  %v1098_v16 = vmax.f32 %v1034_v3, 0.0  ;;  %1418 = vst.msk [vmem:[%s2528_s3 + $0x58] sm:$0xf] %vm1395_vm2, %v1620_v6  ;;  %v138_v42 = vld [vmem:[#allocation2 + $0xe0] sm:$0xff]  ;;  %v668_v57 = vpop.f32.mrf.mxu0  ;;  %v796_v59 = vpop.f32.mrf.mxu1 }
 0x128   :  { %v998_v11 = vld [vmem:[#allocation2 + $0x1d0] sm:$0xff]  ;;  %v1618_v14 = vpack.c.bf16 %v1095_v1, %v1095_v1  ;;  %v1130_v17 = vmax.f32 %v1066_v4, 0.0  ;;  %1450 = vst.msk [vmem:[%s2528_s3 + $0xd8] sm:$0xf] %vm1395_vm2, %v1652_v7  ;;  %v1096_v18 = vmax.f32 %v1032_v8, 0.0  ;;  %v1037_v20 = vadd.f32 %v2151_v62, %v966_v10  ;;  %v170_v43 = vld [vmem:[#allocation2 + $0x1e0] sm:$0xff] }
 0x129   :  { %v1650_v15 = vpack.c.bf16 %v1127_v2, %v1127_v2  ;;  %v1128_v19 = vmax.f32 %v1064_v9, 0.0  ;;  %v1069_v21 = vadd.f32 %v2151_v62, %v998_v11  ;;  %v964_v22 = vld [vmem:[#allocation2 + $0xc0] sm:$0xff]  ;;  %v1621_v24 = vpack.c.bf16 %v1098_v16, %v1098_v16  ;;  %v172_v29 = vld [vmem:[#allocation2 + $0x1f0] sm:$0xff]  ;;  %v141_v44 = vld [vmem:[#allocation2 + $0xf8] sm:$0xff]  ;;  %903 = vst.msk [vmem:[#allocation2 + $0xf0] sm:$0xff] %vm45_vm0, %v838_v49 }
 0x12a   :  { %v996_v23 = vld [vmem:[#allocation2 + $0x1c0] sm:$0xff]  ;;  %1416 = vst.msk [vmem:[%s2528_s3 + $0x50] sm:$0xf] %vm1395_vm2, %v1618_v14  ;;  %v1653_v25 = vpack.c.bf16 %v1130_v17, %v1130_v17  ;;  %v1035_v26 = vadd.f32 %v2151_v62, %v964_v22  ;;  %v1619_v32 = vpack.c.bf16 %v1096_v18, %v1096_v18  ;;  %v1101_v34 = vmax.f32 %v1037_v20, 0.0  ;;  %v173_v51 = vld [vmem:[#allocation2 + $0x1f8] sm:$0xff]  ;;  %v139_v56 = vld [vmem:[#allocation2 + $0xe8] sm:$0xff] }
 0x12b   :  { %1448 = vst.msk [vmem:[%s2528_s3 + $0xd0] sm:$0xf] %vm1395_vm2, %v1650_v15  ;;  %v1067_v27 = vadd.f32 %v2151_v62, %v996_v23  ;;  %v1651_v33 = vpack.c.bf16 %v1128_v19, %v1128_v19  ;;  %v1133_v35 = vmax.f32 %v1069_v21, 0.0  ;;  %v967_v36 = vld [vmem:[#allocation2 + $0xd8] sm:$0xff]  ;;  %1419 = vst.msk [vmem:[%s2528_s3 + $0x5c] sm:$0xf] %vm1395_vm2, %v1621_v24  ;;  %v870_v50 = vadd.f32 %v1765_v0, %v172_v29 }
 0x12c   :  { %v999_v37 = vld [vmem:[#allocation2 + $0x1d8] sm:$0xff]  ;;  %1451 = vst.msk [vmem:[%s2528_s3 + $0xdc] sm:$0xf] %vm1395_vm2, %v1653_v25  ;;  %v1099_v38 = vmax.f32 %v1035_v26, 0.0  ;;  %v1038_v40 = vadd.f32 %v2151_v62, %v967_v36  ;;  %1417 = vst.msk [vmem:[%s2528_s3 + $0x54] sm:$0xf] %vm1395_vm2, %v1619_v32  ;;  %v1624_v45 = vpack.c.bf16 %v1101_v34, %v1101_v34  ;;  %v836_v63 = vadd.f32 %v665_v12, %v138_v42 }
 0x12d   :  { %v1131_v39 = vmax.f32 %v1067_v27, 0.0  ;;  %v1070_v41 = vadd.f32 %v2151_v62, %v999_v37  ;;  %1449 = vst.msk [vmem:[%s2528_s3 + $0xd4] sm:$0xf] %vm1395_vm2, %v1651_v33  ;;  %v1656_v46 = vpack.c.bf16 %v1133_v35, %v1133_v35  ;;  %v965_v47 = vld [vmem:[#allocation2 + $0xc8] sm:$0xff]  ;;  %v868_v0 = vadd.f32 %v793_v13, %v170_v43  ;;  %v1813_v19 = vld [vmem:[#allocation5] ss:$0 sm:$0xff] }
 0x12e   :  { %v997_v48 = vld [vmem:[#allocation2 + $0x1c8] sm:$0xff]  ;;  %v1622_v52 = vpack.c.bf16 %v1099_v38, %v1099_v38  ;;  %v1102_v54 = vmax.f32 %v1038_v40, 0.0  ;;  %1422 = vst.msk [vmem:[%s2528_s3 + $0x68] sm:$0xf] %vm1395_vm2, %v1624_v45  ;;  %v1036_v60 = vadd.f32 %v2151_v62, %v965_v47  ;;  %v839_v3 = vadd.f32 %v1734_v30, %v141_v44 }
 0x12f   :  { %v1654_v53 = vpack.c.bf16 %v1131_v39, %v1131_v39  ;;  %v1134_v55 = vmax.f32 %v1070_v41, 0.0  ;;  %v171_v58 = vld [vmem:[#allocation2 + $0x1e8] sm:$0xff]  ;;  %1454 = vst.msk [vmem:[%s2528_s3 + $0xe8] sm:$0xf] %vm1395_vm2, %v1656_v46  ;;  %v1068_v61 = vadd.f32 %v2151_v62, %v997_v48  ;;  %v871_v4 = vadd.f32 %v1766_v31, %v173_v51 }
 0x130   :  { %935 = vst.msk [vmem:[#allocation2 + $0x1f0] sm:$0xff] %vm45_vm0, %v870_v50  ;;  %v1625_v1 = vpack.c.bf16 %v1102_v54, %v1102_v54  ;;  %v1100_v5 = vmax.f32 %v1036_v60, 0.0  ;;  %901 = vst.msk [vmem:[#allocation2 + $0xe0] sm:$0xff] %vm45_vm0, %v836_v63  ;;  %v837_v7 = vadd.f32 %v668_v57, %v139_v56  ;;  %v869_v8 = vadd.f32 %v796_v59, %v171_v58  ;;  %v970_v11 = vld [vmem:[#allocation2 + $0xf0] sm:$0xff] }
 0x131   :  { %1420 = vst.msk [vmem:[%s2528_s3 + $0x60] sm:$0xf] %vm1395_vm2, %v1622_v52  ;;  %1452 = vst.msk [vmem:[%s2528_s3 + $0xe0] sm:$0xf] %vm1395_vm2, %v1654_v53  ;;  %v1657_v2 = vpack.c.bf16 %v1134_v55, %v1134_v55  ;;  %v1132_v6 = vmax.f32 %v1068_v61, 0.0  ;;  %v1041_v13 = vadd.f32 %v2151_v62, %v970_v11 }
 0x132   :  { %933 = vst.msk [vmem:[#allocation2 + $0x1e0] sm:$0xff] %vm45_vm0, %v868_v0  ;;  %904 = vst.msk [vmem:[#allocation2 + $0xf8] sm:$0xff] %vm45_vm0, %v839_v3  ;;  %v1623_v9 = vpack.c.bf16 %v1100_v5, %v1100_v5 }
 0x133   :  { %1423 = vst.msk [vmem:[%s2528_s3 + $0x6c] sm:$0xf] %vm1395_vm2, %v1625_v1  ;;  %1455 = vst.msk [vmem:[%s2528_s3 + $0xec] sm:$0xf] %vm1395_vm2, %v1657_v2  ;;  %v1655_v10 = vpack.c.bf16 %v1132_v6, %v1132_v6  ;;  %v1105_v17 = vmax.f32 %v1041_v13, 0.0 }
 0x134   :  { %936 = vst.msk [vmem:[#allocation2 + $0x1f8] sm:$0xff] %vm45_vm0, %v871_v4  ;;  %902 = vst.msk [vmem:[#allocation2 + $0xe8] sm:$0xff] %vm45_vm0, %v837_v7 }
 0x135   :  { %934 = vst.msk [vmem:[#allocation2 + $0x1e8] sm:$0xff] %vm45_vm0, %v869_v8  ;;  %v1628_v28 = vpack.c.bf16 %v1105_v17, %v1105_v17 }
 0x136   :  { %1421 = vst.msk [vmem:[%s2528_s3 + $0x64] sm:$0xf] %vm1395_vm2, %v1623_v9  ;;  %1453 = vst.msk [vmem:[%s2528_s3 + $0xe4] sm:$0xf] %vm1395_vm2, %v1655_v10 }
 0x137   :  { %v1002_v12 = vld [vmem:[#allocation2 + $0x1f0] sm:$0xff]  ;;  %v968_v15 = vld [vmem:[#allocation2 + $0xe0] sm:$0xff]  ;;  %1426 = vst.msk [vmem:[%s2528_s3 + $0x78] sm:$0xf] %vm1395_vm2, %v1628_v28 }
 0x138   :  { %v1073_v14 = vadd.f32 %v2151_v62, %v1002_v12  ;;  %v1039_v20 = vadd.f32 %v1813_v19, %v968_v15 }
 0x139   :  { %v1000_v16 = vld [vmem:[#allocation2 + $0x1e0] sm:$0xff]  ;;  %v971_v22 = vld [vmem:[#allocation2 + $0xf8] sm:$0xff] }
 0x13a   :  { %v1137_v18 = vmax.f32 %v1073_v14, 0.0  ;;  %v1071_v21 = vadd.f32 %v1813_v19, %v1000_v16  ;;  %v1042_v24 = vadd.f32 %v1813_v19, %v971_v22  ;;  %v1103_v30 = vmax.f32 %v1039_v20, 0.0 }
 0x13b   :  { %v1003_v23 = vld [vmem:[#allocation2 + $0x1f8] sm:$0xff]  ;;  %v969_v26 = vld [vmem:[#allocation2 + $0xe8] sm:$0xff] }
 0x13c   :  { %v1074_v25 = vadd.f32 %v1813_v19, %v1003_v23  ;;  %v1001_v27 = vld [vmem:[#allocation2 + $0x1e8] sm:$0xff]  ;;  %v1660_v29 = vpack.c.bf16 %v1137_v18, %v1137_v18  ;;  %v1135_v31 = vmax.f32 %v1071_v21, 0.0  ;;  %v1106_v32 = vmax.f32 %v1042_v24, 0.0 }
 0x13d   :  { %v1040_v62 = vadd.f32 %v1813_v19, %v969_v26  ;;  %v1072_v34 = vadd.f32 %v1813_v19, %v1001_v27  ;;  %v1626_v35 = vpack.c.bf16 %v1103_v30, %v1103_v30 }
 0x13e   :  { %v1138_v33 = vmax.f32 %v1074_v25, 0.0  ;;  %1458 = vst.msk [vmem:[%s2528_s3 + $0xf8] sm:$0xf] %vm1395_vm2, %v1660_v29  ;;  %v1658_v36 = vpack.c.bf16 %v1135_v31, %v1135_v31  ;;  %v1629_v37 = vpack.c.bf16 %v1106_v32, %v1106_v32 }
 0x13f   :  { %v1104_v39 = vmax.f32 %v1040_v62, 0.0  ;;  %v1136_v40 = vmax.f32 %v1072_v34, 0.0  ;;  %1424 = vst.msk [vmem:[%s2528_s3 + $0x70] sm:$0xf] %vm1395_vm2, %v1626_v35 }
 0x140   :  { %v1661_v38 = vpack.c.bf16 %v1138_v33, %v1138_v33  ;;  %1456 = vst.msk [vmem:[%s2528_s3 + $0xf0] sm:$0xf] %vm1395_vm2, %v1658_v36  ;;  %1427 = vst.msk [vmem:[%s2528_s3 + $0x7c] sm:$0xf] %vm1395_vm2, %v1629_v37 }
 0x141   :  { %v1627_v41 = vpack.c.bf16 %v1104_v39, %v1104_v39  ;;  %v1659_v42 = vpack.c.bf16 %v1136_v40, %v1136_v40 }
 0x142   :  { %1459 = vst.msk [vmem:[%s2528_s3 + $0xfc] sm:$0xf] %vm1395_vm2, %v1661_v38 }
 0x143   :  { %1425 = vst.msk [vmem:[%s2528_s3 + $0x74] sm:$0xf] %vm1395_vm2, %v1627_v41  ;;  %1457 = vst.msk [vmem:[%s2528_s3 + $0xf4] sm:$0xf] %vm1395_vm2, %v1659_v42 }
 0x144   :  { %1464 = vsyncpa [#allocation4], 1 }
 0x145   :  { %1465 = vsyncpa [#allocation6], 1 }

// kernel: vae_forward.23
= control target key start
LH: loop header
LB: loop body
LE: loop exit
PB: predicated region body
PF: predicated region fallthrough
CT: control target
= control target key end

     0   :  { %s2606_s1 = inlined_call_operand.vmem [shape: bf16[1024,128], index: 1, kind: input, shape index: {}]   ;;  %s2607_s0 = inlined_call_operand.vmem [shape: bf16[128,1024], index: 0, kind: input, shape index: {}]   ;;  %s2608_s2 = inlined_call_operand.vmem [shape: f32[1,128], index: 2, kind: input, shape index: {}]   ;;  %s2609_s3 = inlined_call_operand.vmem [shape: bf16[128,128], index: 3, kind: output, shape index: {}]  }
   0x1   :  { %v1973_v0 = vld [vmem:[%s2606_s1 + $0x78] sm:$0xff]   ;;  %v1977_v4 = vld [vmem:[%s2606_s1 + $0x70] sm:$0xff]   ;;  %v1981_v8 = vld [vmem:[%s2606_s1 + $0x68] sm:$0xff]  }
   0x2   :  { %v1974_v1 = vld [vmem:[%s2606_s1 + $0xf8] sm:$0xff]   ;;  %1717 = vmatprep.subr.bf16.mxu0 %v1973_v0  ;;  %v1978_v5 = vld [vmem:[%s2606_s1 + $0xf0] sm:$0xff]   ;;  %v1982_v9 = vld [vmem:[%s2606_s1 + $0xe8] sm:$0xff]  }
   0x3   :  { %v1975_v2 = vld [vmem:[%s2606_s1 + $0x38] sm:$0xff]   ;;  %1781 = vmatprep.subr.bf16.mxu1 %v1974_v1  ;;  %v1979_v6 = vld [vmem:[%s2606_s1 + $0x30] sm:$0xff]   ;;  %v1983_v10 = vld [vmem:[%s2606_s1 + $0x28] sm:$0xff]  }
   0x4   :  { %v1976_v3 = vld [vmem:[%s2606_s1 + $0xb8] sm:$0xff]   ;;  %1718 = vmatpush3.bf16.msra.mxu0 %v1975_v2  ;;  %v1980_v7 = vld [vmem:[%s2606_s1 + $0xb0] sm:$0xff]   ;;  %v1984_v11 = vld [vmem:[%s2606_s1 + $0xa8] sm:$0xff]  }
   0x5   :  { %1782 = vmatpush3.bf16.msra.mxu1 %v1976_v3  ;;  %1719 = vmatprep.subr.bf16.mxu0 %v1977_v4  ;;  %v1985_v12 = vld [vmem:[%s2606_s1 + $0x60] sm:$0xff]   ;;  %v1989_v16 = vld [vmem:[%s2606_s1 + $0x58] sm:$0xff]   ;;  %v1993_v20 = vld [vmem:[%s2606_s1 + $0x50] sm:$0xff]  }
   0x6   :  { %1783 = vmatprep.subr.bf16.mxu1 %v1978_v5  ;;  %v1986_v13 = vld [vmem:[%s2606_s1 + $0xe0] sm:$0xff]   ;;  %v1990_v17 = vld [vmem:[%s2606_s1 + $0xd8] sm:$0xff]   ;;  %v1994_v21 = vld [vmem:[%s2606_s1 + $0xd0] sm:$0xff]  }
   0x7   :  { %v1987_v14 = vld [vmem:[%s2606_s1 + $0x20] sm:$0xff]   ;;  %v1991_v18 = vld [vmem:[%s2606_s1 + $0x18] sm:$0xff]   ;;  %v1995_v22 = vld [vmem:[%s2606_s1 + $0x10] sm:$0xff]  }
   0x8   :  { %1720 = vmatpush3.bf16.msra.mxu0 %v1979_v6  ;;  %v1988_v15 = vld [vmem:[%s2606_s1 + $0xa0] sm:$0xff]   ;;  %v1992_v19 = vld [vmem:[%s2606_s1 + $0x98] sm:$0xff]   ;;  %v1996_v23 = vld [vmem:[%s2606_s1 + $0x90] sm:$0xff]  }
   0x9   :  { %1784 = vmatpush3.bf16.msra.mxu1 %v1980_v7  ;;  %1721 = vmatprep.subr.bf16.mxu0 %v1981_v8  ;;  %v1997_v24 = vld [vmem:[%s2606_s1 + $0x48] sm:$0xff]   ;;  %v2001_v28 = vld [vmem:[%s2606_s1 + $0x40] sm:$0xff]   ;;  %v2005_v40 = vld [vmem:[%s2606_s1 + $0x178] sm:$0xff]  }
   0xa   :  { %1785 = vmatprep.subr.bf16.mxu1 %v1982_v9  ;;  %v1998_v25 = vld [vmem:[%s2606_s1 + $0xc8] sm:$0xff]   ;;  %v2002_v29 = vld [vmem:[%s2606_s1 + $0xc0] sm:$0xff]   ;;  %v2006_v41 = vld [vmem:[%s2606_s1 + $0x138] sm:$0xff]  }
   0xb   :  { %v1999_v26 = vld [vmem:[%s2606_s1 + $0x8] sm:$0xff]   ;;  %v2003_v30 = vld [vmem:[%s2606_s1] sm:$0xff]   ;;  %v2007_v42 = vld [vmem:[%s2606_s1 + $0x1f8] sm:$0xff]  }
   0xc   :  { %1722 = vmatpush3.bf16.msra.mxu0 %v1983_v10  ;;  %v2000_v27 = vld [vmem:[%s2606_s1 + $0x88] sm:$0xff]   ;;  %v2004_v31 = vld [vmem:[%s2606_s1 + $0x80] sm:$0xff]   ;;  %v2008_v43 = vld [vmem:[%s2606_s1 + $0x1b8] sm:$0xff]  }
   0xd   :  { %1786 = vmatpush3.bf16.msra.mxu1 %v1984_v11  ;;  %1723 = vmatprep.subr.bf16.mxu0 %v1985_v12  ;;  %v51_v32 = vld [vmem:[%s2607_s0] sm:$0xff]  ;;  %v52_v34 = vld [vmem:[%s2607_s0 + $0x8] sm:$0xff]  ;;  %v2009_v50 = vld [vmem:[%s2606_s1 + $0x170] sm:$0xff]  }
   0xe   :  { %1787 = vmatprep.subr.bf16.mxu1 %v1986_v13  ;;  %v55_v33 = vld [vmem:[%s2607_s0 + $0x20] sm:$0xff]  ;;  %v56_v37 = vld [vmem:[%s2607_s0 + $0x28] sm:$0xff]  ;;  %v2010_v52 = vld [vmem:[%s2606_s1 + $0x130] sm:$0xff]  }
   0xf   :  { %v1509_v35 = vcombine.low %v51_v32, %v55_v33  ;;  %v1510_v36 = vcombine.high %v51_v32, %v55_v33  ;;  %v1511_v38 = vcombine.low %v52_v34, %v56_v37  ;;  %v1512_v39 = vcombine.high %v52_v34, %v56_v37  ;;  %v59_v44 = vld [vmem:[%s2607_s0 + $0x40] sm:$0xff]  ;;  %v60_v47 = vld [vmem:[%s2607_s0 + $0x48] sm:$0xff]  ;;  %v2011_v54 = vld [vmem:[%s2606_s1 + $0x1f0] sm:$0xff]  }
  0x10   :  { %1724 = vmatpush3.bf16.msra.mxu0 %v1987_v14  ;;  %v63_v45 = vld [vmem:[%s2607_s0 + $0x60] sm:$0xff]  ;;  %v64_v48 = vld [vmem:[%s2607_s0 + $0x68] sm:$0xff]  ;;  %v2012_v55 = vld [vmem:[%s2606_s1 + $0x1b0] sm:$0xff]  }
  0x11   :  { %1788 = vmatpush3.bf16.msra.mxu1 %v1988_v15  ;;  %1725 = vmatprep.subr.bf16.mxu0 %v1989_v16  ;;  %v1518_v46 = vcombine.high %v59_v44, %v63_v45  ;;  %v1520_v49 = vcombine.high %v60_v47, %v64_v48  ;;  %v1517_v51 = vcombine.low %v59_v44, %v63_v45  ;;  %v67_v56 = vld [vmem:[%s2607_s0 + $0x80] sm:$0xff]  ;;  %v68_v58 = vld [vmem:[%s2607_s0 + $0x88] sm:$0xff]  ;;  %v2027_v32 = vld [vmem:[%s2606_s1 + $0x1d0] sm:$0xff]  }
  0x12   :  { %1789 = vmatprep.subr.bf16.mxu1 %v1990_v17  ;;  %979 = vmatprep.mubr.bf16.mxu0 %v1510_v36  ;;  %v1519_v53 = vcombine.low %v60_v47, %v64_v48  ;;  %v71_v57 = vld [vmem:[%s2607_s0 + $0xa0] sm:$0xff]  ;;  %v72_v59 = vld [vmem:[%s2607_s0 + $0xa8] sm:$0xff]  ;;  %v2028_v33 = vld [vmem:[%s2606_s1 + $0x190] sm:$0xff]  }
  0x13   :  { %1076 = vmatprep.mubr.bf16.mxu1 %v1512_v39  ;;  %v1526_v60 = vcombine.high %v67_v56, %v71_v57  ;;  %v1528_v61 = vcombine.high %v68_v58, %v72_v59  ;;  %v2013_v62 = vld [vmem:[%s2606_s1 + $0x168] sm:$0xff]   ;;  %v1525_v2 = vcombine.low %v67_v56, %v71_v57  ;;  %v75_v3 = vld [vmem:[%s2607_s0 + $0xc0] sm:$0xff]  ;;  %v1527_v6 = vcombine.low %v68_v58, %v72_v59 }
  0x14   :  { %1726 = vmatpush3.bf16.msra.mxu0 %v1991_v18  ;;  %v2014_v63 = vld [vmem:[%s2606_s1 + $0x128] sm:$0xff]   ;;  %v79_v4 = vld [vmem:[%s2607_s0 + $0xe0] sm:$0xff]  ;;  %v2021_v18 = vld [vmem:[%s2606_s1 + $0x158] sm:$0xff]  }
  0x15   :  { %1790 = vmatpush3.bf16.msra.mxu1 %v1992_v19  ;;  %1727 = vmatprep.subr.bf16.mxu0 %v1993_v20  ;;  %v2015_v0 = vld [vmem:[%s2606_s1 + $0x1e8] sm:$0xff]   ;;  %v1534_v7 = vcombine.high %v75_v3, %v79_v4  ;;  %v2017_v10 = vld [vmem:[%s2606_s1 + $0x160] sm:$0xff]   ;;  %v1533_v19 = vcombine.low %v75_v3, %v79_v4  ;;  %v2022_v20 = vld [vmem:[%s2606_s1 + $0x118] sm:$0xff]  }
  0x16   :  { %1791 = vmatprep.subr.bf16.mxu1 %v1994_v21  ;;  %v2016_v1 = vld [vmem:[%s2606_s1 + $0x1a8] sm:$0xff]   ;;  %v2018_v11 = vld [vmem:[%s2606_s1 + $0x120] sm:$0xff]  }
  0x17   :  { %v76_v5 = vld [vmem:[%s2607_s0 + $0xc8] sm:$0xff]  ;;  %v2019_v12 = vld [vmem:[%s2606_s1 + $0x1e0] sm:$0xff]  }
  0x18   :  { %1728 = vmatpush3.bf16.msra.mxu0 %v1995_v22  ;;  %v80_v8 = vld [vmem:[%s2607_s0 + $0xe8] sm:$0xff]  ;;  %v2020_v13 = vld [vmem:[%s2606_s1 + $0x1a0] sm:$0xff]  }
  0x19   :  { %1792 = vmatpush3.bf16.msra.mxu1 %v1996_v23  ;;  %1729 = vmatprep.subr.bf16.mxu0 %v1997_v24  ;;  %v1536_v9 = vcombine.high %v76_v5, %v80_v8  ;;  %v83_v14 = vld [vmem:[%s2607_s0 + $0x100] sm:$0xff]  ;;  %v84_v16 = vld [vmem:[%s2607_s0 + $0x108] sm:$0xff]  ;;  %v1535_v21 = vcombine.low %v76_v5, %v80_v8  ;;  %v2023_v23 = vld [vmem:[%s2606_s1 + $0x1d8] sm:$0xff]  }
  0x1a   :  { %1793 = vmatprep.subr.bf16.mxu1 %v1998_v25  ;;  %v87_v15 = vld [vmem:[%s2607_s0 + $0x120] sm:$0xff]  ;;  %v88_v17 = vld [vmem:[%s2607_s0 + $0x128] sm:$0xff]  ;;  %v2024_v25 = vld [vmem:[%s2606_s1 + $0x198] sm:$0xff]  }
  0x1b   :  { %v1542_v22 = vcombine.high %v83_v14, %v87_v15  ;;  %v1544_v24 = vcombine.high %v84_v16, %v88_v17  ;;  %v1541_v34 = vcombine.low %v83_v14, %v87_v15  ;;  %v2030_v39 = vld [vmem:[%s2606_s1 + $0x108] sm:$0xff]   ;;  %v2034_v48 = vld [vmem:[%s2606_s1 + $0x100] sm:$0xff]   ;;  %v62_v8 = vld [vmem:[%s2607_s0 + $0x58] sm:$0xff] }
  0x1c   :  { %1730 = vmatpush3.bf16.msra.mxu0 %v1999_v26  ;;  %v91_v26 = vld [vmem:[%s2607_s0 + $0x140] sm:$0xff]  ;;  %v100_v44 = vld [vmem:[%s2607_s0 + $0x188] sm:$0xff]  ;;  %v69_v14 = vld [vmem:[%s2607_s0 + $0x90] sm:$0xff] }
  0x1d   :  { %1794 = vmatpush3.bf16.msra.mxu1 %v2000_v27  ;;  %1731 = vmatprep.subr.bf16.mxu0 %v2001_v28  ;;  %v95_v27 = vld [vmem:[%s2607_s0 + $0x160] sm:$0xff]  ;;  %v2025_v28 = vld [vmem:[%s2606_s1 + $0x150] sm:$0xff]   ;;  %v104_v45 = vld [vmem:[%s2607_s0 + $0x1a8] sm:$0xff] }
  0x1e   :  { %1795 = vmatprep.subr.bf16.mxu1 %v2002_v29  ;;  %v92_v29 = vld [vmem:[%s2607_s0 + $0x148] sm:$0xff]  ;;  %v1550_v36 = vcombine.high %v91_v26, %v95_v27  ;;  %v1549_v47 = vcombine.low %v91_v26, %v95_v27  ;;  %v1559_v59 = vcombine.low %v100_v44, %v104_v45  ;;  %v73_v15 = vld [vmem:[%s2607_s0 + $0xb0] sm:$0xff] }
  0x1f   :  { %v108_v56 = vld [vmem:[%s2607_s0 + $0x1c8] sm:$0xff]  ;;  %v1529_v26 = vcombine.low %v69_v14, %v73_v15 }
  0x20   :  { %1732 = vmatpush3.bf16.msra.mxu0 %v2003_v30  ;;  %v96_v30 = vld [vmem:[%s2607_s0 + $0x168] sm:$0xff] }
  0x21   :  { %1796 = vmatpush3.bf16.msra.mxu1 %v2004_v31  ;;  %1845 = vmatprep.subr.bf16.mxu0 %v2005_v40  ;;  %v2026_v31 = vld [vmem:[%s2606_s1 + $0x110] sm:$0xff]   ;;  %v1552_v37 = vcombine.high %v92_v29, %v96_v30  ;;  %v2031_v40 = vld [vmem:[%s2606_s1 + $0x1c8] sm:$0xff]  }
  0x22   :  { %1909 = vmatprep.subr.bf16.mxu1 %v2007_v42  ;;  %v103_v42 = vld [vmem:[%s2607_s0 + $0x1a0] sm:$0xff]  ;;  %v112_v57 = vld [vmem:[%s2607_s0 + $0x1e8] sm:$0xff] }
  0x23   :  { %980 = vmatmul.mubr.bf16.vlgmr.msra.gmra.mxu0 %v1509_v35  ;;  %v1543_v35 = vcombine.low %v84_v16, %v88_v17  ;;  %v1567_v3 = vcombine.low %v108_v56, %v112_v57  ;;  %v70_v16 = vld [vmem:[%s2607_s0 + $0x98] sm:$0xff] }
  0x24   :  { %1077 = vmatmul.mubr.bf16.vlgmr.msra.gmra.mxu1 %v1511_v38  ;;  %1846 = vmatpush3.bf16.msra.mxu0 %v2006_v41  ;;  %v2029_v38 = vld [vmem:[%s2606_s1 + $0x148] sm:$0xff]   ;;  %v99_v41 = vld [vmem:[%s2607_s0 + $0x180] sm:$0xff]  ;;  %v74_v17 = vld [vmem:[%s2607_s0 + $0xb8] sm:$0xff] }
  0x25   :  { %1910 = vmatpush3.bf16.msra.mxu1 %v2008_v43  ;;  %987 = vmatprep.mubr.bf16.mxu0 %v1518_v46  ;;  %v2032_v43 = vld [vmem:[%s2606_s1 + $0x188] sm:$0xff]   ;;  %v2033_v46 = vld [vmem:[%s2606_s1 + $0x140] sm:$0xff]   ;;  %v1557_v58 = vcombine.low %v99_v41, %v103_v42  ;;  %v1531_v27 = vcombine.low %v70_v16, %v74_v17 }
  0x26   :  { %1084 = vmatprep.mubr.bf16.mxu1 %v1520_v49  ;;  %1847 = vmatprep.subr.bf16.mxu0 %v2009_v50  ;;  %v1551_v49 = vcombine.low %v92_v29, %v96_v30  ;;  %v1558_v50 = vcombine.high %v99_v41, %v103_v42  ;;  %v85_v30 = vld [vmem:[%s2607_s0 + $0x110] sm:$0xff]  ;;  %v98_v41 = vld [vmem:[%s2607_s0 + $0x178] sm:$0xff] }
  0x27   :  { %1911 = vmatprep.subr.bf16.mxu1 %v2011_v54  ;;  %v107_v54 = vld [vmem:[%s2607_s0 + $0x1c0] sm:$0xff] }
  0x28   :  { %1848 = vmatpush3.bf16.msra.mxu0 %v2010_v52  ;;  %v1560_v52 = vcombine.high %v100_v44, %v104_v45 }
  0x29   :  { %1912 = vmatpush3.bf16.msra.mxu1 %v2012_v55  ;;  %1849 = vmatprep.subr.bf16.mxu0 %v2013_v62  ;;  %v111_v55 = vld [vmem:[%s2607_s0 + $0x1e0] sm:$0xff]  ;;  %v53_v62 = vld [vmem:[%s2607_s0 + $0x10] sm:$0xff] }
  0x2a   :  { %1913 = vmatprep.subr.bf16.mxu1 %v2015_v0  ;;  %v54_v0 = vld [vmem:[%s2607_s0 + $0x18] sm:$0xff] }
  0x2b   :  { %988 = vmatmul.mubr.bf16.gmra.mxu0 %v1517_v51  ;;  %v2035_v51 = vld [vmem:[%s2606_s1 + $0x1c0] sm:$0xff]  }
  0x2c   :  { %1085 = vmatmul.mubr.bf16.gmra.mxu1 %v1519_v53  ;;  %995 = vmatprep.mubr.bf16.mxu0 %v1526_v60  ;;  %v2036_v53 = vld [vmem:[%s2606_s1 + $0x180] sm:$0xff]   ;;  %v1566_v60 = vcombine.high %v107_v54, %v111_v55 }
  0x2d   :  { %1092 = vmatprep.mubr.bf16.mxu1 %v1528_v61  ;;  %1850 = vmatpush3.bf16.msra.mxu0 %v2014_v63  ;;  %v1568_v61 = vcombine.high %v108_v56, %v112_v57  ;;  %v57_v63 = vld [vmem:[%s2607_s0 + $0x30] sm:$0xff]  ;;  %v110_v56 = vld [vmem:[%s2607_s0 + $0x1d8] sm:$0xff] }
  0x2e   :  { %1914 = vmatpush3.bf16.msra.mxu1 %v2016_v1  ;;  %1851 = vmatprep.subr.bf16.mxu0 %v2017_v10  ;;  %v58_v1 = vld [vmem:[%s2607_s0 + $0x38] sm:$0xff]  ;;  %v1514_v4 = vcombine.high %v53_v62, %v57_v63  ;;  %v1513_v10 = vcombine.low %v53_v62, %v57_v63 }
  0x2f   :  { %1915 = vmatprep.subr.bf16.mxu1 %v2019_v12  ;;  %v1516_v5 = vcombine.high %v54_v0, %v58_v1  ;;  %v114_v57 = vld [vmem:[%s2607_s0 + $0x1f8] sm:$0xff] }
  0x30   :  { %v1571_v63 = vcombine.low %v110_v56, %v114_v57 }
  0x31   :  { %1852 = vmatpush3.bf16.msra.mxu0 %v2018_v11  ;;  %v1515_v11 = vcombine.low %v54_v0, %v58_v1 }
  0x32   :  { %1916 = vmatpush3.bf16.msra.mxu1 %v2020_v13  ;;  %1853 = vmatprep.subr.bf16.mxu0 %v2021_v18 }
  0x33   :  { %996 = vmatmul.mubr.bf16.gmra.mxu0 %v1525_v2  ;;  %1917 = vmatprep.subr.bf16.mxu1 %v2023_v23  ;;  %v1565_v2 = vcombine.low %v107_v54, %v111_v55  ;;  %v81_v23 = vld [vmem:[%s2607_s0 + $0xf0] sm:$0xff] }
  0x34   :  { %1093 = vmatmul.mubr.bf16.gmra.mxu1 %v1527_v6  ;;  %1003 = vmatprep.mubr.bf16.mxu0 %v1534_v7  ;;  %v61_v6 = vld [vmem:[%s2607_s0 + $0x50] sm:$0xff] }
  0x35   :  { %1100 = vmatprep.mubr.bf16.mxu1 %v1536_v9  ;;  %1854 = vmatpush3.bf16.msra.mxu0 %v2022_v20  ;;  %v65_v7 = vld [vmem:[%s2607_s0 + $0x70] sm:$0xff]  ;;  %v66_v9 = vld [vmem:[%s2607_s0 + $0x78] sm:$0xff]  ;;  %v1530_v20 = vcombine.high %v69_v14, %v73_v15 }
  0x36   :  { %1918 = vmatpush3.bf16.msra.mxu1 %v2024_v25  ;;  %1855 = vmatprep.subr.bf16.mxu0 %v2025_v28  ;;  %v1522_v12 = vcombine.high %v61_v6, %v65_v7  ;;  %v1524_v13 = vcombine.high %v62_v8, %v66_v9  ;;  %v1521_v18 = vcombine.low %v61_v6, %v65_v7  ;;  %v82_v25 = vld [vmem:[%s2607_s0 + $0xf8] sm:$0xff]  ;;  %v109_v54 = vld [vmem:[%s2607_s0 + $0x1d0] sm:$0xff] }
  0x37   :  { %1919 = vmatprep.subr.bf16.mxu1 %v2027_v32  ;;  %v86_v32 = vld [vmem:[%s2607_s0 + $0x118] sm:$0xff]  ;;  %v113_v55 = vld [vmem:[%s2607_s0 + $0x1f0] sm:$0xff] }
  0x38   :  { %v1569_v62 = vcombine.low %v109_v54, %v113_v55 }
  0x39   :  { %1856 = vmatpush3.bf16.msra.mxu0 %v2026_v31  ;;  %v89_v31 = vld [vmem:[%s2607_s0 + $0x130] sm:$0xff] }
  0x3a   :  { %1920 = vmatpush3.bf16.msra.mxu1 %v2028_v33  ;;  %1857 = vmatprep.subr.bf16.mxu0 %v2029_v38  ;;  %v90_v33 = vld [vmem:[%s2607_s0 + $0x138] sm:$0xff]  ;;  %v93_v38 = vld [vmem:[%s2607_s0 + $0x150] sm:$0xff]  ;;  %v1545_v42 = vcombine.low %v85_v30, %v89_v31 }
  0x3b   :  { %1004 = vmatmul.mubr.bf16.gmra.mxu0 %v1533_v19  ;;  %1921 = vmatprep.subr.bf16.mxu1 %v2031_v40  ;;  %v1523_v19 = vcombine.low %v62_v8, %v66_v9  ;;  %v94_v40 = vld [vmem:[%s2607_s0 + $0x158] sm:$0xff] }
  0x3c   :  { %1101 = vmatmul.mubr.bf16.gmra.mxu1 %v1535_v21  ;;  %1011 = vmatprep.mubr.bf16.mxu0 %v1542_v22  ;;  %v1532_v21 = vcombine.high %v70_v16, %v74_v17  ;;  %v77_v22 = vld [vmem:[%s2607_s0 + $0xd0] sm:$0xff]  ;;  %v1556_v45 = vcombine.high %v94_v40, %v98_v41 }
  0x3d   :  { %1108 = vmatprep.mubr.bf16.mxu1 %v1544_v24  ;;  %1858 = vmatpush3.bf16.msra.mxu0 %v2030_v39  ;;  %v78_v24 = vld [vmem:[%s2607_s0 + $0xd8] sm:$0xff]  ;;  %v1538_v28 = vcombine.high %v77_v22, %v81_v23  ;;  %v97_v39 = vld [vmem:[%s2607_s0 + $0x170] sm:$0xff] }
  0x3e   :  { %1922 = vmatpush3.bf16.msra.mxu1 %v2032_v43  ;;  %1859 = vmatprep.subr.bf16.mxu0 %v2033_v46  ;;  %v1540_v29 = vcombine.high %v78_v24, %v82_v25  ;;  %v1547_v43 = vcombine.low %v86_v32, %v90_v33  ;;  %v1554_v44 = vcombine.high %v93_v38, %v97_v39  ;;  %v101_v46 = vld [vmem:[%s2607_s0 + $0x190] sm:$0xff] }
  0x3f   :  { %1923 = vmatprep.subr.bf16.mxu1 %v2035_v51  ;;  %v1555_v51 = vcombine.low %v94_v40, %v98_v41 }
  0x41   :  { %1860 = vmatpush3.bf16.msra.mxu0 %v2034_v48  ;;  %v102_v48 = vld [vmem:[%s2607_s0 + $0x198] sm:$0xff] }
  0x42   :  { %1924 = vmatpush3.bf16.msra.mxu1 %v2036_v53 }
  0x43   :  { %1012 = vmatmul.mubr.bf16.gmra.mxu0 %v1541_v34  ;;  %v1537_v34 = vcombine.low %v77_v22, %v81_v23 }
  0x44   :  { %1109 = vmatmul.mubr.bf16.gmra.mxu1 %v1543_v35  ;;  %1019 = vmatprep.mubr.bf16.mxu0 %v1550_v36  ;;  %v1539_v35 = vcombine.low %v78_v24, %v82_v25  ;;  %v1546_v36 = vcombine.high %v85_v30, %v89_v31 }
  0x45   :  { %1116 = vmatprep.mubr.bf16.mxu1 %v1552_v37  ;;  %v1548_v37 = vcombine.high %v86_v32, %v90_v33 }
  0x4b   :  { %1020 = vmatmul.mubr.bf16.gmra.mxu0 %v1549_v47  ;;  %v105_v47 = vld [vmem:[%s2607_s0 + $0x1b0] sm:$0xff] }
  0x4c   :  { %1117 = vmatmul.mubr.bf16.gmra.mxu1 %v1551_v49  ;;  %1027 = vmatprep.mubr.bf16.mxu0 %v1558_v50  ;;  %v106_v49 = vld [vmem:[%s2607_s0 + $0x1b8] sm:$0xff]  ;;  %v1553_v50 = vcombine.low %v93_v38, %v97_v39 }
  0x4d   :  { %1124 = vmatprep.mubr.bf16.mxu1 %v1560_v52  ;;  %v1562_v52 = vcombine.high %v101_v46, %v105_v47  ;;  %v1564_v53 = vcombine.high %v102_v48, %v106_v49 }
  0x53   :  { %1028 = vmatmul.mubr.bf16.gmra.mxu0 %v1557_v58  ;;  %v1561_v58 = vcombine.low %v101_v46, %v105_v47 }
  0x54   :  { %1125 = vmatmul.mubr.bf16.gmra.mxu1 %v1559_v59  ;;  %1035 = vmatprep.mubr.bf16.mxu0 %v1566_v60  ;;  %v1563_v59 = vcombine.low %v102_v48, %v106_v49  ;;  %v1570_v60 = vcombine.high %v109_v54, %v113_v55 }
  0x55   :  { %1132 = vmatprep.mubr.bf16.mxu1 %v1568_v61  ;;  %v1572_v61 = vcombine.high %v110_v56, %v114_v57 }
  0x5b   :  { %1036 = vmatmul.mubr.bf16.gmra.mxu0 %v1565_v2 }
  0x5c   :  { %1133 = vmatmul.mubr.bf16.gmra.mxu1 %v1567_v3  ;;  %1173 = vmatprep.mubr.bf16.mxu0 %v1514_v4 }
  0x5d   :  { %1270 = vmatprep.mubr.bf16.mxu1 %v1516_v5 }
  0x63   :  { %1174 = vmatmul.mubr.bf16.vlgmr.msra.gmra.mxu0 %v1513_v10 }
  0x64   :  { %1271 = vmatmul.mubr.bf16.vlgmr.msra.gmra.mxu1 %v1515_v11  ;;  %1181 = vmatprep.mubr.bf16.mxu0 %v1522_v12 }
  0x65   :  { %1278 = vmatprep.mubr.bf16.mxu1 %v1524_v13 }
  0x6b   :  { %1182 = vmatmul.mubr.bf16.gmra.mxu0 %v1521_v18 }
  0x6c   :  { %1279 = vmatmul.mubr.bf16.gmra.mxu1 %v1523_v19  ;;  %1189 = vmatprep.mubr.bf16.mxu0 %v1530_v20 }
  0x6d   :  { %1286 = vmatprep.mubr.bf16.mxu1 %v1532_v21 }
  0x73   :  { %1190 = vmatmul.mubr.bf16.gmra.mxu0 %v1529_v26 }
  0x74   :  { %1287 = vmatmul.mubr.bf16.gmra.mxu1 %v1531_v27  ;;  %1197 = vmatprep.mubr.bf16.mxu0 %v1538_v28 }
  0x75   :  { %1294 = vmatprep.mubr.bf16.mxu1 %v1540_v29 }
  0x7b   :  { %1198 = vmatmul.mubr.bf16.gmra.mxu0 %v1537_v34 }
  0x7c   :  { %1295 = vmatmul.mubr.bf16.gmra.mxu1 %v1539_v35  ;;  %1205 = vmatprep.mubr.bf16.mxu0 %v1546_v36 }
  0x7d   :  { %1302 = vmatprep.mubr.bf16.mxu1 %v1548_v37 }
  0x83   :  { %1206 = vmatmul.mubr.bf16.gmra.mxu0 %v1545_v42 }
  0x84   :  { %1303 = vmatmul.mubr.bf16.gmra.mxu1 %v1547_v43  ;;  %1213 = vmatprep.mubr.bf16.mxu0 %v1554_v44 }
  0x85   :  { %1310 = vmatprep.mubr.bf16.mxu1 %v1556_v45 }
  0x8b   :  { %1214 = vmatmul.mubr.bf16.gmra.mxu0 %v1553_v50 }
  0x8c   :  { %1311 = vmatmul.mubr.bf16.gmra.mxu1 %v1555_v51  ;;  %1221 = vmatprep.mubr.bf16.mxu0 %v1562_v52 }
  0x8d   :  { %1318 = vmatprep.mubr.bf16.mxu1 %v1564_v53 }
  0x93   :  { %1222 = vmatmul.mubr.bf16.gmra.mxu0 %v1561_v58 }
  0x94   :  { %1319 = vmatmul.mubr.bf16.gmra.mxu1 %v1563_v59  ;;  %1229 = vmatprep.mubr.bf16.mxu0 %v1570_v60 }
  0x95   :  { %1326 = vmatprep.mubr.bf16.mxu1 %v1572_v61 }
  0x9b   :  { %1230 = vmatmul.mubr.bf16.gmra.mxu0 %v1569_v62 }
  0x9c   :  { %1327 = vmatmul.mubr.bf16.gmra.mxu1 %v1571_v63 }
  0xe3   :  { %v1733_v0 = vpop.f32.mrf.mxu0 }
  0xe4   :  { %v1797_v1 = vpop.f32.mrf.mxu1 }
  0xe5   :  { %v1734_v2 = vpop.f32.mrf.mxu0 }
  0xe6   :  { %v1735_v3 = vadd.f32 %v1734_v2, %v1733_v0  ;;  %v1798_v4 = vpop.f32.mrf.mxu1 }
  0xe7   :  { %v1799_v5 = vadd.f32 %v1798_v4, %v1797_v1  ;;  %v2441_v6 = vpop.f32.mrf.mxu0 }
  0xe8   :  { %v2443_v7 = vpop.f32.mrf.mxu1 }
  0xe9   :  { %v2445_v8 = vadd.f32 %v1799_v5, %v1735_v3  ;;  %v2447_v9 = vpop.f32.mrf.mxu0 }
  0xea   :  { %v2449_v10 = vpop.f32.mrf.mxu1 }
  0xeb   :  { %v1739_v11 = vpop.f32.mrf.mxu0 }
  0xec   :  { %v1803_v12 = vpop.f32.mrf.mxu1 }
  0xed   :  { %v1740_v13 = vpop.f32.mrf.mxu0 }
  0xee   :  { %v1741_v14 = vadd.f32 %v1740_v13, %v1739_v11  ;;  %v1804_v15 = vpop.f32.mrf.mxu1 }
  0xef   :  { %v1805_v16 = vadd.f32 %v1804_v15, %v1803_v12  ;;  %v2451_v17 = vpop.f32.mrf.mxu0 }
  0xf0   :  { %v2453_v18 = vpop.f32.mrf.mxu1 }
  0xf1   :  { %v2455_v19 = vadd.f32 %v1805_v16, %v1741_v14  ;;  %v2457_v20 = vpop.f32.mrf.mxu0 }
  0xf2   :  { %v2459_v21 = vpop.f32.mrf.mxu1 }
  0xf3   :  { %v1745_v22 = vpop.f32.mrf.mxu0 }
  0xf4   :  { %v1809_v23 = vpop.f32.mrf.mxu1 }
  0xf5   :  { %v1746_v24 = vpop.f32.mrf.mxu0 }
  0xf6   :  { %v1747_v25 = vadd.f32 %v1746_v24, %v1745_v22  ;;  %v1810_v26 = vpop.f32.mrf.mxu1 }
  0xf7   :  { %v1811_v27 = vadd.f32 %v1810_v26, %v1809_v23  ;;  %v2461_v28 = vpop.f32.mrf.mxu0 }
  0xf8   :  { %v2463_v29 = vpop.f32.mrf.mxu1 }
  0xf9   :  { %v2465_v30 = vadd.f32 %v1811_v27, %v1747_v25  ;;  %v2467_v31 = vpop.f32.mrf.mxu0 }
  0xfa   :  { %v2469_v32 = vpop.f32.mrf.mxu1 }
  0xfb   :  { %v1751_v33 = vpop.f32.mrf.mxu0 }
  0xfc   :  { %v1815_v34 = vpop.f32.mrf.mxu1 }
  0xfd   :  { %v1752_v35 = vpop.f32.mrf.mxu0 }
  0xfe   :  { %v1753_v36 = vadd.f32 %v1752_v35, %v1751_v33  ;;  %v1816_v37 = vpop.f32.mrf.mxu1 }
  0xff   :  { %v1817_v38 = vadd.f32 %v1816_v37, %v1815_v34  ;;  %v2471_v39 = vpop.f32.mrf.mxu0 }
 0x100   :  { %v2473_v40 = vpop.f32.mrf.mxu1 }
 0x101   :  { %v2475_v41 = vadd.f32 %v1817_v38, %v1753_v36  ;;  %v2477_v42 = vpop.f32.mrf.mxu0 }
 0x102   :  { %v2479_v43 = vpop.f32.mrf.mxu1 }
 0x103   :  { %v1757_v44 = vpop.f32.mrf.mxu0 }
 0x104   :  { %v1821_v45 = vpop.f32.mrf.mxu1 }
 0x105   :  { %v1758_v46 = vpop.f32.mrf.mxu0 }
 0x106   :  { %v1759_v47 = vadd.f32 %v1758_v46, %v1757_v44  ;;  %v1822_v48 = vpop.f32.mrf.mxu1 }
 0x107   :  { %v1823_v49 = vadd.f32 %v1822_v48, %v1821_v45  ;;  %v2481_v50 = vpop.f32.mrf.mxu0  ;;  %v1802_v48 = vadd.f32 %v2449_v10, %v2443_v7 }
 0x108   :  { %v2483_v51 = vpop.f32.mrf.mxu1 }
 0x109   :  { %v2485_v52 = vadd.f32 %v1823_v49, %v1759_v47  ;;  %v2487_v53 = vpop.f32.mrf.mxu0  ;;  %v1738_v47 = vadd.f32 %v2447_v9, %v2441_v6 }
 0x10a   :  { %v2489_v54 = vpop.f32.mrf.mxu1 }
 0x10b   :  { %v1763_v55 = vpop.f32.mrf.mxu0 }
 0x10c   :  { %v1827_v56 = vpop.f32.mrf.mxu1 }
 0x10d   :  { %v1764_v57 = vpop.f32.mrf.mxu0 }
 0x10e   :  { %v1765_v58 = vadd.f32 %v1764_v57, %v1763_v55  ;;  %v1828_v59 = vpop.f32.mrf.mxu1 }
 0x10f   :  { %v1829_v60 = vadd.f32 %v1828_v59, %v1827_v56  ;;  %v2491_v61 = vpop.f32.mrf.mxu0 }
 0x110   :  { %v2493_v62 = vpop.f32.mrf.mxu1 }
 0x111   :  { %v2495_v63 = vadd.f32 %v1829_v60, %v1765_v58  ;;  %v2497_v0 = vpop.f32.mrf.mxu0 }
 0x112   :  { %v2499_v1 = vpop.f32.mrf.mxu1 }
 0x113   :  { %v1769_v2 = vpop.f32.mrf.mxu0 }
 0x114   :  { %v1833_v3 = vpop.f32.mrf.mxu1 }
 0x115   :  { %v1770_v4 = vpop.f32.mrf.mxu0 }
 0x116   :  { %v1771_v5 = vadd.f32 %v1770_v4, %v1769_v2  ;;  %v1834_v11 = vpop.f32.mrf.mxu1  ;;  %v1082_v2 = vadd.f32 %v1802_v48, %v1738_v47 }
 0x117   :  { %v1835_v12 = vadd.f32 %v1834_v11, %v1833_v3  ;;  %v2501_v13 = vpop.f32.mrf.mxu0  ;;  %v2529_v11 = vld [vmem:[%s2608_s2] ss:$0 sm:$0xff] }
 0x118   :  { %v2503_v14 = vpop.f32.mrf.mxu1 }
 0x119   :  { %v2505_v15 = vadd.f32 %v1835_v12, %v1771_v5  ;;  %v2507_v16 = vpop.f32.mrf.mxu0  ;;  %v1744_v12 = vadd.f32 %v2457_v20, %v2451_v17 }
 0x11a   :  { %v2509_v22 = vpop.f32.mrf.mxu1 }
 0x11b   :  { %v1775_v23 = vpop.f32.mrf.mxu0 }
 0x11c   :  { %v1839_v24 = vpop.f32.mrf.mxu1 }
 0x11d   :  { %v1776_v25 = vpop.f32.mrf.mxu0 }
 0x11e   :  { %v1777_v26 = vadd.f32 %v1776_v25, %v1775_v23  ;;  %v1840_v27 = vpop.f32.mrf.mxu1 }
 0x11f   :  { %v1841_v33 = vadd.f32 %v1840_v27, %v1839_v24  ;;  %v2511_v34 = vpop.f32.mrf.mxu0 }
 0x120   :  { %v2513_v35 = vpop.f32.mrf.mxu1 }
 0x121   :  { %v2515_v36 = vadd.f32 %v1841_v33, %v1777_v26  ;;  %v2517_v37 = vpop.f32.mrf.mxu0 }
 0x122   :  { %v2519_v38 = vpop.f32.mrf.mxu1 }
 0x123   :  { %v1861_v44 = vpop.f32.mrf.mxu0 }
 0x124   :  { %v1925_v45 = vpop.f32.mrf.mxu1 }
 0x125   :  { %v1862_v46 = vpop.f32.mrf.mxu0 }
 0x126   :  { %v1863_v49 = vadd.f32 %v1862_v46, %v1861_v44  ;;  %v1926_v55 = vpop.f32.mrf.mxu1 }
 0x127   :  { %v1864_v56 = vpop.f32.mrf.mxu0  ;;  %v1927_v58 = vadd.f32 %v1926_v55, %v1925_v45 }
 0x128   :  { %v1176_v57 = vadd.f32 %v1863_v49, %v2445_v8  ;;  %v1928_v59 = vpop.f32.mrf.mxu1  ;;  %v1808_v8 = vadd.f32 %v2459_v21, %v2453_v18 }
 0x129   :  { %v1865_v60 = vpop.f32.mrf.mxu0 }
 0x12a   :  { %v1273_v3 = vadd.f32 %v1927_v58, %v1176_v57  ;;  %v1866_v4 = vadd.f32 %v1865_v60, %v1864_v56  ;;  %v1929_v5 = vpop.f32.mrf.mxu1  ;;  %v1090_v48 = vadd.f32 %v1808_v8, %v1744_v12 }
 0x12b   :  { %v1867_v6 = vpop.f32.mrf.mxu0  ;;  %v1930_v7 = vadd.f32 %v1929_v5, %v1928_v59 }
 0x12c   :  { %v1179_v9 = vadd.f32 %v1866_v4, %v1082_v2  ;;  %v1931_v10 = vpop.f32.mrf.mxu1  ;;  %v1393_v24 = vadd.f32 %v2529_v11, %v1273_v3  ;;  %v1750_v2 = vadd.f32 %v2467_v31, %v2461_v28 }
 0x12d   :  { %v1868_v23 = vpop.f32.mrf.mxu0 }
 0x12e   :  { %v1276_v25 = vadd.f32 %v1930_v7, %v1179_v9  ;;  %v1869_v26 = vadd.f32 %v1868_v23, %v1867_v6  ;;  %v1932_v27 = vpop.f32.mrf.mxu1  ;;  %v1409_v55 = vmax.f32 %v1393_v24, 0.0 }
 0x12f   :  { %v1870_v33 = vpop.f32.mrf.mxu0  ;;  %v1933_v46 = vadd.f32 %v1932_v27, %v1931_v10 }
 0x130   :  { %v1394_v44 = vadd.f32 %v2529_v11, %v1276_v25  ;;  %v1184_v45 = vadd.f32 %v1869_v26, %v2455_v19  ;;  %v1934_v47 = vpop.f32.mrf.mxu1  ;;  %v1814_v19 = vadd.f32 %v2469_v32, %v2463_v29 }
 0x131   :  { %v1871_v49 = vpop.f32.mrf.mxu0 }
 0x132   :  { %v1410_v17 = vmax.f32 %v1394_v44, 0.0  ;;  %v1281_v20 = vadd.f32 %v1933_v46, %v1184_v45  ;;  %v1872_v56 = vadd.f32 %v1871_v49, %v1870_v33  ;;  %v1935_v18 = vpop.f32.mrf.mxu1  ;;  %v1098_v31 = vadd.f32 %v1814_v19, %v1750_v2 }
 0x133   :  { %v1873_v21 = vpop.f32.mrf.mxu0  ;;  %v1936_v59 = vadd.f32 %v1935_v18, %v1934_v47  ;;  %v1756_v47 = vadd.f32 %v2477_v42, %v2471_v39 }
 0x134   :  { %v1673_v57 = vpack.c.bf16 %v1410_v17, %v1409_v55  ;;  %v1187_v58 = vadd.f32 %v1872_v56, %v1090_v48  ;;  %v1937_v60 = vpop.f32.mrf.mxu1  ;;  %v1395_v4 = vadd.f32 %v2529_v11, %v1281_v20 }
 0x135   :  { %v1874_v3 = vpop.f32.mrf.mxu0 }
 0x136   :  { %1674 = vst [vmem:[%s2609_s3] sm:$0xff] %v1673_v57   ;;  %v1284_v5 = vadd.f32 %v1936_v59, %v1187_v58  ;;  %v1875_v6 = vadd.f32 %v1874_v3, %v1873_v21  ;;  %v1938_v9 = vpop.f32.mrf.mxu1  ;;  %v1411_v29 = vmax.f32 %v1395_v4, 0.0 }
 0x137   :  { %v1876_v7 = vpop.f32.mrf.mxu0  ;;  %v1939_v8 = vadd.f32 %v1938_v9, %v1937_v60  ;;  %v1762_v9 = vadd.f32 %v2487_v53, %v2481_v50 }
 0x138   :  { %v1396_v10 = vadd.f32 %v2529_v11, %v1284_v5  ;;  %v1192_v12 = vadd.f32 %v1875_v6, %v2465_v30  ;;  %v1940_v28 = vpop.f32.mrf.mxu1  ;;  %v1820_v30 = vadd.f32 %v2479_v43, %v2473_v40 }
 0x139   :  { %v1877_v23 = vpop.f32.mrf.mxu0 }
 0x13a   :  { %v1412_v32 = vmax.f32 %v1396_v10, 0.0  ;;  %v1289_v24 = vadd.f32 %v1939_v8, %v1192_v12  ;;  %v1878_v25 = vadd.f32 %v1877_v23, %v1876_v7  ;;  %v1941_v26 = vpop.f32.mrf.mxu1  ;;  %v1106_v42 = vadd.f32 %v1820_v30, %v1756_v47 }
 0x13b   :  { %v1879_v27 = vpop.f32.mrf.mxu0  ;;  %v1942_v45 = vadd.f32 %v1941_v26, %v1940_v28  ;;  %v1768_v30 = vadd.f32 %v2497_v0, %v2491_v61 }
 0x13c   :  { %v1678_v33 = vpack.c.bf16 %v1412_v32, %v1411_v29  ;;  %v1195_v44 = vadd.f32 %v1878_v25, %v1098_v31  ;;  %v1943_v46 = vpop.f32.mrf.mxu1  ;;  %v1397_v49 = vadd.f32 %v2529_v11, %v1289_v24 }
 0x13d   :  { %v1880_v48 = vpop.f32.mrf.mxu0 }
 0x13e   :  { %1710 = vst [vmem:[%s2609_s3 + $0x8] sm:$0xff] %v1678_v33   ;;  %v1292_v55 = vadd.f32 %v1942_v45, %v1195_v44  ;;  %v1881_v17 = vadd.f32 %v1880_v48, %v1879_v27  ;;  %v1944_v20 = vpop.f32.mrf.mxu1  ;;  %v1413_v40 = vmax.f32 %v1397_v49, 0.0 }
 0x13f   :  { %v1882_v56 = vpop.f32.mrf.mxu0  ;;  %v1945_v57 = vadd.f32 %v1944_v20, %v1943_v46 }
 0x140   :  { %v1398_v18 = vadd.f32 %v2529_v11, %v1292_v55  ;;  %v1200_v21 = vadd.f32 %v1881_v17, %v2475_v41  ;;  %v1946_v39 = vpop.f32.mrf.mxu1  ;;  %v1826_v41 = vadd.f32 %v2489_v54, %v2483_v51 }
 0x141   :  { %v1883_v58 = vpop.f32.mrf.mxu0 }
 0x142   :  { %v1414_v43 = vmax.f32 %v1398_v18, 0.0  ;;  %v1297_v59 = vadd.f32 %v1945_v57, %v1200_v21  ;;  %v1884_v60 = vadd.f32 %v1883_v58, %v1882_v56  ;;  %v1947_v2 = vpop.f32.mrf.mxu1  ;;  %v1114_v53 = vadd.f32 %v1826_v41, %v1762_v9 }
 0x143   :  { %v1885_v19 = vpop.f32.mrf.mxu0  ;;  %v1948_v5 = vadd.f32 %v1947_v2, %v1946_v39 }
 0x144   :  { %v1683_v3 = vpack.c.bf16 %v1414_v43, %v1413_v40  ;;  %v1203_v4 = vadd.f32 %v1884_v60, %v1106_v42  ;;  %v1949_v6 = vpop.f32.mrf.mxu1  ;;  %v1399_v10 = vadd.f32 %v2529_v11, %v1297_v59 }
 0x145   :  { %v1886_v7 = vpop.f32.mrf.mxu0 }
 0x146   :  { %1711 = vst [vmem:[%s2609_s3 + $0x10] sm:$0xff] %v1683_v3   ;;  %v1300_v12 = vadd.f32 %v1948_v5, %v1203_v4  ;;  %v1887_v8 = vadd.f32 %v1886_v7, %v1885_v19  ;;  %v1950_v28 = vpop.f32.mrf.mxu1  ;;  %v1415_v51 = vmax.f32 %v1399_v10, 0.0  ;;  %v1774_v3 = vadd.f32 %v2507_v16, %v2501_v13 }
 0x147   :  { %v1888_v31 = vpop.f32.mrf.mxu0  ;;  %v1951_v32 = vadd.f32 %v1950_v28, %v1949_v6 }
 0x148   :  { %v1400_v23 = vadd.f32 %v2529_v11, %v1300_v12  ;;  %v1208_v29 = vadd.f32 %v1887_v8, %v2485_v52  ;;  %v1952_v50 = vpop.f32.mrf.mxu1  ;;  %v1832_v52 = vadd.f32 %v2499_v1, %v2493_v62 }
 0x149   :  { %v1889_v24 = vpop.f32.mrf.mxu0 }
 0x14a   :  { %v1416_v54 = vmax.f32 %v1400_v23, 0.0  ;;  %v1305_v25 = vadd.f32 %v1951_v32, %v1208_v29  ;;  %v1890_v26 = vadd.f32 %v1889_v24, %v1888_v31  ;;  %v1953_v27 = vpop.f32.mrf.mxu1  ;;  %v1122_v0 = vadd.f32 %v1832_v52, %v1768_v30 }
 0x14b   :  { %v1891_v33 = vpop.f32.mrf.mxu0  ;;  %v1954_v46 = vadd.f32 %v1953_v27, %v1952_v50 }
 0x14c   :  { %v1688_v44 = vpack.c.bf16 %v1416_v54, %v1415_v51  ;;  %v1211_v45 = vadd.f32 %v1890_v26, %v1114_v53  ;;  %v1955_v47 = vpop.f32.mrf.mxu1  ;;  %v1401_v49 = vadd.f32 %v2529_v11, %v1305_v25  ;;  %v1780_v54 = vadd.f32 %v2517_v37, %v2511_v34 }
 0x14d   :  { %v1892_v48 = vpop.f32.mrf.mxu0 }
 0x14e   :  { %1712 = vst [vmem:[%s2609_s3 + $0x18] sm:$0xff] %v1688_v44   ;;  %v1308_v55 = vadd.f32 %v1954_v46, %v1211_v45  ;;  %v1893_v17 = vadd.f32 %v1892_v48, %v1891_v33  ;;  %v1956_v20 = vpop.f32.mrf.mxu1  ;;  %v1417_v62 = vmax.f32 %v1401_v49, 0.0 }
 0x14f   :  { %v1894_v56 = vpop.f32.mrf.mxu0  ;;  %v1957_v57 = vadd.f32 %v1956_v20, %v1955_v47 }
 0x150   :  { %v1402_v18 = vadd.f32 %v2529_v11, %v1308_v55  ;;  %v1216_v21 = vadd.f32 %v1893_v17, %v2495_v63  ;;  %v1958_v61 = vpop.f32.mrf.mxu1  ;;  %v1838_v63 = vadd.f32 %v2509_v22, %v2503_v14 }
 0x151   :  { %v1895_v39 = vpop.f32.mrf.mxu0 }
 0x152   :  { %v1418_v1 = vmax.f32 %v1402_v18, 0.0  ;;  %v1313_v42 = vadd.f32 %v1957_v57, %v1216_v21  ;;  %v1896_v58 = vadd.f32 %v1895_v39, %v1894_v56  ;;  %v1959_v40 = vpop.f32.mrf.mxu1  ;;  %v1130_v16 = vadd.f32 %v1838_v63, %v1774_v3 }
 0x153   :  { %v1897_v43 = vpop.f32.mrf.mxu0  ;;  %v1960_v2 = vadd.f32 %v1959_v40, %v1958_v61 }
 0x154   :  { %v1693_v59 = vpack.c.bf16 %v1418_v1, %v1417_v62  ;;  %v1219_v60 = vadd.f32 %v1896_v58, %v1122_v0  ;;  %v1961_v19 = vpop.f32.mrf.mxu1  ;;  %v1403_v5 = vadd.f32 %v2529_v11, %v1313_v42 }
 0x155   :  { %v1898_v4 = vpop.f32.mrf.mxu0 }
 0x156   :  { %1713 = vst [vmem:[%s2609_s3 + $0x20] sm:$0xff] %v1693_v59   ;;  %v1316_v6 = vadd.f32 %v1960_v2, %v1219_v60  ;;  %v1899_v9 = vadd.f32 %v1898_v4, %v1897_v43  ;;  %v1962_v41 = vpop.f32.mrf.mxu1  ;;  %v1419_v14 = vmax.f32 %v1403_v5, 0.0 }
 0x157   :  { %v1900_v7 = vpop.f32.mrf.mxu0  ;;  %v1963_v8 = vadd.f32 %v1962_v41, %v1961_v19 }
 0x158   :  { %v1404_v10 = vadd.f32 %v2529_v11, %v1316_v6  ;;  %v1224_v12 = vadd.f32 %v1899_v9, %v2505_v15  ;;  %v1964_v13 = vpop.f32.mrf.mxu1  ;;  %v1844_v15 = vadd.f32 %v2519_v38, %v2513_v35 }
 0x159   :  { %v1901_v28 = vpop.f32.mrf.mxu0 }
 0x15a   :  { %v1420_v22 = vmax.f32 %v1404_v10, 0.0  ;;  %v1321_v31 = vadd.f32 %v1963_v8, %v1224_v12  ;;  %v1902_v23 = vadd.f32 %v1901_v28, %v1900_v7  ;;  %v1965_v29 = vpop.f32.mrf.mxu1  ;;  %v1138_v37 = vadd.f32 %v1844_v15, %v1780_v54 }
 0x15b   :  { %v1903_v32 = vpop.f32.mrf.mxu0  ;;  %v1966_v24 = vadd.f32 %v1965_v29, %v1964_v13 }
 0x15c   :  { %v1698_v50 = vpack.c.bf16 %v1420_v22, %v1419_v14  ;;  %v1227_v53 = vadd.f32 %v1902_v23, %v1130_v16  ;;  %v1967_v51 = vpop.f32.mrf.mxu1  ;;  %v1405_v26 = vadd.f32 %v2529_v11, %v1321_v31 }
 0x15d   :  { %v1904_v25 = vpop.f32.mrf.mxu0 }
 0x15e   :  { %1714 = vst [vmem:[%s2609_s3 + $0x28] sm:$0xff] %v1698_v50   ;;  %v1324_v27 = vadd.f32 %v1966_v24, %v1227_v53  ;;  %v1905_v33 = vadd.f32 %v1904_v25, %v1903_v32  ;;  %v1968_v44 = vpop.f32.mrf.mxu1  ;;  %v1421_v35 = vmax.f32 %v1405_v26, 0.0 }
 0x15f   :  { %v1906_v45 = vpop.f32.mrf.mxu0  ;;  %v1969_v30 = vadd.f32 %v1968_v44, %v1967_v51 }
 0x160   :  { %v1406_v46 = vadd.f32 %v2529_v11, %v1324_v27  ;;  %v1232_v47 = vadd.f32 %v1905_v33, %v2515_v36  ;;  %v1970_v34 = vpop.f32.mrf.mxu1 }
 0x161   :  { %v1907_v52 = vpop.f32.mrf.mxu0 }
 0x162   :  { %v1422_v38 = vmax.f32 %v1406_v46, 0.0  ;;  %v1329_v48 = vadd.f32 %v1969_v30, %v1232_v47  ;;  %v1908_v49 = vadd.f32 %v1907_v52, %v1906_v45  ;;  %v1971_v55 = vpop.f32.mrf.mxu1 }
 0x163   :  { %v1972_v56 = vadd.f32 %v1971_v55, %v1970_v34 }
 0x164   :  { %v1703_v17 = vpack.c.bf16 %v1422_v38, %v1421_v35  ;;  %v1235_v20 = vadd.f32 %v1908_v49, %v1138_v37  ;;  %v1407_v18 = vadd.f32 %v2529_v11, %v1329_v48 }
 0x166   :  { %1715 = vst [vmem:[%s2609_s3 + $0x30] sm:$0xff] %v1703_v17   ;;  %v1332_v21 = vadd.f32 %v1972_v56, %v1235_v20  ;;  %v1423_v57 = vmax.f32 %v1407_v18, 0.0 }
 0x168   :  { %v1408_v36 = vadd.f32 %v2529_v11, %v1332_v21 }
 0x16a   :  { %v1424_v61 = vmax.f32 %v1408_v36, 0.0 }
 0x16c   :  { %v1708_v0 = vpack.c.bf16 %v1424_v61, %v1423_v57 }
 0x16e   :  { %1716 = vst [vmem:[%s2609_s3 + $0x38] sm:$0xff] %v1708_v0  }

// kernel: vae_forward.24
= control target key start
LH: loop header
LB: loop body
LE: loop exit
PB: predicated region body
PF: predicated region fallthrough
CT: control target
= control target key end

     0   :  { %s3915_s1 = inlined_call_operand.vmem [shape: bf16[2048,256], index: 1, kind: input, shape index: {}]   ;;  %s3916_s0 = inlined_call_operand.vmem [shape: bf16[32,2048], index: 0, kind: input, shape index: {}]   ;;  %s3917_s2 = inlined_call_operand.vmem [shape: f32[1,256], index: 2, kind: input, shape index: {}]   ;;  %s3918_s3 = inlined_call_operand.vmem [shape: bf16[32,256], index: 3, kind: output, shape index: {}]  }
   0x1   :  { %v2569_v0 = vld [vmem:[%s3915_s1 + $0x74] ss:$8 sps:$4 sm:$0xff]   ;;  %v2573_v2 = vld [vmem:[%s3915_s1 + $0x70] ss:$8 sps:$4 sm:$0xff]   ;;  %v2575_v4 = vld [vmem:[%s3915_s1 + $0x64] ss:$8 sps:$4 sm:$0xff]  }
   0x2   :  { %v2571_v1 = vld [vmem:[%s3915_s1 + $0x174] ss:$8 sps:$4 sm:$0xff]   ;;  %1762 = vmatprep.subr.bf16.mxu0 %v2569_v0  ;;  %v2574_v3 = vld [vmem:[%s3915_s1 + $0x170] ss:$8 sps:$4 sm:$0xff]   ;;  %v2577_v5 = vld [vmem:[%s3915_s1 + $0x164] ss:$8 sps:$4 sm:$0xff]  }
   0x3   :  { %1815 = vmatprep.subr.bf16.mxu1 %v2571_v1  ;;  %1763 = vmatpush1.bf16.msra.mxu0 %v2573_v2  ;;  %v2579_v6 = vld [vmem:[%s3915_s1 + $0x60] ss:$8 sps:$4 sm:$0xff]   ;;  %v2581_v8 = vld [vmem:[%s3915_s1 + $0x54] ss:$8 sps:$4 sm:$0xff]   ;;  %v2585_v10 = vld [vmem:[%s3915_s1 + $0x50] ss:$8 sps:$4 sm:$0xff]  }
   0x4   :  { %1816 = vmatpush1.bf16.msra.mxu1 %v2574_v3  ;;  %1764 = vmatprep.subr.bf16.mxu0 %v2575_v4  ;;  %v2580_v7 = vld [vmem:[%s3915_s1 + $0x160] ss:$8 sps:$4 sm:$0xff]   ;;  %v2583_v9 = vld [vmem:[%s3915_s1 + $0x154] ss:$8 sps:$4 sm:$0xff]   ;;  %v2586_v11 = vld [vmem:[%s3915_s1 + $0x150] ss:$8 sps:$4 sm:$0xff]  }
   0x5   :  { %1817 = vmatprep.subr.bf16.mxu1 %v2577_v5  ;;  %v2587_v12 = vld [vmem:[%s3915_s1 + $0x44] ss:$8 sps:$4 sm:$0xff]   ;;  %v2591_v14 = vld [vmem:[%s3915_s1 + $0x40] ss:$8 sps:$4 sm:$0xff]   ;;  %v2593_v16 = vld [vmem:[%s3915_s1 + $0x34] ss:$8 sps:$4 sm:$0xff]  }
   0x6   :  { %v2589_v13 = vld [vmem:[%s3915_s1 + $0x144] ss:$8 sps:$4 sm:$0xff]   ;;  %v2592_v15 = vld [vmem:[%s3915_s1 + $0x140] ss:$8 sps:$4 sm:$0xff]   ;;  %v2595_v17 = vld [vmem:[%s3915_s1 + $0x134] ss:$8 sps:$4 sm:$0xff]  }
   0x7   :  { %1765 = vmatpush1.bf16.msra.mxu0 %v2579_v6  ;;  %v2597_v18 = vld [vmem:[%s3915_s1 + $0x30] ss:$8 sps:$4 sm:$0xff]   ;;  %v2599_v20 = vld [vmem:[%s3915_s1 + $0x24] ss:$8 sps:$4 sm:$0xff]   ;;  %v2603_v22 = vld [vmem:[%s3915_s1 + $0x20] ss:$8 sps:$4 sm:$0xff]  }
   0x8   :  { %1818 = vmatpush1.bf16.msra.mxu1 %v2580_v7  ;;  %1766 = vmatprep.subr.bf16.mxu0 %v2581_v8  ;;  %v2598_v19 = vld [vmem:[%s3915_s1 + $0x130] ss:$8 sps:$4 sm:$0xff]   ;;  %v2601_v21 = vld [vmem:[%s3915_s1 + $0x124] ss:$8 sps:$4 sm:$0xff]   ;;  %v2604_v23 = vld [vmem:[%s3915_s1 + $0x120] ss:$8 sps:$4 sm:$0xff]  }
   0x9   :  { %1819 = vmatprep.subr.bf16.mxu1 %v2583_v9  ;;  %v2605_v24 = vld [vmem:[%s3915_s1 + $0x14] ss:$8 sps:$4 sm:$0xff]   ;;  %v2609_v26 = vld [vmem:[%s3915_s1 + $0x10] ss:$8 sps:$4 sm:$0xff]   ;;  %v2611_v28 = vld [vmem:[%s3915_s1 + $0x4] ss:$8 sps:$4 sm:$0xff]  }
   0xa   :  { %v2607_v25 = vld [vmem:[%s3915_s1 + $0x114] ss:$8 sps:$4 sm:$0xff]   ;;  %v2610_v27 = vld [vmem:[%s3915_s1 + $0x110] ss:$8 sps:$4 sm:$0xff]   ;;  %v2613_v29 = vld [vmem:[%s3915_s1 + $0x104] ss:$8 sps:$4 sm:$0xff]  }
   0xb   :  { %1767 = vmatpush1.bf16.msra.mxu0 %v2585_v10  ;;  %v2615_v30 = vld [vmem:[%s3915_s1] ss:$8 sps:$4 sm:$0xff]   ;;  %v2617_v32 = vld [vmem:[%s3915_s1 + $0xf4] ss:$8 sps:$4 sm:$0xff]   ;;  %v2621_v34 = vld [vmem:[%s3915_s1 + $0xf0] ss:$8 sps:$4 sm:$0xff]  }
   0xc   :  { %1820 = vmatpush1.bf16.msra.mxu1 %v2586_v11  ;;  %1768 = vmatprep.subr.bf16.mxu0 %v2587_v12  ;;  %v2616_v31 = vld [vmem:[%s3915_s1 + $0x100] ss:$8 sps:$4 sm:$0xff]   ;;  %v2619_v33 = vld [vmem:[%s3915_s1 + $0x1f4] ss:$8 sps:$4 sm:$0xff]   ;;  %v2622_v35 = vld [vmem:[%s3915_s1 + $0x1f0] ss:$8 sps:$4 sm:$0xff]  }
   0xd   :  { %1821 = vmatprep.subr.bf16.mxu1 %v2589_v13  ;;  %v2623_v36 = vld [vmem:[%s3915_s1 + $0xe4] ss:$8 sps:$4 sm:$0xff]   ;;  %v2627_v38 = vld [vmem:[%s3915_s1 + $0xe0] ss:$8 sps:$4 sm:$0xff]   ;;  %v2629_v40 = vld [vmem:[%s3915_s1 + $0xd4] ss:$8 sps:$4 sm:$0xff]  }
   0xe   :  { %v2625_v37 = vld [vmem:[%s3915_s1 + $0x1e4] ss:$8 sps:$4 sm:$0xff]   ;;  %v2628_v39 = vld [vmem:[%s3915_s1 + $0x1e0] ss:$8 sps:$4 sm:$0xff]   ;;  %v2631_v41 = vld [vmem:[%s3915_s1 + $0x1d4] ss:$8 sps:$4 sm:$0xff]  }
   0xf   :  { %1769 = vmatpush1.bf16.msra.mxu0 %v2591_v14  ;;  %v2633_v42 = vld [vmem:[%s3915_s1 + $0xd0] ss:$8 sps:$4 sm:$0xff]   ;;  %v2635_v44 = vld [vmem:[%s3915_s1 + $0xc4] ss:$8 sps:$4 sm:$0xff]   ;;  %v2639_v46 = vld [vmem:[%s3915_s1 + $0xc0] ss:$8 sps:$4 sm:$0xff]  }
  0x10   :  { %1822 = vmatpush1.bf16.msra.mxu1 %v2592_v15  ;;  %1770 = vmatprep.subr.bf16.mxu0 %v2593_v16  ;;  %v2634_v43 = vld [vmem:[%s3915_s1 + $0x1d0] ss:$8 sps:$4 sm:$0xff]   ;;  %v2637_v45 = vld [vmem:[%s3915_s1 + $0x1c4] ss:$8 sps:$4 sm:$0xff]   ;;  %v2640_v47 = vld [vmem:[%s3915_s1 + $0x1c0] ss:$8 sps:$4 sm:$0xff]  }
  0x11   :  { %1823 = vmatprep.subr.bf16.mxu1 %v2595_v17  ;;  %v34_v48 = vld [vmem:[%s3916_s0] sm:$0xff]  ;;  %v35_v50 = vld [vmem:[%s3916_s0 + $0x8] sm:$0xff]  ;;  %v2641_v52 = vld [vmem:[%s3915_s1 + $0xb4] ss:$8 sps:$4 sm:$0xff]  }
  0x12   :  { %v42_v49 = vld [vmem:[%s3916_s0 + $0x40] sm:$0xff]  ;;  %v43_v51 = vld [vmem:[%s3916_s0 + $0x48] sm:$0xff]  ;;  %v2643_v54 = vld [vmem:[%s3915_s1 + $0x1b4] ss:$8 sps:$4 sm:$0xff]  }
  0x13   :  { %1771 = vmatpush1.bf16.msra.mxu0 %v2597_v18  ;;  %v2274_v53 = vcombine.high %v34_v48, %v42_v49  ;;  %v2276_v55 = vcombine.high %v35_v50, %v43_v51  ;;  %v2645_v56 = vld [vmem:[%s3915_s1 + $0xb0] ss:$8 sps:$4 sm:$0xff]   ;;  %v2647_v58 = vld [vmem:[%s3915_s1 + $0xa4] ss:$8 sps:$4 sm:$0xff]   ;;  %v2651_v60 = vld [vmem:[%s3915_s1 + $0xa0] ss:$8 sps:$4 sm:$0xff]   ;;  %v2273_v8 = vcombine.low %v34_v48, %v42_v49  ;;  %v2275_v9 = vcombine.low %v35_v50, %v43_v51 }
  0x14   :  { %1824 = vmatpush1.bf16.msra.mxu1 %v2598_v19  ;;  %1772 = vmatprep.subr.bf16.mxu0 %v2599_v20  ;;  %v2646_v57 = vld [vmem:[%s3915_s1 + $0x1b0] ss:$8 sps:$4 sm:$0xff]   ;;  %v2649_v59 = vld [vmem:[%s3915_s1 + $0x1a4] ss:$8 sps:$4 sm:$0xff]   ;;  %v2652_v61 = vld [vmem:[%s3915_s1 + $0x1a0] ss:$8 sps:$4 sm:$0xff]  }
  0x15   :  { %1825 = vmatprep.subr.bf16.mxu1 %v2601_v21  ;;  %1794 = vmatprep.mubr.bf16.mxu0 %v2274_v53  ;;  %v2653_v62 = vld [vmem:[%s3915_s1 + $0x94] ss:$8 sps:$4 sm:$0xff]   ;;  %v2657_v0 = vld [vmem:[%s3915_s1 + $0x90] ss:$8 sps:$4 sm:$0xff]   ;;  %v2659_v2 = vld [vmem:[%s3915_s1 + $0x84] ss:$8 sps:$4 sm:$0xff]  }
  0x16   :  { %1847 = vmatprep.mubr.bf16.mxu1 %v2276_v55  ;;  %v2655_v63 = vld [vmem:[%s3915_s1 + $0x194] ss:$8 sps:$4 sm:$0xff]   ;;  %v2658_v1 = vld [vmem:[%s3915_s1 + $0x190] ss:$8 sps:$4 sm:$0xff]   ;;  %v2661_v3 = vld [vmem:[%s3915_s1 + $0x184] ss:$8 sps:$4 sm:$0xff]  }
  0x17   :  { %1773 = vmatpush1.bf16.msra.mxu0 %v2603_v22  ;;  %v2663_v4 = vld [vmem:[%s3915_s1 + $0x80] ss:$8 sps:$4 sm:$0xff]   ;;  %v2667_v6 = vld [vmem:[%s3915_s1 + $0x274] ss:$8 sps:$4 sm:$0xff]   ;;  %v2665_v10 = vld [vmem:[%s3915_s1 + $0x270] ss:$8 sps:$4 sm:$0xff]  }
  0x18   :  { %1826 = vmatpush1.bf16.msra.mxu1 %v2604_v23  ;;  %1774 = vmatprep.subr.bf16.mxu0 %v2605_v24  ;;  %v2664_v5 = vld [vmem:[%s3915_s1 + $0x180] ss:$8 sps:$4 sm:$0xff]   ;;  %v2670_v7 = vld [vmem:[%s3915_s1 + $0x374] ss:$8 sps:$4 sm:$0xff]   ;;  %v2668_v11 = vld [vmem:[%s3915_s1 + $0x370] ss:$8 sps:$4 sm:$0xff]  }
  0x19   :  { %1827 = vmatprep.subr.bf16.mxu1 %v2607_v25  ;;  %v2673_v12 = vld [vmem:[%s3915_s1 + $0x264] ss:$8 sps:$4 sm:$0xff]   ;;  %v2671_v14 = vld [vmem:[%s3915_s1 + $0x260] ss:$8 sps:$4 sm:$0xff]   ;;  %v2679_v16 = vld [vmem:[%s3915_s1 + $0x254] ss:$8 sps:$4 sm:$0xff]  }
  0x1a   :  { %v2676_v13 = vld [vmem:[%s3915_s1 + $0x364] ss:$8 sps:$4 sm:$0xff]   ;;  %v2674_v15 = vld [vmem:[%s3915_s1 + $0x360] ss:$8 sps:$4 sm:$0xff]   ;;  %v2682_v17 = vld [vmem:[%s3915_s1 + $0x354] ss:$8 sps:$4 sm:$0xff]  }
  0x1b   :  { %1775 = vmatpush1.bf16.msra.mxu0 %v2609_v26  ;;  %v2677_v18 = vld [vmem:[%s3915_s1 + $0x250] ss:$8 sps:$4 sm:$0xff]   ;;  %v2685_v20 = vld [vmem:[%s3915_s1 + $0x244] ss:$8 sps:$4 sm:$0xff]   ;;  %v2683_v22 = vld [vmem:[%s3915_s1 + $0x240] ss:$8 sps:$4 sm:$0xff]  }
  0x1c   :  { %1828 = vmatpush1.bf16.msra.mxu1 %v2610_v27  ;;  %1776 = vmatprep.subr.bf16.mxu0 %v2611_v28  ;;  %v2680_v19 = vld [vmem:[%s3915_s1 + $0x350] ss:$8 sps:$4 sm:$0xff]   ;;  %v2688_v21 = vld [vmem:[%s3915_s1 + $0x344] ss:$8 sps:$4 sm:$0xff]   ;;  %v2686_v23 = vld [vmem:[%s3915_s1 + $0x340] ss:$8 sps:$4 sm:$0xff]  }
  0x1d   :  { %1829 = vmatprep.subr.bf16.mxu1 %v2613_v29  ;;  %v2691_v24 = vld [vmem:[%s3915_s1 + $0x234] ss:$8 sps:$4 sm:$0xff]   ;;  %v2689_v26 = vld [vmem:[%s3915_s1 + $0x230] ss:$8 sps:$4 sm:$0xff]   ;;  %v50_v28 = vld [vmem:[%s3916_s0 + $0x80] sm:$0xff] }
  0x1e   :  { %v2694_v25 = vld [vmem:[%s3915_s1 + $0x334] ss:$8 sps:$4 sm:$0xff]   ;;  %v2692_v27 = vld [vmem:[%s3915_s1 + $0x330] ss:$8 sps:$4 sm:$0xff]   ;;  %v58_v29 = vld [vmem:[%s3916_s0 + $0xc0] sm:$0xff] }
  0x1f   :  { %1777 = vmatpush1.bf16.msra.mxu0 %v2615_v30  ;;  %v51_v30 = vld [vmem:[%s3916_s0 + $0x88] sm:$0xff]  ;;  %v3292_v48 = vld [vmem:[%s3916_s0 + $0x18] sm:$0xff] }
  0x20   :  { %1830 = vmatpush1.bf16.msra.mxu1 %v2616_v31  ;;  %1778 = vmatprep.subr.bf16.mxu0 %v2617_v32  ;;  %v59_v31 = vld [vmem:[%s3916_s0 + $0xc8] sm:$0xff]  ;;  %v3299_v50 = vld [vmem:[%s3916_s0 + $0x58] sm:$0xff] }
  0x21   :  { %1831 = vmatprep.subr.bf16.mxu1 %v2619_v33  ;;  %v2697_v32 = vld [vmem:[%s3915_s1 + $0x224] ss:$8 sps:$4 sm:$0xff]   ;;  %v2290_v33 = vcombine.high %v50_v28, %v58_v29  ;;  %v2280_v51 = vcombine.high %v3292_v48, %v3299_v50  ;;  %v2710_v53 = vld [vmem:[%s3915_s1 + $0x300] ss:$8 sps:$4 sm:$0xff]   ;;  %v2718_v55 = vld [vmem:[%s3915_s1 + $0x3f4] ss:$8 sps:$4 sm:$0xff]  }
  0x23   :  { %1779 = vmatpush2.bf16.msra.mxu0 %v2621_v34  ;;  %v2292_v34 = vcombine.high %v51_v30, %v59_v31 }
  0x24   :  { %1832 = vmatpush2.bf16.msra.mxu1 %v2622_v35  ;;  %1780 = vmatprep.subr.bf16.mxu0 %v2623_v36  ;;  %v2289_v35 = vcombine.low %v50_v28, %v58_v29  ;;  %v2700_v36 = vld [vmem:[%s3915_s1 + $0x324] ss:$8 sps:$4 sm:$0xff]   ;;  %v2279_v29 = vcombine.low %v3292_v48, %v3299_v50 }
  0x25   :  { %1833 = vmatprep.subr.bf16.mxu1 %v2625_v37  ;;  %v2291_v37 = vcombine.low %v51_v30, %v59_v31  ;;  %v53_v30 = vld [vmem:[%s3916_s0 + $0x98] sm:$0xff]  ;;  %v2781_v48 = vld [vmem:[%s3915_s1 + $0x444] ss:$8 sps:$4 sm:$0xff]  }
  0x26   :  { %v61_v31 = vld [vmem:[%s3916_s0 + $0xd8] sm:$0xff] }
  0x27   :  { %1781 = vmatpush2.bf16.msra.mxu0 %v2627_v38  ;;  %v2695_v38 = vld [vmem:[%s3915_s1 + $0x220] ss:$8 sps:$4 sm:$0xff]  }
  0x28   :  { %1834 = vmatpush2.bf16.msra.mxu1 %v2628_v39  ;;  %1782 = vmatprep.subr.bf16.mxu0 %v2629_v40  ;;  %v2698_v39 = vld [vmem:[%s3915_s1 + $0x320] ss:$8 sps:$4 sm:$0xff]   ;;  %v2703_v40 = vld [vmem:[%s3915_s1 + $0x214] ss:$8 sps:$4 sm:$0xff]  }
  0x29   :  { %1835 = vmatprep.subr.bf16.mxu1 %v2631_v41  ;;  %v2706_v41 = vld [vmem:[%s3915_s1 + $0x314] ss:$8 sps:$4 sm:$0xff]  }
  0x2b   :  { %1783 = vmatpush2.bf16.msra.mxu0 %v2633_v42  ;;  %v2701_v42 = vld [vmem:[%s3915_s1 + $0x210] ss:$8 sps:$4 sm:$0xff]  }
  0x2c   :  { %1836 = vmatpush2.bf16.msra.mxu1 %v2634_v43  ;;  %1784 = vmatprep.subr.bf16.mxu0 %v2635_v44  ;;  %v2704_v43 = vld [vmem:[%s3915_s1 + $0x310] ss:$8 sps:$4 sm:$0xff]   ;;  %v2709_v44 = vld [vmem:[%s3915_s1 + $0x204] ss:$8 sps:$4 sm:$0xff]  }
  0x2d   :  { %1837 = vmatprep.subr.bf16.mxu1 %v2637_v45  ;;  %v2712_v45 = vld [vmem:[%s3915_s1 + $0x304] ss:$8 sps:$4 sm:$0xff]  }
  0x2f   :  { %1785 = vmatpush2.bf16.msra.mxu0 %v2639_v46  ;;  %v3282_v46 = vld [vmem:[%s3916_s0 + $0x10] sm:$0xff] }
  0x30   :  { %1838 = vmatpush2.bf16.msra.mxu1 %v2640_v47  ;;  %1786 = vmatprep.subr.bf16.mxu0 %v2641_v52  ;;  %v3287_v47 = vld [vmem:[%s3916_s0 + $0x50] sm:$0xff]  ;;  %v2707_v52 = vld [vmem:[%s3915_s1 + $0x200] ss:$8 sps:$4 sm:$0xff]  }
  0x31   :  { %1839 = vmatprep.subr.bf16.mxu1 %v2643_v54  ;;  %v2278_v49 = vcombine.high %v3282_v46, %v3287_v47  ;;  %v2715_v54 = vld [vmem:[%s3915_s1 + $0x2f4] ss:$8 sps:$4 sm:$0xff]   ;;  %v2277_v28 = vcombine.low %v3282_v46, %v3287_v47  ;;  %v3470_v46 = vld [vmem:[%s3916_s0 + $0x28] sm:$0xff] }
  0x32   :  { %v3475_v47 = vld [vmem:[%s3916_s0 + $0x68] sm:$0xff] }
  0x33   :  { %1787 = vmatpush2.bf16.msra.mxu0 %v2645_v56  ;;  %v2713_v56 = vld [vmem:[%s3915_s1 + $0x2f0] ss:$8 sps:$4 sm:$0xff]  }
  0x34   :  { %1840 = vmatpush2.bf16.msra.mxu1 %v2646_v57  ;;  %1788 = vmatprep.subr.bf16.mxu0 %v2647_v58  ;;  %v2716_v57 = vld [vmem:[%s3915_s1 + $0x3f0] ss:$8 sps:$4 sm:$0xff]   ;;  %v2721_v58 = vld [vmem:[%s3915_s1 + $0x2e4] ss:$8 sps:$4 sm:$0xff]  }
  0x35   :  { %1841 = vmatprep.subr.bf16.mxu1 %v2649_v59  ;;  %v2724_v59 = vld [vmem:[%s3915_s1 + $0x3e4] ss:$8 sps:$4 sm:$0xff]  }
  0x37   :  { %1789 = vmatpush2.bf16.msra.mxu0 %v2651_v60  ;;  %v2719_v60 = vld [vmem:[%s3915_s1 + $0x2e0] ss:$8 sps:$4 sm:$0xff]  }
  0x38   :  { %1842 = vmatpush2.bf16.msra.mxu1 %v2652_v61  ;;  %1790 = vmatprep.subr.bf16.mxu0 %v2653_v62  ;;  %v2722_v61 = vld [vmem:[%s3915_s1 + $0x3e0] ss:$8 sps:$4 sm:$0xff]   ;;  %v2727_v62 = vld [vmem:[%s3915_s1 + $0x2d4] ss:$8 sps:$4 sm:$0xff]  }
  0x39   :  { %1843 = vmatprep.subr.bf16.mxu1 %v2655_v63  ;;  %v2730_v63 = vld [vmem:[%s3915_s1 + $0x3d4] ss:$8 sps:$4 sm:$0xff]  }
  0x3b   :  { %1791 = vmatpush2.bf16.msra.mxu0 %v2657_v0  ;;  %v2725_v0 = vld [vmem:[%s3915_s1 + $0x2d0] ss:$8 sps:$4 sm:$0xff]  }
  0x3c   :  { %1844 = vmatpush2.bf16.msra.mxu1 %v2658_v1  ;;  %1792 = vmatprep.subr.bf16.mxu0 %v2659_v2  ;;  %v2728_v1 = vld [vmem:[%s3915_s1 + $0x3d0] ss:$8 sps:$4 sm:$0xff]   ;;  %v2733_v2 = vld [vmem:[%s3915_s1 + $0x2c4] ss:$8 sps:$4 sm:$0xff]  }
  0x3d   :  { %1845 = vmatprep.subr.bf16.mxu1 %v2661_v3  ;;  %v2736_v3 = vld [vmem:[%s3915_s1 + $0x3c4] ss:$8 sps:$4 sm:$0xff]  }
  0x3f   :  { %1793 = vmatpush2.bf16.msra.mxu0 %v2663_v4  ;;  %v2731_v4 = vld [vmem:[%s3915_s1 + $0x2c0] ss:$8 sps:$4 sm:$0xff]  }
  0x40   :  { %1846 = vmatpush2.bf16.msra.mxu1 %v2664_v5  ;;  %1868 = vmatprep.subr.bf16.mxu0 %v2667_v6  ;;  %v2734_v5 = vld [vmem:[%s3915_s1 + $0x3c0] ss:$8 sps:$4 sm:$0xff]   ;;  %v2739_v6 = vld [vmem:[%s3915_s1 + $0x2b4] ss:$8 sps:$4 sm:$0xff]  }
  0x41   :  { %1921 = vmatprep.subr.bf16.mxu1 %v2670_v7  ;;  %v2742_v7 = vld [vmem:[%s3915_s1 + $0x3b4] ss:$8 sps:$4 sm:$0xff]  }
  0x42   :  { %1795 = vmatmul.mubr.bf16.vlgmr.msra.gmra.mxu0 %v2273_v8  ;;  %v2737_v8 = vld [vmem:[%s3915_s1 + $0x2b0] ss:$8 sps:$4 sm:$0xff]  }
  0x43   :  { %1848 = vmatmul.mubr.bf16.vlgmr.msra.gmra.mxu1 %v2275_v9  ;;  %1869 = vmatpush1.bf16.msra.mxu0 %v2665_v10  ;;  %v2740_v9 = vld [vmem:[%s3915_s1 + $0x3b0] ss:$8 sps:$4 sm:$0xff]   ;;  %v2745_v10 = vld [vmem:[%s3915_s1 + $0x2a4] ss:$8 sps:$4 sm:$0xff]  }
  0x44   :  { %1922 = vmatpush1.bf16.msra.mxu1 %v2668_v11  ;;  %1870 = vmatprep.subr.bf16.mxu0 %v2673_v12  ;;  %v2748_v11 = vld [vmem:[%s3915_s1 + $0x3a4] ss:$8 sps:$4 sm:$0xff]   ;;  %v2743_v12 = vld [vmem:[%s3915_s1 + $0x2a0] ss:$8 sps:$4 sm:$0xff]  }
  0x45   :  { %1923 = vmatprep.subr.bf16.mxu1 %v2676_v13  ;;  %1804 = vmatprep.mubr.bf16.mxu0 %v2290_v33  ;;  %v2746_v13 = vld [vmem:[%s3915_s1 + $0x3a0] ss:$8 sps:$4 sm:$0xff]   ;;  %v2772_v33 = vld [vmem:[%s3915_s1 + $0x564] ss:$8 sps:$4 sm:$0xff]  }
  0x46   :  { %1857 = vmatprep.mubr.bf16.mxu1 %v2292_v34 }
  0x47   :  { %1871 = vmatpush1.bf16.msra.mxu0 %v2671_v14  ;;  %v2751_v14 = vld [vmem:[%s3915_s1 + $0x294] ss:$8 sps:$4 sm:$0xff]  }
  0x48   :  { %1924 = vmatpush1.bf16.msra.mxu1 %v2674_v15  ;;  %1872 = vmatprep.subr.bf16.mxu0 %v2679_v16  ;;  %v2754_v15 = vld [vmem:[%s3915_s1 + $0x394] ss:$8 sps:$4 sm:$0xff]   ;;  %v2749_v16 = vld [vmem:[%s3915_s1 + $0x290] ss:$8 sps:$4 sm:$0xff]  }
  0x49   :  { %1925 = vmatprep.subr.bf16.mxu1 %v2682_v17  ;;  %v2752_v17 = vld [vmem:[%s3915_s1 + $0x390] ss:$8 sps:$4 sm:$0xff]  }
  0x4a   :  { %1805 = vmatmul.mubr.bf16.gmra.mxu0 %v2289_v35  ;;  %v2296_v35 = vcombine.high %v53_v30, %v61_v31 }
  0x4b   :  { %1873 = vmatpush1.bf16.msra.mxu0 %v2677_v18  ;;  %1858 = vmatmul.mubr.bf16.gmra.mxu1 %v2291_v37  ;;  %v2757_v18 = vld [vmem:[%s3915_s1 + $0x284] ss:$8 sps:$4 sm:$0xff]   ;;  %v2770_v37 = vld [vmem:[%s3915_s1 + $0x560] ss:$8 sps:$4 sm:$0xff]  }
  0x4c   :  { %1926 = vmatpush1.bf16.msra.mxu1 %v2680_v19  ;;  %1874 = vmatprep.subr.bf16.mxu0 %v2685_v20  ;;  %v2760_v19 = vld [vmem:[%s3915_s1 + $0x384] ss:$8 sps:$4 sm:$0xff]   ;;  %v2755_v20 = vld [vmem:[%s3915_s1 + $0x280] ss:$8 sps:$4 sm:$0xff]  }
  0x4d   :  { %1927 = vmatprep.subr.bf16.mxu1 %v2688_v21  ;;  %1900 = vmatprep.mubr.bf16.mxu0 %v2278_v49  ;;  %v2758_v21 = vld [vmem:[%s3915_s1 + $0x380] ss:$8 sps:$4 sm:$0xff]   ;;  %v2784_v49 = vld [vmem:[%s3915_s1 + $0x544] ss:$8 sps:$4 sm:$0xff]  }
  0x4e   :  { %1953 = vmatprep.mubr.bf16.mxu1 %v2280_v51  ;;  %v2284_v51 = vcombine.high %v3470_v46, %v3475_v47 }
  0x4f   :  { %1875 = vmatpush1.bf16.msra.mxu0 %v2683_v22  ;;  %v2763_v22 = vld [vmem:[%s3915_s1 + $0x474] ss:$8 sps:$4 sm:$0xff]  }
  0x50   :  { %1928 = vmatpush1.bf16.msra.mxu1 %v2686_v23  ;;  %1876 = vmatprep.subr.bf16.mxu0 %v2691_v24  ;;  %v2766_v23 = vld [vmem:[%s3915_s1 + $0x574] ss:$8 sps:$4 sm:$0xff]   ;;  %v2761_v24 = vld [vmem:[%s3915_s1 + $0x470] ss:$8 sps:$4 sm:$0xff]  }
  0x51   :  { %1929 = vmatprep.subr.bf16.mxu1 %v2694_v25  ;;  %v2764_v25 = vld [vmem:[%s3915_s1 + $0x570] ss:$8 sps:$4 sm:$0xff]  }
  0x53   :  { %1877 = vmatpush1.bf16.msra.mxu0 %v2689_v26  ;;  %v52_v26 = vld [vmem:[%s3916_s0 + $0x90] sm:$0xff] }
  0x54   :  { %1930 = vmatpush1.bf16.msra.mxu1 %v2692_v27  ;;  %1878 = vmatprep.subr.bf16.mxu0 %v2697_v32  ;;  %v60_v27 = vld [vmem:[%s3916_s0 + $0xd0] sm:$0xff]  ;;  %v2769_v32 = vld [vmem:[%s3915_s1 + $0x464] ss:$8 sps:$4 sm:$0xff]  }
  0x55   :  { %1931 = vmatprep.subr.bf16.mxu1 %v2700_v36  ;;  %v2294_v34 = vcombine.high %v52_v26, %v60_v27  ;;  %v2767_v36 = vld [vmem:[%s3915_s1 + $0x460] ss:$8 sps:$4 sm:$0xff]  }
  0x57   :  { %1879 = vmatpush1.bf16.msra.mxu0 %v2695_v38  ;;  %v2775_v38 = vld [vmem:[%s3915_s1 + $0x454] ss:$8 sps:$4 sm:$0xff]  }
  0x58   :  { %1932 = vmatpush1.bf16.msra.mxu1 %v2698_v39  ;;  %1880 = vmatprep.subr.bf16.mxu0 %v2703_v40  ;;  %v2778_v39 = vld [vmem:[%s3915_s1 + $0x554] ss:$8 sps:$4 sm:$0xff]   ;;  %v2773_v40 = vld [vmem:[%s3915_s1 + $0x450] ss:$8 sps:$4 sm:$0xff]  }
  0x59   :  { %1933 = vmatprep.subr.bf16.mxu1 %v2706_v41  ;;  %v2776_v41 = vld [vmem:[%s3915_s1 + $0x550] ss:$8 sps:$4 sm:$0xff]  }
  0x5b   :  { %1881 = vmatpush1.bf16.msra.mxu0 %v2701_v42  ;;  %v3460_v42 = vld [vmem:[%s3916_s0 + $0x20] sm:$0xff] }
  0x5c   :  { %1934 = vmatpush1.bf16.msra.mxu1 %v2704_v43  ;;  %1882 = vmatprep.subr.bf16.mxu0 %v2709_v44  ;;  %v3465_v43 = vld [vmem:[%s3916_s0 + $0x60] sm:$0xff]  ;;  %v2293_v44 = vcombine.low %v52_v26, %v60_v27 }
  0x5d   :  { %1935 = vmatprep.subr.bf16.mxu1 %v2712_v45  ;;  %v2295_v45 = vcombine.low %v53_v30, %v61_v31  ;;  %v2282_v50 = vcombine.high %v3460_v42, %v3465_v43  ;;  %v2841_v26 = vld [vmem:[%s3915_s1 + $0x4a4] ss:$8 sps:$4 sm:$0xff]   ;;  %v2847_v30 = vld [vmem:[%s3915_s1 + $0x494] ss:$8 sps:$4 sm:$0xff]  }
  0x5e   :  { %v2844_v27 = vld [vmem:[%s3915_s1 + $0x5a4] ss:$8 sps:$4 sm:$0xff]   ;;  %v2850_v31 = vld [vmem:[%s3915_s1 + $0x594] ss:$8 sps:$4 sm:$0xff]  }
  0x5f   :  { %1883 = vmatpush1.bf16.msra.mxu0 %v2707_v52  ;;  %v2779_v52 = vld [vmem:[%s3915_s1 + $0x440] ss:$8 sps:$4 sm:$0xff]  }
  0x60   :  { %1936 = vmatpush1.bf16.msra.mxu1 %v2710_v53  ;;  %1884 = vmatprep.subr.bf16.mxu0 %v2715_v54  ;;  %v2782_v53 = vld [vmem:[%s3915_s1 + $0x540] ss:$8 sps:$4 sm:$0xff]   ;;  %v2787_v54 = vld [vmem:[%s3915_s1 + $0x434] ss:$8 sps:$4 sm:$0xff]  }
  0x61   :  { %1937 = vmatprep.subr.bf16.mxu1 %v2718_v55  ;;  %v2790_v55 = vld [vmem:[%s3915_s1 + $0x534] ss:$8 sps:$4 sm:$0xff]  }
  0x63   :  { %1885 = vmatpush2.bf16.msra.mxu0 %v2713_v56  ;;  %v2785_v56 = vld [vmem:[%s3915_s1 + $0x430] ss:$8 sps:$4 sm:$0xff]  }
  0x64   :  { %1938 = vmatpush2.bf16.msra.mxu1 %v2716_v57  ;;  %1886 = vmatprep.subr.bf16.mxu0 %v2721_v58  ;;  %v2788_v57 = vld [vmem:[%s3915_s1 + $0x530] ss:$8 sps:$4 sm:$0xff]   ;;  %v2793_v58 = vld [vmem:[%s3915_s1 + $0x424] ss:$8 sps:$4 sm:$0xff]  }
  0x65   :  { %1939 = vmatprep.subr.bf16.mxu1 %v2724_v59  ;;  %v2796_v59 = vld [vmem:[%s3915_s1 + $0x524] ss:$8 sps:$4 sm:$0xff]  }
  0x67   :  { %1887 = vmatpush2.bf16.msra.mxu0 %v2719_v60  ;;  %v2791_v60 = vld [vmem:[%s3915_s1 + $0x420] ss:$8 sps:$4 sm:$0xff]  }
  0x68   :  { %1940 = vmatpush2.bf16.msra.mxu1 %v2722_v61  ;;  %1888 = vmatprep.subr.bf16.mxu0 %v2727_v62  ;;  %v2794_v61 = vld [vmem:[%s3915_s1 + $0x520] ss:$8 sps:$4 sm:$0xff]   ;;  %v2799_v62 = vld [vmem:[%s3915_s1 + $0x414] ss:$8 sps:$4 sm:$0xff]  }
  0x69   :  { %1941 = vmatprep.subr.bf16.mxu1 %v2730_v63  ;;  %v2802_v63 = vld [vmem:[%s3915_s1 + $0x514] ss:$8 sps:$4 sm:$0xff]  }
  0x6b   :  { %1889 = vmatpush2.bf16.msra.mxu0 %v2725_v0  ;;  %v2797_v0 = vld [vmem:[%s3915_s1 + $0x410] ss:$8 sps:$4 sm:$0xff]  }
  0x6c   :  { %1942 = vmatpush2.bf16.msra.mxu1 %v2728_v1  ;;  %1890 = vmatprep.subr.bf16.mxu0 %v2733_v2  ;;  %v2800_v1 = vld [vmem:[%s3915_s1 + $0x510] ss:$8 sps:$4 sm:$0xff]   ;;  %v2805_v2 = vld [vmem:[%s3915_s1 + $0x404] ss:$8 sps:$4 sm:$0xff]  }
  0x6d   :  { %1943 = vmatprep.subr.bf16.mxu1 %v2736_v3  ;;  %v2808_v3 = vld [vmem:[%s3915_s1 + $0x504] ss:$8 sps:$4 sm:$0xff]  }
  0x6f   :  { %1891 = vmatpush2.bf16.msra.mxu0 %v2731_v4  ;;  %v2803_v4 = vld [vmem:[%s3915_s1 + $0x400] ss:$8 sps:$4 sm:$0xff]  }
  0x70   :  { %1944 = vmatpush2.bf16.msra.mxu1 %v2734_v5  ;;  %1892 = vmatprep.subr.bf16.mxu0 %v2739_v6  ;;  %v2806_v5 = vld [vmem:[%s3915_s1 + $0x500] ss:$8 sps:$4 sm:$0xff]   ;;  %v2811_v6 = vld [vmem:[%s3915_s1 + $0x4f4] ss:$8 sps:$4 sm:$0xff]  }
  0x71   :  { %1945 = vmatprep.subr.bf16.mxu1 %v2742_v7  ;;  %v2814_v7 = vld [vmem:[%s3915_s1 + $0x5f4] ss:$8 sps:$4 sm:$0xff]  }
  0x73   :  { %1893 = vmatpush2.bf16.msra.mxu0 %v2737_v8  ;;  %v2809_v8 = vld [vmem:[%s3915_s1 + $0x4f0] ss:$8 sps:$4 sm:$0xff]  }
  0x74   :  { %1946 = vmatpush2.bf16.msra.mxu1 %v2740_v9  ;;  %1894 = vmatprep.subr.bf16.mxu0 %v2745_v10  ;;  %v2812_v9 = vld [vmem:[%s3915_s1 + $0x5f0] ss:$8 sps:$4 sm:$0xff]   ;;  %v2817_v10 = vld [vmem:[%s3915_s1 + $0x4e4] ss:$8 sps:$4 sm:$0xff]  }
  0x75   :  { %1947 = vmatprep.subr.bf16.mxu1 %v2748_v11  ;;  %v2820_v11 = vld [vmem:[%s3915_s1 + $0x5e4] ss:$8 sps:$4 sm:$0xff]  }
  0x77   :  { %1895 = vmatpush2.bf16.msra.mxu0 %v2743_v12  ;;  %v2815_v12 = vld [vmem:[%s3915_s1 + $0x4e0] ss:$8 sps:$4 sm:$0xff]  }
  0x78   :  { %1948 = vmatpush2.bf16.msra.mxu1 %v2746_v13  ;;  %1896 = vmatprep.subr.bf16.mxu0 %v2751_v14  ;;  %v2818_v13 = vld [vmem:[%s3915_s1 + $0x5e0] ss:$8 sps:$4 sm:$0xff]   ;;  %v2823_v14 = vld [vmem:[%s3915_s1 + $0x4d4] ss:$8 sps:$4 sm:$0xff]  }
  0x79   :  { %1949 = vmatprep.subr.bf16.mxu1 %v2754_v15  ;;  %v2826_v15 = vld [vmem:[%s3915_s1 + $0x5d4] ss:$8 sps:$4 sm:$0xff]  }
  0x7b   :  { %1897 = vmatpush2.bf16.msra.mxu0 %v2749_v16  ;;  %v2821_v16 = vld [vmem:[%s3915_s1 + $0x4d0] ss:$8 sps:$4 sm:$0xff]  }
  0x7c   :  { %1950 = vmatpush2.bf16.msra.mxu1 %v2752_v17  ;;  %1898 = vmatprep.subr.bf16.mxu0 %v2757_v18  ;;  %v2824_v17 = vld [vmem:[%s3915_s1 + $0x5d0] ss:$8 sps:$4 sm:$0xff]   ;;  %v2829_v18 = vld [vmem:[%s3915_s1 + $0x4c4] ss:$8 sps:$4 sm:$0xff]  }
  0x7d   :  { %1951 = vmatprep.subr.bf16.mxu1 %v2760_v19  ;;  %v2832_v19 = vld [vmem:[%s3915_s1 + $0x5c4] ss:$8 sps:$4 sm:$0xff]  }
  0x7f   :  { %1899 = vmatpush2.bf16.msra.mxu0 %v2755_v20  ;;  %v2827_v20 = vld [vmem:[%s3915_s1 + $0x4c0] ss:$8 sps:$4 sm:$0xff]  }
  0x80   :  { %1952 = vmatpush2.bf16.msra.mxu1 %v2758_v21  ;;  %1974 = vmatprep.subr.bf16.mxu0 %v2763_v22  ;;  %v2830_v21 = vld [vmem:[%s3915_s1 + $0x5c0] ss:$8 sps:$4 sm:$0xff]   ;;  %v2835_v22 = vld [vmem:[%s3915_s1 + $0x4b4] ss:$8 sps:$4 sm:$0xff]  }
  0x81   :  { %2027 = vmatprep.subr.bf16.mxu1 %v2766_v23  ;;  %v2838_v23 = vld [vmem:[%s3915_s1 + $0x5b4] ss:$8 sps:$4 sm:$0xff]  }
  0x82   :  { %1901 = vmatmul.mubr.bf16.vlgmr.msra.gmra.mxu0 %v2277_v28  ;;  %v2839_v28 = vld [vmem:[%s3915_s1 + $0x4a0] ss:$8 sps:$4 sm:$0xff]  }
  0x83   :  { %1954 = vmatmul.mubr.bf16.vlgmr.msra.gmra.mxu1 %v2279_v29  ;;  %1975 = vmatpush1.bf16.msra.mxu0 %v2761_v24  ;;  %v2833_v24 = vld [vmem:[%s3915_s1 + $0x4b0] ss:$8 sps:$4 sm:$0xff]   ;;  %v2842_v29 = vld [vmem:[%s3915_s1 + $0x5a0] ss:$8 sps:$4 sm:$0xff]  }
  0x84   :  { %2028 = vmatpush1.bf16.msra.mxu1 %v2764_v25  ;;  %1976 = vmatprep.subr.bf16.mxu0 %v2769_v32  ;;  %v2836_v25 = vld [vmem:[%s3915_s1 + $0x5b0] ss:$8 sps:$4 sm:$0xff]  }
  0x85   :  { %2029 = vmatprep.subr.bf16.mxu1 %v2772_v33  ;;  %1910 = vmatprep.mubr.bf16.mxu0 %v2294_v34  ;;  %v2845_v32 = vld [vmem:[%s3915_s1 + $0x490] ss:$8 sps:$4 sm:$0xff]   ;;  %v2853_v34 = vld [vmem:[%s3915_s1 + $0x484] ss:$8 sps:$4 sm:$0xff]  }
  0x86   :  { %1963 = vmatprep.mubr.bf16.mxu1 %v2296_v35  ;;  %v2848_v33 = vld [vmem:[%s3915_s1 + $0x590] ss:$8 sps:$4 sm:$0xff]   ;;  %v2856_v35 = vld [vmem:[%s3915_s1 + $0x584] ss:$8 sps:$4 sm:$0xff]  }
  0x87   :  { %1977 = vmatpush1.bf16.msra.mxu0 %v2767_v36  ;;  %v2851_v36 = vld [vmem:[%s3915_s1 + $0x480] ss:$8 sps:$4 sm:$0xff]  }
  0x88   :  { %2030 = vmatpush1.bf16.msra.mxu1 %v2770_v37  ;;  %1978 = vmatprep.subr.bf16.mxu0 %v2775_v38  ;;  %v2854_v37 = vld [vmem:[%s3915_s1 + $0x580] ss:$8 sps:$4 sm:$0xff]   ;;  %v2859_v38 = vld [vmem:[%s3915_s1 + $0x674] ss:$8 sps:$4 sm:$0xff]  }
  0x89   :  { %2031 = vmatprep.subr.bf16.mxu1 %v2778_v39  ;;  %v2862_v39 = vld [vmem:[%s3915_s1 + $0x774] ss:$8 sps:$4 sm:$0xff]  }
  0x8a   :  { %1911 = vmatmul.mubr.bf16.gmra.mxu0 %v2293_v44  ;;  %v2283_v44 = vcombine.low %v3470_v46, %v3475_v47  ;;  %v2865_v46 = vld [vmem:[%s3915_s1 + $0x664] ss:$8 sps:$4 sm:$0xff]  }
  0x8b   :  { %1964 = vmatmul.mubr.bf16.gmra.mxu1 %v2295_v45  ;;  %1979 = vmatpush1.bf16.msra.mxu0 %v2773_v40  ;;  %v54_v40 = vld [vmem:[%s3916_s0 + $0xa0] sm:$0xff] }
  0x8c   :  { %2032 = vmatpush1.bf16.msra.mxu1 %v2776_v41  ;;  %1980 = vmatprep.subr.bf16.mxu0 %v2781_v48  ;;  %v2281_v41 = vcombine.low %v3460_v42, %v3465_v43  ;;  %v62_v45 = vld [vmem:[%s3916_s0 + $0xe0] sm:$0xff]  ;;  %v55_v48 = vld [vmem:[%s3916_s0 + $0xa8] sm:$0xff]  ;;  %v2857_v42 = vld [vmem:[%s3915_s1 + $0x670] ss:$8 sps:$4 sm:$0xff]  }
  0x8d   :  { %2033 = vmatprep.subr.bf16.mxu1 %v2784_v49  ;;  %2006 = vmatprep.mubr.bf16.mxu0 %v2282_v50  ;;  %v63_v49 = vld [vmem:[%s3916_s0 + $0xe8] sm:$0xff]  ;;  %v2860_v43 = vld [vmem:[%s3915_s1 + $0x770] ss:$8 sps:$4 sm:$0xff]   ;;  %v2298_v50 = vcombine.high %v54_v40, %v62_v45 }
  0x8e   :  { %2059 = vmatprep.mubr.bf16.mxu1 %v2284_v51  ;;  %v2868_v47 = vld [vmem:[%s3915_s1 + $0x764] ss:$8 sps:$4 sm:$0xff]   ;;  %v2300_v51 = vcombine.high %v55_v48, %v63_v49 }
  0x8f   :  { %1981 = vmatpush1.bf16.msra.mxu0 %v2779_v52  ;;  %v2863_v52 = vld [vmem:[%s3915_s1 + $0x660] ss:$8 sps:$4 sm:$0xff]  }
  0x90   :  { %2034 = vmatpush1.bf16.msra.mxu1 %v2782_v53  ;;  %1982 = vmatprep.subr.bf16.mxu0 %v2787_v54  ;;  %v2866_v53 = vld [vmem:[%s3915_s1 + $0x760] ss:$8 sps:$4 sm:$0xff]   ;;  %v2871_v54 = vld [vmem:[%s3915_s1 + $0x654] ss:$8 sps:$4 sm:$0xff]  }
  0x91   :  { %2035 = vmatprep.subr.bf16.mxu1 %v2790_v55  ;;  %v2874_v55 = vld [vmem:[%s3915_s1 + $0x754] ss:$8 sps:$4 sm:$0xff]  }
  0x93   :  { %1983 = vmatpush1.bf16.msra.mxu0 %v2785_v56  ;;  %v3686_v56 = vld [vmem:[%s3916_s0 + $0x30] sm:$0xff] }
  0x94   :  { %2036 = vmatpush1.bf16.msra.mxu1 %v2788_v57  ;;  %1984 = vmatprep.subr.bf16.mxu0 %v2793_v58  ;;  %v2297_v57 = vcombine.low %v54_v40, %v62_v45  ;;  %v2299_v58 = vcombine.low %v55_v48, %v63_v49  ;;  %v2929_v40 = vld [vmem:[%s3915_s1 + $0x6b0] ss:$8 sps:$4 sm:$0xff]   ;;  %v2940_v45 = vld [vmem:[%s3915_s1 + $0x7a4] ss:$8 sps:$4 sm:$0xff]   ;;  %v2935_v48 = vld [vmem:[%s3915_s1 + $0x6a0] ss:$8 sps:$4 sm:$0xff]  }
  0x95   :  { %2037 = vmatprep.subr.bf16.mxu1 %v2796_v59  ;;  %v3691_v59 = vld [vmem:[%s3916_s0 + $0x70] sm:$0xff]  ;;  %v2938_v49 = vld [vmem:[%s3915_s1 + $0x7a0] ss:$8 sps:$4 sm:$0xff]  }
  0x97   :  { %1985 = vmatpush1.bf16.msra.mxu0 %v2791_v60  ;;  %v3696_v60 = vld [vmem:[%s3916_s0 + $0x38] sm:$0xff] }
  0x98   :  { %2038 = vmatpush1.bf16.msra.mxu1 %v2794_v61  ;;  %1986 = vmatprep.subr.bf16.mxu0 %v2799_v62  ;;  %v3701_v61 = vld [vmem:[%s3916_s0 + $0x78] sm:$0xff] }
  0x99   :  { %2039 = vmatprep.subr.bf16.mxu1 %v2802_v63  ;;  %v2869_v62 = vld [vmem:[%s3915_s1 + $0x650] ss:$8 sps:$4 sm:$0xff]  }
  0x9a   :  { %v2872_v63 = vld [vmem:[%s3915_s1 + $0x750] ss:$8 sps:$4 sm:$0xff]  }
  0x9b   :  { %1987 = vmatpush1.bf16.msra.mxu0 %v2797_v0  ;;  %v2877_v0 = vld [vmem:[%s3915_s1 + $0x644] ss:$8 sps:$4 sm:$0xff]  }
  0x9c   :  { %2040 = vmatpush1.bf16.msra.mxu1 %v2800_v1  ;;  %1988 = vmatprep.subr.bf16.mxu0 %v2805_v2  ;;  %v2880_v1 = vld [vmem:[%s3915_s1 + $0x744] ss:$8 sps:$4 sm:$0xff]   ;;  %v2286_v2 = vcombine.high %v3686_v56, %v3691_v59 }
  0x9d   :  { %2041 = vmatprep.subr.bf16.mxu1 %v2808_v3  ;;  %v2288_v3 = vcombine.high %v3696_v60, %v3701_v61 }
  0x9f   :  { %1989 = vmatpush1.bf16.msra.mxu0 %v2803_v4  ;;  %v2875_v4 = vld [vmem:[%s3915_s1 + $0x640] ss:$8 sps:$4 sm:$0xff]  }
  0xa0   :  { %2042 = vmatpush1.bf16.msra.mxu1 %v2806_v5  ;;  %1990 = vmatprep.subr.bf16.mxu0 %v2811_v6  ;;  %v2878_v5 = vld [vmem:[%s3915_s1 + $0x740] ss:$8 sps:$4 sm:$0xff]   ;;  %v2883_v6 = vld [vmem:[%s3915_s1 + $0x634] ss:$8 sps:$4 sm:$0xff]  }
  0xa1   :  { %2043 = vmatprep.subr.bf16.mxu1 %v2814_v7  ;;  %v2886_v7 = vld [vmem:[%s3915_s1 + $0x734] ss:$8 sps:$4 sm:$0xff]  }
  0xa3   :  { %1991 = vmatpush2.bf16.msra.mxu0 %v2809_v8  ;;  %v2881_v8 = vld [vmem:[%s3915_s1 + $0x630] ss:$8 sps:$4 sm:$0xff]  }
  0xa4   :  { %2044 = vmatpush2.bf16.msra.mxu1 %v2812_v9  ;;  %1992 = vmatprep.subr.bf16.mxu0 %v2817_v10  ;;  %v2884_v9 = vld [vmem:[%s3915_s1 + $0x730] ss:$8 sps:$4 sm:$0xff]   ;;  %v2889_v10 = vld [vmem:[%s3915_s1 + $0x624] ss:$8 sps:$4 sm:$0xff]  }
  0xa5   :  { %2045 = vmatprep.subr.bf16.mxu1 %v2820_v11  ;;  %v2892_v11 = vld [vmem:[%s3915_s1 + $0x724] ss:$8 sps:$4 sm:$0xff]  }
  0xa7   :  { %1993 = vmatpush2.bf16.msra.mxu0 %v2815_v12  ;;  %v2887_v12 = vld [vmem:[%s3915_s1 + $0x620] ss:$8 sps:$4 sm:$0xff]  }
  0xa8   :  { %2046 = vmatpush2.bf16.msra.mxu1 %v2818_v13  ;;  %1994 = vmatprep.subr.bf16.mxu0 %v2823_v14  ;;  %v2890_v13 = vld [vmem:[%s3915_s1 + $0x720] ss:$8 sps:$4 sm:$0xff]   ;;  %v2895_v14 = vld [vmem:[%s3915_s1 + $0x614] ss:$8 sps:$4 sm:$0xff]  }
  0xa9   :  { %2047 = vmatprep.subr.bf16.mxu1 %v2826_v15  ;;  %v2898_v15 = vld [vmem:[%s3915_s1 + $0x714] ss:$8 sps:$4 sm:$0xff]  }
  0xab   :  { %1995 = vmatpush2.bf16.msra.mxu0 %v2821_v16  ;;  %v2893_v16 = vld [vmem:[%s3915_s1 + $0x610] ss:$8 sps:$4 sm:$0xff]  }
  0xac   :  { %2048 = vmatpush2.bf16.msra.mxu1 %v2824_v17  ;;  %1996 = vmatprep.subr.bf16.mxu0 %v2829_v18  ;;  %v2896_v17 = vld [vmem:[%s3915_s1 + $0x710] ss:$8 sps:$4 sm:$0xff]   ;;  %v2901_v18 = vld [vmem:[%s3915_s1 + $0x604] ss:$8 sps:$4 sm:$0xff]  }
  0xad   :  { %2049 = vmatprep.subr.bf16.mxu1 %v2832_v19  ;;  %v2904_v19 = vld [vmem:[%s3915_s1 + $0x704] ss:$8 sps:$4 sm:$0xff]  }
  0xaf   :  { %1997 = vmatpush2.bf16.msra.mxu0 %v2827_v20  ;;  %v2899_v20 = vld [vmem:[%s3915_s1 + $0x600] ss:$8 sps:$4 sm:$0xff]  }
  0xb0   :  { %2050 = vmatpush2.bf16.msra.mxu1 %v2830_v21  ;;  %1998 = vmatprep.subr.bf16.mxu0 %v2835_v22  ;;  %v2902_v21 = vld [vmem:[%s3915_s1 + $0x700] ss:$8 sps:$4 sm:$0xff]   ;;  %v2907_v22 = vld [vmem:[%s3915_s1 + $0x6f4] ss:$8 sps:$4 sm:$0xff]  }
  0xb1   :  { %2051 = vmatprep.subr.bf16.mxu1 %v2838_v23  ;;  %v2910_v23 = vld [vmem:[%s3915_s1 + $0x7f4] ss:$8 sps:$4 sm:$0xff]  }
  0xb3   :  { %1999 = vmatpush2.bf16.msra.mxu0 %v2833_v24  ;;  %v2905_v24 = vld [vmem:[%s3915_s1 + $0x6f0] ss:$8 sps:$4 sm:$0xff]  }
  0xb4   :  { %2052 = vmatpush2.bf16.msra.mxu1 %v2836_v25  ;;  %2000 = vmatprep.subr.bf16.mxu0 %v2841_v26  ;;  %v2908_v25 = vld [vmem:[%s3915_s1 + $0x7f0] ss:$8 sps:$4 sm:$0xff]   ;;  %v2913_v26 = vld [vmem:[%s3915_s1 + $0x6e4] ss:$8 sps:$4 sm:$0xff]  }
  0xb5   :  { %2053 = vmatprep.subr.bf16.mxu1 %v2844_v27  ;;  %v2916_v27 = vld [vmem:[%s3915_s1 + $0x7e4] ss:$8 sps:$4 sm:$0xff]  }
  0xb7   :  { %2001 = vmatpush2.bf16.msra.mxu0 %v2839_v28  ;;  %v2911_v28 = vld [vmem:[%s3915_s1 + $0x6e0] ss:$8 sps:$4 sm:$0xff]  }
  0xb8   :  { %2054 = vmatpush2.bf16.msra.mxu1 %v2842_v29  ;;  %2002 = vmatprep.subr.bf16.mxu0 %v2847_v30  ;;  %v2914_v29 = vld [vmem:[%s3915_s1 + $0x7e0] ss:$8 sps:$4 sm:$0xff]   ;;  %v2919_v30 = vld [vmem:[%s3915_s1 + $0x6d4] ss:$8 sps:$4 sm:$0xff]  }
  0xb9   :  { %2055 = vmatprep.subr.bf16.mxu1 %v2850_v31  ;;  %v2922_v31 = vld [vmem:[%s3915_s1 + $0x7d4] ss:$8 sps:$4 sm:$0xff]  }
  0xbb   :  { %2003 = vmatpush2.bf16.msra.mxu0 %v2845_v32  ;;  %v2917_v32 = vld [vmem:[%s3915_s1 + $0x6d0] ss:$8 sps:$4 sm:$0xff]  }
  0xbc   :  { %2056 = vmatpush2.bf16.msra.mxu1 %v2848_v33  ;;  %2004 = vmatprep.subr.bf16.mxu0 %v2853_v34  ;;  %v2920_v33 = vld [vmem:[%s3915_s1 + $0x7d0] ss:$8 sps:$4 sm:$0xff]   ;;  %v2925_v34 = vld [vmem:[%s3915_s1 + $0x6c4] ss:$8 sps:$4 sm:$0xff]  }
  0xbd   :  { %2057 = vmatprep.subr.bf16.mxu1 %v2856_v35  ;;  %v2928_v35 = vld [vmem:[%s3915_s1 + $0x7c4] ss:$8 sps:$4 sm:$0xff]  }
  0xbf   :  { %2005 = vmatpush2.bf16.msra.mxu0 %v2851_v36  ;;  %v2923_v36 = vld [vmem:[%s3915_s1 + $0x6c0] ss:$8 sps:$4 sm:$0xff]  }
  0xc0   :  { %2058 = vmatpush2.bf16.msra.mxu1 %v2854_v37  ;;  %2080 = vmatprep.subr.bf16.mxu0 %v2859_v38  ;;  %v2926_v37 = vld [vmem:[%s3915_s1 + $0x7c0] ss:$8 sps:$4 sm:$0xff]   ;;  %v2931_v38 = vld [vmem:[%s3915_s1 + $0x6b4] ss:$8 sps:$4 sm:$0xff]  }
  0xc1   :  { %2133 = vmatprep.subr.bf16.mxu1 %v2862_v39  ;;  %v2934_v39 = vld [vmem:[%s3915_s1 + $0x7b4] ss:$8 sps:$4 sm:$0xff]  }
  0xc2   :  { %2007 = vmatmul.mubr.bf16.vlgmr.msra.gmra.mxu0 %v2281_v41  ;;  %v2932_v41 = vld [vmem:[%s3915_s1 + $0x7b0] ss:$8 sps:$4 sm:$0xff]  }
  0xc3   :  { %2060 = vmatmul.mubr.bf16.vlgmr.msra.gmra.mxu1 %v2283_v44  ;;  %2081 = vmatpush1.bf16.msra.mxu0 %v2857_v42  ;;  %v2937_v44 = vld [vmem:[%s3915_s1 + $0x6a4] ss:$8 sps:$4 sm:$0xff]   ;;  %v2943_v42 = vld [vmem:[%s3915_s1 + $0x694] ss:$8 sps:$4 sm:$0xff]  }
  0xc4   :  { %2134 = vmatpush1.bf16.msra.mxu1 %v2860_v43  ;;  %2082 = vmatprep.subr.bf16.mxu0 %v2865_v46  ;;  %v2946_v43 = vld [vmem:[%s3915_s1 + $0x794] ss:$8 sps:$4 sm:$0xff]   ;;  %v2941_v46 = vld [vmem:[%s3915_s1 + $0x690] ss:$8 sps:$4 sm:$0xff]  }
  0xc5   :  { %2135 = vmatprep.subr.bf16.mxu1 %v2868_v47  ;;  %2016 = vmatprep.mubr.bf16.mxu0 %v2298_v50  ;;  %v2944_v47 = vld [vmem:[%s3915_s1 + $0x790] ss:$8 sps:$4 sm:$0xff]   ;;  %v2949_v50 = vld [vmem:[%s3915_s1 + $0x684] ss:$8 sps:$4 sm:$0xff]  }
  0xc6   :  { %2069 = vmatprep.mubr.bf16.mxu1 %v2300_v51  ;;  %v2952_v51 = vld [vmem:[%s3915_s1 + $0x784] ss:$8 sps:$4 sm:$0xff]  }
  0xc7   :  { %2083 = vmatpush1.bf16.msra.mxu0 %v2863_v52  ;;  %v2947_v52 = vld [vmem:[%s3915_s1 + $0x680] ss:$8 sps:$4 sm:$0xff]  }
  0xc8   :  { %2136 = vmatpush1.bf16.msra.mxu1 %v2866_v53  ;;  %2084 = vmatprep.subr.bf16.mxu0 %v2871_v54  ;;  %v2950_v53 = vld [vmem:[%s3915_s1 + $0x780] ss:$8 sps:$4 sm:$0xff]   ;;  %v56_v54 = vld [vmem:[%s3916_s0 + $0xb0] sm:$0xff] }
  0xc9   :  { %2137 = vmatprep.subr.bf16.mxu1 %v2874_v55  ;;  %v64_v55 = vld [vmem:[%s3916_s0 + $0xf0] sm:$0xff] }
  0xca   :  { %2017 = vmatmul.mubr.bf16.gmra.mxu0 %v2297_v57  ;;  %v57_v57 = vld [vmem:[%s3916_s0 + $0xb8] sm:$0xff] }
  0xcb   :  { %2070 = vmatmul.mubr.bf16.gmra.mxu1 %v2299_v58  ;;  %2085 = vmatpush1.bf16.msra.mxu0 %v2869_v62  ;;  %v65_v58 = vld [vmem:[%s3916_s0 + $0xf8] sm:$0xff]  ;;  %v2285_v62 = vcombine.low %v3686_v56, %v3691_v59 }
  0xcc   :  { %2138 = vmatpush1.bf16.msra.mxu1 %v2872_v63  ;;  %2086 = vmatprep.subr.bf16.mxu0 %v2877_v0  ;;  %v2287_v63 = vcombine.low %v3696_v60, %v3701_v61  ;;  %v2302_v0 = vcombine.high %v56_v54, %v64_v55 }
  0xcd   :  { %2139 = vmatprep.subr.bf16.mxu1 %v2880_v1  ;;  %2112 = vmatprep.mubr.bf16.mxu0 %v2286_v2  ;;  %v2304_v1 = vcombine.high %v57_v57, %v65_v58  ;;  %v2301_v2 = vcombine.low %v56_v54, %v64_v55 }
  0xce   :  { %2165 = vmatprep.mubr.bf16.mxu1 %v2288_v3  ;;  %v2303_v3 = vcombine.low %v57_v57, %v65_v58 }
  0xcf   :  { %2087 = vmatpush1.bf16.msra.mxu0 %v2875_v4 }
  0xd0   :  { %2140 = vmatpush1.bf16.msra.mxu1 %v2878_v5  ;;  %2088 = vmatprep.subr.bf16.mxu0 %v2883_v6 }
  0xd1   :  { %2141 = vmatprep.subr.bf16.mxu1 %v2886_v7 }
  0xd3   :  { %2089 = vmatpush1.bf16.msra.mxu0 %v2881_v8 }
  0xd4   :  { %2142 = vmatpush1.bf16.msra.mxu1 %v2884_v9  ;;  %2090 = vmatprep.subr.bf16.mxu0 %v2889_v10 }
  0xd5   :  { %2143 = vmatprep.subr.bf16.mxu1 %v2892_v11 }
  0xd7   :  { %2091 = vmatpush1.bf16.msra.mxu0 %v2887_v12 }
  0xd8   :  { %2144 = vmatpush1.bf16.msra.mxu1 %v2890_v13  ;;  %2092 = vmatprep.subr.bf16.mxu0 %v2895_v14 }
  0xd9   :  { %2145 = vmatprep.subr.bf16.mxu1 %v2898_v15 }
  0xdb   :  { %2093 = vmatpush1.bf16.msra.mxu0 %v2893_v16 }
  0xdc   :  { %2146 = vmatpush1.bf16.msra.mxu1 %v2896_v17  ;;  %2094 = vmatprep.subr.bf16.mxu0 %v2901_v18 }
  0xdd   :  { %2147 = vmatprep.subr.bf16.mxu1 %v2904_v19 }
  0xdf   :  { %2095 = vmatpush1.bf16.msra.mxu0 %v2899_v20 }
  0xe0   :  { %2148 = vmatpush1.bf16.msra.mxu1 %v2902_v21  ;;  %2096 = vmatprep.subr.bf16.mxu0 %v2907_v22 }
  0xe1   :  { %2149 = vmatprep.subr.bf16.mxu1 %v2910_v23 }
  0xe3   :  { %2097 = vmatpush2.bf16.msra.mxu0 %v2905_v24 }
  0xe4   :  { %2150 = vmatpush2.bf16.msra.mxu1 %v2908_v25  ;;  %2098 = vmatprep.subr.bf16.mxu0 %v2913_v26 }
  0xe5   :  { %2151 = vmatprep.subr.bf16.mxu1 %v2916_v27 }
  0xe7   :  { %2099 = vmatpush2.bf16.msra.mxu0 %v2911_v28 }
  0xe8   :  { %2152 = vmatpush2.bf16.msra.mxu1 %v2914_v29  ;;  %2100 = vmatprep.subr.bf16.mxu0 %v2919_v30 }
  0xe9   :  { %2153 = vmatprep.subr.bf16.mxu1 %v2922_v31 }
  0xeb   :  { %2101 = vmatpush2.bf16.msra.mxu0 %v2917_v32 }
  0xec   :  { %2154 = vmatpush2.bf16.msra.mxu1 %v2920_v33  ;;  %2102 = vmatprep.subr.bf16.mxu0 %v2925_v34 }
  0xed   :  { %2155 = vmatprep.subr.bf16.mxu1 %v2928_v35 }
  0xef   :  { %2103 = vmatpush2.bf16.msra.mxu0 %v2923_v36 }
  0xf0   :  { %2156 = vmatpush2.bf16.msra.mxu1 %v2926_v37  ;;  %2104 = vmatprep.subr.bf16.mxu0 %v2931_v38 }
  0xf1   :  { %2157 = vmatprep.subr.bf16.mxu1 %v2934_v39 }
  0xf3   :  { %2105 = vmatpush2.bf16.msra.mxu0 %v2929_v40 }
  0xf4   :  { %2158 = vmatpush2.bf16.msra.mxu1 %v2932_v41  ;;  %2106 = vmatprep.subr.bf16.mxu0 %v2937_v44 }
  0xf5   :  { %2159 = vmatprep.subr.bf16.mxu1 %v2940_v45 }
  0xf7   :  { %2107 = vmatpush2.bf16.msra.mxu0 %v2935_v48 }
  0xf8   :  { %2160 = vmatpush2.bf16.msra.mxu1 %v2938_v49  ;;  %2108 = vmatprep.subr.bf16.mxu0 %v2943_v42  ;;  %v2215_v49 = vlaneseq }
  0xf9   :  { %2161 = vmatprep.subr.bf16.mxu1 %v2946_v43 }
  0xfb   :  { %2109 = vmatpush2.bf16.msra.mxu0 %v2941_v46 }
  0xfc   :  { %2162 = vmatpush2.bf16.msra.mxu1 %v2944_v47  ;;  %2110 = vmatprep.subr.bf16.mxu0 %v2949_v50 }
  0xfd   :  { %2163 = vmatprep.subr.bf16.mxu1 %v2952_v51 }
  0xff   :  { %2111 = vmatpush2.bf16.msra.mxu0 %v2947_v52 }
 0x100   :  { %2164 = vmatpush2.bf16.msra.mxu1 %v2950_v53  ;;  %v2216_v53 = vshrl.u32 %v2215_v49, 7 }
 0x102   :  { %2113 = vmatmul.mubr.bf16.vlgmr.msra.gmra.mxu0 %v2285_v62  ;;  %v1796_v4 = vpop.f32.mrf.mxu0 }
 0x103   :  { %2166 = vmatmul.mubr.bf16.vlgmr.msra.gmra.mxu1 %v2287_v63  ;;  %2122 = vmatprep.mubr.bf16.mxu0 %v2302_v0  ;;  %v1849_v5 = vpop.f32.mrf.mxu1 }
 0x104   :  { %2175 = vmatprep.mubr.bf16.mxu1 %v2304_v1  ;;  %v1798_v6 = vpop.f32.mrf.mxu0  ;;  %v1850_v44 = vadd.f32 %v1849_v5, %v1796_v4 }
 0x105   :  { %v1851_v7 = vpop.f32.mrf.mxu1 }
 0x106   :  { %v1800_v56 = vpop.f32.mrf.mxu0  ;;  %v1852_v45 = vadd.f32 %v1851_v7, %v1798_v6 }
 0x107   :  { %v1853_v59 = vpop.f32.mrf.mxu1 }
 0x108   :  { %v1802_v8 = vpop.f32.mrf.mxu0  ;;  %v1854_v46 = vadd.f32 %v1853_v59, %v1800_v56  ;;  %v2213_v56 = vld [vmem:[%s3917_s2] sm:$0x3] }
 0x109   :  { %v1855_v61 = vpop.f32.mrf.mxu1 }
 0x10a   :  { %2123 = vmatmul.mubr.bf16.gmra.mxu0 %v2301_v2  ;;  %v1806_v60 = vpop.f32.mrf.mxu0  ;;  %v1856_v50 = vadd.f32 %v1855_v61, %v1802_v8  ;;  %v2221_v61 = vsub.s32 1, %v2216_v53 }
 0x10b   :  { %2176 = vmatmul.mubr.bf16.gmra.mxu1 %v2303_v3  ;;  %v1859_v9 = vpop.f32.mrf.mxu1  ;;  %v2217_v3 = vsub.s32 0, %v2216_v53 }
 0x10c   :  { %v1808_v10 = vpop.f32.mrf.mxu0  ;;  %v1860_v54 = vadd.f32 %v1859_v9, %v1806_v60 }
 0x10d   :  { %v1861_v11 = vpop.f32.mrf.mxu1 }
 0x10e   :  { %v1810_v12 = vpop.f32.mrf.mxu0  ;;  %v1862_v4 = vadd.f32 %v1861_v11, %v1808_v10  ;;  %v2218_v11 = vrot.slane %v2213_v56, %v2217_v3 }
 0x10f   :  { %v1863_v13 = vpop.f32.mrf.mxu1 }
 0x110   :  { %v1812_v14 = vpop.f32.mrf.mxu0  ;;  %v1864_v5 = vadd.f32 %v1863_v13, %v1810_v12 }
 0x111   :  { %v1865_v16 = vpop.f32.mrf.mxu1 }
 0x112   :  { %v1866_v9 = vadd.f32 %v1865_v16, %v1812_v14 }
 0x142   :  { %v1902_v15 = vpop.f32.mrf.mxu0 }
 0x143   :  { %v1955_v17 = vpop.f32.mrf.mxu1  ;;  %v1903_v48 = vadd.f32 %v1902_v15, %v1850_v44 }
 0x144   :  { %v1904_v18 = vpop.f32.mrf.mxu0 }
 0x145   :  { %v1957_v19 = vpop.f32.mrf.mxu1  ;;  %v1905_v47 = vadd.f32 %v1904_v18, %v1852_v45  ;;  %v1956_v51 = vadd.f32 %v1955_v17, %v1903_v48 }
 0x146   :  { %v1906_v20 = vpop.f32.mrf.mxu0 }
 0x147   :  { %v1959_v21 = vpop.f32.mrf.mxu1  ;;  %v1907_v52 = vadd.f32 %v1906_v20, %v1854_v46  ;;  %v1958_v58 = vadd.f32 %v1957_v19, %v1905_v47 }
 0x148   :  { %v1908_v22 = vpop.f32.mrf.mxu0 }
 0x149   :  { %v1961_v23 = vpop.f32.mrf.mxu1  ;;  %v1909_v62 = vadd.f32 %v1908_v22, %v1856_v50  ;;  %v1960_v1 = vadd.f32 %v1959_v21, %v1907_v52 }
 0x14a   :  { %v1912_v24 = vpop.f32.mrf.mxu0 }
 0x14b   :  { %v1965_v25 = vpop.f32.mrf.mxu1  ;;  %v1913_v0 = vadd.f32 %v1912_v24, %v1860_v54  ;;  %v1962_v59 = vadd.f32 %v1961_v23, %v1909_v62 }
 0x14c   :  { %v1914_v26 = vpop.f32.mrf.mxu0 }
 0x14d   :  { %v3885_v27 = vpop.f32.mrf.mxu1  ;;  %v1915_v15 = vadd.f32 %v1914_v26, %v1862_v4  ;;  %v1966_v17 = vadd.f32 %v1965_v25, %v1913_v0 }
 0x14e   :  { %v1916_v28 = vpop.f32.mrf.mxu0 }
 0x14f   :  { %v3887_v29 = vpop.f32.mrf.mxu1  ;;  %v1917_v18 = vadd.f32 %v1916_v28, %v1864_v5 }
 0x150   :  { %v1918_v30 = vpop.f32.mrf.mxu0 }
 0x151   :  { %v3889_v31 = vpop.f32.mrf.mxu1  ;;  %v1919_v12 = vadd.f32 %v1918_v30, %v1866_v9  ;;  %v1970_v14 = vadd.f32 %v3887_v29, %v1917_v18 }
 0x153   :  { %v1972_v45 = vadd.f32 %v3889_v31, %v1919_v12 }
 0x182   :  { %v2008_v32 = vpop.f32.mrf.mxu0 }
 0x183   :  { %v2061_v33 = vpop.f32.mrf.mxu1  ;;  %v2009_v63 = vadd.f32 %v2008_v32, %v1956_v51 }
 0x184   :  { %v2010_v34 = vpop.f32.mrf.mxu0 }
 0x185   :  { %v2063_v35 = vpop.f32.mrf.mxu1  ;;  %v2011_v2 = vadd.f32 %v2010_v34, %v1958_v58  ;;  %v2062_v8 = vadd.f32 %v2061_v33, %v2009_v63  ;;  %v2222_v33 = vrot.slane %v2213_v56, %v2221_v61 }
 0x186   :  { %v2012_v36 = vpop.f32.mrf.mxu0 }
 0x187   :  { %v2065_v37 = vpop.f32.mrf.mxu1  ;;  %v2013_v60 = vadd.f32 %v2012_v36, %v1960_v1  ;;  %v2064_v21 = vadd.f32 %v2063_v35, %v2011_v2  ;;  %v1968_v36 = vadd.f32 %v3885_v27, %v1915_v15 }
 0x188   :  { %v2014_v38 = vpop.f32.mrf.mxu0 }
 0x189   :  { %v2067_v39 = vpop.f32.mrf.mxu1  ;;  %v2015_v22 = vadd.f32 %v2014_v38, %v1962_v59  ;;  %v2066_v34 = vadd.f32 %v2065_v37, %v2013_v60 }
 0x18a   :  { %v2018_v40 = vpop.f32.mrf.mxu0 }
 0x18b   :  { %v2071_v41 = vpop.f32.mrf.mxu1  ;;  %v2019_v13 = vadd.f32 %v2018_v40, %v1966_v17  ;;  %v2068_v26 = vadd.f32 %v2067_v39, %v2015_v22 }
 0x18c   :  { %v2020_v42 = vpop.f32.mrf.mxu0 }
 0x18d   :  { %v3891_v43 = vpop.f32.mrf.mxu1  ;;  %v2021_v30 = vadd.f32 %v2020_v42, %v1968_v36  ;;  %v2072_v40 = vadd.f32 %v2071_v41, %v2019_v13 }
 0x18e   :  { %v2022_v55 = vpop.f32.mrf.mxu0 }
 0x18f   :  { %v3893_v57 = vpop.f32.mrf.mxu1  ;;  %v2023_v37 = vadd.f32 %v2022_v55, %v1970_v14  ;;  %v2074_v62 = vadd.f32 %v3891_v43, %v2021_v30 }
 0x190   :  { %v2024_v6 = vpop.f32.mrf.mxu0 }
 0x191   :  { %v2077_v7 = vpop.f32.mrf.mxu1  ;;  %v2025_v51 = vadd.f32 %v2024_v6, %v1972_v45  ;;  %v2076_v41 = vadd.f32 %v3893_v57, %v2023_v37 }
 0x193   :  { %v2078_v4 = vadd.f32 %v2077_v7, %v2025_v51 }
 0x1c2   :  { %v2114_v19 = vpop.f32.mrf.mxu0 }
 0x1c3   :  { %v2167_v20 = vpop.f32.mrf.mxu1  ;;  %v2115_v10 = vadd.f32 %v2114_v19, %v2062_v8 }
 0x1c4   :  { %v2116_v24 = vpop.f32.mrf.mxu0 }
 0x1c5   :  { %v2169_v32 = vpop.f32.mrf.mxu1  ;;  %v2168_v44 = vadd.f32 %v2167_v20, %v2115_v10  ;;  %v2117_v23 = vadd.f32 %v2116_v24, %v2064_v21 }
 0x1c6   :  { %v2118_v16 = vpop.f32.mrf.mxu0 }
 0x1c7   :  { %v2171_v25 = vpop.f32.mrf.mxu1  ;;  %v2225_v28 = vadd.f32 %v2218_v11, %v2168_v44  ;;  %v2170_v35 = vadd.f32 %v2169_v32, %v2117_v23  ;;  %v2119_v38 = vadd.f32 %v2118_v16, %v2066_v34 }
 0x1c8   :  { %v2120_v48 = vpop.f32.mrf.mxu0 }
 0x1c9   :  { %v2173_v49 = vpop.f32.mrf.mxu1  ;;  %v2226_v46 = vadd.f32 %v2222_v33, %v2170_v35  ;;  %v2172_v47 = vadd.f32 %v2171_v25, %v2119_v38  ;;  %v2121_v50 = vadd.f32 %v2120_v48, %v2068_v26  ;;  %v2233_v27 = vmax.f32 %v2225_v28, 0.0 }
 0x1ca   :  { %v2124_v52 = vpop.f32.mrf.mxu0 }
 0x1cb   :  { %v2177_v29 = vpop.f32.mrf.mxu1  ;;  %v2234_v53 = vmax.f32 %v2226_v46, 0.0  ;;  %v2227_v54 = vadd.f32 %v2218_v11, %v2172_v47  ;;  %v2174_v39 = vadd.f32 %v2173_v49, %v2121_v50  ;;  %v2125_v58 = vadd.f32 %v2124_v52, %v2072_v40 }
 0x1cc   :  { %v2126_v63 = vpop.f32.mrf.mxu0 }
 0x1cd   :  { %v2179_v31 = vpop.f32.mrf.mxu1  ;;  %v2565_v42 = vpack.c.bf16 %v2234_v53, %v2233_v27  ;;  %v2228_v0 = vadd.f32 %v2222_v33, %v2174_v39  ;;  %v2178_v55 = vadd.f32 %v2177_v29, %v2125_v58  ;;  %v2127_v1 = vadd.f32 %v2126_v63, %v2074_v62 }
 0x1ce   :  { %v2128_v2 = vpop.f32.mrf.mxu0  ;;  %v2235_v5 = vmax.f32 %v2227_v54, 0.0 }
 0x1cf   :  { %v2181_v3 = vpop.f32.mrf.mxu1  ;;  %2265 = vst [vmem:[%s3918_s3] sm:$0xff] %v2565_v42  ;;  %v2236_v6 = vmax.f32 %v2228_v0, 0.0  ;;  %v2129_v56 = vadd.f32 %v2128_v2, %v2076_v41  ;;  %v2229_v59 = vadd.f32 %v2218_v11, %v2178_v55  ;;  %v2180_v43 = vadd.f32 %v2179_v31, %v2127_v1 }
 0x1d0   :  { %v2130_v8 = vpop.f32.mrf.mxu0 }
 0x1d1   :  { %v2566_v60 = vpack.c.bf16 %v2236_v6, %v2235_v5  ;;  %v2182_v61 = vadd.f32 %v2181_v3, %v2129_v56  ;;  %v2131_v57 = vadd.f32 %v2130_v8, %v2078_v4  ;;  %v2230_v9 = vadd.f32 %v2222_v33, %v2180_v43  ;;  %v2183_v15 = vpop.f32.mrf.mxu1 }
 0x1d2   :  { %v2237_v18 = vmax.f32 %v2229_v59, 0.0 }
 0x1d3   :  { %2266 = vst [vmem:[%s3918_s3 + $0x8] sm:$0xff] %v2566_v60  ;;  %v2231_v7 = vadd.f32 %v2218_v11, %v2182_v61  ;;  %v2184_v17 = vadd.f32 %v2183_v15, %v2131_v57  ;;  %v2238_v19 = vmax.f32 %v2230_v9, 0.0 }
 0x1d5   :  { %v2232_v20 = vadd.f32 %v2222_v33, %v2184_v17  ;;  %v2567_v21 = vpack.c.bf16 %v2238_v19, %v2237_v18  ;;  %v2239_v22 = vmax.f32 %v2231_v7, 0.0 }
 0x1d7   :  { %v2240_v10 = vmax.f32 %v2232_v20, 0.0  ;;  %2267 = vst [vmem:[%s3918_s3 + $0x10] sm:$0xff] %v2567_v21 }
 0x1d9   :  { %v2568_v12 = vpack.c.bf16 %v2240_v10, %v2239_v22 }
 0x1db   :  { %2268 = vst [vmem:[%s3918_s3 + $0x18] sm:$0xff] %v2568_v12 }

// kernel: vae_forward.26
= control target key start
LH: loop header
LB: loop body
LE: loop exit
PB: predicated region body
PF: predicated region fallthrough
CT: control target
= control target key end

     0   :  { %s2347_s1 = inlined_call_operand.vmem [shape: bf16[2048,128], index: 1, kind: input, shape index: {}]   ;;  %s2348_s0 = inlined_call_operand.vmem [shape: bf16[8,2048], index: 0, kind: input, shape index: {}]   ;;  %s2349_s2 = inlined_call_operand.vmem [shape: f32[1,128], index: 2, kind: input, shape index: {}]   ;;  %s2350_s3 = inlined_call_operand.vmem [shape: f32[8,128], index: 3, kind: output, shape index: {}]  }
   0x1   :  { %v1769_v0 = vld [vmem:[%s2347_s1 + $0x78] sm:$0xff]   ;;  %v1773_v4 = vld [vmem:[%s2347_s1 + $0x70] sm:$0xff]   ;;  %v1777_v8 = vld [vmem:[%s2347_s1 + $0x68] sm:$0xff]  }
   0x2   :  { %v1770_v1 = vld [vmem:[%s2347_s1 + $0xf8] sm:$0xff]   ;;  %1593 = vmatprep.subr.bf16.mxu0 %v1769_v0  ;;  %v1774_v5 = vld [vmem:[%s2347_s1 + $0xf0] sm:$0xff]   ;;  %v1778_v9 = vld [vmem:[%s2347_s1 + $0xe8] sm:$0xff]  }
   0x3   :  { %v1771_v2 = vld [vmem:[%s2347_s1 + $0x38] sm:$0xff]   ;;  %1615 = vmatprep.subr.bf16.mxu1 %v1770_v1  ;;  %v1775_v6 = vld [vmem:[%s2347_s1 + $0x30] sm:$0xff]   ;;  %v1779_v10 = vld [vmem:[%s2347_s1 + $0x28] sm:$0xff]  }
   0x4   :  { %v1772_v3 = vld [vmem:[%s2347_s1 + $0xb8] sm:$0xff]   ;;  %1594 = vmatpush3.bf16.msra.mxu0 %v1771_v2  ;;  %v1776_v7 = vld [vmem:[%s2347_s1 + $0xb0] sm:$0xff]   ;;  %v1780_v11 = vld [vmem:[%s2347_s1 + $0xa8] sm:$0xff]  }
   0x5   :  { %1616 = vmatpush3.bf16.msra.mxu1 %v1772_v3  ;;  %1595 = vmatprep.subr.bf16.mxu0 %v1773_v4  ;;  %v1781_v12 = vld [vmem:[%s2347_s1 + $0x60] sm:$0xff]   ;;  %v1785_v16 = vld [vmem:[%s2347_s1 + $0x58] sm:$0xff]   ;;  %v1789_v20 = vld [vmem:[%s2347_s1 + $0x50] sm:$0xff]  }
   0x6   :  { %1617 = vmatprep.subr.bf16.mxu1 %v1774_v5  ;;  %v1782_v13 = vld [vmem:[%s2347_s1 + $0xe0] sm:$0xff]   ;;  %v1786_v17 = vld [vmem:[%s2347_s1 + $0xd8] sm:$0xff]   ;;  %v1790_v21 = vld [vmem:[%s2347_s1 + $0xd0] sm:$0xff]  }
   0x7   :  { %v1783_v14 = vld [vmem:[%s2347_s1 + $0x20] sm:$0xff]   ;;  %v1787_v18 = vld [vmem:[%s2347_s1 + $0x18] sm:$0xff]   ;;  %v1791_v22 = vld [vmem:[%s2347_s1 + $0x10] sm:$0xff]  }
   0x8   :  { %1596 = vmatpush3.bf16.msra.mxu0 %v1775_v6  ;;  %v1784_v15 = vld [vmem:[%s2347_s1 + $0xa0] sm:$0xff]   ;;  %v1788_v19 = vld [vmem:[%s2347_s1 + $0x98] sm:$0xff]   ;;  %v1792_v23 = vld [vmem:[%s2347_s1 + $0x90] sm:$0xff]  }
   0x9   :  { %1618 = vmatpush3.bf16.msra.mxu1 %v1776_v7  ;;  %1597 = vmatprep.subr.bf16.mxu0 %v1777_v8  ;;  %v1793_v24 = vld [vmem:[%s2347_s1 + $0x48] sm:$0xff]   ;;  %v1797_v28 = vld [vmem:[%s2347_s1 + $0x40] sm:$0xff]   ;;  %v1805_v38 = vld [vmem:[%s2347_s1 + $0x178] sm:$0xff]  }
   0xa   :  { %1619 = vmatprep.subr.bf16.mxu1 %v1778_v9  ;;  %v1794_v25 = vld [vmem:[%s2347_s1 + $0xc8] sm:$0xff]   ;;  %v1798_v29 = vld [vmem:[%s2347_s1 + $0xc0] sm:$0xff]   ;;  %v1806_v39 = vld [vmem:[%s2347_s1 + $0x1f8] sm:$0xff]  }
   0xb   :  { %v1795_v26 = vld [vmem:[%s2347_s1 + $0x8] sm:$0xff]   ;;  %v1799_v30 = vld [vmem:[%s2347_s1] sm:$0xff]   ;;  %v1807_v40 = vld [vmem:[%s2347_s1 + $0x138] sm:$0xff]  }
   0xc   :  { %1598 = vmatpush3.bf16.msra.mxu0 %v1779_v10  ;;  %v1796_v27 = vld [vmem:[%s2347_s1 + $0x88] sm:$0xff]   ;;  %v1800_v31 = vld [vmem:[%s2347_s1 + $0x80] sm:$0xff]   ;;  %v1808_v41 = vld [vmem:[%s2347_s1 + $0x1b8] sm:$0xff]  }
   0xd   :  { %1620 = vmatpush3.bf16.msra.mxu1 %v1780_v11  ;;  %1599 = vmatprep.subr.bf16.mxu0 %v1781_v12  ;;  %v21_v32 = vld [vmem:[%s2348_s0] sm:$0xff]  ;;  %v22_v33 = vld [vmem:[%s2348_s0 + $0x8] sm:$0xff]  ;;  %v1809_v42 = vld [vmem:[%s2347_s1 + $0x170] sm:$0xff]  }
   0xe   :  { %1621 = vmatprep.subr.bf16.mxu1 %v1782_v13  ;;  %v1448_v34 = vcombine.low %v21_v32, %v21_v32  ;;  %v1449_v35 = vcombine.high %v21_v32, %v21_v32  ;;  %v1450_v36 = vcombine.low %v22_v33, %v22_v33  ;;  %v1451_v37 = vcombine.high %v22_v33, %v22_v33  ;;  %v1810_v43 = vld [vmem:[%s2347_s1 + $0x1f0] sm:$0xff]   ;;  %v1813_v46 = vld [vmem:[%s2347_s1 + $0x168] sm:$0xff]   ;;  %v1817_v50 = vld [vmem:[%s2347_s1 + $0x160] sm:$0xff]  }
   0xf   :  { %v1811_v44 = vld [vmem:[%s2347_s1 + $0x130] sm:$0xff]   ;;  %v1814_v47 = vld [vmem:[%s2347_s1 + $0x1e8] sm:$0xff]   ;;  %v1818_v51 = vld [vmem:[%s2347_s1 + $0x1e0] sm:$0xff]  }
  0x10   :  { %1600 = vmatpush3.bf16.msra.mxu0 %v1783_v14  ;;  %1141 = vmatprep.mubr.bf16.mxu0 %v1449_v35  ;;  %v1812_v45 = vld [vmem:[%s2347_s1 + $0x1b0] sm:$0xff]   ;;  %v1815_v48 = vld [vmem:[%s2347_s1 + $0x128] sm:$0xff]   ;;  %v1819_v52 = vld [vmem:[%s2347_s1 + $0x120] sm:$0xff]  }
  0x11   :  { %1622 = vmatpush3.bf16.msra.mxu1 %v1784_v15  ;;  %1601 = vmatprep.subr.bf16.mxu0 %v1785_v16  ;;  %v1816_v49 = vld [vmem:[%s2347_s1 + $0x1a8] sm:$0xff]   ;;  %v1820_v53 = vld [vmem:[%s2347_s1 + $0x1a0] sm:$0xff]   ;;  %v1821_v54 = vld [vmem:[%s2347_s1 + $0x158] sm:$0xff]  }
  0x12   :  { %1623 = vmatprep.subr.bf16.mxu1 %v1786_v17  ;;  %1181 = vmatprep.mubr.bf16.mxu1 %v1451_v37  ;;  %v1822_v55 = vld [vmem:[%s2347_s1 + $0x1d8] sm:$0xff]   ;;  %v1825_v58 = vld [vmem:[%s2347_s1 + $0x150] sm:$0xff]   ;;  %v1829_v62 = vld [vmem:[%s2347_s1 + $0x148] sm:$0xff]  }
  0x13   :  { %v1823_v56 = vld [vmem:[%s2347_s1 + $0x118] sm:$0xff]   ;;  %v1826_v59 = vld [vmem:[%s2347_s1 + $0x1d0] sm:$0xff]   ;;  %v1830_v63 = vld [vmem:[%s2347_s1 + $0x1c8] sm:$0xff]  }
  0x14   :  { %1602 = vmatpush3.bf16.msra.mxu0 %v1787_v18  ;;  %v1824_v57 = vld [vmem:[%s2347_s1 + $0x198] sm:$0xff]   ;;  %v1827_v60 = vld [vmem:[%s2347_s1 + $0x110] sm:$0xff]   ;;  %v1831_v0 = vld [vmem:[%s2347_s1 + $0x108] sm:$0xff]  }
  0x15   :  { %1624 = vmatpush3.bf16.msra.mxu1 %v1788_v19  ;;  %1603 = vmatprep.subr.bf16.mxu0 %v1789_v20  ;;  %v1828_v61 = vld [vmem:[%s2347_s1 + $0x190] sm:$0xff]   ;;  %v1832_v1 = vld [vmem:[%s2347_s1 + $0x188] sm:$0xff]   ;;  %v1833_v2 = vld [vmem:[%s2347_s1 + $0x140] sm:$0xff]  }
  0x16   :  { %1625 = vmatprep.subr.bf16.mxu1 %v1790_v21  ;;  %v1834_v3 = vld [vmem:[%s2347_s1 + $0x1c0] sm:$0xff]   ;;  %v23_v6 = vld [vmem:[%s2348_s0 + $0x10] sm:$0xff]  ;;  %v24_v9 = vld [vmem:[%s2348_s0 + $0x18] sm:$0xff] }
  0x17   :  { %v1835_v4 = vld [vmem:[%s2347_s1 + $0x100] sm:$0xff]   ;;  %v1452_v7 = vcombine.low %v23_v6, %v23_v6  ;;  %v1453_v8 = vcombine.high %v23_v6, %v23_v6  ;;  %v1454_v10 = vcombine.low %v24_v9, %v24_v9  ;;  %v1455_v11 = vcombine.high %v24_v9, %v24_v9  ;;  %v1841_v12 = vld [vmem:[%s2347_s1 + $0x278] sm:$0xff]   ;;  %v1845_v16 = vld [vmem:[%s2347_s1 + $0x270] sm:$0xff]  }
  0x18   :  { %1604 = vmatpush3.bf16.msra.mxu0 %v1791_v22  ;;  %v1836_v5 = vld [vmem:[%s2347_s1 + $0x180] sm:$0xff]   ;;  %v1842_v13 = vld [vmem:[%s2347_s1 + $0x2f8] sm:$0xff]   ;;  %v1846_v17 = vld [vmem:[%s2347_s1 + $0x2f0] sm:$0xff]  }
  0x19   :  { %1626 = vmatpush3.bf16.msra.mxu1 %v1792_v23  ;;  %1605 = vmatprep.subr.bf16.mxu0 %v1793_v24  ;;  %v1843_v14 = vld [vmem:[%s2347_s1 + $0x238] sm:$0xff]   ;;  %v1847_v18 = vld [vmem:[%s2347_s1 + $0x230] sm:$0xff]   ;;  %v1849_v20 = vld [vmem:[%s2347_s1 + $0x268] sm:$0xff]  }
  0x1a   :  { %1627 = vmatprep.subr.bf16.mxu1 %v1794_v25  ;;  %v1844_v15 = vld [vmem:[%s2347_s1 + $0x2b8] sm:$0xff]   ;;  %v1848_v19 = vld [vmem:[%s2347_s1 + $0x2b0] sm:$0xff]   ;;  %v1850_v21 = vld [vmem:[%s2347_s1 + $0x2e8] sm:$0xff]  }
  0x1b   :  { %v1851_v22 = vld [vmem:[%s2347_s1 + $0x228] sm:$0xff]   ;;  %v1853_v24 = vld [vmem:[%s2347_s1 + $0x260] sm:$0xff]   ;;  %v1861_v32 = vld [vmem:[%s2347_s1 + $0x250] sm:$0xff]  }
  0x1c   :  { %1606 = vmatpush3.bf16.msra.mxu0 %v1795_v26  ;;  %v1852_v23 = vld [vmem:[%s2347_s1 + $0x2a8] sm:$0xff]   ;;  %v1854_v25 = vld [vmem:[%s2347_s1 + $0x2e0] sm:$0xff]   ;;  %v1862_v33 = vld [vmem:[%s2347_s1 + $0x2d0] sm:$0xff]  }
  0x1d   :  { %1628 = vmatpush3.bf16.msra.mxu1 %v1796_v27  ;;  %1607 = vmatprep.subr.bf16.mxu0 %v1797_v28  ;;  %v1855_v26 = vld [vmem:[%s2347_s1 + $0x220] sm:$0xff]   ;;  %v1857_v28 = vld [vmem:[%s2347_s1 + $0x258] sm:$0xff]   ;;  %v1864_v35 = vld [vmem:[%s2347_s1 + $0x290] sm:$0xff]  }
  0x1e   :  { %1629 = vmatprep.subr.bf16.mxu1 %v1798_v29  ;;  %v1856_v27 = vld [vmem:[%s2347_s1 + $0x2a0] sm:$0xff]   ;;  %v1858_v29 = vld [vmem:[%s2347_s1 + $0x2d8] sm:$0xff]   ;;  %v1866_v37 = vld [vmem:[%s2347_s1 + $0x2c8] sm:$0xff]  }
  0x1f   :  { %v1897_v6 = vld [vmem:[%s2347_s1 + $0x350] sm:$0xff]  }
  0x20   :  { %1608 = vmatpush3.bf16.msra.mxu0 %v1799_v30  ;;  %v1859_v30 = vld [vmem:[%s2347_s1 + $0x218] sm:$0xff]   ;;  %v1900_v9 = vld [vmem:[%s2347_s1 + $0x390] sm:$0xff]  }
  0x21   :  { %1630 = vmatpush3.bf16.msra.mxu1 %v1800_v31  ;;  %1637 = vmatprep.subr.bf16.mxu0 %v1805_v38  ;;  %v1860_v31 = vld [vmem:[%s2347_s1 + $0x298] sm:$0xff]   ;;  %v1867_v38 = vld [vmem:[%s2347_s1 + $0x208] sm:$0xff]  }
  0x22   :  { %1659 = vmatprep.subr.bf16.mxu1 %v1806_v39  ;;  %v1868_v39 = vld [vmem:[%s2347_s1 + $0x288] sm:$0xff]  }
  0x23   :  { %1142 = vmatmul.mubr.bf16.vlgmr.msra.gmra.mxu0 %v1448_v34  ;;  %v1863_v34 = vld [vmem:[%s2347_s1 + $0x210] sm:$0xff]  }
  0x24   :  { %1182 = vmatmul.mubr.bf16.vlgmr.msra.gmra.mxu1 %v1450_v36  ;;  %1638 = vmatpush3.bf16.msra.mxu0 %v1807_v40  ;;  %v1865_v36 = vld [vmem:[%s2347_s1 + $0x248] sm:$0xff]   ;;  %v1869_v40 = vld [vmem:[%s2347_s1 + $0x240] sm:$0xff]  }
  0x25   :  { %1660 = vmatpush3.bf16.msra.mxu1 %v1808_v41  ;;  %1639 = vmatprep.subr.bf16.mxu0 %v1809_v42  ;;  %v1870_v41 = vld [vmem:[%s2347_s1 + $0x2c0] sm:$0xff]  }
  0x26   :  { %1661 = vmatprep.subr.bf16.mxu1 %v1810_v43  ;;  %1221 = vmatprep.mubr.bf16.mxu0 %v1453_v8  ;;  %v1871_v42 = vld [vmem:[%s2347_s1 + $0x200] sm:$0xff]   ;;  %v1899_v8 = vld [vmem:[%s2347_s1 + $0x310] sm:$0xff]  }
  0x27   :  { %1261 = vmatprep.mubr.bf16.mxu1 %v1455_v11  ;;  %v1872_v43 = vld [vmem:[%s2347_s1 + $0x280] sm:$0xff]   ;;  %v1902_v11 = vld [vmem:[%s2347_s1 + $0x3c8] sm:$0xff]  }
  0x28   :  { %1640 = vmatpush3.bf16.msra.mxu0 %v1811_v44  ;;  %v25_v44 = vld [vmem:[%s2348_s0 + $0x20] sm:$0xff] }
  0x29   :  { %1662 = vmatpush3.bf16.msra.mxu1 %v1812_v45  ;;  %1641 = vmatprep.subr.bf16.mxu0 %v1813_v46  ;;  %v26_v45 = vld [vmem:[%s2348_s0 + $0x28] sm:$0xff]  ;;  %v1456_v46 = vcombine.low %v25_v44, %v25_v44 }
  0x2a   :  { %1663 = vmatprep.subr.bf16.mxu1 %v1814_v47  ;;  %v1457_v47 = vcombine.high %v25_v44, %v25_v44 }
  0x2c   :  { %1642 = vmatpush3.bf16.msra.mxu0 %v1815_v48  ;;  %v1458_v48 = vcombine.low %v26_v45, %v26_v45 }
  0x2d   :  { %1664 = vmatpush3.bf16.msra.mxu1 %v1816_v49  ;;  %1643 = vmatprep.subr.bf16.mxu0 %v1817_v50  ;;  %v1459_v49 = vcombine.high %v26_v45, %v26_v45  ;;  %v1877_v50 = vld [vmem:[%s2347_s1 + $0x378] sm:$0xff]  }
  0x2e   :  { %1665 = vmatprep.subr.bf16.mxu1 %v1818_v51  ;;  %v1878_v51 = vld [vmem:[%s2347_s1 + $0x3f8] sm:$0xff]  }
  0x30   :  { %1644 = vmatpush3.bf16.msra.mxu0 %v1819_v52  ;;  %v1879_v52 = vld [vmem:[%s2347_s1 + $0x338] sm:$0xff]  }
  0x31   :  { %1666 = vmatpush3.bf16.msra.mxu1 %v1820_v53  ;;  %1645 = vmatprep.subr.bf16.mxu0 %v1821_v54  ;;  %v1880_v53 = vld [vmem:[%s2347_s1 + $0x3b8] sm:$0xff]   ;;  %v1881_v54 = vld [vmem:[%s2347_s1 + $0x370] sm:$0xff]  }
  0x32   :  { %1667 = vmatprep.subr.bf16.mxu1 %v1822_v55  ;;  %v1882_v55 = vld [vmem:[%s2347_s1 + $0x3f0] sm:$0xff]  }
  0x34   :  { %1646 = vmatpush3.bf16.msra.mxu0 %v1823_v56  ;;  %v1883_v56 = vld [vmem:[%s2347_s1 + $0x330] sm:$0xff]  }
  0x35   :  { %1668 = vmatpush3.bf16.msra.mxu1 %v1824_v57  ;;  %1647 = vmatprep.subr.bf16.mxu0 %v1825_v58  ;;  %v1884_v57 = vld [vmem:[%s2347_s1 + $0x3b0] sm:$0xff]   ;;  %v1885_v58 = vld [vmem:[%s2347_s1 + $0x368] sm:$0xff]  }
  0x36   :  { %1669 = vmatprep.subr.bf16.mxu1 %v1826_v59  ;;  %v1886_v59 = vld [vmem:[%s2347_s1 + $0x3e8] sm:$0xff]  }
  0x38   :  { %1648 = vmatpush3.bf16.msra.mxu0 %v1827_v60  ;;  %v1887_v60 = vld [vmem:[%s2347_s1 + $0x328] sm:$0xff]  }
  0x39   :  { %1670 = vmatpush3.bf16.msra.mxu1 %v1828_v61  ;;  %1649 = vmatprep.subr.bf16.mxu0 %v1829_v62  ;;  %v1888_v61 = vld [vmem:[%s2347_s1 + $0x3a8] sm:$0xff]   ;;  %v1889_v62 = vld [vmem:[%s2347_s1 + $0x360] sm:$0xff]  }
  0x3a   :  { %1671 = vmatprep.subr.bf16.mxu1 %v1830_v63  ;;  %v1890_v63 = vld [vmem:[%s2347_s1 + $0x3e0] sm:$0xff]  }
  0x3c   :  { %1650 = vmatpush3.bf16.msra.mxu0 %v1831_v0  ;;  %v1891_v0 = vld [vmem:[%s2347_s1 + $0x320] sm:$0xff]  }
  0x3d   :  { %1672 = vmatpush3.bf16.msra.mxu1 %v1832_v1  ;;  %1651 = vmatprep.subr.bf16.mxu0 %v1833_v2  ;;  %v1892_v1 = vld [vmem:[%s2347_s1 + $0x3a0] sm:$0xff]   ;;  %v1893_v2 = vld [vmem:[%s2347_s1 + $0x358] sm:$0xff]  }
  0x3e   :  { %1673 = vmatprep.subr.bf16.mxu1 %v1834_v3  ;;  %v1894_v3 = vld [vmem:[%s2347_s1 + $0x3d8] sm:$0xff]  }
  0x40   :  { %1652 = vmatpush3.bf16.msra.mxu0 %v1835_v4  ;;  %v1895_v4 = vld [vmem:[%s2347_s1 + $0x318] sm:$0xff]  }
  0x41   :  { %1674 = vmatpush3.bf16.msra.mxu1 %v1836_v5  ;;  %1681 = vmatprep.subr.bf16.mxu0 %v1841_v12  ;;  %v1896_v5 = vld [vmem:[%s2347_s1 + $0x398] sm:$0xff]   ;;  %v1903_v12 = vld [vmem:[%s2347_s1 + $0x308] sm:$0xff]  }
  0x42   :  { %1703 = vmatprep.subr.bf16.mxu1 %v1842_v13  ;;  %v1904_v13 = vld [vmem:[%s2347_s1 + $0x388] sm:$0xff]  }
  0x43   :  { %1222 = vmatmul.mubr.bf16.vlgmr.msra.gmra.mxu0 %v1452_v7  ;;  %v1898_v7 = vld [vmem:[%s2347_s1 + $0x3d0] sm:$0xff]  }
  0x44   :  { %1262 = vmatmul.mubr.bf16.vlgmr.msra.gmra.mxu1 %v1454_v10  ;;  %1682 = vmatpush3.bf16.msra.mxu0 %v1843_v14  ;;  %v1901_v10 = vld [vmem:[%s2347_s1 + $0x348] sm:$0xff]   ;;  %v1905_v14 = vld [vmem:[%s2347_s1 + $0x340] sm:$0xff]  }
  0x45   :  { %1704 = vmatpush3.bf16.msra.mxu1 %v1844_v15  ;;  %1683 = vmatprep.subr.bf16.mxu0 %v1845_v16  ;;  %v1906_v15 = vld [vmem:[%s2347_s1 + $0x3c0] sm:$0xff]  }
  0x46   :  { %1705 = vmatprep.subr.bf16.mxu1 %v1846_v17  ;;  %1301 = vmatprep.mubr.bf16.mxu0 %v1457_v47  ;;  %v1907_v16 = vld [vmem:[%s2347_s1 + $0x300] sm:$0xff]  }
  0x47   :  { %1341 = vmatprep.mubr.bf16.mxu1 %v1459_v49  ;;  %v1908_v17 = vld [vmem:[%s2347_s1 + $0x380] sm:$0xff]  }
  0x48   :  { %1684 = vmatpush3.bf16.msra.mxu0 %v1847_v18  ;;  %v27_v18 = vld [vmem:[%s2348_s0 + $0x30] sm:$0xff] }
  0x49   :  { %1706 = vmatpush3.bf16.msra.mxu1 %v1848_v19  ;;  %1685 = vmatprep.subr.bf16.mxu0 %v1849_v20  ;;  %v28_v19 = vld [vmem:[%s2348_s0 + $0x38] sm:$0xff]  ;;  %v1460_v20 = vcombine.low %v27_v18, %v27_v18 }
  0x4a   :  { %1707 = vmatprep.subr.bf16.mxu1 %v1850_v21  ;;  %v1461_v21 = vcombine.high %v27_v18, %v27_v18 }
  0x4c   :  { %1686 = vmatpush3.bf16.msra.mxu0 %v1851_v22  ;;  %v1462_v22 = vcombine.low %v28_v19, %v28_v19 }
  0x4d   :  { %1708 = vmatpush3.bf16.msra.mxu1 %v1852_v23  ;;  %1687 = vmatprep.subr.bf16.mxu0 %v1853_v24  ;;  %v1463_v23 = vcombine.high %v28_v19, %v28_v19 }
  0x4e   :  { %1709 = vmatprep.subr.bf16.mxu1 %v1854_v25 }
  0x50   :  { %1688 = vmatpush3.bf16.msra.mxu0 %v1855_v26 }
  0x51   :  { %1710 = vmatpush3.bf16.msra.mxu1 %v1856_v27  ;;  %1689 = vmatprep.subr.bf16.mxu0 %v1857_v28 }
  0x52   :  { %1711 = vmatprep.subr.bf16.mxu1 %v1858_v29 }
  0x54   :  { %1690 = vmatpush3.bf16.msra.mxu0 %v1859_v30 }
  0x55   :  { %1712 = vmatpush3.bf16.msra.mxu1 %v1860_v31  ;;  %1691 = vmatprep.subr.bf16.mxu0 %v1861_v32 }
  0x56   :  { %1713 = vmatprep.subr.bf16.mxu1 %v1862_v33 }
  0x58   :  { %1692 = vmatpush3.bf16.msra.mxu0 %v1863_v34 }
  0x59   :  { %1714 = vmatpush3.bf16.msra.mxu1 %v1864_v35  ;;  %1693 = vmatprep.subr.bf16.mxu0 %v1865_v36 }
  0x5a   :  { %1715 = vmatprep.subr.bf16.mxu1 %v1866_v37 }
  0x5c   :  { %1694 = vmatpush3.bf16.msra.mxu0 %v1867_v38 }
  0x5d   :  { %1716 = vmatpush3.bf16.msra.mxu1 %v1868_v39  ;;  %1695 = vmatprep.subr.bf16.mxu0 %v1869_v40 }
  0x5e   :  { %1717 = vmatprep.subr.bf16.mxu1 %v1870_v41 }
  0x60   :  { %1696 = vmatpush3.bf16.msra.mxu0 %v1871_v42 }
  0x61   :  { %1718 = vmatpush3.bf16.msra.mxu1 %v1872_v43  ;;  %1725 = vmatprep.subr.bf16.mxu0 %v1877_v50 }
  0x62   :  { %1747 = vmatprep.subr.bf16.mxu1 %v1878_v51 }
  0x63   :  { %1302 = vmatmul.mubr.bf16.vlgmr.msra.gmra.mxu0 %v1456_v46 }
  0x64   :  { %1342 = vmatmul.mubr.bf16.vlgmr.msra.gmra.mxu1 %v1458_v48  ;;  %1726 = vmatpush3.bf16.msra.mxu0 %v1879_v52 }
  0x65   :  { %1748 = vmatpush3.bf16.msra.mxu1 %v1880_v53  ;;  %1727 = vmatprep.subr.bf16.mxu0 %v1881_v54 }
  0x66   :  { %1749 = vmatprep.subr.bf16.mxu1 %v1882_v55  ;;  %1381 = vmatprep.mubr.bf16.mxu0 %v1461_v21 }
  0x67   :  { %1421 = vmatprep.mubr.bf16.mxu1 %v1463_v23 }
  0x68   :  { %1728 = vmatpush3.bf16.msra.mxu0 %v1883_v56 }
  0x69   :  { %1750 = vmatpush3.bf16.msra.mxu1 %v1884_v57  ;;  %1729 = vmatprep.subr.bf16.mxu0 %v1885_v58 }
  0x6a   :  { %1751 = vmatprep.subr.bf16.mxu1 %v1886_v59 }
  0x6c   :  { %1730 = vmatpush3.bf16.msra.mxu0 %v1887_v60 }
  0x6d   :  { %1752 = vmatpush3.bf16.msra.mxu1 %v1888_v61  ;;  %1731 = vmatprep.subr.bf16.mxu0 %v1889_v62 }
  0x6e   :  { %1753 = vmatprep.subr.bf16.mxu1 %v1890_v63 }
  0x70   :  { %1732 = vmatpush3.bf16.msra.mxu0 %v1891_v0 }
  0x71   :  { %1754 = vmatpush3.bf16.msra.mxu1 %v1892_v1  ;;  %1733 = vmatprep.subr.bf16.mxu0 %v1893_v2 }
  0x72   :  { %1755 = vmatprep.subr.bf16.mxu1 %v1894_v3 }
  0x74   :  { %1734 = vmatpush3.bf16.msra.mxu0 %v1895_v4  ;;  %v1592_v4 = vld [vmem:[%s2349_s2] ss:$0 sm:$0xff] }
  0x75   :  { %1756 = vmatpush3.bf16.msra.mxu1 %v1896_v5  ;;  %1735 = vmatprep.subr.bf16.mxu0 %v1897_v6 }
  0x76   :  { %1757 = vmatprep.subr.bf16.mxu1 %v1898_v7 }
  0x78   :  { %1736 = vmatpush3.bf16.msra.mxu0 %v1899_v8 }
  0x79   :  { %1758 = vmatpush3.bf16.msra.mxu1 %v1900_v9  ;;  %1737 = vmatprep.subr.bf16.mxu0 %v1901_v10 }
  0x7a   :  { %1759 = vmatprep.subr.bf16.mxu1 %v1902_v11 }
  0x7c   :  { %1738 = vmatpush3.bf16.msra.mxu0 %v1903_v12 }
  0x7d   :  { %1760 = vmatpush3.bf16.msra.mxu1 %v1904_v13  ;;  %1739 = vmatprep.subr.bf16.mxu0 %v1905_v14 }
  0x7e   :  { %1761 = vmatprep.subr.bf16.mxu1 %v1906_v15 }
  0x80   :  { %1740 = vmatpush3.bf16.msra.mxu0 %v1907_v16 }
  0x81   :  { %1762 = vmatpush3.bf16.msra.mxu1 %v1908_v17 }
  0x83   :  { %1382 = vmatmul.mubr.bf16.vlgmr.msra.gmra.mxu0 %v1460_v20 }
  0x84   :  { %1422 = vmatmul.mubr.bf16.vlgmr.msra.gmra.mxu1 %v1462_v22 }
  0xe3   :  { %v1609_v24 = vpop.f32.mrf.mxu0 }
  0xe4   :  { %v1631_v25 = vpop.f32.mrf.mxu1 }
  0xe5   :  { %v1610_v26 = vpop.f32.mrf.mxu0 }
  0xe6   :  { %v1632_v27 = vpop.f32.mrf.mxu1  ;;  %v1611_v28 = vadd.f32 %v1610_v26, %v1609_v24 }
  0xe7   :  { %v1633_v29 = vadd.f32 %v1632_v27, %v1631_v25  ;;  %v1612_v30 = vpop.f32.mrf.mxu0 }
  0xe8   :  { %v1634_v31 = vpop.f32.mrf.mxu1 }
  0xe9   :  { %v1184_v32 = vadd.f32 %v1633_v29, %v1611_v28  ;;  %v1613_v33 = vpop.f32.mrf.mxu0 }
  0xea   :  { %v1635_v34 = vpop.f32.mrf.mxu1 }
 0x103   :  { %v1653_v35 = vpop.f32.mrf.mxu0 }
 0x104   :  { %v1675_v36 = vpop.f32.mrf.mxu1 }
 0x105   :  { %v1654_v37 = vpop.f32.mrf.mxu0 }
 0x106   :  { %v1676_v38 = vpop.f32.mrf.mxu1  ;;  %v1655_v51 = vadd.f32 %v1654_v37, %v1653_v35 }
 0x107   :  { %v1656_v39 = vpop.f32.mrf.mxu0  ;;  %v1677_v53 = vadd.f32 %v1676_v38, %v1675_v36 }
 0x108   :  { %v1678_v40 = vpop.f32.mrf.mxu1  ;;  %v1224_v52 = vadd.f32 %v1655_v51, %v1184_v32 }
 0x109   :  { %v1657_v41 = vpop.f32.mrf.mxu0 }
 0x10a   :  { %v1679_v42 = vpop.f32.mrf.mxu1  ;;  %v1264_v55 = vadd.f32 %v1677_v53, %v1224_v52 }
 0x123   :  { %v1697_v43 = vpop.f32.mrf.mxu0 }
 0x124   :  { %v1719_v44 = vpop.f32.mrf.mxu1 }
 0x125   :  { %v1698_v45 = vpop.f32.mrf.mxu0 }
 0x126   :  { %v1720_v46 = vpop.f32.mrf.mxu1  ;;  %v1699_v54 = vadd.f32 %v1698_v45, %v1697_v43 }
 0x127   :  { %v1700_v47 = vpop.f32.mrf.mxu0  ;;  %v1721_v57 = vadd.f32 %v1720_v46, %v1719_v44 }
 0x128   :  { %v1722_v48 = vpop.f32.mrf.mxu1  ;;  %v1304_v56 = vadd.f32 %v1699_v54, %v1264_v55 }
 0x129   :  { %v1701_v49 = vpop.f32.mrf.mxu0 }
 0x12a   :  { %v1723_v50 = vpop.f32.mrf.mxu1  ;;  %v1344_v61 = vadd.f32 %v1721_v57, %v1304_v56 }
 0x143   :  { %v1741_v58 = vpop.f32.mrf.mxu0 }
 0x144   :  { %v1763_v59 = vpop.f32.mrf.mxu1 }
 0x145   :  { %v1742_v60 = vpop.f32.mrf.mxu0 }
 0x146   :  { %v1743_v62 = vadd.f32 %v1742_v60, %v1741_v58  ;;  %v1764_v63 = vpop.f32.mrf.mxu1 }
 0x147   :  { %v1744_v0 = vpop.f32.mrf.mxu0  ;;  %v1765_v2 = vadd.f32 %v1764_v63, %v1763_v59 }
 0x148   :  { %v1384_v1 = vadd.f32 %v1743_v62, %v1344_v61  ;;  %v1766_v3 = vpop.f32.mrf.mxu1 }
 0x149   :  { %v1745_v5 = vpop.f32.mrf.mxu0 }
 0x14a   :  { %v1424_v6 = vadd.f32 %v1765_v2, %v1384_v1  ;;  %v1767_v7 = vpop.f32.mrf.mxu1 }
 0x14c   :  { %v1442_v8 = vadd.f32 %v1592_v4, %v1424_v6 }
 0x14e   :  { %1443 = vst [vmem:[%s2350_s3] sm:$0xff] %v1442_v8 }

// kernel: vae_forward.25
= control target key start
LH: loop header
LB: loop body
LE: loop exit
PB: predicated region body
PF: predicated region fallthrough
CT: control target
= control target key end

     0   :  { %s5665_s12 = smov 0   ;;  %s5667_s13 = smov 0   ;;  %s6361_s0 = inlined_call_operand.vmem [shape: bf16[8,4096], index: 0, kind: input, shape index: {}]   ;;  %s6362_s1 = inlined_call_operand.vmem [shape: bf16[4096,512], index: 1, kind: input, shape index: {}]   ;;  %s6363_s2 = inlined_call_operand.vmem [shape: f32[1,512], index: 2, kind: input, shape index: {}]   ;;  %s6364_s3 = inlined_call_operand.vmem [shape: bf16[8,512], index: 3, kind: output, shape index: {}]  }
   0x1   :  { %s5669_s14 = smov 0  }
   0x2 LB: > { %s25_s15 = sadd.s32 1, %s5638_s13  ;;  %p4266_p0 = scmp.ge.s32.totalorder %s5642_s14, 1  ;;  %s5642_s14 = sphi %s5669_s14, %s13_s14   ;;  %s5638_s13 = sphi %s5667_s13, %s6366_s13   ;;  %s5634_s12 = sphi %s5665_s12, %s6365_s12  }
   0x3   : > { %p26_p1 = scmp.ge.s32.totalorder %s25_s15, 2  ;;  %p194_p2 = scmp.lt.s32.totalorder %s5642_s14, 3 }
   0x5   : > { %s6368_s15 = smov (%p26_p1, %s25_s15), 0  ;;  %p195_p3 = pnand %p4266_p0, %p194_p2 }
   0x6   : > { %s4267_s16 = sshll.u32 (!%p195_p3), %s5634_s12, 4  ;;  %s4269_s17 = sshll.u32 (!%p195_p3), %s5634_s12, 8 }
   0x7   : > { %198 = sbr.rel (%p195_p3) target bundleno = 753 (0x2f1), region = 32  ;;  %p243_p4 = scmp.lt.s32.totalorder (!%p195_p3), %s4267_s16, 31 }
   0x8   : > { %p252_p5 = scmp.lt.s32.totalorder (!%p195_p3), %s4269_s17, 511  ;;  %p4272_p6 = scmp.ne.s32.totalorder (!%p195_p3), %s5634_s12, 0 }
   0xc   : > { %s6370_s16 = smov (!%p243_p4, %s4267_s16), 31  ;;  %s6372_s17 = smov (!%p252_p5, %s4269_s17), 511 }
   0xd   : > { %s4268_s18 = sshll.u32 %s6370_s16, 2  ;;  %s4808_s22 = sshll.u32 %s6372_s17, 4 }
   0xe   : > { %s5690_s21 = scalar_lea.vmem %s6361_s0, %s4268_s18  ;;  %s5695_s25 = scalar_lea.vmem %s6362_s1, %s4808_s22 }
   0xf   : > { %280 = sbr.rel (%p4272_p6) target bundleno = 23 (0x17), region = 36 }
  0x14   : > { %v5644_v0 = vmov 0.0  }
  0x15   : > { %281 = vst [vmem:[#allocation2 + $0x10] sm:$0xff] %v5644_v0  ;;  %282 = vst [vmem:[#allocation2] sm:$0xff] %v5644_v0 }
  0x16   : > { %283 = vst [vmem:[#allocation2 + $0x18] sm:$0xff] %v5644_v0  ;;  %284 = vst [vmem:[#allocation2 + $0x8] sm:$0xff] %v5644_v0 }
  0x17 PF: > { %v4836_v1 = vld [vmem:[%s5695_s25 + $0xe4] ss:$16 sps:$4 sm:$0xff]   ;;  %v4840_v3 = vld [vmem:[%s5695_s25 + $0xe0] ss:$16 sps:$4 sm:$0xff]   ;;  %v290_v49 = vld [vmem:[%s5690_s21 + $0x8] sm:$0xff]  ;;  %p4801_p7 = scmp.ne.s32.totalorder %s5634_s12, 1 }
  0x18   : > { %v4838_v2 = vld [vmem:[%s5695_s25 + $0x2e4] ss:$16 sps:$4 sm:$0xff]   ;;  %3425 = vmatprep.subr.bf16.mxu0 %v4836_v1  ;;  %v4841_v4 = vld [vmem:[%s5695_s25 + $0x2e0] ss:$16 sps:$4 sm:$0xff]   ;;  %v5750_v52 = vcombine.high %v290_v49, %v290_v49 }
  0x19   : > { %3466 = vmatprep.subr.bf16.mxu1 %v4838_v2  ;;  %v4842_v5 = vld [vmem:[%s5695_s25 + $0xc4] ss:$16 sps:$4 sm:$0xff]   ;;  %3426 = vmatpush1.bf16.msra.mxu0 %v4840_v3  ;;  %v4846_v7 = vld [vmem:[%s5695_s25 + $0xc0] ss:$16 sps:$4 sm:$0xff]  }
  0x1a   : > { %3467 = vmatpush1.bf16.msra.mxu1 %v4841_v4  ;;  %v4844_v6 = vld [vmem:[%s5695_s25 + $0x2c4] ss:$16 sps:$4 sm:$0xff]   ;;  %3427 = vmatprep.subr.bf16.mxu0 %v4842_v5  ;;  %v4847_v8 = vld [vmem:[%s5695_s25 + $0x2c0] ss:$16 sps:$4 sm:$0xff]  }
  0x1b   : > { %3468 = vmatprep.subr.bf16.mxu1 %v4844_v6  ;;  %v4848_v9 = vld [vmem:[%s5695_s25 + $0xa4] ss:$16 sps:$4 sm:$0xff]   ;;  %v4852_v11 = vld [vmem:[%s5695_s25 + $0xa0] ss:$16 sps:$4 sm:$0xff]   ;;  %3498 = vmatprep.mubr.bf16.mxu1 %v5750_v52 }
  0x1c   : > { %v4850_v10 = vld [vmem:[%s5695_s25 + $0x2a4] ss:$16 sps:$4 sm:$0xff]   ;;  %v4853_v12 = vld [vmem:[%s5695_s25 + $0x2a0] ss:$16 sps:$4 sm:$0xff]  }
  0x1d   : > { %3428 = vmatpush1.bf16.msra.mxu0 %v4846_v7  ;;  %v4854_v13 = vld [vmem:[%s5695_s25 + $0x84] ss:$16 sps:$4 sm:$0xff]   ;;  %v4858_v15 = vld [vmem:[%s5695_s25 + $0x80] ss:$16 sps:$4 sm:$0xff]  }
  0x1e   : > { %3469 = vmatpush1.bf16.msra.mxu1 %v4847_v8  ;;  %3429 = vmatprep.subr.bf16.mxu0 %v4848_v9  ;;  %v4856_v14 = vld [vmem:[%s5695_s25 + $0x284] ss:$16 sps:$4 sm:$0xff]   ;;  %v4859_v16 = vld [vmem:[%s5695_s25 + $0x280] ss:$16 sps:$4 sm:$0xff]   ;;  %v5774_v8 = vcombine.low %v290_v49, %v290_v49 }
  0x1f   : > { %3470 = vmatprep.subr.bf16.mxu1 %v4850_v10  ;;  %v4860_v17 = vld [vmem:[%s5695_s25 + $0x64] ss:$16 sps:$4 sm:$0xff]   ;;  %v4864_v19 = vld [vmem:[%s5695_s25 + $0x60] ss:$16 sps:$4 sm:$0xff]  }
  0x20   : > { %v4862_v18 = vld [vmem:[%s5695_s25 + $0x264] ss:$16 sps:$4 sm:$0xff]   ;;  %v4865_v20 = vld [vmem:[%s5695_s25 + $0x260] ss:$16 sps:$4 sm:$0xff]  }
  0x21   : > { %3430 = vmatpush1.bf16.msra.mxu0 %v4852_v11  ;;  %v4866_v21 = vld [vmem:[%s5695_s25 + $0x44] ss:$16 sps:$4 sm:$0xff]   ;;  %v4870_v23 = vld [vmem:[%s5695_s25 + $0x40] ss:$16 sps:$4 sm:$0xff]  }
  0x22   : > { %3471 = vmatpush1.bf16.msra.mxu1 %v4853_v12  ;;  %3431 = vmatprep.subr.bf16.mxu0 %v4854_v13  ;;  %v4868_v22 = vld [vmem:[%s5695_s25 + $0x244] ss:$16 sps:$4 sm:$0xff]   ;;  %v4871_v24 = vld [vmem:[%s5695_s25 + $0x240] ss:$16 sps:$4 sm:$0xff]  }
  0x23   : > { %3472 = vmatprep.subr.bf16.mxu1 %v4856_v14  ;;  %v4872_v25 = vld [vmem:[%s5695_s25 + $0x24] ss:$16 sps:$4 sm:$0xff]   ;;  %v4876_v27 = vld [vmem:[%s5695_s25 + $0x20] ss:$16 sps:$4 sm:$0xff]  }
  0x24   : > { %v4874_v26 = vld [vmem:[%s5695_s25 + $0x224] ss:$16 sps:$4 sm:$0xff]   ;;  %v4877_v28 = vld [vmem:[%s5695_s25 + $0x220] ss:$16 sps:$4 sm:$0xff]  }
  0x25   : > { %3432 = vmatpush1.bf16.msra.mxu0 %v4858_v15  ;;  %v4878_v29 = vld [vmem:[%s5695_s25 + $0x4] ss:$16 sps:$4 sm:$0xff]   ;;  %v4882_v31 = vld [vmem:[%s5695_s25] ss:$16 sps:$4 sm:$0xff]  }
  0x26   : > { %3473 = vmatpush1.bf16.msra.mxu1 %v4859_v16  ;;  %3433 = vmatprep.subr.bf16.mxu0 %v4860_v17  ;;  %v4880_v30 = vld [vmem:[%s5695_s25 + $0x204] ss:$16 sps:$4 sm:$0xff]   ;;  %v4883_v32 = vld [vmem:[%s5695_s25 + $0x200] ss:$16 sps:$4 sm:$0xff]  }
  0x27   : > { %3474 = vmatprep.subr.bf16.mxu1 %v4862_v18  ;;  %v4884_v33 = vld [vmem:[%s5695_s25 + $0x1e4] ss:$16 sps:$4 sm:$0xff]   ;;  %v4888_v35 = vld [vmem:[%s5695_s25 + $0x1e0] ss:$16 sps:$4 sm:$0xff]  }
  0x28   : > { %v4886_v34 = vld [vmem:[%s5695_s25 + $0x3e4] ss:$16 sps:$4 sm:$0xff]   ;;  %v4889_v36 = vld [vmem:[%s5695_s25 + $0x3e0] ss:$16 sps:$4 sm:$0xff]  }
  0x29   : > { %3434 = vmatpush1.bf16.msra.mxu0 %v4864_v19  ;;  %v4890_v37 = vld [vmem:[%s5695_s25 + $0x1c4] ss:$16 sps:$4 sm:$0xff]   ;;  %v4894_v39 = vld [vmem:[%s5695_s25 + $0x1c0] ss:$16 sps:$4 sm:$0xff]  }
  0x2a   : > { %3475 = vmatpush1.bf16.msra.mxu1 %v4865_v20  ;;  %3435 = vmatprep.subr.bf16.mxu0 %v4866_v21  ;;  %v4892_v38 = vld [vmem:[%s5695_s25 + $0x3c4] ss:$16 sps:$4 sm:$0xff]   ;;  %v4895_v40 = vld [vmem:[%s5695_s25 + $0x3c0] ss:$16 sps:$4 sm:$0xff]  }
  0x2b   : > { %3476 = vmatprep.subr.bf16.mxu1 %v4868_v22  ;;  %v4896_v41 = vld [vmem:[%s5695_s25 + $0x1a4] ss:$16 sps:$4 sm:$0xff]   ;;  %v4900_v43 = vld [vmem:[%s5695_s25 + $0x1a0] ss:$16 sps:$4 sm:$0xff]  }
  0x2c   : > { %v4898_v42 = vld [vmem:[%s5695_s25 + $0x3a4] ss:$16 sps:$4 sm:$0xff]   ;;  %v4901_v44 = vld [vmem:[%s5695_s25 + $0x3a0] ss:$16 sps:$4 sm:$0xff]  }
  0x2d   : > { %3436 = vmatpush1.bf16.msra.mxu0 %v4870_v23  ;;  %v4902_v45 = vld [vmem:[%s5695_s25 + $0x184] ss:$16 sps:$4 sm:$0xff]   ;;  %v4906_v50 = vld [vmem:[%s5695_s25 + $0x180] ss:$16 sps:$4 sm:$0xff]  }
  0x2e   : > { %3477 = vmatpush1.bf16.msra.mxu1 %v4871_v24  ;;  %3437 = vmatprep.subr.bf16.mxu0 %v4872_v25  ;;  %v4904_v46 = vld [vmem:[%s5695_s25 + $0x384] ss:$16 sps:$4 sm:$0xff]   ;;  %v4907_v51 = vld [vmem:[%s5695_s25 + $0x380] ss:$16 sps:$4 sm:$0xff]  }
  0x2f   : > { %3478 = vmatprep.subr.bf16.mxu1 %v4874_v26  ;;  %v289_v47 = vld [vmem:[%s5690_s21] sm:$0xff] }
  0x30   : > { %v5745_v48 = vcombine.high %v289_v47, %v289_v47  ;;  %v4908_v53 = vld [vmem:[%s5695_s25 + $0x164] ss:$16 sps:$4 sm:$0xff]   ;;  %v4912_v55 = vld [vmem:[%s5695_s25 + $0x160] ss:$16 sps:$4 sm:$0xff]   ;;  %v5772_v7 = vcombine.low %v289_v47, %v289_v47 }
  0x31   : > { %3438 = vmatpush1.bf16.msra.mxu0 %v4876_v27  ;;  %v4910_v54 = vld [vmem:[%s5695_s25 + $0x364] ss:$16 sps:$4 sm:$0xff]   ;;  %v4913_v56 = vld [vmem:[%s5695_s25 + $0x360] ss:$16 sps:$4 sm:$0xff]  }
  0x32   : > { %3479 = vmatpush1.bf16.msra.mxu1 %v4877_v28  ;;  %3439 = vmatprep.subr.bf16.mxu0 %v4878_v29  ;;  %v4914_v57 = vld [vmem:[%s5695_s25 + $0x144] ss:$16 sps:$4 sm:$0xff]   ;;  %v4918_v59 = vld [vmem:[%s5695_s25 + $0x140] ss:$16 sps:$4 sm:$0xff]  }
  0x33   : > { %3480 = vmatprep.subr.bf16.mxu1 %v4880_v30  ;;  %3457 = vmatprep.mubr.bf16.mxu0 %v5745_v48  ;;  %v4916_v58 = vld [vmem:[%s5695_s25 + $0x344] ss:$16 sps:$4 sm:$0xff]   ;;  %v4919_v60 = vld [vmem:[%s5695_s25 + $0x340] ss:$16 sps:$4 sm:$0xff]  }
  0x34   : > { %v4920_v61 = vld [vmem:[%s5695_s25 + $0x124] ss:$16 sps:$4 sm:$0xff]   ;;  %v4924_v63 = vld [vmem:[%s5695_s25 + $0x120] ss:$16 sps:$4 sm:$0xff]  }
  0x35   : > { %3440 = vmatpush1.bf16.msra.mxu0 %v4882_v31  ;;  %v4922_v62 = vld [vmem:[%s5695_s25 + $0x324] ss:$16 sps:$4 sm:$0xff]   ;;  %v4925_v0 = vld [vmem:[%s5695_s25 + $0x320] ss:$16 sps:$4 sm:$0xff]  }
  0x36   : > { %3481 = vmatpush1.bf16.msra.mxu1 %v4883_v32  ;;  %3441 = vmatprep.subr.bf16.mxu0 %v4884_v33  ;;  %v4926_v1 = vld [vmem:[%s5695_s25 + $0x104] ss:$16 sps:$4 sm:$0xff]   ;;  %v4930_v3 = vld [vmem:[%s5695_s25 + $0x100] ss:$16 sps:$4 sm:$0xff]  }
  0x37   : > { %3482 = vmatprep.subr.bf16.mxu1 %v4886_v34  ;;  %v4928_v2 = vld [vmem:[%s5695_s25 + $0x304] ss:$16 sps:$4 sm:$0xff]   ;;  %v4931_v4 = vld [vmem:[%s5695_s25 + $0x300] ss:$16 sps:$4 sm:$0xff]   ;;  %v5806_v34 = vld [vmem:[%s5690_s21 + $0x18] sm:$0xff] }
  0x38   : > { %v4938_v5 = vld [vmem:[%s5695_s25 + $0x4e4] ss:$16 sps:$4 sm:$0xff]   ;;  %v4936_v9 = vld [vmem:[%s5695_s25 + $0x4e0] ss:$16 sps:$4 sm:$0xff]  }
  0x39   : > { %3442 = vmatpush2.bf16.msra.mxu0 %v4888_v35  ;;  %v4941_v6 = vld [vmem:[%s5695_s25 + $0x6e4] ss:$16 sps:$4 sm:$0xff]   ;;  %v4939_v10 = vld [vmem:[%s5695_s25 + $0x6e0] ss:$16 sps:$4 sm:$0xff]  }
  0x3a   : > { %3483 = vmatpush2.bf16.msra.mxu1 %v4889_v36  ;;  %3443 = vmatprep.subr.bf16.mxu0 %v4890_v37  ;;  %v4944_v11 = vld [vmem:[%s5695_s25 + $0x4c4] ss:$16 sps:$4 sm:$0xff]   ;;  %v4942_v13 = vld [vmem:[%s5695_s25 + $0x4c0] ss:$16 sps:$4 sm:$0xff]  }
  0x3b   : > { %3484 = vmatprep.subr.bf16.mxu1 %v4892_v38  ;;  %v4947_v12 = vld [vmem:[%s5695_s25 + $0x6c4] ss:$16 sps:$4 sm:$0xff]   ;;  %v4945_v14 = vld [vmem:[%s5695_s25 + $0x6c0] ss:$16 sps:$4 sm:$0xff]   ;;  %v5816_v38 = vcombine.high %v5806_v34, %v5806_v34 }
  0x3c   : > { %v4950_v15 = vld [vmem:[%s5695_s25 + $0x4a4] ss:$16 sps:$4 sm:$0xff]   ;;  %v4948_v17 = vld [vmem:[%s5695_s25 + $0x4a0] ss:$16 sps:$4 sm:$0xff]  }
  0x3d   : > { %3444 = vmatpush2.bf16.msra.mxu0 %v4894_v39  ;;  %v4953_v16 = vld [vmem:[%s5695_s25 + $0x6a4] ss:$16 sps:$4 sm:$0xff]   ;;  %v4951_v18 = vld [vmem:[%s5695_s25 + $0x6a0] ss:$16 sps:$4 sm:$0xff]  }
  0x3e   : > { %3485 = vmatpush2.bf16.msra.mxu1 %v4895_v40  ;;  %3445 = vmatprep.subr.bf16.mxu0 %v4896_v41  ;;  %v4956_v19 = vld [vmem:[%s5695_s25 + $0x484] ss:$16 sps:$4 sm:$0xff]   ;;  %v4954_v21 = vld [vmem:[%s5695_s25 + $0x480] ss:$16 sps:$4 sm:$0xff]  }
  0x3f   : > { %3486 = vmatprep.subr.bf16.mxu1 %v4898_v42  ;;  %v4959_v20 = vld [vmem:[%s5695_s25 + $0x684] ss:$16 sps:$4 sm:$0xff]   ;;  %v4957_v22 = vld [vmem:[%s5695_s25 + $0x680] ss:$16 sps:$4 sm:$0xff]  }
  0x40   : > { %v4962_v23 = vld [vmem:[%s5695_s25 + $0x464] ss:$16 sps:$4 sm:$0xff]   ;;  %v4960_v25 = vld [vmem:[%s5695_s25 + $0x460] ss:$16 sps:$4 sm:$0xff]  }
  0x41   : > { %3446 = vmatpush2.bf16.msra.mxu0 %v4900_v43  ;;  %v4965_v24 = vld [vmem:[%s5695_s25 + $0x664] ss:$16 sps:$4 sm:$0xff]   ;;  %v4963_v26 = vld [vmem:[%s5695_s25 + $0x660] ss:$16 sps:$4 sm:$0xff]  }
  0x42   : > { %3487 = vmatpush2.bf16.msra.mxu1 %v4901_v44  ;;  %3447 = vmatprep.subr.bf16.mxu0 %v4902_v45  ;;  %v4968_v27 = vld [vmem:[%s5695_s25 + $0x444] ss:$16 sps:$4 sm:$0xff]   ;;  %v4966_v29 = vld [vmem:[%s5695_s25 + $0x440] ss:$16 sps:$4 sm:$0xff]  }
  0x43   : > { %3488 = vmatprep.subr.bf16.mxu1 %v4904_v46  ;;  %v4971_v28 = vld [vmem:[%s5695_s25 + $0x644] ss:$16 sps:$4 sm:$0xff]   ;;  %v4969_v30 = vld [vmem:[%s5695_s25 + $0x640] ss:$16 sps:$4 sm:$0xff]  }
  0x44   : > { %v4974_v31 = vld [vmem:[%s5695_s25 + $0x424] ss:$16 sps:$4 sm:$0xff]   ;;  %v4972_v35 = vld [vmem:[%s5695_s25 + $0x420] ss:$16 sps:$4 sm:$0xff]  }
  0x45   : > { %3448 = vmatpush2.bf16.msra.mxu0 %v4906_v50  ;;  %v4977_v32 = vld [vmem:[%s5695_s25 + $0x624] ss:$16 sps:$4 sm:$0xff]   ;;  %v4975_v36 = vld [vmem:[%s5695_s25 + $0x620] ss:$16 sps:$4 sm:$0xff]  }
  0x46   : > { %3489 = vmatpush2.bf16.msra.mxu1 %v4907_v51  ;;  %3449 = vmatprep.subr.bf16.mxu0 %v4908_v53  ;;  %v5803_v33 = vld [vmem:[%s5690_s21 + $0x10] sm:$0xff] }
  0x47   : > { %3490 = vmatprep.subr.bf16.mxu1 %v4910_v54  ;;  %v5812_v37 = vcombine.high %v5803_v33, %v5803_v33  ;;  %v4980_v39 = vld [vmem:[%s5695_s25 + $0x404] ss:$16 sps:$4 sm:$0xff]   ;;  %v4978_v41 = vld [vmem:[%s5695_s25 + $0x400] ss:$16 sps:$4 sm:$0xff]  }
  0x48   : > { %v4983_v40 = vld [vmem:[%s5695_s25 + $0x604] ss:$16 sps:$4 sm:$0xff]   ;;  %v4981_v42 = vld [vmem:[%s5695_s25 + $0x600] ss:$16 sps:$4 sm:$0xff]  }
  0x49   : > { %3450 = vmatpush2.bf16.msra.mxu0 %v4912_v55  ;;  %v4986_v43 = vld [vmem:[%s5695_s25 + $0x5e4] ss:$16 sps:$4 sm:$0xff]   ;;  %v4984_v45 = vld [vmem:[%s5695_s25 + $0x5e0] ss:$16 sps:$4 sm:$0xff]  }
  0x4a   : > { %3491 = vmatpush2.bf16.msra.mxu1 %v4913_v56  ;;  %3451 = vmatprep.subr.bf16.mxu0 %v4914_v57  ;;  %v4989_v44 = vld [vmem:[%s5695_s25 + $0x7e4] ss:$16 sps:$4 sm:$0xff]   ;;  %v4987_v46 = vld [vmem:[%s5695_s25 + $0x7e0] ss:$16 sps:$4 sm:$0xff]  }
  0x4b   : > { %3492 = vmatprep.subr.bf16.mxu1 %v4916_v58  ;;  %v4992_v47 = vld [vmem:[%s5695_s25 + $0x5c4] ss:$16 sps:$4 sm:$0xff]   ;;  %v4990_v50 = vld [vmem:[%s5695_s25 + $0x5c0] ss:$16 sps:$4 sm:$0xff]  }
  0x4c   : > { %v4995_v49 = vld [vmem:[%s5695_s25 + $0x7c4] ss:$16 sps:$4 sm:$0xff]   ;;  %v4993_v51 = vld [vmem:[%s5695_s25 + $0x7c0] ss:$16 sps:$4 sm:$0xff]  }
  0x4d   : > { %3452 = vmatpush2.bf16.msra.mxu0 %v4918_v59  ;;  %v4998_v53 = vld [vmem:[%s5695_s25 + $0x5a4] ss:$16 sps:$4 sm:$0xff]   ;;  %v4996_v55 = vld [vmem:[%s5695_s25 + $0x5a0] ss:$16 sps:$4 sm:$0xff]  }
  0x4e   : > { %3493 = vmatpush2.bf16.msra.mxu1 %v4919_v60  ;;  %3453 = vmatprep.subr.bf16.mxu0 %v4920_v61  ;;  %v5001_v54 = vld [vmem:[%s5695_s25 + $0x7a4] ss:$16 sps:$4 sm:$0xff]   ;;  %v4999_v56 = vld [vmem:[%s5695_s25 + $0x7a0] ss:$16 sps:$4 sm:$0xff]  }
  0x4f   : > { %3494 = vmatprep.subr.bf16.mxu1 %v4922_v62  ;;  %v5004_v57 = vld [vmem:[%s5695_s25 + $0x584] ss:$16 sps:$4 sm:$0xff]   ;;  %v5002_v59 = vld [vmem:[%s5695_s25 + $0x580] ss:$16 sps:$4 sm:$0xff]  }
  0x50   : > { %v5007_v58 = vld [vmem:[%s5695_s25 + $0x784] ss:$16 sps:$4 sm:$0xff]   ;;  %v5005_v60 = vld [vmem:[%s5695_s25 + $0x780] ss:$16 sps:$4 sm:$0xff]  }
  0x51   : > { %3454 = vmatpush2.bf16.msra.mxu0 %v4924_v63  ;;  %v5010_v61 = vld [vmem:[%s5695_s25 + $0x564] ss:$16 sps:$4 sm:$0xff]   ;;  %v5008_v63 = vld [vmem:[%s5695_s25 + $0x560] ss:$16 sps:$4 sm:$0xff]  }
  0x52   : > { %3495 = vmatpush2.bf16.msra.mxu1 %v4925_v0  ;;  %3455 = vmatprep.subr.bf16.mxu0 %v4926_v1  ;;  %v5013_v62 = vld [vmem:[%s5695_s25 + $0x764] ss:$16 sps:$4 sm:$0xff]   ;;  %v5011_v0 = vld [vmem:[%s5695_s25 + $0x760] ss:$16 sps:$4 sm:$0xff]  }
  0x53   : > { %3496 = vmatprep.subr.bf16.mxu1 %v4928_v2  ;;  %v5016_v1 = vld [vmem:[%s5695_s25 + $0x544] ss:$16 sps:$4 sm:$0xff]  }
  0x54   : > { %v5019_v2 = vld [vmem:[%s5695_s25 + $0x744] ss:$16 sps:$4 sm:$0xff]  }
  0x55   : > { %3456 = vmatpush2.bf16.msra.mxu0 %v4930_v3  ;;  %v5014_v3 = vld [vmem:[%s5695_s25 + $0x540] ss:$16 sps:$4 sm:$0xff]  }
  0x56   : > { %3497 = vmatpush2.bf16.msra.mxu1 %v4931_v4  ;;  %3507 = vmatprep.subr.bf16.mxu0 %v4938_v5  ;;  %v5017_v4 = vld [vmem:[%s5695_s25 + $0x740] ss:$16 sps:$4 sm:$0xff]   ;;  %v5022_v5 = vld [vmem:[%s5695_s25 + $0x524] ss:$16 sps:$4 sm:$0xff]  }
  0x57   : > { %3548 = vmatprep.subr.bf16.mxu1 %v4941_v6  ;;  %v5025_v6 = vld [vmem:[%s5695_s25 + $0x724] ss:$16 sps:$4 sm:$0xff]  }
  0x58   : > { %3458 = vmatmul.mubr.bf16.vlgmr.msra.gmra.mxu0 %v5772_v7 }
  0x59   : > { %3499 = vmatmul.mubr.bf16.vlgmr.msra.gmra.mxu1 %v5774_v8  ;;  %3508 = vmatpush1.bf16.msra.mxu0 %v4936_v9  ;;  %v5020_v9 = vld [vmem:[%s5695_s25 + $0x520] ss:$16 sps:$4 sm:$0xff]  }
  0x5a   : > { %3549 = vmatpush1.bf16.msra.mxu1 %v4939_v10  ;;  %3509 = vmatprep.subr.bf16.mxu0 %v4944_v11  ;;  %v5023_v10 = vld [vmem:[%s5695_s25 + $0x720] ss:$16 sps:$4 sm:$0xff]   ;;  %v5028_v11 = vld [vmem:[%s5695_s25 + $0x504] ss:$16 sps:$4 sm:$0xff]  }
  0x5b   : > { %3550 = vmatprep.subr.bf16.mxu1 %v4947_v12  ;;  %3539 = vmatprep.mubr.bf16.mxu0 %v5812_v37  ;;  %v5031_v12 = vld [vmem:[%s5695_s25 + $0x704] ss:$16 sps:$4 sm:$0xff]  }
  0x5c   : > { %3580 = vmatprep.mubr.bf16.mxu1 %v5816_v38 }
  0x5d   : > { %3510 = vmatpush1.bf16.msra.mxu0 %v4942_v13  ;;  %v5026_v13 = vld [vmem:[%s5695_s25 + $0x500] ss:$16 sps:$4 sm:$0xff]  }
  0x5e   : > { %3551 = vmatpush1.bf16.msra.mxu1 %v4945_v14  ;;  %3511 = vmatprep.subr.bf16.mxu0 %v4950_v15  ;;  %v5029_v14 = vld [vmem:[%s5695_s25 + $0x700] ss:$16 sps:$4 sm:$0xff]   ;;  %v5038_v15 = vld [vmem:[%s5695_s25 + $0x8e4] ss:$16 sps:$4 sm:$0xff]  }
  0x5f   : > { %3552 = vmatprep.subr.bf16.mxu1 %v4953_v16  ;;  %v5041_v16 = vld [vmem:[%s5695_s25 + $0xae4] ss:$16 sps:$4 sm:$0xff]  }
  0x61   : > { %3512 = vmatpush1.bf16.msra.mxu0 %v4948_v17  ;;  %v5860_v17 = vcombine.low %v5803_v33, %v5803_v33  ;;  %v5056_v33 = vld [vmem:[%s5695_s25 + $0x884] ss:$16 sps:$4 sm:$0xff]  }
  0x62   : > { %3553 = vmatpush1.bf16.msra.mxu1 %v4951_v18  ;;  %3513 = vmatprep.subr.bf16.mxu0 %v4956_v19  ;;  %v5864_v18 = vcombine.low %v5806_v34, %v5806_v34  ;;  %v5036_v19 = vld [vmem:[%s5695_s25 + $0x8e0] ss:$16 sps:$4 sm:$0xff]   ;;  %v5059_v34 = vld [vmem:[%s5695_s25 + $0xa84] ss:$16 sps:$4 sm:$0xff]  }
  0x63   : > { %3554 = vmatprep.subr.bf16.mxu1 %v4959_v20  ;;  %v5039_v20 = vld [vmem:[%s5695_s25 + $0xae0] ss:$16 sps:$4 sm:$0xff]  }
  0x65   : > { %3514 = vmatpush1.bf16.msra.mxu0 %v4954_v21  ;;  %v5044_v21 = vld [vmem:[%s5695_s25 + $0x8c4] ss:$16 sps:$4 sm:$0xff]  }
  0x66   : > { %3555 = vmatpush1.bf16.msra.mxu1 %v4957_v22  ;;  %3515 = vmatprep.subr.bf16.mxu0 %v4962_v23  ;;  %v5047_v22 = vld [vmem:[%s5695_s25 + $0xac4] ss:$16 sps:$4 sm:$0xff]  }
  0x67   : > { %3556 = vmatprep.subr.bf16.mxu1 %v4965_v24  ;;  %v5871_v23 = vld [vmem:[%s5690_s21 + $0x20] sm:$0xff]  ;;  %v5874_v24 = vld [vmem:[%s5690_s21 + $0x28] sm:$0xff] }
  0x69   : > { %3516 = vmatpush1.bf16.msra.mxu0 %v4960_v25  ;;  %v5878_v25 = vcombine.high %v5871_v23, %v5871_v23 }
  0x6a   : > { %3557 = vmatpush1.bf16.msra.mxu1 %v4963_v26  ;;  %3517 = vmatprep.subr.bf16.mxu0 %v4968_v27  ;;  %v5882_v26 = vcombine.high %v5874_v24, %v5874_v24  ;;  %v5042_v27 = vld [vmem:[%s5695_s25 + $0x8c0] ss:$16 sps:$4 sm:$0xff]  }
  0x6b   : > { %3558 = vmatprep.subr.bf16.mxu1 %v4971_v28  ;;  %v5045_v28 = vld [vmem:[%s5695_s25 + $0xac0] ss:$16 sps:$4 sm:$0xff]  }
  0x6d   : > { %3518 = vmatpush1.bf16.msra.mxu0 %v4966_v29  ;;  %v5050_v29 = vld [vmem:[%s5695_s25 + $0x8a4] ss:$16 sps:$4 sm:$0xff]  }
  0x6e   : > { %3559 = vmatpush1.bf16.msra.mxu1 %v4969_v30  ;;  %3519 = vmatprep.subr.bf16.mxu0 %v4974_v31  ;;  %v5053_v30 = vld [vmem:[%s5695_s25 + $0xaa4] ss:$16 sps:$4 sm:$0xff]   ;;  %v5048_v31 = vld [vmem:[%s5695_s25 + $0x8a0] ss:$16 sps:$4 sm:$0xff]  }
  0x6f   : > { %3560 = vmatprep.subr.bf16.mxu1 %v4977_v32  ;;  %v5051_v32 = vld [vmem:[%s5695_s25 + $0xaa0] ss:$16 sps:$4 sm:$0xff]  }
  0x71   : > { %3520 = vmatpush1.bf16.msra.mxu0 %v4972_v35  ;;  %v5054_v35 = vld [vmem:[%s5695_s25 + $0x880] ss:$16 sps:$4 sm:$0xff]  }
  0x72   : > { %3561 = vmatpush1.bf16.msra.mxu1 %v4975_v36  ;;  %3521 = vmatprep.subr.bf16.mxu0 %v4980_v39  ;;  %v5057_v36 = vld [vmem:[%s5695_s25 + $0xa80] ss:$16 sps:$4 sm:$0xff]   ;;  %v5062_v39 = vld [vmem:[%s5695_s25 + $0x864] ss:$16 sps:$4 sm:$0xff]  }
  0x73   : > { %3562 = vmatprep.subr.bf16.mxu1 %v4983_v40  ;;  %v5065_v40 = vld [vmem:[%s5695_s25 + $0xa64] ss:$16 sps:$4 sm:$0xff]  }
  0x75   : > { %3522 = vmatpush1.bf16.msra.mxu0 %v4978_v41  ;;  %v5060_v41 = vld [vmem:[%s5695_s25 + $0x860] ss:$16 sps:$4 sm:$0xff]  }
  0x76   : > { %3563 = vmatpush1.bf16.msra.mxu1 %v4981_v42  ;;  %3523 = vmatprep.subr.bf16.mxu0 %v4986_v43  ;;  %v5063_v42 = vld [vmem:[%s5695_s25 + $0xa60] ss:$16 sps:$4 sm:$0xff]   ;;  %v5068_v43 = vld [vmem:[%s5695_s25 + $0x844] ss:$16 sps:$4 sm:$0xff]  }
  0x77   : > { %3564 = vmatprep.subr.bf16.mxu1 %v4989_v44  ;;  %v5071_v44 = vld [vmem:[%s5695_s25 + $0xa44] ss:$16 sps:$4 sm:$0xff]  }
  0x79   : > { %3524 = vmatpush2.bf16.msra.mxu0 %v4984_v45  ;;  %v5066_v45 = vld [vmem:[%s5695_s25 + $0x840] ss:$16 sps:$4 sm:$0xff]  }
  0x7a   : > { %3565 = vmatpush2.bf16.msra.mxu1 %v4987_v46  ;;  %3525 = vmatprep.subr.bf16.mxu0 %v4992_v47  ;;  %v5069_v46 = vld [vmem:[%s5695_s25 + $0xa40] ss:$16 sps:$4 sm:$0xff]   ;;  %v5074_v47 = vld [vmem:[%s5695_s25 + $0x824] ss:$16 sps:$4 sm:$0xff]  }
  0x7b   : > { %3566 = vmatprep.subr.bf16.mxu1 %v4995_v49  ;;  %v5077_v49 = vld [vmem:[%s5695_s25 + $0xa24] ss:$16 sps:$4 sm:$0xff]  }
  0x7d   : > { %3526 = vmatpush2.bf16.msra.mxu0 %v4990_v50  ;;  %v5072_v50 = vld [vmem:[%s5695_s25 + $0x820] ss:$16 sps:$4 sm:$0xff]  }
  0x7e   : > { %3567 = vmatpush2.bf16.msra.mxu1 %v4993_v51  ;;  %3527 = vmatprep.subr.bf16.mxu0 %v4998_v53  ;;  %v5075_v51 = vld [vmem:[%s5695_s25 + $0xa20] ss:$16 sps:$4 sm:$0xff]   ;;  %v5080_v53 = vld [vmem:[%s5695_s25 + $0x804] ss:$16 sps:$4 sm:$0xff]  }
  0x7f   : > { %3568 = vmatprep.subr.bf16.mxu1 %v5001_v54  ;;  %v5083_v54 = vld [vmem:[%s5695_s25 + $0xa04] ss:$16 sps:$4 sm:$0xff]  }
  0x81   : > { %3528 = vmatpush2.bf16.msra.mxu0 %v4996_v55  ;;  %v5078_v55 = vld [vmem:[%s5695_s25 + $0x800] ss:$16 sps:$4 sm:$0xff]  }
  0x82   : > { %3569 = vmatpush2.bf16.msra.mxu1 %v4999_v56  ;;  %3529 = vmatprep.subr.bf16.mxu0 %v5004_v57  ;;  %v5081_v56 = vld [vmem:[%s5695_s25 + $0xa00] ss:$16 sps:$4 sm:$0xff]   ;;  %v5086_v57 = vld [vmem:[%s5695_s25 + $0x9e4] ss:$16 sps:$4 sm:$0xff]  }
  0x83   : > { %3570 = vmatprep.subr.bf16.mxu1 %v5007_v58  ;;  %v5089_v58 = vld [vmem:[%s5695_s25 + $0xbe4] ss:$16 sps:$4 sm:$0xff]  }
  0x85   : > { %3530 = vmatpush2.bf16.msra.mxu0 %v5002_v59  ;;  %v5084_v59 = vld [vmem:[%s5695_s25 + $0x9e0] ss:$16 sps:$4 sm:$0xff]  }
  0x86   : > { %3571 = vmatpush2.bf16.msra.mxu1 %v5005_v60  ;;  %3531 = vmatprep.subr.bf16.mxu0 %v5010_v61  ;;  %v5087_v60 = vld [vmem:[%s5695_s25 + $0xbe0] ss:$16 sps:$4 sm:$0xff]   ;;  %v5092_v61 = vld [vmem:[%s5695_s25 + $0x9c4] ss:$16 sps:$4 sm:$0xff]  }
  0x87   : > { %3572 = vmatprep.subr.bf16.mxu1 %v5013_v62  ;;  %v5095_v62 = vld [vmem:[%s5695_s25 + $0xbc4] ss:$16 sps:$4 sm:$0xff]  }
  0x89   : > { %3532 = vmatpush2.bf16.msra.mxu0 %v5008_v63  ;;  %v5090_v63 = vld [vmem:[%s5695_s25 + $0x9c0] ss:$16 sps:$4 sm:$0xff]  }
  0x8a   : > { %3573 = vmatpush2.bf16.msra.mxu1 %v5011_v0  ;;  %3533 = vmatprep.subr.bf16.mxu0 %v5016_v1  ;;  %v5093_v0 = vld [vmem:[%s5695_s25 + $0xbc0] ss:$16 sps:$4 sm:$0xff]   ;;  %v5098_v1 = vld [vmem:[%s5695_s25 + $0x9a4] ss:$16 sps:$4 sm:$0xff]  }
  0x8b   : > { %3574 = vmatprep.subr.bf16.mxu1 %v5019_v2  ;;  %v5101_v2 = vld [vmem:[%s5695_s25 + $0xba4] ss:$16 sps:$4 sm:$0xff]  }
  0x8d   : > { %3534 = vmatpush2.bf16.msra.mxu0 %v5014_v3  ;;  %v5096_v3 = vld [vmem:[%s5695_s25 + $0x9a0] ss:$16 sps:$4 sm:$0xff]  }
  0x8e   : > { %3575 = vmatpush2.bf16.msra.mxu1 %v5017_v4  ;;  %3535 = vmatprep.subr.bf16.mxu0 %v5022_v5  ;;  %v5099_v4 = vld [vmem:[%s5695_s25 + $0xba0] ss:$16 sps:$4 sm:$0xff]   ;;  %v5104_v5 = vld [vmem:[%s5695_s25 + $0x984] ss:$16 sps:$4 sm:$0xff]  }
  0x8f   : > { %3576 = vmatprep.subr.bf16.mxu1 %v5025_v6  ;;  %v5107_v6 = vld [vmem:[%s5695_s25 + $0xb84] ss:$16 sps:$4 sm:$0xff]  }
  0x91   : > { %3536 = vmatpush2.bf16.msra.mxu0 %v5020_v9  ;;  %v5102_v9 = vld [vmem:[%s5695_s25 + $0x980] ss:$16 sps:$4 sm:$0xff]  }
  0x92   : > { %3577 = vmatpush2.bf16.msra.mxu1 %v5023_v10  ;;  %3537 = vmatprep.subr.bf16.mxu0 %v5028_v11  ;;  %v5105_v10 = vld [vmem:[%s5695_s25 + $0xb80] ss:$16 sps:$4 sm:$0xff]   ;;  %v5110_v11 = vld [vmem:[%s5695_s25 + $0x964] ss:$16 sps:$4 sm:$0xff]  }
  0x93   : > { %3578 = vmatprep.subr.bf16.mxu1 %v5031_v12  ;;  %v5113_v12 = vld [vmem:[%s5695_s25 + $0xb64] ss:$16 sps:$4 sm:$0xff]  }
  0x95   : > { %3538 = vmatpush2.bf16.msra.mxu0 %v5026_v13  ;;  %v5108_v13 = vld [vmem:[%s5695_s25 + $0x960] ss:$16 sps:$4 sm:$0xff]  }
  0x96   : > { %3579 = vmatpush2.bf16.msra.mxu1 %v5029_v14  ;;  %3589 = vmatprep.subr.bf16.mxu0 %v5038_v15  ;;  %v5111_v14 = vld [vmem:[%s5695_s25 + $0xb60] ss:$16 sps:$4 sm:$0xff]   ;;  %v5116_v15 = vld [vmem:[%s5695_s25 + $0x944] ss:$16 sps:$4 sm:$0xff]  }
  0x97   : > { %3630 = vmatprep.subr.bf16.mxu1 %v5041_v16  ;;  %v5119_v16 = vld [vmem:[%s5695_s25 + $0xb44] ss:$16 sps:$4 sm:$0xff]  }
  0x98   : > { %3540 = vmatmul.mubr.bf16.vlgmr.msra.gmra.mxu0 %v5860_v17 }
  0x99   : > { %3581 = vmatmul.mubr.bf16.vlgmr.msra.gmra.mxu1 %v5864_v18  ;;  %3590 = vmatpush1.bf16.msra.mxu0 %v5036_v19  ;;  %v5114_v19 = vld [vmem:[%s5695_s25 + $0x940] ss:$16 sps:$4 sm:$0xff]  }
  0x9a   : > { %3631 = vmatpush1.bf16.msra.mxu1 %v5039_v20  ;;  %3591 = vmatprep.subr.bf16.mxu0 %v5044_v21  ;;  %v5117_v20 = vld [vmem:[%s5695_s25 + $0xb40] ss:$16 sps:$4 sm:$0xff]   ;;  %v5122_v21 = vld [vmem:[%s5695_s25 + $0x924] ss:$16 sps:$4 sm:$0xff]  }
  0x9b   : > { %3632 = vmatprep.subr.bf16.mxu1 %v5047_v22  ;;  %3621 = vmatprep.mubr.bf16.mxu0 %v5878_v25  ;;  %v5125_v22 = vld [vmem:[%s5695_s25 + $0xb24] ss:$16 sps:$4 sm:$0xff]  }
  0x9c   : > { %3662 = vmatprep.mubr.bf16.mxu1 %v5882_v26 }
  0x9d   : > { %3592 = vmatpush1.bf16.msra.mxu0 %v5042_v27  ;;  %v5120_v27 = vld [vmem:[%s5695_s25 + $0x920] ss:$16 sps:$4 sm:$0xff]  }
  0x9e   : > { %3633 = vmatpush1.bf16.msra.mxu1 %v5045_v28  ;;  %3593 = vmatprep.subr.bf16.mxu0 %v5050_v29  ;;  %v5123_v28 = vld [vmem:[%s5695_s25 + $0xb20] ss:$16 sps:$4 sm:$0xff]   ;;  %v5128_v29 = vld [vmem:[%s5695_s25 + $0x904] ss:$16 sps:$4 sm:$0xff]  }
  0x9f   : > { %3634 = vmatprep.subr.bf16.mxu1 %v5053_v30  ;;  %v5131_v30 = vld [vmem:[%s5695_s25 + $0xb04] ss:$16 sps:$4 sm:$0xff]  }
  0xa1   : > { %3594 = vmatpush1.bf16.msra.mxu0 %v5048_v31  ;;  %v5126_v31 = vld [vmem:[%s5695_s25 + $0x900] ss:$16 sps:$4 sm:$0xff]  }
  0xa2   : > { %3635 = vmatpush1.bf16.msra.mxu1 %v5051_v32  ;;  %3595 = vmatprep.subr.bf16.mxu0 %v5056_v33  ;;  %v5129_v32 = vld [vmem:[%s5695_s25 + $0xb00] ss:$16 sps:$4 sm:$0xff]   ;;  %v5138_v33 = vld [vmem:[%s5695_s25 + $0xce4] ss:$16 sps:$4 sm:$0xff]  }
  0xa3   : > { %3636 = vmatprep.subr.bf16.mxu1 %v5059_v34  ;;  %v5141_v34 = vld [vmem:[%s5695_s25 + $0xee4] ss:$16 sps:$4 sm:$0xff]  }
  0xa5   : > { %3596 = vmatpush1.bf16.msra.mxu0 %v5054_v35  ;;  %v5136_v35 = vld [vmem:[%s5695_s25 + $0xce0] ss:$16 sps:$4 sm:$0xff]  }
  0xa6   : > { %3637 = vmatpush1.bf16.msra.mxu1 %v5057_v36  ;;  %3597 = vmatprep.subr.bf16.mxu0 %v5062_v39  ;;  %v5139_v36 = vld [vmem:[%s5695_s25 + $0xee0] ss:$16 sps:$4 sm:$0xff]   ;;  %v5952_v39 = vcombine.low %v5871_v23, %v5871_v23 }
  0xa7   : > { %3638 = vmatprep.subr.bf16.mxu1 %v5065_v40  ;;  %v5956_v40 = vcombine.low %v5874_v24, %v5874_v24 }
  0xa9   : > { %3598 = vmatpush1.bf16.msra.mxu0 %v5060_v41  ;;  %v5959_v41 = vld [vmem:[%s5690_s21 + $0x30] sm:$0xff] }
  0xaa   : > { %3639 = vmatpush1.bf16.msra.mxu1 %v5063_v42  ;;  %3599 = vmatprep.subr.bf16.mxu0 %v5068_v43  ;;  %v5962_v42 = vld [vmem:[%s5690_s21 + $0x38] sm:$0xff]  ;;  %v5144_v43 = vld [vmem:[%s5695_s25 + $0xcc4] ss:$16 sps:$4 sm:$0xff]   ;;  %v5968_v23 = vcombine.high %v5959_v41, %v5959_v41 }
  0xab   : > { %3640 = vmatprep.subr.bf16.mxu1 %v5071_v44  ;;  %v5147_v44 = vld [vmem:[%s5695_s25 + $0xec4] ss:$16 sps:$4 sm:$0xff]   ;;  %v5972_v24 = vcombine.high %v5962_v42, %v5962_v42 }
  0xad   : > { %3600 = vmatpush1.bf16.msra.mxu0 %v5066_v45  ;;  %v5142_v45 = vld [vmem:[%s5695_s25 + $0xcc0] ss:$16 sps:$4 sm:$0xff]  }
  0xae   : > { %3641 = vmatpush1.bf16.msra.mxu1 %v5069_v46  ;;  %3601 = vmatprep.subr.bf16.mxu0 %v5074_v47  ;;  %v5145_v46 = vld [vmem:[%s5695_s25 + $0xec0] ss:$16 sps:$4 sm:$0xff]   ;;  %v5150_v47 = vld [vmem:[%s5695_s25 + $0xca4] ss:$16 sps:$4 sm:$0xff]  }
  0xaf   : > { %3642 = vmatprep.subr.bf16.mxu1 %v5077_v49  ;;  %v5153_v49 = vld [vmem:[%s5695_s25 + $0xea4] ss:$16 sps:$4 sm:$0xff]  }
  0xb1   : > { %3602 = vmatpush1.bf16.msra.mxu0 %v5072_v50  ;;  %v5148_v50 = vld [vmem:[%s5695_s25 + $0xca0] ss:$16 sps:$4 sm:$0xff]  }
  0xb2   : > { %3643 = vmatpush1.bf16.msra.mxu1 %v5075_v51  ;;  %3603 = vmatprep.subr.bf16.mxu0 %v5080_v53  ;;  %v5151_v51 = vld [vmem:[%s5695_s25 + $0xea0] ss:$16 sps:$4 sm:$0xff]   ;;  %v5156_v53 = vld [vmem:[%s5695_s25 + $0xc84] ss:$16 sps:$4 sm:$0xff]  }
  0xb3   : > { %3644 = vmatprep.subr.bf16.mxu1 %v5083_v54  ;;  %v5159_v54 = vld [vmem:[%s5695_s25 + $0xe84] ss:$16 sps:$4 sm:$0xff]  }
  0xb5   : > { %3604 = vmatpush1.bf16.msra.mxu0 %v5078_v55  ;;  %v5154_v55 = vld [vmem:[%s5695_s25 + $0xc80] ss:$16 sps:$4 sm:$0xff]  }
  0xb6   : > { %3645 = vmatpush1.bf16.msra.mxu1 %v5081_v56  ;;  %3605 = vmatprep.subr.bf16.mxu0 %v5086_v57  ;;  %v5157_v56 = vld [vmem:[%s5695_s25 + $0xe80] ss:$16 sps:$4 sm:$0xff]   ;;  %v5162_v57 = vld [vmem:[%s5695_s25 + $0xc64] ss:$16 sps:$4 sm:$0xff]  }
  0xb7   : > { %3646 = vmatprep.subr.bf16.mxu1 %v5089_v58  ;;  %v5165_v58 = vld [vmem:[%s5695_s25 + $0xe64] ss:$16 sps:$4 sm:$0xff]  }
  0xb9   : > { %3606 = vmatpush2.bf16.msra.mxu0 %v5084_v59  ;;  %v5160_v59 = vld [vmem:[%s5695_s25 + $0xc60] ss:$16 sps:$4 sm:$0xff]  }
  0xba   : > { %3647 = vmatpush2.bf16.msra.mxu1 %v5087_v60  ;;  %3607 = vmatprep.subr.bf16.mxu0 %v5092_v61  ;;  %v5163_v60 = vld [vmem:[%s5695_s25 + $0xe60] ss:$16 sps:$4 sm:$0xff]   ;;  %v5168_v61 = vld [vmem:[%s5695_s25 + $0xc44] ss:$16 sps:$4 sm:$0xff]  }
  0xbb   : > { %3648 = vmatprep.subr.bf16.mxu1 %v5095_v62  ;;  %v5171_v62 = vld [vmem:[%s5695_s25 + $0xe44] ss:$16 sps:$4 sm:$0xff]  }
  0xbd   : > { %3608 = vmatpush2.bf16.msra.mxu0 %v5090_v63  ;;  %v5166_v63 = vld [vmem:[%s5695_s25 + $0xc40] ss:$16 sps:$4 sm:$0xff]  }
  0xbe   : > { %3649 = vmatpush2.bf16.msra.mxu1 %v5093_v0  ;;  %3609 = vmatprep.subr.bf16.mxu0 %v5098_v1  ;;  %v5169_v0 = vld [vmem:[%s5695_s25 + $0xe40] ss:$16 sps:$4 sm:$0xff]   ;;  %v5174_v1 = vld [vmem:[%s5695_s25 + $0xc24] ss:$16 sps:$4 sm:$0xff]  }
  0xbf   : > { %3650 = vmatprep.subr.bf16.mxu1 %v5101_v2  ;;  %v5177_v2 = vld [vmem:[%s5695_s25 + $0xe24] ss:$16 sps:$4 sm:$0xff]  }
  0xc1   : > { %3610 = vmatpush2.bf16.msra.mxu0 %v5096_v3  ;;  %v5172_v3 = vld [vmem:[%s5695_s25 + $0xc20] ss:$16 sps:$4 sm:$0xff]  }
  0xc2   : > { %3651 = vmatpush2.bf16.msra.mxu1 %v5099_v4  ;;  %3611 = vmatprep.subr.bf16.mxu0 %v5104_v5  ;;  %v5175_v4 = vld [vmem:[%s5695_s25 + $0xe20] ss:$16 sps:$4 sm:$0xff]   ;;  %v5180_v5 = vld [vmem:[%s5695_s25 + $0xc04] ss:$16 sps:$4 sm:$0xff]  }
  0xc3   : > { %3652 = vmatprep.subr.bf16.mxu1 %v5107_v6  ;;  %v5183_v6 = vld [vmem:[%s5695_s25 + $0xe04] ss:$16 sps:$4 sm:$0xff]  }
  0xc5   : > { %3612 = vmatpush2.bf16.msra.mxu0 %v5102_v9  ;;  %v5178_v9 = vld [vmem:[%s5695_s25 + $0xc00] ss:$16 sps:$4 sm:$0xff]  }
  0xc6   : > { %3653 = vmatpush2.bf16.msra.mxu1 %v5105_v10  ;;  %3613 = vmatprep.subr.bf16.mxu0 %v5110_v11  ;;  %v5181_v10 = vld [vmem:[%s5695_s25 + $0xe00] ss:$16 sps:$4 sm:$0xff]   ;;  %v5186_v11 = vld [vmem:[%s5695_s25 + $0xde4] ss:$16 sps:$4 sm:$0xff]  }
  0xc7   : > { %3654 = vmatprep.subr.bf16.mxu1 %v5113_v12  ;;  %v5189_v12 = vld [vmem:[%s5695_s25 + $0xfe4] ss:$16 sps:$4 sm:$0xff]  }
  0xc9   : > { %3614 = vmatpush2.bf16.msra.mxu0 %v5108_v13  ;;  %v5184_v13 = vld [vmem:[%s5695_s25 + $0xde0] ss:$16 sps:$4 sm:$0xff]  }
  0xca   : > { %3655 = vmatpush2.bf16.msra.mxu1 %v5111_v14  ;;  %3615 = vmatprep.subr.bf16.mxu0 %v5116_v15  ;;  %v5187_v14 = vld [vmem:[%s5695_s25 + $0xfe0] ss:$16 sps:$4 sm:$0xff]   ;;  %v5192_v15 = vld [vmem:[%s5695_s25 + $0xdc4] ss:$16 sps:$4 sm:$0xff]  }
  0xcb   : > { %3656 = vmatprep.subr.bf16.mxu1 %v5119_v16  ;;  %v5195_v16 = vld [vmem:[%s5695_s25 + $0xfc4] ss:$16 sps:$4 sm:$0xff]  }
  0xcd   : > { %3616 = vmatpush2.bf16.msra.mxu0 %v5114_v19  ;;  %v5190_v19 = vld [vmem:[%s5695_s25 + $0xdc0] ss:$16 sps:$4 sm:$0xff]  }
  0xce   : > { %3657 = vmatpush2.bf16.msra.mxu1 %v5117_v20  ;;  %3617 = vmatprep.subr.bf16.mxu0 %v5122_v21  ;;  %v5193_v20 = vld [vmem:[%s5695_s25 + $0xfc0] ss:$16 sps:$4 sm:$0xff]   ;;  %v5198_v21 = vld [vmem:[%s5695_s25 + $0xda4] ss:$16 sps:$4 sm:$0xff]  }
  0xcf   : > { %3658 = vmatprep.subr.bf16.mxu1 %v5125_v22  ;;  %v5201_v22 = vld [vmem:[%s5695_s25 + $0xfa4] ss:$16 sps:$4 sm:$0xff]  }
  0xd1   : > { %3618 = vmatpush2.bf16.msra.mxu0 %v5120_v27  ;;  %v5196_v27 = vld [vmem:[%s5695_s25 + $0xda0] ss:$16 sps:$4 sm:$0xff]  }
  0xd2   : > { %3659 = vmatpush2.bf16.msra.mxu1 %v5123_v28  ;;  %3619 = vmatprep.subr.bf16.mxu0 %v5128_v29  ;;  %v5199_v28 = vld [vmem:[%s5695_s25 + $0xfa0] ss:$16 sps:$4 sm:$0xff]   ;;  %v5204_v29 = vld [vmem:[%s5695_s25 + $0xd84] ss:$16 sps:$4 sm:$0xff]  }
  0xd3   : > { %3660 = vmatprep.subr.bf16.mxu1 %v5131_v30  ;;  %v5207_v30 = vld [vmem:[%s5695_s25 + $0xf84] ss:$16 sps:$4 sm:$0xff]  }
  0xd5   : > { %3620 = vmatpush2.bf16.msra.mxu0 %v5126_v31  ;;  %v5202_v31 = vld [vmem:[%s5695_s25 + $0xd80] ss:$16 sps:$4 sm:$0xff]  }
  0xd6   : > { %3661 = vmatpush2.bf16.msra.mxu1 %v5129_v32  ;;  %3671 = vmatprep.subr.bf16.mxu0 %v5138_v33  ;;  %v5205_v32 = vld [vmem:[%s5695_s25 + $0xf80] ss:$16 sps:$4 sm:$0xff]   ;;  %v5210_v33 = vld [vmem:[%s5695_s25 + $0xd64] ss:$16 sps:$4 sm:$0xff]  }
  0xd7   : > { %3712 = vmatprep.subr.bf16.mxu1 %v5141_v34  ;;  %v5213_v34 = vld [vmem:[%s5695_s25 + $0xf64] ss:$16 sps:$4 sm:$0xff]  }
  0xd8   : > { %3622 = vmatmul.mubr.bf16.vlgmr.msra.gmra.mxu0 %v5952_v39 }
  0xd9   : > { %3663 = vmatmul.mubr.bf16.vlgmr.msra.gmra.mxu1 %v5956_v40  ;;  %3672 = vmatpush1.bf16.msra.mxu0 %v5136_v35  ;;  %v5208_v35 = vld [vmem:[%s5695_s25 + $0xd60] ss:$16 sps:$4 sm:$0xff]  }
  0xda   : > { %3713 = vmatpush1.bf16.msra.mxu1 %v5139_v36  ;;  %3673 = vmatprep.subr.bf16.mxu0 %v5144_v43  ;;  %v5211_v36 = vld [vmem:[%s5695_s25 + $0xf60] ss:$16 sps:$4 sm:$0xff]   ;;  %v5216_v43 = vld [vmem:[%s5695_s25 + $0xd44] ss:$16 sps:$4 sm:$0xff]  }
  0xdb   : > { %3714 = vmatprep.subr.bf16.mxu1 %v5147_v44  ;;  %3703 = vmatprep.mubr.bf16.mxu0 %v5968_v23  ;;  %v5219_v44 = vld [vmem:[%s5695_s25 + $0xf44] ss:$16 sps:$4 sm:$0xff]  }
  0xdc   : > { %3744 = vmatprep.mubr.bf16.mxu1 %v5972_v24 }
  0xdd   : > { %3674 = vmatpush1.bf16.msra.mxu0 %v5142_v45  ;;  %v5214_v45 = vld [vmem:[%s5695_s25 + $0xd40] ss:$16 sps:$4 sm:$0xff]  }
  0xde   : > { %3715 = vmatpush1.bf16.msra.mxu1 %v5145_v46  ;;  %3675 = vmatprep.subr.bf16.mxu0 %v5150_v47  ;;  %v5217_v46 = vld [vmem:[%s5695_s25 + $0xf40] ss:$16 sps:$4 sm:$0xff]   ;;  %v5222_v47 = vld [vmem:[%s5695_s25 + $0xd24] ss:$16 sps:$4 sm:$0xff]  }
  0xdf   : > { %3716 = vmatprep.subr.bf16.mxu1 %v5153_v49  ;;  %v5225_v49 = vld [vmem:[%s5695_s25 + $0xf24] ss:$16 sps:$4 sm:$0xff]  }
  0xe1   : > { %3676 = vmatpush1.bf16.msra.mxu0 %v5148_v50  ;;  %v5220_v50 = vld [vmem:[%s5695_s25 + $0xd20] ss:$16 sps:$4 sm:$0xff]  }
  0xe2   : > { %3717 = vmatpush1.bf16.msra.mxu1 %v5151_v51  ;;  %3677 = vmatprep.subr.bf16.mxu0 %v5156_v53  ;;  %v5223_v51 = vld [vmem:[%s5695_s25 + $0xf20] ss:$16 sps:$4 sm:$0xff]   ;;  %v5228_v53 = vld [vmem:[%s5695_s25 + $0xd04] ss:$16 sps:$4 sm:$0xff]  }
  0xe3   : > { %3718 = vmatprep.subr.bf16.mxu1 %v5159_v54  ;;  %v5231_v54 = vld [vmem:[%s5695_s25 + $0xf04] ss:$16 sps:$4 sm:$0xff]  }
  0xe5   : > { %3678 = vmatpush1.bf16.msra.mxu0 %v5154_v55  ;;  %v5226_v55 = vld [vmem:[%s5695_s25 + $0xd00] ss:$16 sps:$4 sm:$0xff]  }
  0xe6   : > { %3719 = vmatpush1.bf16.msra.mxu1 %v5157_v56  ;;  %3679 = vmatprep.subr.bf16.mxu0 %v5162_v57  ;;  %v5229_v56 = vld [vmem:[%s5695_s25 + $0xf00] ss:$16 sps:$4 sm:$0xff]   ;;  %v5238_v57 = vld [vmem:[%s5695_s25 + $0xec] ss:$16 sps:$4 sm:$0xff]  }
  0xe7   : > { %3720 = vmatprep.subr.bf16.mxu1 %v5165_v58  ;;  %v5241_v58 = vld [vmem:[%s5695_s25 + $0x2ec] ss:$16 sps:$4 sm:$0xff]  }
  0xe9   : > { %3680 = vmatpush1.bf16.msra.mxu0 %v5160_v59  ;;  %v6040_v59 = vcombine.low %v5959_v41, %v5959_v41  ;;  %v5242_v41 = vld [vmem:[%s5695_s25 + $0xc8] ss:$16 sps:$4 sm:$0xff]  }
  0xea   : > { %3721 = vmatpush1.bf16.msra.mxu1 %v5163_v60  ;;  %3681 = vmatprep.subr.bf16.mxu0 %v5168_v61  ;;  %v6044_v60 = vcombine.low %v5962_v42, %v5962_v42  ;;  %v5236_v61 = vld [vmem:[%s5695_s25 + $0xe8] ss:$16 sps:$4 sm:$0xff]  }
  0xeb   : > { %3722 = vmatprep.subr.bf16.mxu1 %v5171_v62  ;;  %v5239_v62 = vld [vmem:[%s5695_s25 + $0x2e8] ss:$16 sps:$4 sm:$0xff]  }
  0xec   : > { %v5245_v42 = vld [vmem:[%s5695_s25 + $0x2c8] ss:$16 sps:$4 sm:$0xff]  }
  0xed   : > { %3682 = vmatpush1.bf16.msra.mxu0 %v5166_v63  ;;  %v5244_v63 = vld [vmem:[%s5695_s25 + $0xcc] ss:$16 sps:$4 sm:$0xff]  }
  0xee   : > { %3723 = vmatpush1.bf16.msra.mxu1 %v5169_v0  ;;  %3683 = vmatprep.subr.bf16.mxu0 %v5174_v1  ;;  %v5247_v0 = vld [vmem:[%s5695_s25 + $0x2cc] ss:$16 sps:$4 sm:$0xff]  }
  0xef   : > { %3724 = vmatprep.subr.bf16.mxu1 %v5177_v2 }
  0xf1   : > { %3684 = vmatpush1.bf16.msra.mxu0 %v5172_v3 }
  0xf2   : > { %3725 = vmatpush1.bf16.msra.mxu1 %v5175_v4  ;;  %3685 = vmatprep.subr.bf16.mxu0 %v5180_v5  ;;  %v5250_v4 = vld [vmem:[%s5695_s25 + $0xac] ss:$16 sps:$4 sm:$0xff]  }
  0xf3   : > { %3726 = vmatprep.subr.bf16.mxu1 %v5183_v6 }
  0xf5   : > { %3686 = vmatpush1.bf16.msra.mxu0 %v5178_v9  ;;  %v5253_v9 = vld [vmem:[%s5695_s25 + $0x2ac] ss:$16 sps:$4 sm:$0xff]  }
  0xf6   : > { %3727 = vmatpush1.bf16.msra.mxu1 %v5181_v10  ;;  %3687 = vmatprep.subr.bf16.mxu0 %v5186_v11 }
  0xf7   : > { %3728 = vmatprep.subr.bf16.mxu1 %v5189_v12 }
  0xf9   : > { %3688 = vmatpush2.bf16.msra.mxu0 %v5184_v13  ;;  %v5248_v13 = vld [vmem:[%s5695_s25 + $0xa8] ss:$16 sps:$4 sm:$0xff]  }
  0xfa   : > { %3729 = vmatpush2.bf16.msra.mxu1 %v5187_v14  ;;  %3689 = vmatprep.subr.bf16.mxu0 %v5192_v15  ;;  %v5251_v14 = vld [vmem:[%s5695_s25 + $0x2a8] ss:$16 sps:$4 sm:$0xff]  }
  0xfb   : > { %3730 = vmatprep.subr.bf16.mxu1 %v5195_v16 }
  0xfd   : > { %3690 = vmatpush2.bf16.msra.mxu0 %v5190_v19  ;;  %v5256_v19 = vld [vmem:[%s5695_s25 + $0x8c] ss:$16 sps:$4 sm:$0xff]  }
  0xfe   : > { %3731 = vmatpush2.bf16.msra.mxu1 %v5193_v20  ;;  %3691 = vmatprep.subr.bf16.mxu0 %v5198_v21  ;;  %v5257_v20 = vld [vmem:[%s5695_s25 + $0x288] ss:$16 sps:$4 sm:$0xff]   ;;  %v5262_v21 = vld [vmem:[%s5695_s25 + $0x6c] ss:$16 sps:$4 sm:$0xff]  }
  0xff   : > { %3732 = vmatprep.subr.bf16.mxu1 %v5201_v22  ;;  %v5265_v22 = vld [vmem:[%s5695_s25 + $0x26c] ss:$16 sps:$4 sm:$0xff]  }
 0x101   : > { %3692 = vmatpush2.bf16.msra.mxu0 %v5196_v27  ;;  %v5260_v27 = vld [vmem:[%s5695_s25 + $0x68] ss:$16 sps:$4 sm:$0xff]  }
 0x102   : > { %3733 = vmatpush2.bf16.msra.mxu1 %v5199_v28  ;;  %3693 = vmatprep.subr.bf16.mxu0 %v5204_v29  ;;  %v5263_v28 = vld [vmem:[%s5695_s25 + $0x268] ss:$16 sps:$4 sm:$0xff]   ;;  %v5268_v29 = vld [vmem:[%s5695_s25 + $0x4c] ss:$16 sps:$4 sm:$0xff]  }
 0x103   : > { %3734 = vmatprep.subr.bf16.mxu1 %v5207_v30  ;;  %v5271_v30 = vld [vmem:[%s5695_s25 + $0x24c] ss:$16 sps:$4 sm:$0xff]  }
 0x105   : > { %3694 = vmatpush2.bf16.msra.mxu0 %v5202_v31  ;;  %v5266_v31 = vld [vmem:[%s5695_s25 + $0x48] ss:$16 sps:$4 sm:$0xff]  }
 0x106   : > { %3735 = vmatpush2.bf16.msra.mxu1 %v5205_v32  ;;  %3695 = vmatprep.subr.bf16.mxu0 %v5210_v33  ;;  %v5269_v32 = vld [vmem:[%s5695_s25 + $0x248] ss:$16 sps:$4 sm:$0xff]   ;;  %v5274_v33 = vld [vmem:[%s5695_s25 + $0x2c] ss:$16 sps:$4 sm:$0xff]  }
 0x107   : > { %3736 = vmatprep.subr.bf16.mxu1 %v5213_v34  ;;  %v5277_v34 = vld [vmem:[%s5695_s25 + $0x22c] ss:$16 sps:$4 sm:$0xff]  }
 0x109   : > { %3696 = vmatpush2.bf16.msra.mxu0 %v5208_v35  ;;  %v5272_v35 = vld [vmem:[%s5695_s25 + $0x28] ss:$16 sps:$4 sm:$0xff]  }
 0x10a   : > { %3737 = vmatpush2.bf16.msra.mxu1 %v5211_v36  ;;  %3697 = vmatprep.subr.bf16.mxu0 %v5216_v43  ;;  %v5275_v36 = vld [vmem:[%s5695_s25 + $0x228] ss:$16 sps:$4 sm:$0xff]   ;;  %v5280_v43 = vld [vmem:[%s5695_s25 + $0xc] ss:$16 sps:$4 sm:$0xff]  }
 0x10b   : > { %3738 = vmatprep.subr.bf16.mxu1 %v5219_v44  ;;  %v5283_v44 = vld [vmem:[%s5695_s25 + $0x20c] ss:$16 sps:$4 sm:$0xff]  }
 0x10d   : > { %3698 = vmatpush2.bf16.msra.mxu0 %v5214_v45  ;;  %v5278_v45 = vld [vmem:[%s5695_s25 + $0x8] ss:$16 sps:$4 sm:$0xff]  }
 0x10e   : > { %3739 = vmatpush2.bf16.msra.mxu1 %v5217_v46  ;;  %3699 = vmatprep.subr.bf16.mxu0 %v5222_v47  ;;  %v5281_v46 = vld [vmem:[%s5695_s25 + $0x208] ss:$16 sps:$4 sm:$0xff]   ;;  %v5286_v47 = vld [vmem:[%s5695_s25 + $0x1ec] ss:$16 sps:$4 sm:$0xff]  }
 0x10f   : > { %3740 = vmatprep.subr.bf16.mxu1 %v5225_v49  ;;  %v5289_v49 = vld [vmem:[%s5695_s25 + $0x3ec] ss:$16 sps:$4 sm:$0xff]  }
 0x111   : > { %3700 = vmatpush2.bf16.msra.mxu0 %v5220_v50  ;;  %v5284_v50 = vld [vmem:[%s5695_s25 + $0x1e8] ss:$16 sps:$4 sm:$0xff]  }
 0x112   : > { %3741 = vmatpush2.bf16.msra.mxu1 %v5223_v51  ;;  %3701 = vmatprep.subr.bf16.mxu0 %v5228_v53  ;;  %v5287_v51 = vld [vmem:[%s5695_s25 + $0x3e8] ss:$16 sps:$4 sm:$0xff]   ;;  %v5292_v53 = vld [vmem:[%s5695_s25 + $0x1cc] ss:$16 sps:$4 sm:$0xff]  }
 0x113   : > { %3742 = vmatprep.subr.bf16.mxu1 %v5231_v54  ;;  %v5295_v54 = vld [vmem:[%s5695_s25 + $0x3cc] ss:$16 sps:$4 sm:$0xff]  }
 0x115   : > { %3702 = vmatpush2.bf16.msra.mxu0 %v5226_v55  ;;  %v5290_v55 = vld [vmem:[%s5695_s25 + $0x1c8] ss:$16 sps:$4 sm:$0xff]  }
 0x116   : > { %3743 = vmatpush2.bf16.msra.mxu1 %v5229_v56  ;;  %3753 = vmatprep.subr.bf16.mxu0 %v5238_v57  ;;  %v5293_v56 = vld [vmem:[%s5695_s25 + $0x3c8] ss:$16 sps:$4 sm:$0xff]   ;;  %v5298_v57 = vld [vmem:[%s5695_s25 + $0x1ac] ss:$16 sps:$4 sm:$0xff]  }
 0x117   : > { %3794 = vmatprep.subr.bf16.mxu1 %v5241_v58  ;;  %v5301_v58 = vld [vmem:[%s5695_s25 + $0x3ac] ss:$16 sps:$4 sm:$0xff]  }
 0x118   : > { %v3459_v1 = vpop.f32.mrf.mxu0  ;;  %3704 = vmatmul.mubr.bf16.vlgmr.msra.gmra.mxu0 %v6040_v59 }
 0x119   : > { %v3500_v2 = vpop.f32.mrf.mxu1  ;;  %3745 = vmatmul.mubr.bf16.vlgmr.msra.gmra.mxu1 %v6044_v60  ;;  %3754 = vmatpush1.bf16.msra.mxu0 %v5236_v61  ;;  %v5296_v61 = vld [vmem:[%s5695_s25 + $0x1a8] ss:$16 sps:$4 sm:$0xff]  }
 0x11a   : > { %v6054_v3 = vadd.f32 %v3500_v2, %v3459_v1  ;;  %3795 = vmatpush1.bf16.msra.mxu1 %v5239_v62  ;;  %v3461_v5 = vpop.f32.mrf.mxu0  ;;  %3755 = vmatprep.subr.bf16.mxu0 %v5244_v63  ;;  %v5299_v62 = vld [vmem:[%s5695_s25 + $0x3a8] ss:$16 sps:$4 sm:$0xff]   ;;  %v5304_v63 = vld [vmem:[%s5695_s25 + $0x18c] ss:$16 sps:$4 sm:$0xff]  }
 0x11b   : > { %v3502_v6 = vpop.f32.mrf.mxu1  ;;  %3796 = vmatprep.subr.bf16.mxu1 %v5247_v0  ;;  %3785 = vmatprep.mubr.bf16.mxu0 %v5745_v48  ;;  %v5259_v48 = vld [vmem:[%s5695_s25 + $0x28c] ss:$16 sps:$4 sm:$0xff]   ;;  %v5302_v1 = vld [vmem:[%s5695_s25 + $0x188] ss:$16 sps:$4 sm:$0xff]  }
 0x11c   : > { %v6058_v10 = vadd.f32 %v3502_v6, %v3461_v5  ;;  %3826 = vmatprep.mubr.bf16.mxu1 %v5750_v52  ;;  %v3463_v11 = vpop.f32.mrf.mxu0  ;;  %v5254_v52 = vld [vmem:[%s5695_s25 + $0x88] ss:$16 sps:$4 sm:$0xff]   ;;  %v5307_v0 = vld [vmem:[%s5695_s25 + $0x38c] ss:$16 sps:$4 sm:$0xff]  }
 0x11d   : > { %v3504_v12 = vpop.f32.mrf.mxu1  ;;  %3756 = vmatpush1.bf16.msra.mxu0 %v5242_v41  ;;  %v5305_v2 = vld [vmem:[%s5695_s25 + $0x388] ss:$16 sps:$4 sm:$0xff]   ;;  %v5310_v41 = vld [vmem:[%s5695_s25 + $0x16c] ss:$16 sps:$4 sm:$0xff]  }
 0x11e   : > { %3797 = vmatpush1.bf16.msra.mxu1 %v5245_v42  ;;  %v3464_v15 = vpop.f32.mrf.mxu0  ;;  %3757 = vmatprep.subr.bf16.mxu0 %v5250_v4  ;;  %v5313_v42 = vld [vmem:[%s5695_s25 + $0x36c] ss:$16 sps:$4 sm:$0xff]   ;;  %v5308_v4 = vld [vmem:[%s5695_s25 + $0x168] ss:$16 sps:$4 sm:$0xff]  }
 0x11f   : > { %v3505_v16 = vpop.f32.mrf.mxu1  ;;  %3798 = vmatprep.subr.bf16.mxu1 %v5253_v9  ;;  %v5311_v5 = vld [vmem:[%s5695_s25 + $0x368] ss:$16 sps:$4 sm:$0xff]   ;;  %v5316_v6 = vld [vmem:[%s5695_s25 + $0x14c] ss:$16 sps:$4 sm:$0xff]  }
 0x120   : > { %v5319_v9 = vld [vmem:[%s5695_s25 + $0x34c] ss:$16 sps:$4 sm:$0xff]   ;;  %v5314_v11 = vld [vmem:[%s5695_s25 + $0x148] ss:$16 sps:$4 sm:$0xff]  }
 0x121   : > { %3758 = vmatpush1.bf16.msra.mxu0 %v5248_v13  ;;  %v5317_v12 = vld [vmem:[%s5695_s25 + $0x348] ss:$16 sps:$4 sm:$0xff]   ;;  %v5322_v13 = vld [vmem:[%s5695_s25 + $0x12c] ss:$16 sps:$4 sm:$0xff]  }
 0x122   : > { %3799 = vmatpush1.bf16.msra.mxu1 %v5251_v14  ;;  %3759 = vmatprep.subr.bf16.mxu0 %v5256_v19  ;;  %v5325_v14 = vld [vmem:[%s5695_s25 + $0x32c] ss:$16 sps:$4 sm:$0xff]   ;;  %v5320_v15 = vld [vmem:[%s5695_s25 + $0x128] ss:$16 sps:$4 sm:$0xff]  }
 0x123   : > { %3800 = vmatprep.subr.bf16.mxu1 %v5259_v48  ;;  %v5323_v16 = vld [vmem:[%s5695_s25 + $0x328] ss:$16 sps:$4 sm:$0xff]   ;;  %v5328_v19 = vld [vmem:[%s5695_s25 + $0x10c] ss:$16 sps:$4 sm:$0xff]  }
 0x124   : > { %v5331_v48 = vld [vmem:[%s5695_s25 + $0x30c] ss:$16 sps:$4 sm:$0xff]  }
 0x125   : > { %3760 = vmatpush1.bf16.msra.mxu0 %v5254_v52  ;;  %v5326_v52 = vld [vmem:[%s5695_s25 + $0x108] ss:$16 sps:$4 sm:$0xff]  }
 0x126   : > { %3801 = vmatpush1.bf16.msra.mxu1 %v5257_v20  ;;  %3761 = vmatprep.subr.bf16.mxu0 %v5262_v21  ;;  %v5329_v20 = vld [vmem:[%s5695_s25 + $0x308] ss:$16 sps:$4 sm:$0xff]   ;;  %v5334_v21 = vld [vmem:[%s5695_s25 + $0x4ec] ss:$16 sps:$4 sm:$0xff]  }
 0x127   : > { %3802 = vmatprep.subr.bf16.mxu1 %v5265_v22  ;;  %v5337_v22 = vld [vmem:[%s5695_s25 + $0x6ec] ss:$16 sps:$4 sm:$0xff]  }
 0x129   : > { %3762 = vmatpush1.bf16.msra.mxu0 %v5260_v27  ;;  %v5332_v27 = vld [vmem:[%s5695_s25 + $0x4e8] ss:$16 sps:$4 sm:$0xff]  }
 0x12a   : > { %3803 = vmatpush1.bf16.msra.mxu1 %v5263_v28  ;;  %3763 = vmatprep.subr.bf16.mxu0 %v5268_v29  ;;  %v5335_v28 = vld [vmem:[%s5695_s25 + $0x6e8] ss:$16 sps:$4 sm:$0xff]   ;;  %v5340_v29 = vld [vmem:[%s5695_s25 + $0x4cc] ss:$16 sps:$4 sm:$0xff]  }
 0x12b   : > { %3804 = vmatprep.subr.bf16.mxu1 %v5271_v30  ;;  %v5343_v30 = vld [vmem:[%s5695_s25 + $0x6cc] ss:$16 sps:$4 sm:$0xff]  }
 0x12d   : > { %3764 = vmatpush1.bf16.msra.mxu0 %v5266_v31 }
 0x12e   : > { %3805 = vmatpush1.bf16.msra.mxu1 %v5269_v32  ;;  %3765 = vmatprep.subr.bf16.mxu0 %v5274_v33 }
 0x12f   : > { %3806 = vmatprep.subr.bf16.mxu1 %v5277_v34  ;;  %v5338_v34 = vld [vmem:[%s5695_s25 + $0x4c8] ss:$16 sps:$4 sm:$0xff]  }
 0x131   : > { %3766 = vmatpush1.bf16.msra.mxu0 %v5272_v35  ;;  %v5341_v35 = vld [vmem:[%s5695_s25 + $0x6c8] ss:$16 sps:$4 sm:$0xff]  }
 0x132   : > { %3807 = vmatpush1.bf16.msra.mxu1 %v5275_v36  ;;  %3767 = vmatprep.subr.bf16.mxu0 %v5280_v43 }
 0x133   : > { %3808 = vmatprep.subr.bf16.mxu1 %v5283_v44  ;;  %v5346_v44 = vld [vmem:[%s5695_s25 + $0x4ac] ss:$16 sps:$4 sm:$0xff]  }
 0x135   : > { %3768 = vmatpush1.bf16.msra.mxu0 %v5278_v45  ;;  %v5349_v45 = vld [vmem:[%s5695_s25 + $0x6ac] ss:$16 sps:$4 sm:$0xff]  }
 0x136   : > { %3809 = vmatpush1.bf16.msra.mxu1 %v5281_v46  ;;  %3769 = vmatprep.subr.bf16.mxu0 %v5286_v47 }
 0x137   : > { %3810 = vmatprep.subr.bf16.mxu1 %v5289_v49  ;;  %v5344_v49 = vld [vmem:[%s5695_s25 + $0x4a8] ss:$16 sps:$4 sm:$0xff]  }
 0x139   : > { %3770 = vmatpush2.bf16.msra.mxu0 %v5284_v50  ;;  %v5347_v50 = vld [vmem:[%s5695_s25 + $0x6a8] ss:$16 sps:$4 sm:$0xff]  }
 0x13a   : > { %3811 = vmatpush2.bf16.msra.mxu1 %v5287_v51  ;;  %3771 = vmatprep.subr.bf16.mxu0 %v5292_v53 }
 0x13b   : > { %3812 = vmatprep.subr.bf16.mxu1 %v5295_v54  ;;  %v5353_v54 = vld [vmem:[%s5695_s25 + $0x688] ss:$16 sps:$4 sm:$0xff]  }
 0x13d   : > { %3772 = vmatpush2.bf16.msra.mxu0 %v5290_v55  ;;  %v5358_v55 = vld [vmem:[%s5695_s25 + $0x46c] ss:$16 sps:$4 sm:$0xff]  }
 0x13e   : > { %3813 = vmatpush2.bf16.msra.mxu1 %v5293_v56  ;;  %3773 = vmatprep.subr.bf16.mxu0 %v5298_v57  ;;  %v5361_v56 = vld [vmem:[%s5695_s25 + $0x66c] ss:$16 sps:$4 sm:$0xff]   ;;  %v5356_v57 = vld [vmem:[%s5695_s25 + $0x468] ss:$16 sps:$4 sm:$0xff]  }
 0x13f   : > { %3814 = vmatprep.subr.bf16.mxu1 %v5301_v58  ;;  %v5359_v58 = vld [vmem:[%s5695_s25 + $0x668] ss:$16 sps:$4 sm:$0xff]  }
 0x141   : > { %3774 = vmatpush2.bf16.msra.mxu0 %v5296_v61  ;;  %v5364_v61 = vld [vmem:[%s5695_s25 + $0x44c] ss:$16 sps:$4 sm:$0xff]  }
 0x142   : > { %3815 = vmatpush2.bf16.msra.mxu1 %v5299_v62  ;;  %3775 = vmatprep.subr.bf16.mxu0 %v5304_v63  ;;  %v5367_v62 = vld [vmem:[%s5695_s25 + $0x64c] ss:$16 sps:$4 sm:$0xff]   ;;  %v5362_v63 = vld [vmem:[%s5695_s25 + $0x448] ss:$16 sps:$4 sm:$0xff]  }
 0x143   : > { %3816 = vmatprep.subr.bf16.mxu1 %v5307_v0  ;;  %v5365_v0 = vld [vmem:[%s5695_s25 + $0x648] ss:$16 sps:$4 sm:$0xff]  }
 0x145   : > { %3776 = vmatpush2.bf16.msra.mxu0 %v5302_v1  ;;  %v5370_v1 = vld [vmem:[%s5695_s25 + $0x42c] ss:$16 sps:$4 sm:$0xff]  }
 0x146   : > { %3817 = vmatpush2.bf16.msra.mxu1 %v5305_v2  ;;  %3777 = vmatprep.subr.bf16.mxu0 %v5310_v41  ;;  %v5373_v2 = vld [vmem:[%s5695_s25 + $0x62c] ss:$16 sps:$4 sm:$0xff]   ;;  %v5368_v41 = vld [vmem:[%s5695_s25 + $0x428] ss:$16 sps:$4 sm:$0xff]  }
 0x147   : > { %3818 = vmatprep.subr.bf16.mxu1 %v5313_v42  ;;  %v5371_v42 = vld [vmem:[%s5695_s25 + $0x628] ss:$16 sps:$4 sm:$0xff]  }
 0x149   : > { %3778 = vmatpush2.bf16.msra.mxu0 %v5308_v4  ;;  %v5376_v4 = vld [vmem:[%s5695_s25 + $0x40c] ss:$16 sps:$4 sm:$0xff]  }
 0x14a   : > { %3819 = vmatpush2.bf16.msra.mxu1 %v5311_v5  ;;  %3779 = vmatprep.subr.bf16.mxu0 %v5316_v6  ;;  %v5379_v5 = vld [vmem:[%s5695_s25 + $0x60c] ss:$16 sps:$4 sm:$0xff]   ;;  %v5374_v6 = vld [vmem:[%s5695_s25 + $0x408] ss:$16 sps:$4 sm:$0xff]  }
 0x14b   : > { %3820 = vmatprep.subr.bf16.mxu1 %v5319_v9  ;;  %v5377_v9 = vld [vmem:[%s5695_s25 + $0x608] ss:$16 sps:$4 sm:$0xff]  }
 0x14d   : > { %3780 = vmatpush2.bf16.msra.mxu0 %v5314_v11  ;;  %v5382_v11 = vld [vmem:[%s5695_s25 + $0x5ec] ss:$16 sps:$4 sm:$0xff]  }
 0x14e   : > { %3821 = vmatpush2.bf16.msra.mxu1 %v5317_v12  ;;  %3781 = vmatprep.subr.bf16.mxu0 %v5322_v13  ;;  %v5385_v12 = vld [vmem:[%s5695_s25 + $0x7ec] ss:$16 sps:$4 sm:$0xff]   ;;  %v5380_v13 = vld [vmem:[%s5695_s25 + $0x5e8] ss:$16 sps:$4 sm:$0xff]  }
 0x14f   : > { %3822 = vmatprep.subr.bf16.mxu1 %v5325_v14  ;;  %v5383_v14 = vld [vmem:[%s5695_s25 + $0x7e8] ss:$16 sps:$4 sm:$0xff]  }
 0x151   : > { %3782 = vmatpush2.bf16.msra.mxu0 %v5320_v15  ;;  %v5388_v15 = vld [vmem:[%s5695_s25 + $0x5cc] ss:$16 sps:$4 sm:$0xff]  }
 0x152   : > { %3823 = vmatpush2.bf16.msra.mxu1 %v5323_v16  ;;  %3783 = vmatprep.subr.bf16.mxu0 %v5328_v19  ;;  %v5391_v16 = vld [vmem:[%s5695_s25 + $0x7cc] ss:$16 sps:$4 sm:$0xff]   ;;  %v5386_v19 = vld [vmem:[%s5695_s25 + $0x5c8] ss:$16 sps:$4 sm:$0xff]  }
 0x153   : > { %3824 = vmatprep.subr.bf16.mxu1 %v5331_v48  ;;  %v5389_v48 = vld [vmem:[%s5695_s25 + $0x7c8] ss:$16 sps:$4 sm:$0xff]  }
 0x155   : > { %3784 = vmatpush2.bf16.msra.mxu0 %v5326_v52  ;;  %v5394_v52 = vld [vmem:[%s5695_s25 + $0x5ac] ss:$16 sps:$4 sm:$0xff]  }
 0x156   : > { %3825 = vmatpush2.bf16.msra.mxu1 %v5329_v20  ;;  %3835 = vmatprep.subr.bf16.mxu0 %v5334_v21  ;;  %v5397_v20 = vld [vmem:[%s5695_s25 + $0x7ac] ss:$16 sps:$4 sm:$0xff]   ;;  %v5392_v21 = vld [vmem:[%s5695_s25 + $0x5a8] ss:$16 sps:$4 sm:$0xff]  }
 0x157   : > { %3876 = vmatprep.subr.bf16.mxu1 %v5337_v22  ;;  %v5395_v22 = vld [vmem:[%s5695_s25 + $0x7a8] ss:$16 sps:$4 sm:$0xff]  }
 0x158   : > { %v3541_v31 = vpop.f32.mrf.mxu0  ;;  %3786 = vmatmul.mubr.bf16.vlgmr.msra.gmra.mxu0 %v5772_v7 }
 0x159   : > { %v3582_v32 = vpop.f32.mrf.mxu1  ;;  %3827 = vmatmul.mubr.bf16.vlgmr.msra.gmra.mxu1 %v5774_v8  ;;  %v3542_v33 = vadd.f32 %v3541_v31, %v6054_v3  ;;  %3836 = vmatpush1.bf16.msra.mxu0 %v5332_v27  ;;  %v5400_v27 = vld [vmem:[%s5695_s25 + $0x58c] ss:$16 sps:$4 sm:$0xff]  }
 0x15a   : > { %3877 = vmatpush1.bf16.msra.mxu1 %v5335_v28  ;;  %v3543_v36 = vpop.f32.mrf.mxu0  ;;  %3837 = vmatprep.subr.bf16.mxu0 %v5340_v29  ;;  %v5403_v28 = vld [vmem:[%s5695_s25 + $0x78c] ss:$16 sps:$4 sm:$0xff]   ;;  %v5398_v29 = vld [vmem:[%s5695_s25 + $0x588] ss:$16 sps:$4 sm:$0xff]  }
 0x15b   : > { %v3584_v43 = vpop.f32.mrf.mxu1  ;;  %3878 = vmatprep.subr.bf16.mxu1 %v5343_v30  ;;  %v6129_v46 = vadd.f32 %v3582_v32, %v3542_v33  ;;  %v3544_v7 = vadd.f32 %v3543_v36, %v6058_v10  ;;  %3867 = vmatprep.mubr.bf16.mxu0 %v5812_v37  ;;  %v5352_v37 = vld [vmem:[%s5695_s25 + $0x48c] ss:$16 sps:$4 sm:$0xff]   ;;  %v5350_v10 = vld [vmem:[%s5695_s25 + $0x488] ss:$16 sps:$4 sm:$0xff]  }
 0x15c   : > { %3908 = vmatprep.mubr.bf16.mxu1 %v5816_v38  ;;  %v3545_v8 = vpop.f32.mrf.mxu0  ;;  %v5355_v38 = vld [vmem:[%s5695_s25 + $0x68c] ss:$16 sps:$4 sm:$0xff]   ;;  %v5401_v30 = vld [vmem:[%s5695_s25 + $0x788] ss:$16 sps:$4 sm:$0xff]  }
 0x15d   : > { %v3586_v3 = vpop.f32.mrf.mxu1  ;;  %v6134_v47 = vadd.f32 %v3584_v43, %v3544_v7  ;;  %3838 = vmatpush1.bf16.msra.mxu0 %v5338_v34  ;;  %v5406_v31 = vld [vmem:[%s5695_s25 + $0x56c] ss:$16 sps:$4 sm:$0xff]   ;;  %v5404_v33 = vld [vmem:[%s5695_s25 + $0x568] ss:$16 sps:$4 sm:$0xff]  }
 0x15e   : > { %3879 = vmatpush1.bf16.msra.mxu1 %v5341_v35  ;;  %v3546_v51 = vpop.f32.mrf.mxu0  ;;  %3839 = vmatprep.subr.bf16.mxu0 %v5346_v44  ;;  %v5409_v32 = vld [vmem:[%s5695_s25 + $0x76c] ss:$16 sps:$4 sm:$0xff]   ;;  %v5407_v34 = vld [vmem:[%s5695_s25 + $0x768] ss:$16 sps:$4 sm:$0xff]  }
 0x15f   : > { %v3587_v53 = vpop.f32.mrf.mxu1  ;;  %3880 = vmatprep.subr.bf16.mxu1 %v5349_v45  ;;  %v5412_v35 = vld [vmem:[%s5695_s25 + $0x54c] ss:$16 sps:$4 sm:$0xff]   ;;  %v5410_v43 = vld [vmem:[%s5695_s25 + $0x548] ss:$16 sps:$4 sm:$0xff]  }
 0x160   : > { %v5415_v36 = vld [vmem:[%s5695_s25 + $0x74c] ss:$16 sps:$4 sm:$0xff]   ;;  %v5413_v44 = vld [vmem:[%s5695_s25 + $0x748] ss:$16 sps:$4 sm:$0xff]  }
 0x161   : > { %3840 = vmatpush1.bf16.msra.mxu0 %v5344_v49  ;;  %v5418_v45 = vld [vmem:[%s5695_s25 + $0x52c] ss:$16 sps:$4 sm:$0xff]   ;;  %v5416_v8 = vld [vmem:[%s5695_s25 + $0x528] ss:$16 sps:$4 sm:$0xff]  }
 0x162   : > { %3881 = vmatpush1.bf16.msra.mxu1 %v5347_v50  ;;  %3841 = vmatprep.subr.bf16.mxu0 %v5352_v37  ;;  %v5421_v7 = vld [vmem:[%s5695_s25 + $0x72c] ss:$16 sps:$4 sm:$0xff]   ;;  %v5419_v3 = vld [vmem:[%s5695_s25 + $0x728] ss:$16 sps:$4 sm:$0xff]  }
 0x163   : > { %3882 = vmatprep.subr.bf16.mxu1 %v5355_v38  ;;  %v5424_v49 = vld [vmem:[%s5695_s25 + $0x50c] ss:$16 sps:$4 sm:$0xff]   ;;  %v5422_v51 = vld [vmem:[%s5695_s25 + $0x508] ss:$16 sps:$4 sm:$0xff]  }
 0x164   : > { %v5427_v50 = vld [vmem:[%s5695_s25 + $0x70c] ss:$16 sps:$4 sm:$0xff]   ;;  %v5425_v53 = vld [vmem:[%s5695_s25 + $0x708] ss:$16 sps:$4 sm:$0xff]  }
 0x165   : > { %3842 = vmatpush1.bf16.msra.mxu0 %v5350_v10  ;;  %v5430_v37 = vld [vmem:[%s5695_s25 + $0x8ec] ss:$16 sps:$4 sm:$0xff]   ;;  %v5428_v10 = vld [vmem:[%s5695_s25 + $0x8e8] ss:$16 sps:$4 sm:$0xff]  }
 0x166   : > { %3883 = vmatpush1.bf16.msra.mxu1 %v5353_v54  ;;  %3843 = vmatprep.subr.bf16.mxu0 %v5358_v55  ;;  %v5433_v38 = vld [vmem:[%s5695_s25 + $0xaec] ss:$16 sps:$4 sm:$0xff]   ;;  %v5431_v54 = vld [vmem:[%s5695_s25 + $0xae8] ss:$16 sps:$4 sm:$0xff]  }
 0x167   : > { %3884 = vmatprep.subr.bf16.mxu1 %v5361_v56  ;;  %v5436_v55 = vld [vmem:[%s5695_s25 + $0x8cc] ss:$16 sps:$4 sm:$0xff]  }
 0x168   : > { %v5439_v56 = vld [vmem:[%s5695_s25 + $0xacc] ss:$16 sps:$4 sm:$0xff]  }
 0x169   : > { %3844 = vmatpush1.bf16.msra.mxu0 %v5356_v57 }
 0x16a   : > { %3885 = vmatpush1.bf16.msra.mxu1 %v5359_v58  ;;  %3845 = vmatprep.subr.bf16.mxu0 %v5364_v61  ;;  %v5434_v61 = vld [vmem:[%s5695_s25 + $0x8c8] ss:$16 sps:$4 sm:$0xff]  }
 0x16b   : > { %3886 = vmatprep.subr.bf16.mxu1 %v5367_v62  ;;  %v5437_v62 = vld [vmem:[%s5695_s25 + $0xac8] ss:$16 sps:$4 sm:$0xff]  }
 0x16d   : > { %3846 = vmatpush1.bf16.msra.mxu0 %v5362_v63 }
 0x16e   : > { %3887 = vmatpush1.bf16.msra.mxu1 %v5365_v0  ;;  %3847 = vmatprep.subr.bf16.mxu0 %v5370_v1  ;;  %v5442_v1 = vld [vmem:[%s5695_s25 + $0x8ac] ss:$16 sps:$4 sm:$0xff]  }
 0x16f   : > { %3888 = vmatprep.subr.bf16.mxu1 %v5373_v2  ;;  %v5445_v2 = vld [vmem:[%s5695_s25 + $0xaac] ss:$16 sps:$4 sm:$0xff]  }
 0x171   : > { %3848 = vmatpush1.bf16.msra.mxu0 %v5368_v41  ;;  %v5440_v41 = vld [vmem:[%s5695_s25 + $0x8a8] ss:$16 sps:$4 sm:$0xff]  }
 0x172   : > { %3889 = vmatpush1.bf16.msra.mxu1 %v5371_v42  ;;  %3849 = vmatprep.subr.bf16.mxu0 %v5376_v4  ;;  %v5443_v42 = vld [vmem:[%s5695_s25 + $0xaa8] ss:$16 sps:$4 sm:$0xff]  }
 0x173   : > { %3890 = vmatprep.subr.bf16.mxu1 %v5379_v5 }
 0x175   : > { %3850 = vmatpush1.bf16.msra.mxu0 %v5374_v6  ;;  %v5448_v6 = vld [vmem:[%s5695_s25 + $0x88c] ss:$16 sps:$4 sm:$0xff]  }
 0x176   : > { %3891 = vmatpush1.bf16.msra.mxu1 %v5377_v9  ;;  %3851 = vmatprep.subr.bf16.mxu0 %v5382_v11  ;;  %v5449_v9 = vld [vmem:[%s5695_s25 + $0xa88] ss:$16 sps:$4 sm:$0xff]   ;;  %v5454_v11 = vld [vmem:[%s5695_s25 + $0x86c] ss:$16 sps:$4 sm:$0xff]  }
 0x177   : > { %3892 = vmatprep.subr.bf16.mxu1 %v5385_v12  ;;  %v5457_v12 = vld [vmem:[%s5695_s25 + $0xa6c] ss:$16 sps:$4 sm:$0xff]  }
 0x179   : > { %3852 = vmatpush2.bf16.msra.mxu0 %v5380_v13  ;;  %v5452_v13 = vld [vmem:[%s5695_s25 + $0x868] ss:$16 sps:$4 sm:$0xff]  }
 0x17a   : > { %3893 = vmatpush2.bf16.msra.mxu1 %v5383_v14  ;;  %3853 = vmatprep.subr.bf16.mxu0 %v5388_v15  ;;  %v5455_v14 = vld [vmem:[%s5695_s25 + $0xa68] ss:$16 sps:$4 sm:$0xff]   ;;  %v5460_v15 = vld [vmem:[%s5695_s25 + $0x84c] ss:$16 sps:$4 sm:$0xff]  }
 0x17b   : > { %3894 = vmatprep.subr.bf16.mxu1 %v5391_v16  ;;  %v5463_v16 = vld [vmem:[%s5695_s25 + $0xa4c] ss:$16 sps:$4 sm:$0xff]  }
 0x17d   : > { %3854 = vmatpush2.bf16.msra.mxu0 %v5386_v19  ;;  %v5458_v19 = vld [vmem:[%s5695_s25 + $0x848] ss:$16 sps:$4 sm:$0xff]  }
 0x17e   : > { %3895 = vmatpush2.bf16.msra.mxu1 %v5389_v48  ;;  %3855 = vmatprep.subr.bf16.mxu0 %v5394_v52  ;;  %v5461_v48 = vld [vmem:[%s5695_s25 + $0xa48] ss:$16 sps:$4 sm:$0xff]   ;;  %v5466_v52 = vld [vmem:[%s5695_s25 + $0x82c] ss:$16 sps:$4 sm:$0xff]  }
 0x17f   : > { %3896 = vmatprep.subr.bf16.mxu1 %v5397_v20  ;;  %v5469_v20 = vld [vmem:[%s5695_s25 + $0xa2c] ss:$16 sps:$4 sm:$0xff]  }
 0x181   : > { %3856 = vmatpush2.bf16.msra.mxu0 %v5392_v21  ;;  %v5464_v21 = vld [vmem:[%s5695_s25 + $0x828] ss:$16 sps:$4 sm:$0xff]  }
 0x182   : > { %3897 = vmatpush2.bf16.msra.mxu1 %v5395_v22  ;;  %3857 = vmatprep.subr.bf16.mxu0 %v5400_v27  ;;  %v5467_v22 = vld [vmem:[%s5695_s25 + $0xa28] ss:$16 sps:$4 sm:$0xff]   ;;  %v5472_v27 = vld [vmem:[%s5695_s25 + $0x80c] ss:$16 sps:$4 sm:$0xff]  }
 0x183   : > { %3898 = vmatprep.subr.bf16.mxu1 %v5403_v28  ;;  %v5475_v28 = vld [vmem:[%s5695_s25 + $0xa0c] ss:$16 sps:$4 sm:$0xff]  }
 0x185   : > { %3858 = vmatpush2.bf16.msra.mxu0 %v5398_v29  ;;  %v5470_v29 = vld [vmem:[%s5695_s25 + $0x808] ss:$16 sps:$4 sm:$0xff]  }
 0x186   : > { %3899 = vmatpush2.bf16.msra.mxu1 %v5401_v30  ;;  %3859 = vmatprep.subr.bf16.mxu0 %v5406_v31  ;;  %v5473_v30 = vld [vmem:[%s5695_s25 + $0xa08] ss:$16 sps:$4 sm:$0xff]   ;;  %v5478_v31 = vld [vmem:[%s5695_s25 + $0x9ec] ss:$16 sps:$4 sm:$0xff]  }
 0x187   : > { %3900 = vmatprep.subr.bf16.mxu1 %v5409_v32  ;;  %v5481_v32 = vld [vmem:[%s5695_s25 + $0xbec] ss:$16 sps:$4 sm:$0xff]  }
 0x189   : > { %3860 = vmatpush2.bf16.msra.mxu0 %v5404_v33  ;;  %v5476_v33 = vld [vmem:[%s5695_s25 + $0x9e8] ss:$16 sps:$4 sm:$0xff]  }
 0x18a   : > { %3901 = vmatpush2.bf16.msra.mxu1 %v5407_v34  ;;  %3861 = vmatprep.subr.bf16.mxu0 %v5412_v35  ;;  %v5479_v34 = vld [vmem:[%s5695_s25 + $0xbe8] ss:$16 sps:$4 sm:$0xff]   ;;  %v5484_v35 = vld [vmem:[%s5695_s25 + $0x9cc] ss:$16 sps:$4 sm:$0xff]  }
 0x18b   : > { %3902 = vmatprep.subr.bf16.mxu1 %v5415_v36  ;;  %v5487_v36 = vld [vmem:[%s5695_s25 + $0xbcc] ss:$16 sps:$4 sm:$0xff]  }
 0x18d   : > { %3862 = vmatpush2.bf16.msra.mxu0 %v5410_v43  ;;  %v5482_v43 = vld [vmem:[%s5695_s25 + $0x9c8] ss:$16 sps:$4 sm:$0xff]  }
 0x18e   : > { %3903 = vmatpush2.bf16.msra.mxu1 %v5413_v44  ;;  %3863 = vmatprep.subr.bf16.mxu0 %v5418_v45  ;;  %v5485_v44 = vld [vmem:[%s5695_s25 + $0xbc8] ss:$16 sps:$4 sm:$0xff]   ;;  %v5490_v45 = vld [vmem:[%s5695_s25 + $0x9ac] ss:$16 sps:$4 sm:$0xff]  }
 0x18f   : > { %3904 = vmatprep.subr.bf16.mxu1 %v5421_v7  ;;  %v5493_v7 = vld [vmem:[%s5695_s25 + $0xbac] ss:$16 sps:$4 sm:$0xff]  }
 0x191   : > { %3864 = vmatpush2.bf16.msra.mxu0 %v5416_v8  ;;  %v5488_v8 = vld [vmem:[%s5695_s25 + $0x9a8] ss:$16 sps:$4 sm:$0xff]  }
 0x192   : > { %3905 = vmatpush2.bf16.msra.mxu1 %v5419_v3  ;;  %3865 = vmatprep.subr.bf16.mxu0 %v5424_v49  ;;  %v5491_v3 = vld [vmem:[%s5695_s25 + $0xba8] ss:$16 sps:$4 sm:$0xff]   ;;  %v5496_v49 = vld [vmem:[%s5695_s25 + $0x98c] ss:$16 sps:$4 sm:$0xff]  }
 0x193   : > { %3906 = vmatprep.subr.bf16.mxu1 %v5427_v50  ;;  %v5499_v50 = vld [vmem:[%s5695_s25 + $0xb8c] ss:$16 sps:$4 sm:$0xff]  }
 0x195   : > { %3866 = vmatpush2.bf16.msra.mxu0 %v5422_v51  ;;  %v5494_v51 = vld [vmem:[%s5695_s25 + $0x988] ss:$16 sps:$4 sm:$0xff]  }
 0x196   : > { %3907 = vmatpush2.bf16.msra.mxu1 %v5425_v53  ;;  %3917 = vmatprep.subr.bf16.mxu0 %v5430_v37  ;;  %v5497_v53 = vld [vmem:[%s5695_s25 + $0xb88] ss:$16 sps:$4 sm:$0xff]   ;;  %v5502_v37 = vld [vmem:[%s5695_s25 + $0x96c] ss:$16 sps:$4 sm:$0xff]  }
 0x197   : > { %3958 = vmatprep.subr.bf16.mxu1 %v5433_v38  ;;  %v5505_v38 = vld [vmem:[%s5695_s25 + $0xb6c] ss:$16 sps:$4 sm:$0xff]  }
 0x198   : > { %v6196_v57 = vpop.f32.mrf.mxu0  ;;  %3868 = vmatmul.mubr.bf16.vlgmr.msra.gmra.mxu0 %v5860_v17 }
 0x199   : > { %v6198_v58 = vpop.f32.mrf.mxu1  ;;  %3909 = vmatmul.mubr.bf16.vlgmr.msra.gmra.mxu1 %v5864_v18  ;;  %3918 = vmatpush1.bf16.msra.mxu0 %v5428_v10  ;;  %v5500_v10 = vld [vmem:[%s5695_s25 + $0x968] ss:$16 sps:$4 sm:$0xff]  }
 0x19a   : > { %3959 = vmatpush1.bf16.msra.mxu1 %v5431_v54  ;;  %v6204_v63 = vpop.f32.mrf.mxu0  ;;  %3919 = vmatprep.subr.bf16.mxu0 %v5436_v55  ;;  %v5503_v54 = vld [vmem:[%s5695_s25 + $0xb68] ss:$16 sps:$4 sm:$0xff]   ;;  %v5508_v55 = vld [vmem:[%s5695_s25 + $0x94c] ss:$16 sps:$4 sm:$0xff]  }
 0x19b   : > { %v6206_v0 = vpop.f32.mrf.mxu1  ;;  %3960 = vmatprep.subr.bf16.mxu1 %v5439_v56  ;;  %3949 = vmatprep.mubr.bf16.mxu0 %v5878_v25  ;;  %v5451_v25 = vld [vmem:[%s5695_s25 + $0xa8c] ss:$16 sps:$4 sm:$0xff]  }
 0x19c   : > { %3990 = vmatprep.mubr.bf16.mxu1 %v5882_v26  ;;  %v3627_v17 = vpop.f32.mrf.mxu0  ;;  %v5446_v26 = vld [vmem:[%s5695_s25 + $0x888] ss:$16 sps:$4 sm:$0xff]   ;;  %v5511_v56 = vld [vmem:[%s5695_s25 + $0xb4c] ss:$16 sps:$4 sm:$0xff]  }
 0x19d   : > { %v3668_v18 = vpop.f32.mrf.mxu1  ;;  %3920 = vmatpush1.bf16.msra.mxu0 %v5434_v61  ;;  %v5506_v61 = vld [vmem:[%s5695_s25 + $0x948] ss:$16 sps:$4 sm:$0xff]  }
 0x19e   : > { %3961 = vmatpush1.bf16.msra.mxu1 %v5437_v62  ;;  %v3628_v4 = vpop.f32.mrf.mxu0  ;;  %3921 = vmatprep.subr.bf16.mxu0 %v5442_v1  ;;  %v5509_v62 = vld [vmem:[%s5695_s25 + $0xb48] ss:$16 sps:$4 sm:$0xff]   ;;  %v5514_v1 = vld [vmem:[%s5695_s25 + $0x92c] ss:$16 sps:$4 sm:$0xff]  }
 0x19f   : > { %v3669_v5 = vpop.f32.mrf.mxu1  ;;  %3962 = vmatprep.subr.bf16.mxu1 %v5445_v2  ;;  %v5517_v2 = vld [vmem:[%s5695_s25 + $0xb2c] ss:$16 sps:$4 sm:$0xff]   ;;  %v5512_v17 = vld [vmem:[%s5695_s25 + $0x928] ss:$16 sps:$4 sm:$0xff]  }
 0x1a0   : > { %v5515_v18 = vld [vmem:[%s5695_s25 + $0xb28] ss:$16 sps:$4 sm:$0xff]  }
 0x1a1   : > { %3922 = vmatpush1.bf16.msra.mxu0 %v5440_v41  ;;  %v5520_v41 = vld [vmem:[%s5695_s25 + $0x90c] ss:$16 sps:$4 sm:$0xff]   ;;  %v5518_v4 = vld [vmem:[%s5695_s25 + $0x908] ss:$16 sps:$4 sm:$0xff]  }
 0x1a2   : > { %3963 = vmatpush1.bf16.msra.mxu1 %v5443_v42  ;;  %3923 = vmatprep.subr.bf16.mxu0 %v5448_v6  ;;  %v5523_v42 = vld [vmem:[%s5695_s25 + $0xb0c] ss:$16 sps:$4 sm:$0xff]   ;;  %v5521_v5 = vld [vmem:[%s5695_s25 + $0xb08] ss:$16 sps:$4 sm:$0xff]  }
 0x1a3   : > { %3964 = vmatprep.subr.bf16.mxu1 %v5451_v25  ;;  %v5526_v6 = vld [vmem:[%s5695_s25 + $0xcec] ss:$16 sps:$4 sm:$0xff]  }
 0x1a4   : > { %v5529_v25 = vld [vmem:[%s5695_s25 + $0xeec] ss:$16 sps:$4 sm:$0xff]  }
 0x1a5   : > { %3924 = vmatpush1.bf16.msra.mxu0 %v5446_v26  ;;  %v3624_v26 = vadd.f32 %v6196_v57, %v6129_v46  ;;  %v5530_v57 = vld [vmem:[%s5695_s25 + $0xcc8] ss:$16 sps:$4 sm:$0xff]  }
 0x1a6   : > { %3965 = vmatpush1.bf16.msra.mxu1 %v5449_v9  ;;  %3925 = vmatprep.subr.bf16.mxu0 %v5454_v11  ;;  %v3626_v9 = vadd.f32 %v6204_v63, %v6134_v47  ;;  %v5524_v11 = vld [vmem:[%s5695_s25 + $0xce8] ss:$16 sps:$4 sm:$0xff]  }
 0x1a7   : > { %3966 = vmatprep.subr.bf16.mxu1 %v5457_v12  ;;  %v5527_v12 = vld [vmem:[%s5695_s25 + $0xee8] ss:$16 sps:$4 sm:$0xff]  }
 0x1a8   : > { %v3667_v46 = vadd.f32 %v6206_v0, %v3626_v9  ;;  %v5533_v63 = vld [vmem:[%s5695_s25 + $0xec8] ss:$16 sps:$4 sm:$0xff]   ;;  %v5595_v9 = vld [vmem:[%s5695_s25 + $0xf8c] ss:$16 sps:$4 sm:$0xff]  }
 0x1a9   : > { %3926 = vmatpush1.bf16.msra.mxu0 %v5452_v13  ;;  %v5532_v13 = vld [vmem:[%s5695_s25 + $0xccc] ss:$16 sps:$4 sm:$0xff]  }
 0x1aa   : > { %3967 = vmatpush1.bf16.msra.mxu1 %v5455_v14  ;;  %3927 = vmatprep.subr.bf16.mxu0 %v5460_v15  ;;  %v5535_v14 = vld [vmem:[%s5695_s25 + $0xecc] ss:$16 sps:$4 sm:$0xff]   ;;  %v3665_v15 = vadd.f32 %v6198_v58, %v3624_v26 }
 0x1ab   : > { %3968 = vmatprep.subr.bf16.mxu1 %v5463_v16  ;;  %v5538_v58 = vld [vmem:[%s5695_s25 + $0xcac] ss:$16 sps:$4 sm:$0xff]  }
 0x1ac   : > { %v5592_v26 = vld [vmem:[%s5695_s25 + $0xd8c] ss:$16 sps:$4 sm:$0xff]  }
 0x1ad   : > { %3928 = vmatpush1.bf16.msra.mxu0 %v5458_v19 }
 0x1ae   : > { %3969 = vmatpush1.bf16.msra.mxu1 %v5461_v48  ;;  %3929 = vmatprep.subr.bf16.mxu0 %v5466_v52  ;;  %v285_v48 = vld [vmem:[#allocation2 + $0x10] sm:$0xff] }
 0x1af   : > { %3970 = vmatprep.subr.bf16.mxu1 %v5469_v20 }
 0x1b1   : > { %3930 = vmatpush1.bf16.msra.mxu0 %v5464_v21  ;;  %v5541_v21 = vld [vmem:[%s5695_s25 + $0xeac] ss:$16 sps:$4 sm:$0xff]  }
 0x1b2   : > { %3971 = vmatpush1.bf16.msra.mxu1 %v5467_v22  ;;  %3931 = vmatprep.subr.bf16.mxu0 %v5472_v27 }
 0x1b3   : > { %3972 = vmatprep.subr.bf16.mxu1 %v5475_v28 }
 0x1b5   : > { %3932 = vmatpush1.bf16.msra.mxu0 %v5470_v29 }
 0x1b6   : > { %3973 = vmatpush1.bf16.msra.mxu1 %v5473_v30  ;;  %3933 = vmatprep.subr.bf16.mxu0 %v5478_v31  ;;  %v5536_v30 = vld [vmem:[%s5695_s25 + $0xca8] ss:$16 sps:$4 sm:$0xff]  }
 0x1b7   : > { %3974 = vmatprep.subr.bf16.mxu1 %v5481_v32  ;;  %v5539_v31 = vld [vmem:[%s5695_s25 + $0xea8] ss:$16 sps:$4 sm:$0xff]  }
 0x1b9   : > { %3934 = vmatpush2.bf16.msra.mxu0 %v5476_v33 }
 0x1ba   : > { %3975 = vmatpush2.bf16.msra.mxu1 %v5479_v34  ;;  %3935 = vmatprep.subr.bf16.mxu0 %v5484_v35  ;;  %v5542_v35 = vld [vmem:[%s5695_s25 + $0xc88] ss:$16 sps:$4 sm:$0xff]  }
 0x1bb   : > { %3976 = vmatprep.subr.bf16.mxu1 %v5487_v36  ;;  %v5545_v36 = vld [vmem:[%s5695_s25 + $0xe88] ss:$16 sps:$4 sm:$0xff]  }
 0x1bd   : > { %3936 = vmatpush2.bf16.msra.mxu0 %v5482_v43  ;;  %v5550_v43 = vld [vmem:[%s5695_s25 + $0xc6c] ss:$16 sps:$4 sm:$0xff]  }
 0x1be   : > { %3977 = vmatpush2.bf16.msra.mxu1 %v5485_v44  ;;  %3937 = vmatprep.subr.bf16.mxu0 %v5490_v45  ;;  %v5553_v44 = vld [vmem:[%s5695_s25 + $0xe6c] ss:$16 sps:$4 sm:$0xff]   ;;  %v5548_v45 = vld [vmem:[%s5695_s25 + $0xc68] ss:$16 sps:$4 sm:$0xff]  }
 0x1bf   : > { %3978 = vmatprep.subr.bf16.mxu1 %v5493_v7  ;;  %v5551_v7 = vld [vmem:[%s5695_s25 + $0xe68] ss:$16 sps:$4 sm:$0xff]  }
 0x1c1   : > { %3938 = vmatpush2.bf16.msra.mxu0 %v5488_v8  ;;  %v5556_v8 = vld [vmem:[%s5695_s25 + $0xc4c] ss:$16 sps:$4 sm:$0xff]  }
 0x1c2   : > { %3979 = vmatpush2.bf16.msra.mxu1 %v5491_v3  ;;  %3939 = vmatprep.subr.bf16.mxu0 %v5496_v49  ;;  %v5559_v3 = vld [vmem:[%s5695_s25 + $0xe4c] ss:$16 sps:$4 sm:$0xff]   ;;  %v5554_v49 = vld [vmem:[%s5695_s25 + $0xc48] ss:$16 sps:$4 sm:$0xff]  }
 0x1c3   : > { %3980 = vmatprep.subr.bf16.mxu1 %v5499_v50  ;;  %v5557_v50 = vld [vmem:[%s5695_s25 + $0xe48] ss:$16 sps:$4 sm:$0xff]  }
 0x1c5   : > { %3940 = vmatpush2.bf16.msra.mxu0 %v5494_v51  ;;  %v5562_v51 = vld [vmem:[%s5695_s25 + $0xc2c] ss:$16 sps:$4 sm:$0xff]  }
 0x1c6   : > { %3981 = vmatpush2.bf16.msra.mxu1 %v5497_v53  ;;  %3941 = vmatprep.subr.bf16.mxu0 %v5502_v37  ;;  %v5565_v53 = vld [vmem:[%s5695_s25 + $0xe2c] ss:$16 sps:$4 sm:$0xff]   ;;  %v5560_v37 = vld [vmem:[%s5695_s25 + $0xc28] ss:$16 sps:$4 sm:$0xff]  }
 0x1c7   : > { %3982 = vmatprep.subr.bf16.mxu1 %v5505_v38  ;;  %v5563_v38 = vld [vmem:[%s5695_s25 + $0xe28] ss:$16 sps:$4 sm:$0xff]  }
 0x1c9   : > { %3942 = vmatpush2.bf16.msra.mxu0 %v5500_v10  ;;  %v5568_v10 = vld [vmem:[%s5695_s25 + $0xc0c] ss:$16 sps:$4 sm:$0xff]  }
 0x1ca   : > { %3983 = vmatpush2.bf16.msra.mxu1 %v5503_v54  ;;  %3943 = vmatprep.subr.bf16.mxu0 %v5508_v55  ;;  %v5571_v54 = vld [vmem:[%s5695_s25 + $0xe0c] ss:$16 sps:$4 sm:$0xff]   ;;  %v5566_v55 = vld [vmem:[%s5695_s25 + $0xc08] ss:$16 sps:$4 sm:$0xff]  }
 0x1cb   : > { %3984 = vmatprep.subr.bf16.mxu1 %v5511_v56  ;;  %v5569_v56 = vld [vmem:[%s5695_s25 + $0xe08] ss:$16 sps:$4 sm:$0xff]  }
 0x1cd   : > { %3944 = vmatpush2.bf16.msra.mxu0 %v5506_v61  ;;  %v5574_v61 = vld [vmem:[%s5695_s25 + $0xdec] ss:$16 sps:$4 sm:$0xff]  }
 0x1ce   : > { %3985 = vmatpush2.bf16.msra.mxu1 %v5509_v62  ;;  %3945 = vmatprep.subr.bf16.mxu0 %v5514_v1  ;;  %v5577_v62 = vld [vmem:[%s5695_s25 + $0xfec] ss:$16 sps:$4 sm:$0xff]   ;;  %v5572_v1 = vld [vmem:[%s5695_s25 + $0xde8] ss:$16 sps:$4 sm:$0xff]  }
 0x1cf   : > { %3986 = vmatprep.subr.bf16.mxu1 %v5517_v2  ;;  %v5575_v2 = vld [vmem:[%s5695_s25 + $0xfe8] ss:$16 sps:$4 sm:$0xff]  }
 0x1d1   : > { %3946 = vmatpush2.bf16.msra.mxu0 %v5512_v17  ;;  %v5580_v17 = vld [vmem:[%s5695_s25 + $0xdcc] ss:$16 sps:$4 sm:$0xff]  }
 0x1d2   : > { %3987 = vmatpush2.bf16.msra.mxu1 %v5515_v18  ;;  %3947 = vmatprep.subr.bf16.mxu0 %v5520_v41  ;;  %v5583_v18 = vld [vmem:[%s5695_s25 + $0xfcc] ss:$16 sps:$4 sm:$0xff]   ;;  %v5578_v41 = vld [vmem:[%s5695_s25 + $0xdc8] ss:$16 sps:$4 sm:$0xff]  }
 0x1d3   : > { %3988 = vmatprep.subr.bf16.mxu1 %v5523_v42  ;;  %v5581_v42 = vld [vmem:[%s5695_s25 + $0xfc8] ss:$16 sps:$4 sm:$0xff]  }
 0x1d5   : > { %3948 = vmatpush2.bf16.msra.mxu0 %v5518_v4  ;;  %v5586_v4 = vld [vmem:[%s5695_s25 + $0xdac] ss:$16 sps:$4 sm:$0xff]  }
 0x1d6   : > { %3989 = vmatpush2.bf16.msra.mxu1 %v5521_v5  ;;  %3999 = vmatprep.subr.bf16.mxu0 %v5526_v6  ;;  %v5589_v5 = vld [vmem:[%s5695_s25 + $0xfac] ss:$16 sps:$4 sm:$0xff]   ;;  %v5584_v6 = vld [vmem:[%s5695_s25 + $0xda8] ss:$16 sps:$4 sm:$0xff]  }
 0x1d7   : > { %4040 = vmatprep.subr.bf16.mxu1 %v5529_v25  ;;  %v5587_v25 = vld [vmem:[%s5695_s25 + $0xfa8] ss:$16 sps:$4 sm:$0xff]  }
 0x1d8   : > { %v3705_v16 = vpop.f32.mrf.mxu0  ;;  %3950 = vmatmul.mubr.bf16.vlgmr.msra.gmra.mxu0 %v5952_v39 }
 0x1d9   : > { %v3746_v19 = vpop.f32.mrf.mxu1  ;;  %3991 = vmatmul.mubr.bf16.vlgmr.msra.gmra.mxu1 %v5956_v40  ;;  %v3706_v47 = vadd.f32 %v3705_v16, %v3665_v15  ;;  %4000 = vmatpush1.bf16.msra.mxu0 %v5524_v11  ;;  %v286_v40 = vld [vmem:[#allocation2] sm:$0xff]  ;;  %v5590_v11 = vld [vmem:[%s5695_s25 + $0xd88] ss:$16 sps:$4 sm:$0xff]  }
 0x1da   : > { %4041 = vmatpush1.bf16.msra.mxu1 %v5527_v12  ;;  %v3707_v52 = vpop.f32.mrf.mxu0  ;;  %4001 = vmatprep.subr.bf16.mxu0 %v5532_v13  ;;  %v5593_v12 = vld [vmem:[%s5695_s25 + $0xf88] ss:$16 sps:$4 sm:$0xff]   ;;  %v5598_v13 = vld [vmem:[%s5695_s25 + $0xd6c] ss:$16 sps:$4 sm:$0xff]  }
 0x1db   : > { %v3748_v20 = vpop.f32.mrf.mxu1  ;;  %4042 = vmatprep.subr.bf16.mxu1 %v5535_v14  ;;  %v3747_v22 = vadd.f32 %v3746_v19, %v3706_v47  ;;  %v3708_v39 = vadd.f32 %v3707_v52, %v3667_v46  ;;  %4031 = vmatprep.mubr.bf16.mxu0 %v5968_v23  ;;  %v5544_v23 = vld [vmem:[%s5695_s25 + $0xc8c] ss:$16 sps:$4 sm:$0xff]   ;;  %v5596_v15 = vld [vmem:[%s5695_s25 + $0xd68] ss:$16 sps:$4 sm:$0xff]  }
 0x1dc   : > { %4072 = vmatprep.mubr.bf16.mxu1 %v5972_v24  ;;  %v3709_v0 = vpop.f32.mrf.mxu0  ;;  %v5547_v24 = vld [vmem:[%s5695_s25 + $0xe8c] ss:$16 sps:$4 sm:$0xff]   ;;  %v5599_v16 = vld [vmem:[%s5695_s25 + $0xf68] ss:$16 sps:$4 sm:$0xff]  }
 0x1dd   : > { %v3750_v27 = vpop.f32.mrf.mxu1  ;;  %v4081_v28 = vadd.f32 %v3747_v22, %v285_v48  ;;  %v3749_v29 = vadd.f32 %v3748_v20, %v3708_v39  ;;  %4002 = vmatpush1.bf16.msra.mxu0 %v5530_v57  ;;  %v5601_v14 = vld [vmem:[%s5695_s25 + $0xf6c] ss:$16 sps:$4 sm:$0xff]   ;;  %v5602_v47 = vld [vmem:[%s5695_s25 + $0xd48] ss:$16 sps:$4 sm:$0xff]  }
 0x1de   : > { %4043 = vmatpush1.bf16.msra.mxu1 %v5533_v63  ;;  %v3710_v32 = vpop.f32.mrf.mxu0  ;;  %4003 = vmatprep.subr.bf16.mxu0 %v5538_v58  ;;  %v5604_v19 = vld [vmem:[%s5695_s25 + $0xd4c] ss:$16 sps:$4 sm:$0xff]   ;;  %v5605_v57 = vld [vmem:[%s5695_s25 + $0xf48] ss:$16 sps:$4 sm:$0xff]  }
 0x1df   : > { %v3751_v33 = vpop.f32.mrf.mxu1  ;;  %4044 = vmatprep.subr.bf16.mxu1 %v5541_v21  ;;  %4085 = vst [vmem:[#allocation2 + $0x10] sm:$0xff] %v4081_v28  ;;  %v4082_v34 = vadd.f32 %v3749_v29, %v286_v40  ;;  %v5607_v46 = vld [vmem:[%s5695_s25 + $0xf4c] ss:$16 sps:$4 sm:$0xff]   ;;  %v5608_v52 = vld [vmem:[%s5695_s25 + $0xd28] ss:$16 sps:$4 sm:$0xff]  }
 0x1e0   : > { %v5610_v63 = vld [vmem:[%s5695_s25 + $0xd2c] ss:$16 sps:$4 sm:$0xff]   ;;  %v5611_v20 = vld [vmem:[%s5695_s25 + $0xf28] ss:$16 sps:$4 sm:$0xff]  }
 0x1e1   : > { %4086 = vst [vmem:[#allocation2] sm:$0xff] %v4082_v34  ;;  %4004 = vmatpush1.bf16.msra.mxu0 %v5536_v30  ;;  %v5613_v48 = vld [vmem:[%s5695_s25 + $0xf2c] ss:$16 sps:$4 sm:$0xff]   ;;  %v5614_v22 = vld [vmem:[%s5695_s25 + $0xd08] ss:$16 sps:$4 sm:$0xff]  }
 0x1e2   : > { %4045 = vmatpush1.bf16.msra.mxu1 %v5539_v31  ;;  %4005 = vmatprep.subr.bf16.mxu0 %v5544_v23  ;;  %v5616_v58 = vld [vmem:[%s5695_s25 + $0xd0c] ss:$16 sps:$4 sm:$0xff]   ;;  %v5617_v39 = vld [vmem:[%s5695_s25 + $0xf08] ss:$16 sps:$4 sm:$0xff]  }
 0x1e3   : > { %4046 = vmatprep.subr.bf16.mxu1 %v5547_v24  ;;  %v5619_v21 = vld [vmem:[%s5695_s25 + $0xf0c] ss:$16 sps:$4 sm:$0xff]  }
 0x1e5   : > { %4006 = vmatpush1.bf16.msra.mxu0 %v5542_v35 }
 0x1e6   : > { %4047 = vmatpush1.bf16.msra.mxu1 %v5545_v36  ;;  %4007 = vmatprep.subr.bf16.mxu0 %v5550_v43 }
 0x1e7   : > { %4048 = vmatprep.subr.bf16.mxu1 %v5553_v44 }
 0x1e9   : > { %4008 = vmatpush1.bf16.msra.mxu0 %v5548_v45 }
 0x1ea   : > { %4049 = vmatpush1.bf16.msra.mxu1 %v5551_v7  ;;  %4009 = vmatprep.subr.bf16.mxu0 %v5556_v8 }
 0x1eb   : > { %4050 = vmatprep.subr.bf16.mxu1 %v5559_v3 }
 0x1ed   : > { %4010 = vmatpush1.bf16.msra.mxu0 %v5554_v49 }
 0x1ee   : > { %4051 = vmatpush1.bf16.msra.mxu1 %v5557_v50  ;;  %4011 = vmatprep.subr.bf16.mxu0 %v5562_v51 }
 0x1ef   : > { %4052 = vmatprep.subr.bf16.mxu1 %v5565_v53 }
 0x1f1   : > { %4012 = vmatpush1.bf16.msra.mxu0 %v5560_v37 }
 0x1f2   : > { %4053 = vmatpush1.bf16.msra.mxu1 %v5563_v38  ;;  %4013 = vmatprep.subr.bf16.mxu0 %v5568_v10 }
 0x1f3   : > { %4054 = vmatprep.subr.bf16.mxu1 %v5571_v54 }
 0x1f5   : > { %4014 = vmatpush1.bf16.msra.mxu0 %v5566_v55 }
 0x1f6   : > { %4055 = vmatpush1.bf16.msra.mxu1 %v5569_v56  ;;  %4015 = vmatprep.subr.bf16.mxu0 %v5574_v61 }
 0x1f7   : > { %4056 = vmatprep.subr.bf16.mxu1 %v5577_v62 }
 0x1f9   : > { %4016 = vmatpush2.bf16.msra.mxu0 %v5572_v1 }
 0x1fa   : > { %4057 = vmatpush2.bf16.msra.mxu1 %v5575_v2  ;;  %4017 = vmatprep.subr.bf16.mxu0 %v5580_v17 }
 0x1fb   : > { %4058 = vmatprep.subr.bf16.mxu1 %v5583_v18  ;;  %v287_v18 = vld [vmem:[#allocation2 + $0x18] sm:$0xff] }
 0x1fd   : > { %4018 = vmatpush2.bf16.msra.mxu0 %v5578_v41 }
 0x1fe   : > { %4059 = vmatpush2.bf16.msra.mxu1 %v5581_v42  ;;  %4019 = vmatprep.subr.bf16.mxu0 %v5586_v4 }
 0x1ff   : > { %4060 = vmatprep.subr.bf16.mxu1 %v5589_v5 }
 0x201   : > { %4020 = vmatpush2.bf16.msra.mxu0 %v5584_v6  ;;  %v288_v6 = vld [vmem:[#allocation2 + $0x8] sm:$0xff] }
 0x202   : > { %4061 = vmatpush2.bf16.msra.mxu1 %v5587_v25  ;;  %4021 = vmatprep.subr.bf16.mxu0 %v5592_v26 }
 0x203   : > { %4062 = vmatprep.subr.bf16.mxu1 %v5595_v9 }
 0x205   : > { %4022 = vmatpush2.bf16.msra.mxu0 %v5590_v11 }
 0x206   : > { %4063 = vmatpush2.bf16.msra.mxu1 %v5593_v12  ;;  %4023 = vmatprep.subr.bf16.mxu0 %v5598_v13 }
 0x207   : > { %4064 = vmatprep.subr.bf16.mxu1 %v5601_v14 }
 0x209   : > { %4024 = vmatpush2.bf16.msra.mxu0 %v5596_v15 }
 0x20a   : > { %4065 = vmatpush2.bf16.msra.mxu1 %v5599_v16  ;;  %4025 = vmatprep.subr.bf16.mxu0 %v5604_v19 }
 0x20b   : > { %4066 = vmatprep.subr.bf16.mxu1 %v5607_v46 }
 0x20d   : > { %4026 = vmatpush2.bf16.msra.mxu0 %v5602_v47 }
 0x20e   : > { %4067 = vmatpush2.bf16.msra.mxu1 %v5605_v57  ;;  %4027 = vmatprep.subr.bf16.mxu0 %v5610_v63 }
 0x20f   : > { %4068 = vmatprep.subr.bf16.mxu1 %v5613_v48 }
 0x211   : > { %4028 = vmatpush2.bf16.msra.mxu0 %v5608_v52 }
 0x212   : > { %4069 = vmatpush2.bf16.msra.mxu1 %v5611_v20  ;;  %4029 = vmatprep.subr.bf16.mxu0 %v5616_v58 }
 0x213   : > { %4070 = vmatprep.subr.bf16.mxu1 %v5619_v21 }
 0x215   : > { %4030 = vmatpush2.bf16.msra.mxu0 %v5614_v22 }
 0x216   : > { %4071 = vmatpush2.bf16.msra.mxu1 %v5617_v39 }
 0x218   : > { %v3787_v40 = vpop.f32.mrf.mxu0  ;;  %4032 = vmatmul.mubr.bf16.vlgmr.msra.gmra.mxu0 %v6040_v59 }
 0x219   : > { %v3828_v0 = vpop.f32.mrf.mxu1  ;;  %4073 = vmatmul.mubr.bf16.vlgmr.msra.gmra.mxu1 %v6044_v60 }
 0x21a   : > { %v3829_v27 = vadd.f32 %v3828_v0, %v3787_v40  ;;  %v3789_v28 = vpop.f32.mrf.mxu0 }
 0x21b   : > { %v3830_v29 = vpop.f32.mrf.mxu1 }
 0x21c   : > { %v3831_v30 = vadd.f32 %v3830_v29, %v3789_v28  ;;  %v3791_v31 = vpop.f32.mrf.mxu0 }
 0x21d   : > { %v3832_v32 = vpop.f32.mrf.mxu1 }
 0x21e   : > { %v3792_v33 = vpop.f32.mrf.mxu0 }
 0x21f   : > { %v3833_v23 = vpop.f32.mrf.mxu1 }
 0x258   : > { %v3869_v24 = vpop.f32.mrf.mxu0 }
 0x259   : > { %v3910_v34 = vpop.f32.mrf.mxu1  ;;  %v3870_v35 = vadd.f32 %v3869_v24, %v3829_v27 }
 0x25a   : > { %v3871_v36 = vpop.f32.mrf.mxu0 }
 0x25b   : > { %v3912_v43 = vpop.f32.mrf.mxu1  ;;  %v3911_v44 = vadd.f32 %v3910_v34, %v3870_v35  ;;  %v3872_v45 = vadd.f32 %v3871_v36, %v3831_v30 }
 0x25c   : > { %v3873_v7 = vpop.f32.mrf.mxu0 }
 0x25d   : > { %v3914_v8 = vpop.f32.mrf.mxu1  ;;  %v3913_v59 = vadd.f32 %v3912_v43, %v3872_v45 }
 0x25e   : > { %v3874_v3 = vpop.f32.mrf.mxu0 }
 0x25f   : > { %v3915_v60 = vpop.f32.mrf.mxu1 }
 0x298   : > { %v3951_v49 = vpop.f32.mrf.mxu0 }
 0x299   : > { %v3992_v50 = vpop.f32.mrf.mxu1  ;;  %v3952_v55 = vadd.f32 %v3951_v49, %v3911_v44 }
 0x29a   : > { %v3953_v51 = vpop.f32.mrf.mxu0 }
 0x29b   : > { %v3994_v53 = vpop.f32.mrf.mxu1  ;;  %v3954_v56 = vadd.f32 %v3953_v51, %v3913_v59  ;;  %v3993_v61 = vadd.f32 %v3992_v50, %v3952_v55 }
 0x29c   : > { %v3955_v37 = vpop.f32.mrf.mxu0 }
 0x29d   : > { %v3996_v38 = vpop.f32.mrf.mxu1  ;;  %v3995_v2 = vadd.f32 %v3994_v53, %v3954_v56 }
 0x29e   : > { %v3956_v10 = vpop.f32.mrf.mxu0 }
 0x29f   : > { %v3997_v54 = vpop.f32.mrf.mxu1 }
 0x2d8   : > { %v4033_v62 = vpop.f32.mrf.mxu0 }
 0x2d9   : > { %v4074_v1 = vpop.f32.mrf.mxu1  ;;  %v4034_v17 = vadd.f32 %v4033_v62, %v3993_v61 }
 0x2da   : > { %v4035_v41 = vpop.f32.mrf.mxu0 }
 0x2db   : > { %v4076_v42 = vpop.f32.mrf.mxu1  ;;  %v4075_v4 = vadd.f32 %v4074_v1, %v4034_v17  ;;  %v4036_v5 = vadd.f32 %v4035_v41, %v3995_v2 }
 0x2dc   : > { %v4037_v25 = vpop.f32.mrf.mxu0 }
 0x2dd   : > { %v4078_v26 = vpop.f32.mrf.mxu1  ;;  %v4083_v9 = vadd.f32 %v4075_v4, %v287_v18  ;;  %v4077_v11 = vadd.f32 %v4076_v42, %v4036_v5  ;;  %4092 = sbr.rel (%p4801_p7) target bundleno = 753 (0x2f1), region = 40 }
 0x2de   : > { %v4038_v12 = vpop.f32.mrf.mxu0 }
 0x2df   : > { %v4079_v13 = vpop.f32.mrf.mxu1  ;;  %4087 = vst [vmem:[#allocation2 + $0x18] sm:$0xff] %v4083_v9  ;;  %v4084_v14 = vadd.f32 %v4077_v11, %v288_v6 }
 0x2e1   : > { %4088 = vst [vmem:[#allocation2 + $0x8] sm:$0xff] %v4084_v14 }
 0x2e2   : > { %v4099_v15 = vlaneseq  ;;  %v4097_v19 = vld [vmem:[%s6363_s2] sm:$0xf]  ;;  %v4093_v46 = vld [vmem:[#allocation2 + $0x10] sm:$0xff] }
 0x2e3   : > { %v4094_v52 = vld [vmem:[#allocation2] sm:$0xff] }
 0x2e4   : > { %v4100_v16 = vshrl.u32 %v4099_v15, 7 }
 0x2e6   : > { %v4101_v47 = vsub.s32 0, %v4100_v16  ;;  %v4105_v57 = vsub.s32 1, %v4100_v16  ;;  %v4109_v63 = vsub.s32 2, %v4100_v16  ;;  %v4113_v48 = vsub.s32 3, %v4100_v16  ;;  %v4095_v20 = vld [vmem:[#allocation2 + $0x18] sm:$0xff] }
 0x2e8   : > { %v4096_v58 = vld [vmem:[#allocation2 + $0x8] sm:$0xff]  ;;  %v4102_v21 = vrot.slane %v4097_v19, %v4101_v47  ;;  %v4106_v22 = vrot.slane %v4097_v19, %v4105_v57  ;;  %v4110_v39 = vrot.slane %v4097_v19, %v4109_v63  ;;  %v4114_v40 = vrot.slane %v4097_v19, %v4113_v48 }
 0x2ea   : > { %v4119_v0 = vadd.f32 %v4102_v21, %v4093_v46  ;;  %v4120_v27 = vadd.f32 %v4106_v22, %v4094_v52  ;;  %v4121_v28 = vadd.f32 %v4110_v39, %v4095_v20  ;;  %v4122_v29 = vadd.f32 %v4114_v40, %v4096_v58 }
 0x2ec   : > { %v4123_v30 = vmax.f32 %v4119_v0, 0.0  ;;  %v4124_v31 = vmax.f32 %v4120_v27, 0.0  ;;  %v4125_v32 = vmax.f32 %v4121_v28, 0.0  ;;  %v4126_v33 = vmax.f32 %v4122_v29, 0.0 }
 0x2ee   : > { %v4809_v23 = vpack.c.bf16 %v4124_v31, %v4123_v30  ;;  %v4810_v24 = vpack.c.bf16 %v4126_v33, %v4125_v32 }
 0x2f0   : > { %4143 = vst [vmem:[%s6364_s3] sm:$0xff] %v4809_v23  ;;  %4144 = vst [vmem:[%s6364_s3 + $0x8] sm:$0xff] %v4810_v24 }
 0x2f1 PF: > { %s13_s14 = sadd.s32 1, %s5642_s14   ;;  %s6365_s12 = smov %s5638_s13 }
 0x2f2   : > { %p10_p8 = scmp.ge.s32.totalorder %s13_s14, 4   ;;  %s6366_s13 = smov %s6368_s15 }
 0x2f4   :  { %12 = sbr.rel (!%p10_p8) target bundleno = 2 (0x2), region = 76 }

// kernel: vae_forward.27
= control target key start
LH: loop header
LB: loop body
LE: loop exit
PB: predicated region body
PF: predicated region fallthrough
CT: control target
= control target key end

     0   :  { %s844_s12 = smov 0   ;;  %s846_s13 = smov 0   ;;  %s933_s0 = inlined_call_operand.vmem [shape: bf16[8,64], index: 0, kind: input, shape index: {}]   ;;  %s934_s1 = inlined_call_operand.vmem [shape: bf16[64,2048], index: 1, kind: input, shape index: {}]   ;;  %s935_s2 = inlined_call_operand.vmem [shape: f32[1,2048], index: 2, kind: input, shape index: {}]   ;;  %s936_s3 = inlined_call_operand.vmem [shape: bf16[8,2048], index: 3, kind: output, shape index: {}]  }
   0x1   :  { %s848_s14 = smov 0   ;;  %s850_s15 = smov 0  }
   0x2   :  { %s852_s16 = smov 0  }
   0x3 LB: > { %s28_s17 = sadd.s32 1, %s817_s15  ;;  %p76_p1 = scmp.ne.s32.totalorder %s809_s13, %s805_s12  ;;  %s821_s16 = sphi %s852_s16, %s13_s16   ;;  %s817_s15 = sphi %s850_s15, %s940_s15   ;;  %s813_s14 = sphi %s848_s14, %s939_s14   ;;  %s809_s13 = sphi %s846_s13, %s938_s13   ;;  %s805_s12 = sphi %s844_s12, %s937_s12  }
   0x4   : > { %p30_p0 = scmp.ge.s32.totalorder %s28_s17, 4  ;;  %p77_p2 = scmp.eq.s32.totalorder %s821_s16, 0 }
   0x5   : > { %s69_s19 = sadd.s32 1, %s809_s13  ;;  %p684_p5 = scmp.ge.s32.totalorder %s821_s16, 4 }
   0x6   : > { %s942_s17 = smov (%p30_p0, %s28_s17), 0  ;;  %p78_p3 = por %p77_p2, %p76_p1 }
   0x7   : > { %s65_s18 = ssub.s32 %s817_s15, %s942_s17  ;;  %166 = sbr.rel (%p684_p5) target bundleno = 24 (0x18), region = 20 }
   0x8   : > { %p67_p4 = scmp.eq.s32.totalorder %s65_s18, 0 }
   0xa   : > { %s879_s20 = scalar_select %p67_p4, %s809_s13, %s69_s19  }
   0xc   : > { %169 = sbr.rel (!%p78_p3) target bundleno = 24 (0x18), region = 24  ;;  %s171_s21 = sand.u32 (%p78_p3), 1, %s809_s13  }
   0xd   : > { %s715_s22 = sshll.u32 (%p78_p3), %s817_s15, 4  ;;  %s685_s23 = sshll.u32 (%p78_p3), %s171_s21, 7 }
   0xe   : > { %s887_s26 = scalar_lea.vmem (%p78_p3), %s934_s1, %s715_s22  ;;  %s173_s27 = scalar_lea.vmem (%p78_p3), [#allocation3], %s685_s23 }
   0xf   : > { %v192_v0 = vld [vmem:[%s887_s26] sm:$0xff] (%p78_p3)  ;;  %v194_v1 = vld [vmem:[%s887_s26 + $0x8] sm:$0xff] (%p78_p3) }
  0x10   : > { %v196_v2 = vld [vmem:[%s887_s26 + $0x40] sm:$0xff] (%p78_p3)  ;;  %193 = vst [vmem:[%s173_s27] sm:$0xff] (%p78_p3), %v192_v0  ;;  %195 = vst [vmem:[%s173_s27 + $0x8] sm:$0xff] (%p78_p3), %v194_v1  ;;  %v198_v3 = vld [vmem:[%s887_s26 + $0x48] sm:$0xff] (%p78_p3) }
  0x11   : > { %197 = vst [vmem:[%s173_s27 + $0x10] sm:$0xff] %v196_v2  ;;  %v200_v4 = vld [vmem:[%s887_s26 + $0x80] sm:$0xff]  ;;  %v202_v5 = vld [vmem:[%s887_s26 + $0x88] sm:$0xff]  ;;  %199 = vst [vmem:[%s173_s27 + $0x18] sm:$0xff] %v198_v3 }
  0x12   : > { %201 = vst [vmem:[%s173_s27 + $0x20] sm:$0xff] %v200_v4  ;;  %203 = vst [vmem:[%s173_s27 + $0x28] sm:$0xff] %v202_v5  ;;  %v204_v6 = vld [vmem:[%s887_s26 + $0xc0] sm:$0xff]  ;;  %v206_v7 = vld [vmem:[%s887_s26 + $0xc8] sm:$0xff] }
  0x13   : > { %v208_v8 = vld [vmem:[%s887_s26 + $0x100] sm:$0xff]  ;;  %205 = vst [vmem:[%s173_s27 + $0x30] sm:$0xff] %v204_v6  ;;  %207 = vst [vmem:[%s173_s27 + $0x38] sm:$0xff] %v206_v7  ;;  %v210_v9 = vld [vmem:[%s887_s26 + $0x108] sm:$0xff] }
  0x14   : > { %209 = vst [vmem:[%s173_s27 + $0x40] sm:$0xff] %v208_v8  ;;  %v212_v10 = vld [vmem:[%s887_s26 + $0x140] sm:$0xff]  ;;  %v214_v11 = vld [vmem:[%s887_s26 + $0x148] sm:$0xff]  ;;  %211 = vst [vmem:[%s173_s27 + $0x48] sm:$0xff] %v210_v9 }
  0x15   : > { %213 = vst [vmem:[%s173_s27 + $0x50] sm:$0xff] %v212_v10  ;;  %215 = vst [vmem:[%s173_s27 + $0x58] sm:$0xff] %v214_v11  ;;  %v216_v12 = vld [vmem:[%s887_s26 + $0x180] sm:$0xff]  ;;  %v218_v13 = vld [vmem:[%s887_s26 + $0x188] sm:$0xff] }
  0x16   : > { %v220_v14 = vld [vmem:[%s887_s26 + $0x1c0] sm:$0xff]  ;;  %217 = vst [vmem:[%s173_s27 + $0x60] sm:$0xff] %v216_v12  ;;  %219 = vst [vmem:[%s173_s27 + $0x68] sm:$0xff] %v218_v13  ;;  %v222_v15 = vld [vmem:[%s887_s26 + $0x1c8] sm:$0xff] }
  0x17   : > { %221 = vst [vmem:[%s173_s27 + $0x70] sm:$0xff] %v220_v14  ;;  %223 = vst [vmem:[%s173_s27 + $0x78] sm:$0xff] %v222_v15 }
  0x18 PF: > { %p688_p6 = scmp.ge.s32.totalorder %s821_s16, 1  ;;  %p236_p7 = scmp.lt.s32.totalorder %s821_s16, 5 }
  0x1a   : > { %p237_p8 = pnand %p688_p6, %p236_p7 }
  0x1b   : > { %s243_s28 = sand.u32 (!%p237_p8), 1, %s805_s12   ;;  %s690_s6 = sshll.u32 (!%p237_p8), %s813_s14, 2 }
  0x1c   : > { %240 = sbr.rel (%p237_p8) target bundleno = 251 (0xfb), region = 51  ;;  %s689_s29 = sshll.u32 (!%p237_p8), %s243_s28, 7 }
  0x1d   : > { %s245_s30 = scalar_lea.vmem (!%p237_p8), [#allocation3], %s689_s29  ;;  %p291_p9 = scmp.lt.s32.totalorder (!%p237_p8), %s690_s6, 15 }
  0x21   : > { %v823_v16 = vmov 0   ;;  %v759_v17 = vld [vmem:[%s245_s30 + $0x64] ss:$16 sps:$4 sm:$0xff]   ;;  %v761_v18 = vld [vmem:[%s245_s30 + $0x6c] ss:$16 sps:$4 sm:$0xff]   ;;  %vm415_vm0 = vcmask 523264   ;;  %v518_v34 = vlaneseq }
  0x22   : > { %451 = vmatprep.mubr.bf16.mxu0 %v823_v16  ;;  %492 = vmatprep.mubr.bf16.mxu1 %v823_v16  ;;  %v763_v19 = vld [vmem:[%s245_s30 + $0x60] ss:$16 sps:$4 sm:$0xff]   ;;  %v764_v20 = vld [vmem:[%s245_s30 + $0x68] ss:$16 sps:$4 sm:$0xff]   ;;  %v765_v21 = vld [vmem:[%s245_s30 + $0x44] ss:$16 sps:$4 sm:$0xff]  }
  0x23   : > { %427 = vmatprep.subr.bf16.mxu0 %v759_v17  ;;  %468 = vmatprep.subr.bf16.mxu1 %v761_v18  ;;  %v767_v22 = vld [vmem:[%s245_s30 + $0x4c] ss:$16 sps:$4 sm:$0xff]   ;;  %v769_v23 = vld [vmem:[%s245_s30 + $0x40] ss:$16 sps:$4 sm:$0xff]   ;;  %v770_v24 = vld [vmem:[%s245_s30 + $0x48] ss:$16 sps:$4 sm:$0xff]  }
  0x24   : > { %428 = vmatpush1.bf16.msra.mxu0 %v763_v19  ;;  %469 = vmatpush1.bf16.msra.mxu1 %v764_v20  ;;  %v771_v25 = vld [vmem:[%s245_s30 + $0x24] ss:$16 sps:$4 sm:$0xff]   ;;  %v773_v26 = vld [vmem:[%s245_s30 + $0x2c] ss:$16 sps:$4 sm:$0xff]   ;;  %v775_v27 = vld [vmem:[%s245_s30 + $0x20] ss:$16 sps:$4 sm:$0xff]  }
  0x25   : > { %429 = vmatprep.subr.bf16.mxu0 %v765_v21  ;;  %470 = vmatprep.subr.bf16.mxu1 %v767_v22  ;;  %v776_v28 = vld [vmem:[%s245_s30 + $0x28] ss:$16 sps:$4 sm:$0xff]   ;;  %v777_v29 = vld [vmem:[%s245_s30 + $0x4] ss:$16 sps:$4 sm:$0xff]   ;;  %v779_v30 = vld [vmem:[%s245_s30 + $0xc] ss:$16 sps:$4 sm:$0xff]  }
  0x26   : > { %v781_v31 = vld [vmem:[%s245_s30] ss:$16 sps:$4 sm:$0xff]   ;;  %v782_v32 = vld [vmem:[%s245_s30 + $0x8] ss:$16 sps:$4 sm:$0xff]   ;;  %s944_s6 = smov (!%p291_p9, %s690_s6), 15  ;;  %v519_v35 = vshrl.u32 %v518_v34, 7 }
  0x27   : > { %v318_v33 = vld [vmem:[%s933_s0] sm:$0xf]  ;;  %s293_s9 = scalar_lea.vmem %s935_s2, %s944_s6  ;;  %s692_s10 = sshll.u32 %s944_s6, 2 }
  0x28   : > { %430 = vmatpush1.bf16.msra.mxu0 %v769_v23  ;;  %471 = vmatpush1.bf16.msra.mxu1 %v770_v24  ;;  %v520_v36 = vsub.s32 0, %v519_v35  ;;  %v528_v37 = vsub.s32 2, %v519_v35  ;;  %v524_v38 = vsub.s32 1, %v519_v35  ;;  %v532_v39 = vsub.s32 3, %v519_v35  ;;  %v516_v40 = vld [vmem:[%s293_s9] sm:$0xf]  ;;  %s303_s14 = scalar_lea.vmem %s936_s3, %s692_s10 }
  0x29   : > { %431 = vmatprep.subr.bf16.mxu0 %v771_v25  ;;  %472 = vmatprep.subr.bf16.mxu1 %v773_v26 }
  0x2a   : > { %v521_v41 = vrot.slane %v516_v40, %v520_v36  ;;  %v529_v42 = vrot.slane %v516_v40, %v528_v37  ;;  %v525_v43 = vrot.slane %v516_v40, %v524_v38  ;;  %v533_v44 = vrot.slane %v516_v40, %v532_v39 }
  0x2c   : > { %432 = vmatpush1.bf16.msra.mxu0 %v775_v27  ;;  %473 = vmatpush1.bf16.msra.mxu1 %v776_v28 }
  0x2d   : > { %433 = vmatprep.subr.bf16.mxu0 %v777_v29  ;;  %474 = vmatprep.subr.bf16.mxu1 %v779_v30 }
  0x30   : > { %434 = vmatpush1.bf16.msra.mxu0 %v781_v31  ;;  %475 = vmatpush1.bf16.msra.mxu1 %v782_v32 }
  0x33   : > { %709 = vmatmul.mubr.msk.bf16.vlgmr.msra.gmra.mxu0 %vm415_vm0, %v318_v33  ;;  %710 = vmatmul.mubr.msk.bf16.vlgmr.msra.gmra.mxu1 %vm415_vm0, %v318_v33 }
  0xf3   : > { %v453_v45 = vpop.f32.mrf.mxu0  ;;  %v494_v46 = vpop.f32.mrf.mxu1 }
  0xf4   : > { %v538_v49 = vadd.f32 %v521_v41, %v453_v45  ;;  %v540_v50 = vadd.f32 %v529_v42, %v494_v46 }
  0xf5   : > { %v455_v47 = vpop.f32.mrf.mxu0  ;;  %v496_v48 = vpop.f32.mrf.mxu1 }
  0xf6   : > { %v539_v51 = vadd.f32 %v525_v43, %v455_v47  ;;  %v541_v52 = vadd.f32 %v533_v44, %v496_v48 }
  0xf7   : > { %v457_v53 = vpop.f32.mrf.mxu0  ;;  %v498_v54 = vpop.f32.mrf.mxu1 }
  0xf8   : > { %v716_v55 = vpack.c.bf16 %v539_v51, %v538_v49  ;;  %v717_v56 = vpack.c.bf16 %v541_v52, %v540_v50 }
  0xf9   : > { %v458_v57 = vpop.f32.mrf.mxu0  ;;  %v499_v58 = vpop.f32.mrf.mxu1 }
  0xfa   : > { %558 = vst [vmem:[%s303_s14] sm:$0xff] %v716_v55  ;;  %559 = vst [vmem:[%s303_s14 + $0x8] sm:$0xff] %v717_v56 }
  0xfb PF: > { %s13_s16 = sadd.s32 1, %s821_s16   ;;  %s937_s12 = smov %s809_s13 }
  0xfc   : > { %p10_p10 = scmp.ge.s32.totalorder %s13_s16, 6   ;;  %s938_s13 = smov %s879_s20 }
  0xfd   : > { %s939_s14 = smov %s817_s15  ;;  %s940_s15 = smov %s942_s17 }
  0xfe   :  { %12 = sbr.rel (!%p10_p10) target bundleno = 3 (0x3), region = 104 }

// kernel: vae_forward.28
= control target key start
LH: loop header
LB: loop body
LE: loop exit
PB: predicated region body
PF: predicated region fallthrough
CT: control target
= control target key end

     0   :  { %s3516_s1 = inlined_call_operand.vmem [shape: bf16[2048,256], index: 1, kind: input, shape index: {}]   ;;  %s3517_s0 = inlined_call_operand.vmem [shape: bf16[8,2048], index: 0, kind: input, shape index: {}]   ;;  %s3518_s2 = inlined_call_operand.vmem [shape: f32[1,256], index: 2, kind: input, shape index: {}]   ;;  %s3519_s3 = inlined_call_operand.vmem [shape: bf16[8,256], index: 3, kind: output, shape index: {}]  }
   0x1   :  { %v2262_v0 = vld [vmem:[%s3516_s1 + $0x74] ss:$8 sps:$4 sm:$0xff]   ;;  %v2266_v2 = vld [vmem:[%s3516_s1 + $0x70] ss:$8 sps:$4 sm:$0xff]   ;;  %v2268_v4 = vld [vmem:[%s3516_s1 + $0x64] ss:$8 sps:$4 sm:$0xff]  }
   0x2   :  { %v2264_v1 = vld [vmem:[%s3516_s1 + $0x174] ss:$8 sps:$4 sm:$0xff]   ;;  %1622 = vmatprep.subr.bf16.mxu0 %v2262_v0  ;;  %v2267_v3 = vld [vmem:[%s3516_s1 + $0x170] ss:$8 sps:$4 sm:$0xff]   ;;  %v2270_v5 = vld [vmem:[%s3516_s1 + $0x164] ss:$8 sps:$4 sm:$0xff]  }
   0x3   :  { %1663 = vmatprep.subr.bf16.mxu1 %v2264_v1  ;;  %1623 = vmatpush1.bf16.msra.mxu0 %v2266_v2  ;;  %v2272_v6 = vld [vmem:[%s3516_s1 + $0x60] ss:$8 sps:$4 sm:$0xff]   ;;  %v2274_v8 = vld [vmem:[%s3516_s1 + $0x54] ss:$8 sps:$4 sm:$0xff]   ;;  %v2278_v10 = vld [vmem:[%s3516_s1 + $0x50] ss:$8 sps:$4 sm:$0xff]  }
   0x4   :  { %1664 = vmatpush1.bf16.msra.mxu1 %v2267_v3  ;;  %1624 = vmatprep.subr.bf16.mxu0 %v2268_v4  ;;  %v2273_v7 = vld [vmem:[%s3516_s1 + $0x160] ss:$8 sps:$4 sm:$0xff]   ;;  %v2276_v9 = vld [vmem:[%s3516_s1 + $0x154] ss:$8 sps:$4 sm:$0xff]   ;;  %v2279_v11 = vld [vmem:[%s3516_s1 + $0x150] ss:$8 sps:$4 sm:$0xff]  }
   0x5   :  { %1665 = vmatprep.subr.bf16.mxu1 %v2270_v5  ;;  %v2280_v12 = vld [vmem:[%s3516_s1 + $0x44] ss:$8 sps:$4 sm:$0xff]   ;;  %v2284_v14 = vld [vmem:[%s3516_s1 + $0x40] ss:$8 sps:$4 sm:$0xff]   ;;  %v2286_v16 = vld [vmem:[%s3516_s1 + $0x34] ss:$8 sps:$4 sm:$0xff]  }
   0x6   :  { %v2282_v13 = vld [vmem:[%s3516_s1 + $0x144] ss:$8 sps:$4 sm:$0xff]   ;;  %v2285_v15 = vld [vmem:[%s3516_s1 + $0x140] ss:$8 sps:$4 sm:$0xff]   ;;  %v2288_v17 = vld [vmem:[%s3516_s1 + $0x134] ss:$8 sps:$4 sm:$0xff]  }
   0x7   :  { %1625 = vmatpush1.bf16.msra.mxu0 %v2272_v6  ;;  %v2290_v18 = vld [vmem:[%s3516_s1 + $0x30] ss:$8 sps:$4 sm:$0xff]   ;;  %v2292_v20 = vld [vmem:[%s3516_s1 + $0x24] ss:$8 sps:$4 sm:$0xff]   ;;  %v2296_v22 = vld [vmem:[%s3516_s1 + $0x20] ss:$8 sps:$4 sm:$0xff]  }
   0x8   :  { %1666 = vmatpush1.bf16.msra.mxu1 %v2273_v7  ;;  %1626 = vmatprep.subr.bf16.mxu0 %v2274_v8  ;;  %v2291_v19 = vld [vmem:[%s3516_s1 + $0x130] ss:$8 sps:$4 sm:$0xff]   ;;  %v2294_v21 = vld [vmem:[%s3516_s1 + $0x124] ss:$8 sps:$4 sm:$0xff]   ;;  %v2297_v23 = vld [vmem:[%s3516_s1 + $0x120] ss:$8 sps:$4 sm:$0xff]  }
   0x9   :  { %1667 = vmatprep.subr.bf16.mxu1 %v2276_v9  ;;  %v2298_v24 = vld [vmem:[%s3516_s1 + $0x14] ss:$8 sps:$4 sm:$0xff]   ;;  %v2302_v26 = vld [vmem:[%s3516_s1 + $0x10] ss:$8 sps:$4 sm:$0xff]   ;;  %v2304_v28 = vld [vmem:[%s3516_s1 + $0x4] ss:$8 sps:$4 sm:$0xff]  }
   0xa   :  { %v2300_v25 = vld [vmem:[%s3516_s1 + $0x114] ss:$8 sps:$4 sm:$0xff]   ;;  %v2303_v27 = vld [vmem:[%s3516_s1 + $0x110] ss:$8 sps:$4 sm:$0xff]   ;;  %v2306_v29 = vld [vmem:[%s3516_s1 + $0x104] ss:$8 sps:$4 sm:$0xff]  }
   0xb   :  { %1627 = vmatpush1.bf16.msra.mxu0 %v2278_v10  ;;  %v2308_v30 = vld [vmem:[%s3516_s1] ss:$8 sps:$4 sm:$0xff]   ;;  %v2310_v32 = vld [vmem:[%s3516_s1 + $0xf4] ss:$8 sps:$4 sm:$0xff]   ;;  %v2314_v34 = vld [vmem:[%s3516_s1 + $0xf0] ss:$8 sps:$4 sm:$0xff]  }
   0xc   :  { %1668 = vmatpush1.bf16.msra.mxu1 %v2279_v11  ;;  %1628 = vmatprep.subr.bf16.mxu0 %v2280_v12  ;;  %v2309_v31 = vld [vmem:[%s3516_s1 + $0x100] ss:$8 sps:$4 sm:$0xff]   ;;  %v2312_v33 = vld [vmem:[%s3516_s1 + $0x1f4] ss:$8 sps:$4 sm:$0xff]   ;;  %v2315_v35 = vld [vmem:[%s3516_s1 + $0x1f0] ss:$8 sps:$4 sm:$0xff]  }
   0xd   :  { %1669 = vmatprep.subr.bf16.mxu1 %v2282_v13  ;;  %v2316_v36 = vld [vmem:[%s3516_s1 + $0xe4] ss:$8 sps:$4 sm:$0xff]   ;;  %v2320_v38 = vld [vmem:[%s3516_s1 + $0xe0] ss:$8 sps:$4 sm:$0xff]   ;;  %v2322_v40 = vld [vmem:[%s3516_s1 + $0xd4] ss:$8 sps:$4 sm:$0xff]  }
   0xe   :  { %v2318_v37 = vld [vmem:[%s3516_s1 + $0x1e4] ss:$8 sps:$4 sm:$0xff]   ;;  %v2321_v39 = vld [vmem:[%s3516_s1 + $0x1e0] ss:$8 sps:$4 sm:$0xff]   ;;  %v2324_v41 = vld [vmem:[%s3516_s1 + $0x1d4] ss:$8 sps:$4 sm:$0xff]  }
   0xf   :  { %1629 = vmatpush1.bf16.msra.mxu0 %v2284_v14  ;;  %v2326_v42 = vld [vmem:[%s3516_s1 + $0xd0] ss:$8 sps:$4 sm:$0xff]   ;;  %v2328_v44 = vld [vmem:[%s3516_s1 + $0xc4] ss:$8 sps:$4 sm:$0xff]   ;;  %v2332_v49 = vld [vmem:[%s3516_s1 + $0xc0] ss:$8 sps:$4 sm:$0xff]  }
  0x10   :  { %1670 = vmatpush1.bf16.msra.mxu1 %v2285_v15  ;;  %1630 = vmatprep.subr.bf16.mxu0 %v2286_v16  ;;  %v2327_v43 = vld [vmem:[%s3516_s1 + $0x1d0] ss:$8 sps:$4 sm:$0xff]   ;;  %v2330_v45 = vld [vmem:[%s3516_s1 + $0x1c4] ss:$8 sps:$4 sm:$0xff]   ;;  %v2333_v50 = vld [vmem:[%s3516_s1 + $0x1c0] ss:$8 sps:$4 sm:$0xff]  }
  0x11   :  { %1671 = vmatprep.subr.bf16.mxu1 %v2288_v17  ;;  %v22_v46 = vld [vmem:[%s3517_s0] sm:$0xff]  ;;  %v23_v48 = vld [vmem:[%s3517_s0 + $0x8] sm:$0xff]  ;;  %v2334_v52 = vld [vmem:[%s3516_s1 + $0xb4] ss:$8 sps:$4 sm:$0xff]  }
  0x12   :  { %v1989_v47 = vcombine.high %v22_v46, %v22_v46  ;;  %v1991_v51 = vcombine.high %v23_v48, %v23_v48  ;;  %v2336_v53 = vld [vmem:[%s3516_s1 + $0x1b4] ss:$8 sps:$4 sm:$0xff]   ;;  %v2338_v54 = vld [vmem:[%s3516_s1 + $0xb0] ss:$8 sps:$4 sm:$0xff]   ;;  %v2340_v56 = vld [vmem:[%s3516_s1 + $0xa4] ss:$8 sps:$4 sm:$0xff]   ;;  %v1988_v6 = vcombine.low %v22_v46, %v22_v46  ;;  %v1990_v7 = vcombine.low %v23_v48, %v23_v48 }
  0x13   :  { %1631 = vmatpush1.bf16.msra.mxu0 %v2290_v18  ;;  %v2339_v55 = vld [vmem:[%s3516_s1 + $0x1b0] ss:$8 sps:$4 sm:$0xff]   ;;  %v2342_v57 = vld [vmem:[%s3516_s1 + $0x1a4] ss:$8 sps:$4 sm:$0xff]   ;;  %v2344_v58 = vld [vmem:[%s3516_s1 + $0xa0] ss:$8 sps:$4 sm:$0xff]  }
  0x14   :  { %1672 = vmatpush1.bf16.msra.mxu1 %v2291_v19  ;;  %1632 = vmatprep.subr.bf16.mxu0 %v2292_v20  ;;  %v2345_v59 = vld [vmem:[%s3516_s1 + $0x1a0] ss:$8 sps:$4 sm:$0xff]   ;;  %v2346_v60 = vld [vmem:[%s3516_s1 + $0x94] ss:$8 sps:$4 sm:$0xff]   ;;  %v2350_v62 = vld [vmem:[%s3516_s1 + $0x90] ss:$8 sps:$4 sm:$0xff]  }
  0x15   :  { %1673 = vmatprep.subr.bf16.mxu1 %v2294_v21  ;;  %1654 = vmatprep.mubr.bf16.mxu0 %v1989_v47  ;;  %v2348_v61 = vld [vmem:[%s3516_s1 + $0x194] ss:$8 sps:$4 sm:$0xff]   ;;  %v2351_v63 = vld [vmem:[%s3516_s1 + $0x190] ss:$8 sps:$4 sm:$0xff]   ;;  %v2352_v0 = vld [vmem:[%s3516_s1 + $0x84] ss:$8 sps:$4 sm:$0xff]  }
  0x16   :  { %1695 = vmatprep.mubr.bf16.mxu1 %v1991_v51  ;;  %v2354_v1 = vld [vmem:[%s3516_s1 + $0x184] ss:$8 sps:$4 sm:$0xff]   ;;  %v2356_v2 = vld [vmem:[%s3516_s1 + $0x80] ss:$8 sps:$4 sm:$0xff]   ;;  %v2364_v4 = vld [vmem:[%s3516_s1 + $0x274] ss:$8 sps:$4 sm:$0xff]  }
  0x17   :  { %1633 = vmatpush1.bf16.msra.mxu0 %v2296_v22  ;;  %v2357_v3 = vld [vmem:[%s3516_s1 + $0x180] ss:$8 sps:$4 sm:$0xff]   ;;  %v2367_v5 = vld [vmem:[%s3516_s1 + $0x374] ss:$8 sps:$4 sm:$0xff]   ;;  %v2362_v8 = vld [vmem:[%s3516_s1 + $0x270] ss:$8 sps:$4 sm:$0xff]  }
  0x18   :  { %1674 = vmatpush1.bf16.msra.mxu1 %v2297_v23  ;;  %1634 = vmatprep.subr.bf16.mxu0 %v2298_v24  ;;  %v2365_v9 = vld [vmem:[%s3516_s1 + $0x370] ss:$8 sps:$4 sm:$0xff]   ;;  %v2370_v10 = vld [vmem:[%s3516_s1 + $0x264] ss:$8 sps:$4 sm:$0xff]   ;;  %v2368_v12 = vld [vmem:[%s3516_s1 + $0x260] ss:$8 sps:$4 sm:$0xff]  }
  0x19   :  { %1675 = vmatprep.subr.bf16.mxu1 %v2300_v25  ;;  %v2373_v11 = vld [vmem:[%s3516_s1 + $0x364] ss:$8 sps:$4 sm:$0xff]   ;;  %v2371_v13 = vld [vmem:[%s3516_s1 + $0x360] ss:$8 sps:$4 sm:$0xff]   ;;  %v2376_v14 = vld [vmem:[%s3516_s1 + $0x254] ss:$8 sps:$4 sm:$0xff]  }
  0x1a   :  { %v2379_v15 = vld [vmem:[%s3516_s1 + $0x354] ss:$8 sps:$4 sm:$0xff]   ;;  %v2374_v16 = vld [vmem:[%s3516_s1 + $0x250] ss:$8 sps:$4 sm:$0xff]   ;;  %v2382_v18 = vld [vmem:[%s3516_s1 + $0x244] ss:$8 sps:$4 sm:$0xff]  }
  0x1b   :  { %1635 = vmatpush1.bf16.msra.mxu0 %v2302_v26  ;;  %v2377_v17 = vld [vmem:[%s3516_s1 + $0x350] ss:$8 sps:$4 sm:$0xff]   ;;  %v2385_v19 = vld [vmem:[%s3516_s1 + $0x344] ss:$8 sps:$4 sm:$0xff]   ;;  %v2380_v20 = vld [vmem:[%s3516_s1 + $0x240] ss:$8 sps:$4 sm:$0xff]  }
  0x1c   :  { %1676 = vmatpush1.bf16.msra.mxu1 %v2303_v27  ;;  %1636 = vmatprep.subr.bf16.mxu0 %v2304_v28  ;;  %v2383_v21 = vld [vmem:[%s3516_s1 + $0x340] ss:$8 sps:$4 sm:$0xff]   ;;  %v2388_v22 = vld [vmem:[%s3516_s1 + $0x234] ss:$8 sps:$4 sm:$0xff]   ;;  %v2386_v24 = vld [vmem:[%s3516_s1 + $0x230] ss:$8 sps:$4 sm:$0xff]  }
  0x1d   :  { %1677 = vmatprep.subr.bf16.mxu1 %v2306_v29  ;;  %v2391_v23 = vld [vmem:[%s3516_s1 + $0x334] ss:$8 sps:$4 sm:$0xff]   ;;  %v2389_v25 = vld [vmem:[%s3516_s1 + $0x330] ss:$8 sps:$4 sm:$0xff]   ;;  %v2394_v26 = vld [vmem:[%s3516_s1 + $0x224] ss:$8 sps:$4 sm:$0xff]  }
  0x1e   :  { %v2397_v27 = vld [vmem:[%s3516_s1 + $0x324] ss:$8 sps:$4 sm:$0xff]   ;;  %v2392_v28 = vld [vmem:[%s3516_s1 + $0x220] ss:$8 sps:$4 sm:$0xff]   ;;  %v2427_v51 = vld [vmem:[%s3516_s1 + $0x3d4] ss:$8 sps:$4 sm:$0xff]  }
  0x1f   :  { %1637 = vmatpush1.bf16.msra.mxu0 %v2308_v30  ;;  %v2395_v29 = vld [vmem:[%s3516_s1 + $0x320] ss:$8 sps:$4 sm:$0xff]   ;;  %v2400_v30 = vld [vmem:[%s3516_s1 + $0x214] ss:$8 sps:$4 sm:$0xff]   ;;  %v2418_v46 = vld [vmem:[%s3516_s1 + $0x2e4] ss:$8 sps:$4 sm:$0xff]  }
  0x20   :  { %1678 = vmatpush1.bf16.msra.mxu1 %v2309_v31  ;;  %1638 = vmatprep.subr.bf16.mxu0 %v2310_v32  ;;  %v2403_v31 = vld [vmem:[%s3516_s1 + $0x314] ss:$8 sps:$4 sm:$0xff]   ;;  %v2421_v47 = vld [vmem:[%s3516_s1 + $0x3e4] ss:$8 sps:$4 sm:$0xff]   ;;  %v2416_v48 = vld [vmem:[%s3516_s1 + $0x2e0] ss:$8 sps:$4 sm:$0xff]  }
  0x21   :  { %1679 = vmatprep.subr.bf16.mxu1 %v2312_v33  ;;  %v2961_v32 = vld [vmem:[%s3517_s0 + $0x10] sm:$0xff]  ;;  %v2966_v33 = vld [vmem:[%s3517_s0 + $0x18] sm:$0xff] }
  0x23   :  { %1639 = vmatpush2.bf16.msra.mxu0 %v2314_v34  ;;  %v2398_v34 = vld [vmem:[%s3516_s1 + $0x210] ss:$8 sps:$4 sm:$0xff]  }
  0x24   :  { %1680 = vmatpush2.bf16.msra.mxu1 %v2315_v35  ;;  %1640 = vmatprep.subr.bf16.mxu0 %v2316_v36  ;;  %v2401_v35 = vld [vmem:[%s3516_s1 + $0x310] ss:$8 sps:$4 sm:$0xff]   ;;  %v1993_v36 = vcombine.high %v2961_v32, %v2961_v32 }
  0x25   :  { %1681 = vmatprep.subr.bf16.mxu1 %v2318_v37  ;;  %v1995_v37 = vcombine.high %v2966_v33, %v2966_v33 }
  0x27   :  { %1641 = vmatpush2.bf16.msra.mxu0 %v2320_v38  ;;  %v2406_v38 = vld [vmem:[%s3516_s1 + $0x204] ss:$8 sps:$4 sm:$0xff]  }
  0x28   :  { %1682 = vmatpush2.bf16.msra.mxu1 %v2321_v39  ;;  %1642 = vmatprep.subr.bf16.mxu0 %v2322_v40  ;;  %v2409_v39 = vld [vmem:[%s3516_s1 + $0x304] ss:$8 sps:$4 sm:$0xff]   ;;  %v2404_v40 = vld [vmem:[%s3516_s1 + $0x200] ss:$8 sps:$4 sm:$0xff]  }
  0x29   :  { %1683 = vmatprep.subr.bf16.mxu1 %v2324_v41  ;;  %v2407_v41 = vld [vmem:[%s3516_s1 + $0x300] ss:$8 sps:$4 sm:$0xff]  }
  0x2b   :  { %1643 = vmatpush2.bf16.msra.mxu0 %v2326_v42  ;;  %v2412_v42 = vld [vmem:[%s3516_s1 + $0x2f4] ss:$8 sps:$4 sm:$0xff]  }
  0x2c   :  { %1684 = vmatpush2.bf16.msra.mxu1 %v2327_v43  ;;  %1644 = vmatprep.subr.bf16.mxu0 %v2328_v44  ;;  %v2415_v43 = vld [vmem:[%s3516_s1 + $0x3f4] ss:$8 sps:$4 sm:$0xff]   ;;  %v2410_v44 = vld [vmem:[%s3516_s1 + $0x2f0] ss:$8 sps:$4 sm:$0xff]  }
  0x2d   :  { %1685 = vmatprep.subr.bf16.mxu1 %v2330_v45  ;;  %v2413_v45 = vld [vmem:[%s3516_s1 + $0x3f0] ss:$8 sps:$4 sm:$0xff]  }
  0x2f   :  { %1645 = vmatpush2.bf16.msra.mxu0 %v2332_v49  ;;  %v2419_v49 = vld [vmem:[%s3516_s1 + $0x3e0] ss:$8 sps:$4 sm:$0xff]  }
  0x30   :  { %1686 = vmatpush2.bf16.msra.mxu1 %v2333_v50  ;;  %1646 = vmatprep.subr.bf16.mxu0 %v2334_v52  ;;  %v2424_v50 = vld [vmem:[%s3516_s1 + $0x2d4] ss:$8 sps:$4 sm:$0xff]   ;;  %v2422_v52 = vld [vmem:[%s3516_s1 + $0x2d0] ss:$8 sps:$4 sm:$0xff]  }
  0x31   :  { %1687 = vmatprep.subr.bf16.mxu1 %v2336_v53  ;;  %v2425_v53 = vld [vmem:[%s3516_s1 + $0x3d0] ss:$8 sps:$4 sm:$0xff]  }
  0x33   :  { %1647 = vmatpush2.bf16.msra.mxu0 %v2338_v54  ;;  %v2430_v54 = vld [vmem:[%s3516_s1 + $0x2c4] ss:$8 sps:$4 sm:$0xff]  }
  0x34   :  { %1688 = vmatpush2.bf16.msra.mxu1 %v2339_v55  ;;  %1648 = vmatprep.subr.bf16.mxu0 %v2340_v56  ;;  %v2433_v55 = vld [vmem:[%s3516_s1 + $0x3c4] ss:$8 sps:$4 sm:$0xff]   ;;  %v2428_v56 = vld [vmem:[%s3516_s1 + $0x2c0] ss:$8 sps:$4 sm:$0xff]  }
  0x35   :  { %1689 = vmatprep.subr.bf16.mxu1 %v2342_v57  ;;  %v2431_v57 = vld [vmem:[%s3516_s1 + $0x3c0] ss:$8 sps:$4 sm:$0xff]  }
  0x37   :  { %1649 = vmatpush2.bf16.msra.mxu0 %v2344_v58  ;;  %v2436_v58 = vld [vmem:[%s3516_s1 + $0x2b4] ss:$8 sps:$4 sm:$0xff]  }
  0x38   :  { %1690 = vmatpush2.bf16.msra.mxu1 %v2345_v59  ;;  %1650 = vmatprep.subr.bf16.mxu0 %v2346_v60  ;;  %v2439_v59 = vld [vmem:[%s3516_s1 + $0x3b4] ss:$8 sps:$4 sm:$0xff]   ;;  %v2434_v60 = vld [vmem:[%s3516_s1 + $0x2b0] ss:$8 sps:$4 sm:$0xff]  }
  0x39   :  { %1691 = vmatprep.subr.bf16.mxu1 %v2348_v61  ;;  %v2437_v61 = vld [vmem:[%s3516_s1 + $0x3b0] ss:$8 sps:$4 sm:$0xff]  }
  0x3b   :  { %1651 = vmatpush2.bf16.msra.mxu0 %v2350_v62  ;;  %v2442_v62 = vld [vmem:[%s3516_s1 + $0x2a4] ss:$8 sps:$4 sm:$0xff]  }
  0x3c   :  { %1692 = vmatpush2.bf16.msra.mxu1 %v2351_v63  ;;  %1652 = vmatprep.subr.bf16.mxu0 %v2352_v0  ;;  %v2445_v63 = vld [vmem:[%s3516_s1 + $0x3a4] ss:$8 sps:$4 sm:$0xff]   ;;  %v2440_v0 = vld [vmem:[%s3516_s1 + $0x2a0] ss:$8 sps:$4 sm:$0xff]  }
  0x3d   :  { %1693 = vmatprep.subr.bf16.mxu1 %v2354_v1  ;;  %v2443_v1 = vld [vmem:[%s3516_s1 + $0x3a0] ss:$8 sps:$4 sm:$0xff]  }
  0x3f   :  { %1653 = vmatpush2.bf16.msra.mxu0 %v2356_v2  ;;  %v2448_v2 = vld [vmem:[%s3516_s1 + $0x294] ss:$8 sps:$4 sm:$0xff]  }
  0x40   :  { %1694 = vmatpush2.bf16.msra.mxu1 %v2357_v3  ;;  %1704 = vmatprep.subr.bf16.mxu0 %v2364_v4  ;;  %v2451_v3 = vld [vmem:[%s3516_s1 + $0x394] ss:$8 sps:$4 sm:$0xff]   ;;  %v2446_v4 = vld [vmem:[%s3516_s1 + $0x290] ss:$8 sps:$4 sm:$0xff]  }
  0x41   :  { %1745 = vmatprep.subr.bf16.mxu1 %v2367_v5  ;;  %v2449_v5 = vld [vmem:[%s3516_s1 + $0x390] ss:$8 sps:$4 sm:$0xff]  }
  0x42   :  { %1655 = vmatmul.mubr.bf16.vlgmr.msra.gmra.mxu0 %v1988_v6  ;;  %v2454_v6 = vld [vmem:[%s3516_s1 + $0x284] ss:$8 sps:$4 sm:$0xff]  }
  0x43   :  { %1696 = vmatmul.mubr.bf16.vlgmr.msra.gmra.mxu1 %v1990_v7  ;;  %1705 = vmatpush1.bf16.msra.mxu0 %v2362_v8  ;;  %v2457_v7 = vld [vmem:[%s3516_s1 + $0x384] ss:$8 sps:$4 sm:$0xff]   ;;  %v2452_v8 = vld [vmem:[%s3516_s1 + $0x280] ss:$8 sps:$4 sm:$0xff]  }
  0x44   :  { %1746 = vmatpush1.bf16.msra.mxu1 %v2365_v9  ;;  %1706 = vmatprep.subr.bf16.mxu0 %v2370_v10  ;;  %v2455_v9 = vld [vmem:[%s3516_s1 + $0x380] ss:$8 sps:$4 sm:$0xff]   ;;  %v2464_v10 = vld [vmem:[%s3516_s1 + $0x474] ss:$8 sps:$4 sm:$0xff]  }
  0x45   :  { %1747 = vmatprep.subr.bf16.mxu1 %v2373_v11  ;;  %1736 = vmatprep.mubr.bf16.mxu0 %v1993_v36  ;;  %v2467_v11 = vld [vmem:[%s3516_s1 + $0x574] ss:$8 sps:$4 sm:$0xff]   ;;  %v2494_v36 = vld [vmem:[%s3516_s1 + $0x424] ss:$8 sps:$4 sm:$0xff]  }
  0x46   :  { %1777 = vmatprep.mubr.bf16.mxu1 %v1995_v37  ;;  %v2497_v37 = vld [vmem:[%s3516_s1 + $0x524] ss:$8 sps:$4 sm:$0xff]  }
  0x47   :  { %1707 = vmatpush1.bf16.msra.mxu0 %v2368_v12  ;;  %v1992_v12 = vcombine.low %v2961_v32, %v2961_v32  ;;  %v2488_v32 = vld [vmem:[%s3516_s1 + $0x434] ss:$8 sps:$4 sm:$0xff]  }
  0x48   :  { %1748 = vmatpush1.bf16.msra.mxu1 %v2371_v13  ;;  %1708 = vmatprep.subr.bf16.mxu0 %v2376_v14  ;;  %v1994_v13 = vcombine.low %v2966_v33, %v2966_v33  ;;  %v2462_v14 = vld [vmem:[%s3516_s1 + $0x470] ss:$8 sps:$4 sm:$0xff]   ;;  %v2491_v33 = vld [vmem:[%s3516_s1 + $0x534] ss:$8 sps:$4 sm:$0xff]  }
  0x49   :  { %1749 = vmatprep.subr.bf16.mxu1 %v2379_v15  ;;  %v2465_v15 = vld [vmem:[%s3516_s1 + $0x570] ss:$8 sps:$4 sm:$0xff]  }
  0x4b   :  { %1709 = vmatpush1.bf16.msra.mxu0 %v2374_v16  ;;  %v2470_v16 = vld [vmem:[%s3516_s1 + $0x464] ss:$8 sps:$4 sm:$0xff]  }
  0x4c   :  { %1750 = vmatpush1.bf16.msra.mxu1 %v2377_v17  ;;  %1710 = vmatprep.subr.bf16.mxu0 %v2382_v18  ;;  %v2473_v17 = vld [vmem:[%s3516_s1 + $0x564] ss:$8 sps:$4 sm:$0xff]  }
  0x4d   :  { %1751 = vmatprep.subr.bf16.mxu1 %v2385_v19  ;;  %v3111_v18 = vld [vmem:[%s3517_s0 + $0x20] sm:$0xff]  ;;  %v3116_v19 = vld [vmem:[%s3517_s0 + $0x28] sm:$0xff] }
  0x4f   :  { %1711 = vmatpush1.bf16.msra.mxu0 %v2380_v20  ;;  %v1997_v20 = vcombine.high %v3111_v18, %v3111_v18 }
  0x50   :  { %1752 = vmatpush1.bf16.msra.mxu1 %v2383_v21  ;;  %1712 = vmatprep.subr.bf16.mxu0 %v2388_v22  ;;  %v1999_v21 = vcombine.high %v3116_v19, %v3116_v19  ;;  %v2468_v22 = vld [vmem:[%s3516_s1 + $0x460] ss:$8 sps:$4 sm:$0xff]  }
  0x51   :  { %1753 = vmatprep.subr.bf16.mxu1 %v2391_v23  ;;  %v2471_v23 = vld [vmem:[%s3516_s1 + $0x560] ss:$8 sps:$4 sm:$0xff]  }
  0x53   :  { %1713 = vmatpush1.bf16.msra.mxu0 %v2386_v24  ;;  %v2476_v24 = vld [vmem:[%s3516_s1 + $0x454] ss:$8 sps:$4 sm:$0xff]  }
  0x54   :  { %1754 = vmatpush1.bf16.msra.mxu1 %v2389_v25  ;;  %1714 = vmatprep.subr.bf16.mxu0 %v2394_v26  ;;  %v2479_v25 = vld [vmem:[%s3516_s1 + $0x554] ss:$8 sps:$4 sm:$0xff]   ;;  %v2474_v26 = vld [vmem:[%s3516_s1 + $0x450] ss:$8 sps:$4 sm:$0xff]  }
  0x55   :  { %1755 = vmatprep.subr.bf16.mxu1 %v2397_v27  ;;  %v2477_v27 = vld [vmem:[%s3516_s1 + $0x550] ss:$8 sps:$4 sm:$0xff]  }
  0x57   :  { %1715 = vmatpush1.bf16.msra.mxu0 %v2392_v28  ;;  %v2482_v28 = vld [vmem:[%s3516_s1 + $0x444] ss:$8 sps:$4 sm:$0xff]  }
  0x58   :  { %1756 = vmatpush1.bf16.msra.mxu1 %v2395_v29  ;;  %1716 = vmatprep.subr.bf16.mxu0 %v2400_v30  ;;  %v2485_v29 = vld [vmem:[%s3516_s1 + $0x544] ss:$8 sps:$4 sm:$0xff]   ;;  %v2480_v30 = vld [vmem:[%s3516_s1 + $0x440] ss:$8 sps:$4 sm:$0xff]  }
  0x59   :  { %1757 = vmatprep.subr.bf16.mxu1 %v2403_v31  ;;  %v2483_v31 = vld [vmem:[%s3516_s1 + $0x540] ss:$8 sps:$4 sm:$0xff]  }
  0x5b   :  { %1717 = vmatpush1.bf16.msra.mxu0 %v2398_v34  ;;  %v2486_v34 = vld [vmem:[%s3516_s1 + $0x430] ss:$8 sps:$4 sm:$0xff]  }
  0x5c   :  { %1758 = vmatpush1.bf16.msra.mxu1 %v2401_v35  ;;  %1718 = vmatprep.subr.bf16.mxu0 %v2406_v38  ;;  %v2489_v35 = vld [vmem:[%s3516_s1 + $0x530] ss:$8 sps:$4 sm:$0xff]   ;;  %v2492_v38 = vld [vmem:[%s3516_s1 + $0x420] ss:$8 sps:$4 sm:$0xff]  }
  0x5d   :  { %1759 = vmatprep.subr.bf16.mxu1 %v2409_v39  ;;  %v2495_v39 = vld [vmem:[%s3516_s1 + $0x520] ss:$8 sps:$4 sm:$0xff]  }
  0x5f   :  { %1719 = vmatpush1.bf16.msra.mxu0 %v2404_v40  ;;  %v2500_v40 = vld [vmem:[%s3516_s1 + $0x414] ss:$8 sps:$4 sm:$0xff]  }
  0x60   :  { %1760 = vmatpush1.bf16.msra.mxu1 %v2407_v41  ;;  %1720 = vmatprep.subr.bf16.mxu0 %v2412_v42  ;;  %v2503_v41 = vld [vmem:[%s3516_s1 + $0x514] ss:$8 sps:$4 sm:$0xff]   ;;  %v2498_v42 = vld [vmem:[%s3516_s1 + $0x410] ss:$8 sps:$4 sm:$0xff]  }
  0x61   :  { %1761 = vmatprep.subr.bf16.mxu1 %v2415_v43  ;;  %v2501_v43 = vld [vmem:[%s3516_s1 + $0x510] ss:$8 sps:$4 sm:$0xff]  }
  0x63   :  { %1721 = vmatpush2.bf16.msra.mxu0 %v2410_v44  ;;  %v2506_v44 = vld [vmem:[%s3516_s1 + $0x404] ss:$8 sps:$4 sm:$0xff]  }
  0x64   :  { %1762 = vmatpush2.bf16.msra.mxu1 %v2413_v45  ;;  %1722 = vmatprep.subr.bf16.mxu0 %v2418_v46  ;;  %v2509_v45 = vld [vmem:[%s3516_s1 + $0x504] ss:$8 sps:$4 sm:$0xff]   ;;  %v2504_v46 = vld [vmem:[%s3516_s1 + $0x400] ss:$8 sps:$4 sm:$0xff]  }
  0x65   :  { %1763 = vmatprep.subr.bf16.mxu1 %v2421_v47  ;;  %v2507_v47 = vld [vmem:[%s3516_s1 + $0x500] ss:$8 sps:$4 sm:$0xff]  }
  0x67   :  { %1723 = vmatpush2.bf16.msra.mxu0 %v2416_v48  ;;  %v2512_v48 = vld [vmem:[%s3516_s1 + $0x4f4] ss:$8 sps:$4 sm:$0xff]  }
  0x68   :  { %1764 = vmatpush2.bf16.msra.mxu1 %v2419_v49  ;;  %1724 = vmatprep.subr.bf16.mxu0 %v2424_v50  ;;  %v2515_v49 = vld [vmem:[%s3516_s1 + $0x5f4] ss:$8 sps:$4 sm:$0xff]   ;;  %v2510_v50 = vld [vmem:[%s3516_s1 + $0x4f0] ss:$8 sps:$4 sm:$0xff]  }
  0x69   :  { %1765 = vmatprep.subr.bf16.mxu1 %v2427_v51  ;;  %v2513_v51 = vld [vmem:[%s3516_s1 + $0x5f0] ss:$8 sps:$4 sm:$0xff]  }
  0x6b   :  { %1725 = vmatpush2.bf16.msra.mxu0 %v2422_v52  ;;  %v2518_v52 = vld [vmem:[%s3516_s1 + $0x4e4] ss:$8 sps:$4 sm:$0xff]  }
  0x6c   :  { %1766 = vmatpush2.bf16.msra.mxu1 %v2425_v53  ;;  %1726 = vmatprep.subr.bf16.mxu0 %v2430_v54  ;;  %v2521_v53 = vld [vmem:[%s3516_s1 + $0x5e4] ss:$8 sps:$4 sm:$0xff]   ;;  %v2516_v54 = vld [vmem:[%s3516_s1 + $0x4e0] ss:$8 sps:$4 sm:$0xff]  }
  0x6d   :  { %1767 = vmatprep.subr.bf16.mxu1 %v2433_v55  ;;  %v2519_v55 = vld [vmem:[%s3516_s1 + $0x5e0] ss:$8 sps:$4 sm:$0xff]  }
  0x6f   :  { %1727 = vmatpush2.bf16.msra.mxu0 %v2428_v56  ;;  %v2524_v56 = vld [vmem:[%s3516_s1 + $0x4d4] ss:$8 sps:$4 sm:$0xff]  }
  0x70   :  { %1768 = vmatpush2.bf16.msra.mxu1 %v2431_v57  ;;  %1728 = vmatprep.subr.bf16.mxu0 %v2436_v58  ;;  %v2527_v57 = vld [vmem:[%s3516_s1 + $0x5d4] ss:$8 sps:$4 sm:$0xff]   ;;  %v2522_v58 = vld [vmem:[%s3516_s1 + $0x4d0] ss:$8 sps:$4 sm:$0xff]  }
  0x71   :  { %1769 = vmatprep.subr.bf16.mxu1 %v2439_v59  ;;  %v2525_v59 = vld [vmem:[%s3516_s1 + $0x5d0] ss:$8 sps:$4 sm:$0xff]  }
  0x73   :  { %1729 = vmatpush2.bf16.msra.mxu0 %v2434_v60  ;;  %v2530_v60 = vld [vmem:[%s3516_s1 + $0x4c4] ss:$8 sps:$4 sm:$0xff]  }
  0x74   :  { %1770 = vmatpush2.bf16.msra.mxu1 %v2437_v61  ;;  %1730 = vmatprep.subr.bf16.mxu0 %v2442_v62  ;;  %v2533_v61 = vld [vmem:[%s3516_s1 + $0x5c4] ss:$8 sps:$4 sm:$0xff]   ;;  %v2528_v62 = vld [vmem:[%s3516_s1 + $0x4c0] ss:$8 sps:$4 sm:$0xff]  }
  0x75   :  { %1771 = vmatprep.subr.bf16.mxu1 %v2445_v63  ;;  %v2531_v63 = vld [vmem:[%s3516_s1 + $0x5c0] ss:$8 sps:$4 sm:$0xff]  }
  0x77   :  { %1731 = vmatpush2.bf16.msra.mxu0 %v2440_v0  ;;  %v2536_v0 = vld [vmem:[%s3516_s1 + $0x4b4] ss:$8 sps:$4 sm:$0xff]  }
  0x78   :  { %1772 = vmatpush2.bf16.msra.mxu1 %v2443_v1  ;;  %1732 = vmatprep.subr.bf16.mxu0 %v2448_v2  ;;  %v2539_v1 = vld [vmem:[%s3516_s1 + $0x5b4] ss:$8 sps:$4 sm:$0xff]   ;;  %v2534_v2 = vld [vmem:[%s3516_s1 + $0x4b0] ss:$8 sps:$4 sm:$0xff]  }
  0x79   :  { %1773 = vmatprep.subr.bf16.mxu1 %v2451_v3  ;;  %v2537_v3 = vld [vmem:[%s3516_s1 + $0x5b0] ss:$8 sps:$4 sm:$0xff]  }
  0x7b   :  { %1733 = vmatpush2.bf16.msra.mxu0 %v2446_v4  ;;  %v2542_v4 = vld [vmem:[%s3516_s1 + $0x4a4] ss:$8 sps:$4 sm:$0xff]  }
  0x7c   :  { %1774 = vmatpush2.bf16.msra.mxu1 %v2449_v5  ;;  %1734 = vmatprep.subr.bf16.mxu0 %v2454_v6  ;;  %v2545_v5 = vld [vmem:[%s3516_s1 + $0x5a4] ss:$8 sps:$4 sm:$0xff]   ;;  %v2540_v6 = vld [vmem:[%s3516_s1 + $0x4a0] ss:$8 sps:$4 sm:$0xff]  }
  0x7d   :  { %1775 = vmatprep.subr.bf16.mxu1 %v2457_v7  ;;  %v2543_v7 = vld [vmem:[%s3516_s1 + $0x5a0] ss:$8 sps:$4 sm:$0xff]  }
  0x7f   :  { %1735 = vmatpush2.bf16.msra.mxu0 %v2452_v8  ;;  %v2548_v8 = vld [vmem:[%s3516_s1 + $0x494] ss:$8 sps:$4 sm:$0xff]  }
  0x80   :  { %1776 = vmatpush2.bf16.msra.mxu1 %v2455_v9  ;;  %1786 = vmatprep.subr.bf16.mxu0 %v2464_v10  ;;  %v2551_v9 = vld [vmem:[%s3516_s1 + $0x594] ss:$8 sps:$4 sm:$0xff]   ;;  %v2546_v10 = vld [vmem:[%s3516_s1 + $0x490] ss:$8 sps:$4 sm:$0xff]  }
  0x81   :  { %1827 = vmatprep.subr.bf16.mxu1 %v2467_v11  ;;  %v2549_v11 = vld [vmem:[%s3516_s1 + $0x590] ss:$8 sps:$4 sm:$0xff]  }
  0x82   :  { %1737 = vmatmul.mubr.bf16.vlgmr.msra.gmra.mxu0 %v1992_v12  ;;  %v2554_v12 = vld [vmem:[%s3516_s1 + $0x484] ss:$8 sps:$4 sm:$0xff]  }
  0x83   :  { %1778 = vmatmul.mubr.bf16.vlgmr.msra.gmra.mxu1 %v1994_v13  ;;  %1787 = vmatpush1.bf16.msra.mxu0 %v2462_v14  ;;  %v2557_v13 = vld [vmem:[%s3516_s1 + $0x584] ss:$8 sps:$4 sm:$0xff]   ;;  %v2552_v14 = vld [vmem:[%s3516_s1 + $0x480] ss:$8 sps:$4 sm:$0xff]  }
  0x84   :  { %1828 = vmatpush1.bf16.msra.mxu1 %v2465_v15  ;;  %1788 = vmatprep.subr.bf16.mxu0 %v2470_v16  ;;  %v2555_v15 = vld [vmem:[%s3516_s1 + $0x580] ss:$8 sps:$4 sm:$0xff]   ;;  %v2564_v16 = vld [vmem:[%s3516_s1 + $0x674] ss:$8 sps:$4 sm:$0xff]  }
  0x85   :  { %1829 = vmatprep.subr.bf16.mxu1 %v2473_v17  ;;  %1818 = vmatprep.mubr.bf16.mxu0 %v1997_v20  ;;  %v2567_v17 = vld [vmem:[%s3516_s1 + $0x774] ss:$8 sps:$4 sm:$0xff]   ;;  %v1996_v20 = vcombine.low %v3111_v18, %v3111_v18  ;;  %v2565_v18 = vld [vmem:[%s3516_s1 + $0x770] ss:$8 sps:$4 sm:$0xff]  }
  0x86   :  { %1859 = vmatprep.mubr.bf16.mxu1 %v1999_v21  ;;  %v1998_v21 = vcombine.low %v3116_v19, %v3116_v19  ;;  %v2570_v19 = vld [vmem:[%s3516_s1 + $0x664] ss:$8 sps:$4 sm:$0xff]  }
  0x87   :  { %1789 = vmatpush1.bf16.msra.mxu0 %v2468_v22  ;;  %v3309_v22 = vld [vmem:[%s3517_s0 + $0x30] sm:$0xff] }
  0x88   :  { %1830 = vmatpush1.bf16.msra.mxu1 %v2471_v23  ;;  %1790 = vmatprep.subr.bf16.mxu0 %v2476_v24  ;;  %v3314_v23 = vld [vmem:[%s3517_s0 + $0x38] sm:$0xff] }
  0x89   :  { %1831 = vmatprep.subr.bf16.mxu1 %v2479_v25  ;;  %v2562_v24 = vld [vmem:[%s3516_s1 + $0x670] ss:$8 sps:$4 sm:$0xff]   ;;  %v2573_v25 = vld [vmem:[%s3516_s1 + $0x764] ss:$8 sps:$4 sm:$0xff]  }
  0x8b   :  { %1791 = vmatpush1.bf16.msra.mxu0 %v2474_v26  ;;  %v2001_v26 = vcombine.high %v3309_v22, %v3309_v22 }
  0x8c   :  { %1832 = vmatpush1.bf16.msra.mxu1 %v2477_v27  ;;  %1792 = vmatprep.subr.bf16.mxu0 %v2482_v28  ;;  %v2003_v27 = vcombine.high %v3314_v23, %v3314_v23  ;;  %v2568_v28 = vld [vmem:[%s3516_s1 + $0x660] ss:$8 sps:$4 sm:$0xff]  }
  0x8d   :  { %1833 = vmatprep.subr.bf16.mxu1 %v2485_v29  ;;  %v2571_v29 = vld [vmem:[%s3516_s1 + $0x760] ss:$8 sps:$4 sm:$0xff]  }
  0x8f   :  { %1793 = vmatpush1.bf16.msra.mxu0 %v2480_v30  ;;  %v2576_v30 = vld [vmem:[%s3516_s1 + $0x654] ss:$8 sps:$4 sm:$0xff]  }
  0x90   :  { %1834 = vmatpush1.bf16.msra.mxu1 %v2483_v31  ;;  %1794 = vmatprep.subr.bf16.mxu0 %v2488_v32  ;;  %v2579_v31 = vld [vmem:[%s3516_s1 + $0x754] ss:$8 sps:$4 sm:$0xff]   ;;  %v2574_v32 = vld [vmem:[%s3516_s1 + $0x650] ss:$8 sps:$4 sm:$0xff]  }
  0x91   :  { %1835 = vmatprep.subr.bf16.mxu1 %v2491_v33  ;;  %v2577_v33 = vld [vmem:[%s3516_s1 + $0x750] ss:$8 sps:$4 sm:$0xff]  }
  0x93   :  { %1795 = vmatpush1.bf16.msra.mxu0 %v2486_v34  ;;  %v2582_v34 = vld [vmem:[%s3516_s1 + $0x644] ss:$8 sps:$4 sm:$0xff]  }
  0x94   :  { %1836 = vmatpush1.bf16.msra.mxu1 %v2489_v35  ;;  %1796 = vmatprep.subr.bf16.mxu0 %v2494_v36  ;;  %v2585_v35 = vld [vmem:[%s3516_s1 + $0x744] ss:$8 sps:$4 sm:$0xff]   ;;  %v2580_v36 = vld [vmem:[%s3516_s1 + $0x640] ss:$8 sps:$4 sm:$0xff]  }
  0x95   :  { %1837 = vmatprep.subr.bf16.mxu1 %v2497_v37  ;;  %v2583_v37 = vld [vmem:[%s3516_s1 + $0x740] ss:$8 sps:$4 sm:$0xff]  }
  0x97   :  { %1797 = vmatpush1.bf16.msra.mxu0 %v2492_v38  ;;  %v2588_v38 = vld [vmem:[%s3516_s1 + $0x634] ss:$8 sps:$4 sm:$0xff]  }
  0x98   :  { %1838 = vmatpush1.bf16.msra.mxu1 %v2495_v39  ;;  %1798 = vmatprep.subr.bf16.mxu0 %v2500_v40  ;;  %v2591_v39 = vld [vmem:[%s3516_s1 + $0x734] ss:$8 sps:$4 sm:$0xff]   ;;  %v2586_v40 = vld [vmem:[%s3516_s1 + $0x630] ss:$8 sps:$4 sm:$0xff]  }
  0x99   :  { %1839 = vmatprep.subr.bf16.mxu1 %v2503_v41  ;;  %v2589_v41 = vld [vmem:[%s3516_s1 + $0x730] ss:$8 sps:$4 sm:$0xff]  }
  0x9b   :  { %1799 = vmatpush1.bf16.msra.mxu0 %v2498_v42  ;;  %v2594_v42 = vld [vmem:[%s3516_s1 + $0x624] ss:$8 sps:$4 sm:$0xff]  }
  0x9c   :  { %1840 = vmatpush1.bf16.msra.mxu1 %v2501_v43  ;;  %1800 = vmatprep.subr.bf16.mxu0 %v2506_v44  ;;  %v2597_v43 = vld [vmem:[%s3516_s1 + $0x724] ss:$8 sps:$4 sm:$0xff]   ;;  %v2592_v44 = vld [vmem:[%s3516_s1 + $0x620] ss:$8 sps:$4 sm:$0xff]  }
  0x9d   :  { %1841 = vmatprep.subr.bf16.mxu1 %v2509_v45  ;;  %v2595_v45 = vld [vmem:[%s3516_s1 + $0x720] ss:$8 sps:$4 sm:$0xff]  }
  0x9f   :  { %1801 = vmatpush1.bf16.msra.mxu0 %v2504_v46  ;;  %v2600_v46 = vld [vmem:[%s3516_s1 + $0x614] ss:$8 sps:$4 sm:$0xff]  }
  0xa0   :  { %1842 = vmatpush1.bf16.msra.mxu1 %v2507_v47  ;;  %1802 = vmatprep.subr.bf16.mxu0 %v2512_v48  ;;  %v2603_v47 = vld [vmem:[%s3516_s1 + $0x714] ss:$8 sps:$4 sm:$0xff]   ;;  %v2598_v48 = vld [vmem:[%s3516_s1 + $0x610] ss:$8 sps:$4 sm:$0xff]  }
  0xa1   :  { %1843 = vmatprep.subr.bf16.mxu1 %v2515_v49  ;;  %v2601_v49 = vld [vmem:[%s3516_s1 + $0x710] ss:$8 sps:$4 sm:$0xff]  }
  0xa3   :  { %1803 = vmatpush2.bf16.msra.mxu0 %v2510_v50  ;;  %v2606_v50 = vld [vmem:[%s3516_s1 + $0x604] ss:$8 sps:$4 sm:$0xff]  }
  0xa4   :  { %1844 = vmatpush2.bf16.msra.mxu1 %v2513_v51  ;;  %1804 = vmatprep.subr.bf16.mxu0 %v2518_v52  ;;  %v2609_v51 = vld [vmem:[%s3516_s1 + $0x704] ss:$8 sps:$4 sm:$0xff]   ;;  %v2604_v52 = vld [vmem:[%s3516_s1 + $0x600] ss:$8 sps:$4 sm:$0xff]  }
  0xa5   :  { %1845 = vmatprep.subr.bf16.mxu1 %v2521_v53  ;;  %v2607_v53 = vld [vmem:[%s3516_s1 + $0x700] ss:$8 sps:$4 sm:$0xff]  }
  0xa7   :  { %1805 = vmatpush2.bf16.msra.mxu0 %v2516_v54  ;;  %v2612_v54 = vld [vmem:[%s3516_s1 + $0x6f4] ss:$8 sps:$4 sm:$0xff]  }
  0xa8   :  { %1846 = vmatpush2.bf16.msra.mxu1 %v2519_v55  ;;  %1806 = vmatprep.subr.bf16.mxu0 %v2524_v56  ;;  %v2615_v55 = vld [vmem:[%s3516_s1 + $0x7f4] ss:$8 sps:$4 sm:$0xff]   ;;  %v2610_v56 = vld [vmem:[%s3516_s1 + $0x6f0] ss:$8 sps:$4 sm:$0xff]  }
  0xa9   :  { %1847 = vmatprep.subr.bf16.mxu1 %v2527_v57  ;;  %v2613_v57 = vld [vmem:[%s3516_s1 + $0x7f0] ss:$8 sps:$4 sm:$0xff]  }
  0xab   :  { %1807 = vmatpush2.bf16.msra.mxu0 %v2522_v58  ;;  %v2618_v58 = vld [vmem:[%s3516_s1 + $0x6e4] ss:$8 sps:$4 sm:$0xff]  }
  0xac   :  { %1848 = vmatpush2.bf16.msra.mxu1 %v2525_v59  ;;  %1808 = vmatprep.subr.bf16.mxu0 %v2530_v60  ;;  %v2621_v59 = vld [vmem:[%s3516_s1 + $0x7e4] ss:$8 sps:$4 sm:$0xff]   ;;  %v2616_v60 = vld [vmem:[%s3516_s1 + $0x6e0] ss:$8 sps:$4 sm:$0xff]  }
  0xad   :  { %1849 = vmatprep.subr.bf16.mxu1 %v2533_v61  ;;  %v2619_v61 = vld [vmem:[%s3516_s1 + $0x7e0] ss:$8 sps:$4 sm:$0xff]  }
  0xaf   :  { %1809 = vmatpush2.bf16.msra.mxu0 %v2528_v62  ;;  %v2624_v62 = vld [vmem:[%s3516_s1 + $0x6d4] ss:$8 sps:$4 sm:$0xff]  }
  0xb0   :  { %1850 = vmatpush2.bf16.msra.mxu1 %v2531_v63  ;;  %1810 = vmatprep.subr.bf16.mxu0 %v2536_v0  ;;  %v2627_v63 = vld [vmem:[%s3516_s1 + $0x7d4] ss:$8 sps:$4 sm:$0xff]   ;;  %v2622_v0 = vld [vmem:[%s3516_s1 + $0x6d0] ss:$8 sps:$4 sm:$0xff]  }
  0xb1   :  { %1851 = vmatprep.subr.bf16.mxu1 %v2539_v1  ;;  %v2625_v1 = vld [vmem:[%s3516_s1 + $0x7d0] ss:$8 sps:$4 sm:$0xff]  }
  0xb3   :  { %1811 = vmatpush2.bf16.msra.mxu0 %v2534_v2  ;;  %v2630_v2 = vld [vmem:[%s3516_s1 + $0x6c4] ss:$8 sps:$4 sm:$0xff]  }
  0xb4   :  { %1852 = vmatpush2.bf16.msra.mxu1 %v2537_v3  ;;  %1812 = vmatprep.subr.bf16.mxu0 %v2542_v4  ;;  %v2633_v3 = vld [vmem:[%s3516_s1 + $0x7c4] ss:$8 sps:$4 sm:$0xff]   ;;  %v2628_v4 = vld [vmem:[%s3516_s1 + $0x6c0] ss:$8 sps:$4 sm:$0xff]  }
  0xb5   :  { %1853 = vmatprep.subr.bf16.mxu1 %v2545_v5  ;;  %v2631_v5 = vld [vmem:[%s3516_s1 + $0x7c0] ss:$8 sps:$4 sm:$0xff]  }
  0xb7   :  { %1813 = vmatpush2.bf16.msra.mxu0 %v2540_v6  ;;  %v2636_v6 = vld [vmem:[%s3516_s1 + $0x6b4] ss:$8 sps:$4 sm:$0xff]  }
  0xb8   :  { %1854 = vmatpush2.bf16.msra.mxu1 %v2543_v7  ;;  %1814 = vmatprep.subr.bf16.mxu0 %v2548_v8  ;;  %v2639_v7 = vld [vmem:[%s3516_s1 + $0x7b4] ss:$8 sps:$4 sm:$0xff]   ;;  %v2634_v8 = vld [vmem:[%s3516_s1 + $0x6b0] ss:$8 sps:$4 sm:$0xff]  }
  0xb9   :  { %1855 = vmatprep.subr.bf16.mxu1 %v2551_v9  ;;  %v2637_v9 = vld [vmem:[%s3516_s1 + $0x7b0] ss:$8 sps:$4 sm:$0xff]  }
  0xbb   :  { %1815 = vmatpush2.bf16.msra.mxu0 %v2546_v10  ;;  %v2642_v10 = vld [vmem:[%s3516_s1 + $0x6a4] ss:$8 sps:$4 sm:$0xff]  }
  0xbc   :  { %1856 = vmatpush2.bf16.msra.mxu1 %v2549_v11  ;;  %1816 = vmatprep.subr.bf16.mxu0 %v2554_v12  ;;  %v2645_v11 = vld [vmem:[%s3516_s1 + $0x7a4] ss:$8 sps:$4 sm:$0xff]   ;;  %v2640_v12 = vld [vmem:[%s3516_s1 + $0x6a0] ss:$8 sps:$4 sm:$0xff]  }
  0xbd   :  { %1857 = vmatprep.subr.bf16.mxu1 %v2557_v13  ;;  %v2643_v13 = vld [vmem:[%s3516_s1 + $0x7a0] ss:$8 sps:$4 sm:$0xff]  }
  0xbf   :  { %1817 = vmatpush2.bf16.msra.mxu0 %v2552_v14  ;;  %v2648_v14 = vld [vmem:[%s3516_s1 + $0x694] ss:$8 sps:$4 sm:$0xff]  }
  0xc0   :  { %1858 = vmatpush2.bf16.msra.mxu1 %v2555_v15  ;;  %1868 = vmatprep.subr.bf16.mxu0 %v2564_v16  ;;  %v2651_v15 = vld [vmem:[%s3516_s1 + $0x794] ss:$8 sps:$4 sm:$0xff]   ;;  %v2646_v16 = vld [vmem:[%s3516_s1 + $0x690] ss:$8 sps:$4 sm:$0xff]  }
  0xc1   :  { %1909 = vmatprep.subr.bf16.mxu1 %v2567_v17  ;;  %v2649_v17 = vld [vmem:[%s3516_s1 + $0x790] ss:$8 sps:$4 sm:$0xff]  }
  0xc2   :  { %1819 = vmatmul.mubr.bf16.vlgmr.msra.gmra.mxu0 %v1996_v20  ;;  %v2654_v20 = vld [vmem:[%s3516_s1 + $0x684] ss:$8 sps:$4 sm:$0xff]  }
  0xc3   :  { %1860 = vmatmul.mubr.bf16.vlgmr.msra.gmra.mxu1 %v1998_v21  ;;  %1869 = vmatpush1.bf16.msra.mxu0 %v2562_v24  ;;  %v2657_v21 = vld [vmem:[%s3516_s1 + $0x784] ss:$8 sps:$4 sm:$0xff]   ;;  %v2652_v24 = vld [vmem:[%s3516_s1 + $0x680] ss:$8 sps:$4 sm:$0xff]  }
  0xc4   :  { %1910 = vmatpush1.bf16.msra.mxu1 %v2565_v18  ;;  %1870 = vmatprep.subr.bf16.mxu0 %v2570_v19  ;;  %v2655_v18 = vld [vmem:[%s3516_s1 + $0x780] ss:$8 sps:$4 sm:$0xff]   ;;  %v2000_v19 = vcombine.low %v3309_v22, %v3309_v22 }
  0xc5   :  { %1911 = vmatprep.subr.bf16.mxu1 %v2573_v25  ;;  %1900 = vmatprep.mubr.bf16.mxu0 %v2001_v26  ;;  %v2002_v25 = vcombine.low %v3314_v23, %v3314_v23 }
  0xc6   :  { %1941 = vmatprep.mubr.bf16.mxu1 %v2003_v27 }
  0xc7   :  { %1871 = vmatpush1.bf16.msra.mxu0 %v2568_v28 }
  0xc8   :  { %1912 = vmatpush1.bf16.msra.mxu1 %v2571_v29  ;;  %1872 = vmatprep.subr.bf16.mxu0 %v2576_v30 }
  0xc9   :  { %1913 = vmatprep.subr.bf16.mxu1 %v2579_v31 }
  0xcb   :  { %1873 = vmatpush1.bf16.msra.mxu0 %v2574_v32 }
  0xcc   :  { %1914 = vmatpush1.bf16.msra.mxu1 %v2577_v33  ;;  %1874 = vmatprep.subr.bf16.mxu0 %v2582_v34 }
  0xcd   :  { %1915 = vmatprep.subr.bf16.mxu1 %v2585_v35 }
  0xcf   :  { %1875 = vmatpush1.bf16.msra.mxu0 %v2580_v36 }
  0xd0   :  { %1916 = vmatpush1.bf16.msra.mxu1 %v2583_v37  ;;  %1876 = vmatprep.subr.bf16.mxu0 %v2588_v38 }
  0xd1   :  { %1917 = vmatprep.subr.bf16.mxu1 %v2591_v39 }
  0xd3   :  { %1877 = vmatpush1.bf16.msra.mxu0 %v2586_v40 }
  0xd4   :  { %1918 = vmatpush1.bf16.msra.mxu1 %v2589_v41  ;;  %1878 = vmatprep.subr.bf16.mxu0 %v2594_v42 }
  0xd5   :  { %1919 = vmatprep.subr.bf16.mxu1 %v2597_v43 }
  0xd7   :  { %1879 = vmatpush1.bf16.msra.mxu0 %v2592_v44 }
  0xd8   :  { %1920 = vmatpush1.bf16.msra.mxu1 %v2595_v45  ;;  %1880 = vmatprep.subr.bf16.mxu0 %v2600_v46 }
  0xd9   :  { %1921 = vmatprep.subr.bf16.mxu1 %v2603_v47 }
  0xdb   :  { %1881 = vmatpush1.bf16.msra.mxu0 %v2598_v48 }
  0xdc   :  { %1922 = vmatpush1.bf16.msra.mxu1 %v2601_v49  ;;  %1882 = vmatprep.subr.bf16.mxu0 %v2606_v50 }
  0xdd   :  { %1923 = vmatprep.subr.bf16.mxu1 %v2609_v51 }
  0xdf   :  { %1883 = vmatpush1.bf16.msra.mxu0 %v2604_v52 }
  0xe0   :  { %1924 = vmatpush1.bf16.msra.mxu1 %v2607_v53  ;;  %1884 = vmatprep.subr.bf16.mxu0 %v2612_v54 }
  0xe1   :  { %1925 = vmatprep.subr.bf16.mxu1 %v2615_v55 }
  0xe3   :  { %1885 = vmatpush2.bf16.msra.mxu0 %v2610_v56  ;;  %v1961_v56 = vlaneseq }
  0xe4   :  { %1926 = vmatpush2.bf16.msra.mxu1 %v2613_v57  ;;  %1886 = vmatprep.subr.bf16.mxu0 %v2618_v58 }
  0xe5   :  { %1927 = vmatprep.subr.bf16.mxu1 %v2621_v59  ;;  %v1962_v57 = vshrl.u32 %v1961_v56, 7 }
  0xe7   :  { %1887 = vmatpush2.bf16.msra.mxu0 %v2616_v60  ;;  %v1963_v59 = vsub.s32 0, %v1962_v57  ;;  %v1959_v60 = vld [vmem:[%s3518_s2] sm:$0x3] }
  0xe8   :  { %1928 = vmatpush2.bf16.msra.mxu1 %v2619_v61  ;;  %1888 = vmatprep.subr.bf16.mxu0 %v2624_v62  ;;  %v1967_v61 = vsub.s32 1, %v1962_v57 }
  0xe9   :  { %1929 = vmatprep.subr.bf16.mxu1 %v2627_v63 }
  0xeb   :  { %1889 = vmatpush2.bf16.msra.mxu0 %v2622_v0 }
  0xec   :  { %1930 = vmatpush2.bf16.msra.mxu1 %v2625_v1  ;;  %1890 = vmatprep.subr.bf16.mxu0 %v2630_v2  ;;  %v1964_v2 = vrot.slane %v1959_v60, %v1963_v59 }
  0xed   :  { %1931 = vmatprep.subr.bf16.mxu1 %v2633_v3 }
  0xef   :  { %1891 = vmatpush2.bf16.msra.mxu0 %v2628_v4 }
  0xf0   :  { %1932 = vmatpush2.bf16.msra.mxu1 %v2631_v5  ;;  %1892 = vmatprep.subr.bf16.mxu0 %v2636_v6 }
  0xf1   :  { %1933 = vmatprep.subr.bf16.mxu1 %v2639_v7  ;;  %v1968_v7 = vrot.slane %v1959_v60, %v1967_v61 }
  0xf3   :  { %1893 = vmatpush2.bf16.msra.mxu0 %v2634_v8 }
  0xf4   :  { %1934 = vmatpush2.bf16.msra.mxu1 %v2637_v9  ;;  %1894 = vmatprep.subr.bf16.mxu0 %v2642_v10 }
  0xf5   :  { %1935 = vmatprep.subr.bf16.mxu1 %v2645_v11 }
  0xf7   :  { %1895 = vmatpush2.bf16.msra.mxu0 %v2640_v12 }
  0xf8   :  { %1936 = vmatpush2.bf16.msra.mxu1 %v2643_v13  ;;  %1896 = vmatprep.subr.bf16.mxu0 %v2648_v14 }
  0xf9   :  { %1937 = vmatprep.subr.bf16.mxu1 %v2651_v15 }
  0xfb   :  { %1897 = vmatpush2.bf16.msra.mxu0 %v2646_v16 }
  0xfc   :  { %1938 = vmatpush2.bf16.msra.mxu1 %v2649_v17  ;;  %1898 = vmatprep.subr.bf16.mxu0 %v2654_v20 }
  0xfd   :  { %1939 = vmatprep.subr.bf16.mxu1 %v2657_v21 }
  0xff   :  { %1899 = vmatpush2.bf16.msra.mxu0 %v2652_v24 }
 0x100   :  { %1940 = vmatpush2.bf16.msra.mxu1 %v2655_v18 }
 0x102   :  { %v1656_v26 = vpop.f32.mrf.mxu0  ;;  %1901 = vmatmul.mubr.bf16.vlgmr.msra.gmra.mxu0 %v2000_v19 }
 0x103   :  { %v1697_v27 = vpop.f32.mrf.mxu1  ;;  %1942 = vmatmul.mubr.bf16.vlgmr.msra.gmra.mxu1 %v2002_v25 }
 0x104   :  { %v1698_v28 = vadd.f32 %v1697_v27, %v1656_v26  ;;  %v1658_v29 = vpop.f32.mrf.mxu0 }
 0x105   :  { %v1699_v30 = vpop.f32.mrf.mxu1 }
 0x106   :  { %v1700_v31 = vadd.f32 %v1699_v30, %v1658_v29  ;;  %v1660_v32 = vpop.f32.mrf.mxu0 }
 0x107   :  { %v1701_v33 = vpop.f32.mrf.mxu1 }
 0x108   :  { %v1661_v34 = vpop.f32.mrf.mxu0 }
 0x109   :  { %v1702_v35 = vpop.f32.mrf.mxu1 }
 0x142   :  { %v1738_v36 = vpop.f32.mrf.mxu0 }
 0x143   :  { %v1779_v37 = vpop.f32.mrf.mxu1  ;;  %v1739_v22 = vadd.f32 %v1738_v36, %v1698_v28 }
 0x144   :  { %v1740_v38 = vpop.f32.mrf.mxu0 }
 0x145   :  { %v1781_v39 = vpop.f32.mrf.mxu1  ;;  %v1780_v23 = vadd.f32 %v1779_v37, %v1739_v22  ;;  %v1741_v40 = vadd.f32 %v1740_v38, %v1700_v31 }
 0x146   :  { %v1742_v41 = vpop.f32.mrf.mxu0 }
 0x147   :  { %v1783_v42 = vpop.f32.mrf.mxu1  ;;  %v1782_v43 = vadd.f32 %v1781_v39, %v1741_v40 }
 0x148   :  { %v1743_v44 = vpop.f32.mrf.mxu0 }
 0x149   :  { %v1784_v45 = vpop.f32.mrf.mxu1 }
 0x182   :  { %v1820_v46 = vpop.f32.mrf.mxu0 }
 0x183   :  { %v1861_v47 = vpop.f32.mrf.mxu1  ;;  %v1821_v48 = vadd.f32 %v1820_v46, %v1780_v23 }
 0x184   :  { %v1822_v49 = vpop.f32.mrf.mxu0 }
 0x185   :  { %v1863_v50 = vpop.f32.mrf.mxu1  ;;  %v1862_v51 = vadd.f32 %v1861_v47, %v1821_v48  ;;  %v1823_v58 = vadd.f32 %v1822_v49, %v1782_v43 }
 0x186   :  { %v1824_v52 = vpop.f32.mrf.mxu0 }
 0x187   :  { %v1865_v53 = vpop.f32.mrf.mxu1  ;;  %v1864_v0 = vadd.f32 %v1863_v50, %v1823_v58 }
 0x188   :  { %v1825_v54 = vpop.f32.mrf.mxu0 }
 0x189   :  { %v1866_v55 = vpop.f32.mrf.mxu1 }
 0x1c2   :  { %v1902_v62 = vpop.f32.mrf.mxu0 }
 0x1c3   :  { %v1943_v63 = vpop.f32.mrf.mxu1  ;;  %v1903_v1 = vadd.f32 %v1902_v62, %v1862_v51 }
 0x1c4   :  { %v1904_v3 = vpop.f32.mrf.mxu0 }
 0x1c5   :  { %v1945_v4 = vpop.f32.mrf.mxu1  ;;  %v1944_v5 = vadd.f32 %v1943_v63, %v1903_v1  ;;  %v1905_v6 = vadd.f32 %v1904_v3, %v1864_v0 }
 0x1c6   :  { %v1906_v8 = vpop.f32.mrf.mxu0 }
 0x1c7   :  { %v1947_v9 = vpop.f32.mrf.mxu1  ;;  %v1971_v10 = vadd.f32 %v1964_v2, %v1944_v5  ;;  %v1946_v11 = vadd.f32 %v1945_v4, %v1905_v6 }
 0x1c8   :  { %v1907_v12 = vpop.f32.mrf.mxu0 }
 0x1c9   :  { %v1948_v13 = vpop.f32.mrf.mxu1  ;;  %v1972_v14 = vadd.f32 %v1968_v7, %v1946_v11  ;;  %v1973_v15 = vmax.f32 %v1971_v10, 0.0 }
 0x1cb   :  { %v1974_v16 = vmax.f32 %v1972_v14, 0.0 }
 0x1cd   :  { %v2261_v17 = vpack.c.bf16 %v1974_v16, %v1973_v15 }
 0x1cf   :  { %1983 = vst [vmem:[%s3519_s3] sm:$0xff] %v2261_v17 }

// kernel: vae_forward.32
= control target key start
LH: loop header
LB: loop body
LE: loop exit
PB: predicated region body
PF: predicated region fallthrough
CT: control target
= control target key end

     0   :  { %s1430_s1 = inlined_call_operand.vmem [shape: bf16[1024,128], index: 1, kind: input, shape index: {}]   ;;  %s1431_s0 = inlined_call_operand.vmem [shape: bf16[32,1024], index: 0, kind: input, shape index: {}]   ;;  %s1432_s2 = inlined_call_operand.vmem [shape: f32[1,128], index: 2, kind: input, shape index: {}]   ;;  %s1433_s3 = inlined_call_operand.vmem [shape: bf16[32,128], index: 3, kind: output, shape index: {}]  }
   0x1   :  { %v1097_v0 = vld [vmem:[%s1430_s1 + $0x78] sm:$0xff]   ;;  %v1101_v4 = vld [vmem:[%s1430_s1 + $0x70] sm:$0xff]   ;;  %v1105_v8 = vld [vmem:[%s1430_s1 + $0x68] sm:$0xff]  }
   0x2   :  { %v1098_v1 = vld [vmem:[%s1430_s1 + $0xf8] sm:$0xff]   ;;  %985 = vmatprep.subr.bf16.mxu0 %v1097_v0  ;;  %v1102_v5 = vld [vmem:[%s1430_s1 + $0xf0] sm:$0xff]   ;;  %v1106_v9 = vld [vmem:[%s1430_s1 + $0xe8] sm:$0xff]  }
   0x3   :  { %v1099_v2 = vld [vmem:[%s1430_s1 + $0x38] sm:$0xff]   ;;  %1013 = vmatprep.subr.bf16.mxu1 %v1098_v1  ;;  %v1103_v6 = vld [vmem:[%s1430_s1 + $0x30] sm:$0xff]   ;;  %v1107_v10 = vld [vmem:[%s1430_s1 + $0x28] sm:$0xff]  }
   0x4   :  { %v1100_v3 = vld [vmem:[%s1430_s1 + $0xb8] sm:$0xff]   ;;  %986 = vmatpush3.bf16.msra.mxu0 %v1099_v2  ;;  %v1104_v7 = vld [vmem:[%s1430_s1 + $0xb0] sm:$0xff]   ;;  %v1108_v11 = vld [vmem:[%s1430_s1 + $0xa8] sm:$0xff]  }
   0x5   :  { %1014 = vmatpush3.bf16.msra.mxu1 %v1100_v3  ;;  %987 = vmatprep.subr.bf16.mxu0 %v1101_v4  ;;  %v1109_v12 = vld [vmem:[%s1430_s1 + $0x60] sm:$0xff]   ;;  %v1113_v16 = vld [vmem:[%s1430_s1 + $0x58] sm:$0xff]   ;;  %v1117_v20 = vld [vmem:[%s1430_s1 + $0x50] sm:$0xff]  }
   0x6   :  { %1015 = vmatprep.subr.bf16.mxu1 %v1102_v5  ;;  %v1110_v13 = vld [vmem:[%s1430_s1 + $0xe0] sm:$0xff]   ;;  %v1114_v17 = vld [vmem:[%s1430_s1 + $0xd8] sm:$0xff]   ;;  %v1118_v21 = vld [vmem:[%s1430_s1 + $0xd0] sm:$0xff]  }
   0x7   :  { %v1111_v14 = vld [vmem:[%s1430_s1 + $0x20] sm:$0xff]   ;;  %v1115_v18 = vld [vmem:[%s1430_s1 + $0x18] sm:$0xff]   ;;  %v1119_v22 = vld [vmem:[%s1430_s1 + $0x10] sm:$0xff]  }
   0x8   :  { %988 = vmatpush3.bf16.msra.mxu0 %v1103_v6  ;;  %v1112_v15 = vld [vmem:[%s1430_s1 + $0xa0] sm:$0xff]   ;;  %v1116_v19 = vld [vmem:[%s1430_s1 + $0x98] sm:$0xff]   ;;  %v1120_v23 = vld [vmem:[%s1430_s1 + $0x90] sm:$0xff]  }
   0x9   :  { %1016 = vmatpush3.bf16.msra.mxu1 %v1104_v7  ;;  %989 = vmatprep.subr.bf16.mxu0 %v1105_v8  ;;  %v1121_v24 = vld [vmem:[%s1430_s1 + $0x48] sm:$0xff]   ;;  %v1125_v28 = vld [vmem:[%s1430_s1 + $0x40] sm:$0xff]   ;;  %v1129_v40 = vld [vmem:[%s1430_s1 + $0x178] sm:$0xff]  }
   0xa   :  { %1017 = vmatprep.subr.bf16.mxu1 %v1106_v9  ;;  %v1122_v25 = vld [vmem:[%s1430_s1 + $0xc8] sm:$0xff]   ;;  %v1126_v29 = vld [vmem:[%s1430_s1 + $0xc0] sm:$0xff]   ;;  %v1130_v41 = vld [vmem:[%s1430_s1 + $0x1f8] sm:$0xff]  }
   0xb   :  { %v1123_v26 = vld [vmem:[%s1430_s1 + $0x8] sm:$0xff]   ;;  %v1127_v30 = vld [vmem:[%s1430_s1] sm:$0xff]   ;;  %v1131_v42 = vld [vmem:[%s1430_s1 + $0x138] sm:$0xff]  }
   0xc   :  { %990 = vmatpush3.bf16.msra.mxu0 %v1107_v10  ;;  %v1124_v27 = vld [vmem:[%s1430_s1 + $0x88] sm:$0xff]   ;;  %v1128_v31 = vld [vmem:[%s1430_s1 + $0x80] sm:$0xff]   ;;  %v1132_v43 = vld [vmem:[%s1430_s1 + $0x1b8] sm:$0xff]  }
   0xd   :  { %1018 = vmatpush3.bf16.msra.mxu1 %v1108_v11  ;;  %991 = vmatprep.subr.bf16.mxu0 %v1109_v12  ;;  %v27_v32 = vld [vmem:[%s1431_s0] sm:$0xff]  ;;  %v28_v34 = vld [vmem:[%s1431_s0 + $0x8] sm:$0xff]  ;;  %v1133_v44 = vld [vmem:[%s1430_s1 + $0x170] sm:$0xff]  }
   0xe   :  { %1019 = vmatprep.subr.bf16.mxu1 %v1110_v13  ;;  %v31_v33 = vld [vmem:[%s1431_s0 + $0x20] sm:$0xff]  ;;  %v32_v37 = vld [vmem:[%s1431_s0 + $0x28] sm:$0xff]  ;;  %v1134_v45 = vld [vmem:[%s1430_s1 + $0x1f0] sm:$0xff]  }
   0xf   :  { %v885_v35 = vcombine.low %v27_v32, %v31_v33  ;;  %v886_v36 = vcombine.high %v27_v32, %v31_v33  ;;  %v887_v38 = vcombine.low %v28_v34, %v32_v37  ;;  %v888_v39 = vcombine.high %v28_v34, %v32_v37  ;;  %v1135_v46 = vld [vmem:[%s1430_s1 + $0x130] sm:$0xff]   ;;  %v1137_v48 = vld [vmem:[%s1430_s1 + $0x168] sm:$0xff]   ;;  %v1141_v52 = vld [vmem:[%s1430_s1 + $0x160] sm:$0xff]  }
  0x10   :  { %992 = vmatpush3.bf16.msra.mxu0 %v1111_v14  ;;  %v1136_v47 = vld [vmem:[%s1430_s1 + $0x1b0] sm:$0xff]   ;;  %v1138_v49 = vld [vmem:[%s1430_s1 + $0x1e8] sm:$0xff]   ;;  %v1142_v53 = vld [vmem:[%s1430_s1 + $0x1e0] sm:$0xff]  }
  0x11   :  { %1020 = vmatpush3.bf16.msra.mxu1 %v1112_v15  ;;  %993 = vmatprep.subr.bf16.mxu0 %v1113_v16  ;;  %v1139_v50 = vld [vmem:[%s1430_s1 + $0x128] sm:$0xff]   ;;  %v1143_v54 = vld [vmem:[%s1430_s1 + $0x120] sm:$0xff]   ;;  %v1145_v56 = vld [vmem:[%s1430_s1 + $0x158] sm:$0xff]  }
  0x12   :  { %1021 = vmatprep.subr.bf16.mxu1 %v1114_v17  ;;  %667 = vmatprep.mubr.bf16.mxu0 %v886_v36  ;;  %v1140_v51 = vld [vmem:[%s1430_s1 + $0x1a8] sm:$0xff]   ;;  %v1144_v55 = vld [vmem:[%s1430_s1 + $0x1a0] sm:$0xff]   ;;  %v1146_v57 = vld [vmem:[%s1430_s1 + $0x1d8] sm:$0xff]  }
  0x13   :  { %716 = vmatprep.mubr.bf16.mxu1 %v888_v39  ;;  %v35_v58 = vld [vmem:[%s1431_s0 + $0x40] sm:$0xff]  ;;  %v36_v61 = vld [vmem:[%s1431_s0 + $0x48] sm:$0xff]  ;;  %v1147_v1 = vld [vmem:[%s1430_s1 + $0x118] sm:$0xff]  }
  0x14   :  { %994 = vmatpush3.bf16.msra.mxu0 %v1115_v18  ;;  %v39_v59 = vld [vmem:[%s1431_s0 + $0x60] sm:$0xff]  ;;  %v40_v62 = vld [vmem:[%s1431_s0 + $0x68] sm:$0xff]  ;;  %v1148_v3 = vld [vmem:[%s1430_s1 + $0x198] sm:$0xff]  }
  0x15   :  { %1022 = vmatpush3.bf16.msra.mxu1 %v1116_v19  ;;  %995 = vmatprep.subr.bf16.mxu0 %v1117_v20  ;;  %v894_v60 = vcombine.high %v35_v58, %v39_v59  ;;  %v893_v63 = vcombine.low %v35_v58, %v39_v59  ;;  %v896_v0 = vcombine.high %v36_v61, %v40_v62  ;;  %v1149_v4 = vld [vmem:[%s1430_s1 + $0x150] sm:$0xff]   ;;  %v1153_v8 = vld [vmem:[%s1430_s1 + $0x148] sm:$0xff]   ;;  %v1157_v12 = vld [vmem:[%s1430_s1 + $0x140] sm:$0xff]  }
  0x16   :  { %1023 = vmatprep.subr.bf16.mxu1 %v1118_v21  ;;  %v895_v2 = vcombine.low %v36_v61, %v40_v62  ;;  %v1150_v5 = vld [vmem:[%s1430_s1 + $0x1d0] sm:$0xff]   ;;  %v1154_v9 = vld [vmem:[%s1430_s1 + $0x1c8] sm:$0xff]   ;;  %v1158_v13 = vld [vmem:[%s1430_s1 + $0x1c0] sm:$0xff]  }
  0x17   :  { %v1151_v6 = vld [vmem:[%s1430_s1 + $0x110] sm:$0xff]   ;;  %v1155_v10 = vld [vmem:[%s1430_s1 + $0x108] sm:$0xff]   ;;  %v1159_v14 = vld [vmem:[%s1430_s1 + $0x100] sm:$0xff]  }
  0x18   :  { %996 = vmatpush3.bf16.msra.mxu0 %v1119_v22  ;;  %v1152_v7 = vld [vmem:[%s1430_s1 + $0x190] sm:$0xff]   ;;  %v1156_v11 = vld [vmem:[%s1430_s1 + $0x188] sm:$0xff]   ;;  %v1160_v15 = vld [vmem:[%s1430_s1 + $0x180] sm:$0xff]  }
  0x19   :  { %1024 = vmatpush3.bf16.msra.mxu1 %v1120_v23  ;;  %997 = vmatprep.subr.bf16.mxu0 %v1121_v24  ;;  %v29_v16 = vld [vmem:[%s1431_s0 + $0x10] sm:$0xff]  ;;  %v30_v18 = vld [vmem:[%s1431_s0 + $0x18] sm:$0xff] }
  0x1a   :  { %1025 = vmatprep.subr.bf16.mxu1 %v1122_v25  ;;  %v33_v17 = vld [vmem:[%s1431_s0 + $0x30] sm:$0xff]  ;;  %v34_v19 = vld [vmem:[%s1431_s0 + $0x38] sm:$0xff] }
  0x1b   :  { %v889_v20 = vcombine.low %v29_v16, %v33_v17  ;;  %v890_v21 = vcombine.high %v29_v16, %v33_v17  ;;  %v891_v22 = vcombine.low %v30_v18, %v34_v19  ;;  %v892_v23 = vcombine.high %v30_v18, %v34_v19  ;;  %v37_v24 = vld [vmem:[%s1431_s0 + $0x50] sm:$0xff] }
  0x1c   :  { %998 = vmatpush3.bf16.msra.mxu0 %v1123_v26  ;;  %v41_v25 = vld [vmem:[%s1431_s0 + $0x70] sm:$0xff]  ;;  %v38_v26 = vld [vmem:[%s1431_s0 + $0x58] sm:$0xff] }
  0x1d   :  { %1026 = vmatpush3.bf16.msra.mxu1 %v1124_v27  ;;  %999 = vmatprep.subr.bf16.mxu0 %v1125_v28  ;;  %v898_v27 = vcombine.high %v37_v24, %v41_v25  ;;  %v42_v28 = vld [vmem:[%s1431_s0 + $0x78] sm:$0xff] }
  0x1e   :  { %1027 = vmatprep.subr.bf16.mxu1 %v1126_v29  ;;  %v900_v29 = vcombine.high %v38_v26, %v42_v28 }
  0x20   :  { %1000 = vmatpush3.bf16.msra.mxu0 %v1127_v30  ;;  %v897_v30 = vcombine.low %v37_v24, %v41_v25 }
  0x21   :  { %1028 = vmatpush3.bf16.msra.mxu1 %v1128_v31  ;;  %1041 = vmatprep.subr.bf16.mxu0 %v1129_v40  ;;  %v899_v31 = vcombine.low %v38_v26, %v42_v28 }
  0x22   :  { %1069 = vmatprep.subr.bf16.mxu1 %v1130_v41 }
  0x23   :  { %668 = vmatmul.mubr.bf16.vlgmr.msra.gmra.mxu0 %v885_v35 }
  0x24   :  { %717 = vmatmul.mubr.bf16.vlgmr.msra.gmra.mxu1 %v887_v38  ;;  %1042 = vmatpush3.bf16.msra.mxu0 %v1131_v42 }
  0x25   :  { %1070 = vmatpush3.bf16.msra.mxu1 %v1132_v43  ;;  %1043 = vmatprep.subr.bf16.mxu0 %v1133_v44 }
  0x26   :  { %1071 = vmatprep.subr.bf16.mxu1 %v1134_v45  ;;  %675 = vmatprep.mubr.bf16.mxu0 %v894_v60 }
  0x27   :  { %724 = vmatprep.mubr.bf16.mxu1 %v896_v0 }
  0x28   :  { %1044 = vmatpush3.bf16.msra.mxu0 %v1135_v46 }
  0x29   :  { %1072 = vmatpush3.bf16.msra.mxu1 %v1136_v47  ;;  %1045 = vmatprep.subr.bf16.mxu0 %v1137_v48 }
  0x2a   :  { %1073 = vmatprep.subr.bf16.mxu1 %v1138_v49 }
  0x2b   :  { %676 = vmatmul.mubr.bf16.gmra.mxu0 %v893_v63 }
  0x2c   :  { %1046 = vmatpush3.bf16.msra.mxu0 %v1139_v50  ;;  %725 = vmatmul.mubr.bf16.gmra.mxu1 %v895_v2 }
  0x2d   :  { %1074 = vmatpush3.bf16.msra.mxu1 %v1140_v51  ;;  %1047 = vmatprep.subr.bf16.mxu0 %v1141_v52 }
  0x2e   :  { %1075 = vmatprep.subr.bf16.mxu1 %v1142_v53  ;;  %765 = vmatprep.mubr.bf16.mxu0 %v890_v21 }
  0x2f   :  { %814 = vmatprep.mubr.bf16.mxu1 %v892_v23 }
  0x30   :  { %1048 = vmatpush3.bf16.msra.mxu0 %v1143_v54 }
  0x31   :  { %1076 = vmatpush3.bf16.msra.mxu1 %v1144_v55  ;;  %1049 = vmatprep.subr.bf16.mxu0 %v1145_v56 }
  0x32   :  { %1077 = vmatprep.subr.bf16.mxu1 %v1146_v57 }
  0x34   :  { %1050 = vmatpush3.bf16.msra.mxu0 %v1147_v1 }
  0x35   :  { %1078 = vmatpush3.bf16.msra.mxu1 %v1148_v3  ;;  %1051 = vmatprep.subr.bf16.mxu0 %v1149_v4 }
  0x36   :  { %1079 = vmatprep.subr.bf16.mxu1 %v1150_v5  ;;  %v965_v5 = vld [vmem:[%s1432_s2] ss:$0 sm:$0xff] }
  0x38   :  { %1052 = vmatpush3.bf16.msra.mxu0 %v1151_v6 }
  0x39   :  { %1080 = vmatpush3.bf16.msra.mxu1 %v1152_v7  ;;  %1053 = vmatprep.subr.bf16.mxu0 %v1153_v8 }
  0x3a   :  { %1081 = vmatprep.subr.bf16.mxu1 %v1154_v9 }
  0x3c   :  { %1054 = vmatpush3.bf16.msra.mxu0 %v1155_v10 }
  0x3d   :  { %1082 = vmatpush3.bf16.msra.mxu1 %v1156_v11  ;;  %1055 = vmatprep.subr.bf16.mxu0 %v1157_v12 }
  0x3e   :  { %1083 = vmatprep.subr.bf16.mxu1 %v1158_v13 }
  0x40   :  { %1056 = vmatpush3.bf16.msra.mxu0 %v1159_v14 }
  0x41   :  { %1084 = vmatpush3.bf16.msra.mxu1 %v1160_v15 }
  0x43   :  { %766 = vmatmul.mubr.bf16.vlgmr.msra.gmra.mxu0 %v889_v20 }
  0x44   :  { %815 = vmatmul.mubr.bf16.vlgmr.msra.gmra.mxu1 %v891_v22  ;;  %773 = vmatprep.mubr.bf16.mxu0 %v898_v27 }
  0x45   :  { %822 = vmatprep.mubr.bf16.mxu1 %v900_v29 }
  0x4b   :  { %774 = vmatmul.mubr.bf16.gmra.mxu0 %v897_v30 }
  0x4c   :  { %823 = vmatmul.mubr.bf16.gmra.mxu1 %v899_v31 }
  0xe3   :  { %v1001_v32 = vpop.f32.mrf.mxu0 }
  0xe4   :  { %v1029_v33 = vpop.f32.mrf.mxu1 }
  0xe5   :  { %v1002_v34 = vpop.f32.mrf.mxu0 }
  0xe6   :  { %v1030_v35 = vpop.f32.mrf.mxu1  ;;  %v1003_v48 = vadd.f32 %v1002_v34, %v1001_v32 }
  0xe7   :  { %v1004_v36 = vpop.f32.mrf.mxu0  ;;  %v1031_v49 = vadd.f32 %v1030_v35, %v1029_v33 }
  0xe8   :  { %v1032_v37 = vpop.f32.mrf.mxu1 }
  0xe9   :  { %v1005_v38 = vpop.f32.mrf.mxu0  ;;  %v719_v56 = vadd.f32 %v1031_v49, %v1003_v48 }
  0xea   :  { %v1033_v39 = vpop.f32.mrf.mxu1  ;;  %v1006_v52 = vadd.f32 %v1005_v38, %v1004_v36 }
  0xeb   :  { %v1007_v40 = vpop.f32.mrf.mxu0  ;;  %v1034_v53 = vadd.f32 %v1033_v39, %v1032_v37 }
  0xec   :  { %v1035_v41 = vpop.f32.mrf.mxu1 }
  0xed   :  { %v1008_v42 = vpop.f32.mrf.mxu0  ;;  %v722_v62 = vadd.f32 %v1034_v53, %v1006_v52 }
  0xee   :  { %v1036_v43 = vpop.f32.mrf.mxu1  ;;  %v1009_v1 = vadd.f32 %v1008_v42, %v1007_v40 }
  0xef   :  { %v1010_v44 = vpop.f32.mrf.mxu0  ;;  %v1037_v2 = vadd.f32 %v1036_v43, %v1035_v41 }
  0xf0   :  { %v1038_v45 = vpop.f32.mrf.mxu1 }
  0xf1   :  { %v1011_v46 = vpop.f32.mrf.mxu0  ;;  %v727_v14 = vadd.f32 %v1037_v2, %v1009_v1 }
  0xf2   :  { %v1039_v47 = vpop.f32.mrf.mxu1  ;;  %v1012_v10 = vadd.f32 %v1011_v46, %v1010_v44 }
  0xf3   :  { %v1040_v11 = vadd.f32 %v1039_v47, %v1038_v45 }
  0xf5   :  { %v730_v23 = vadd.f32 %v1040_v11, %v1012_v10 }
 0x103   :  { %v1057_v50 = vpop.f32.mrf.mxu0 }
 0x104   :  { %v1085_v51 = vpop.f32.mrf.mxu1 }
 0x105   :  { %v1058_v54 = vpop.f32.mrf.mxu0 }
 0x106   :  { %v1086_v55 = vpop.f32.mrf.mxu1  ;;  %v1059_v57 = vadd.f32 %v1058_v54, %v1057_v50 }
 0x107   :  { %v1060_v58 = vpop.f32.mrf.mxu0  ;;  %v1087_v61 = vadd.f32 %v1086_v55, %v1085_v51 }
 0x108   :  { %v1088_v59 = vpop.f32.mrf.mxu1  ;;  %v768_v60 = vadd.f32 %v1059_v57, %v719_v56 }
 0x109   :  { %v1061_v63 = vpop.f32.mrf.mxu0 }
 0x10a   :  { %v1089_v0 = vpop.f32.mrf.mxu1  ;;  %v817_v3 = vadd.f32 %v1087_v61, %v768_v60  ;;  %v1062_v4 = vadd.f32 %v1061_v63, %v1060_v58 }
 0x10b   :  { %v1063_v6 = vpop.f32.mrf.mxu0  ;;  %v1090_v9 = vadd.f32 %v1089_v0, %v1088_v59 }
 0x10c   :  { %v1091_v7 = vpop.f32.mrf.mxu1  ;;  %v771_v8 = vadd.f32 %v1062_v4, %v722_v62  ;;  %v853_v15 = vadd.f32 %v965_v5, %v817_v3 }
 0x10d   :  { %v1064_v12 = vpop.f32.mrf.mxu0 }
 0x10e   :  { %v1092_v13 = vpop.f32.mrf.mxu1  ;;  %v820_v16 = vadd.f32 %v1090_v9, %v771_v8  ;;  %v1065_v17 = vadd.f32 %v1064_v12, %v1063_v6  ;;  %v857_v26 = vmax.f32 %v853_v15, 0.0 }
 0x10f   :  { %v1066_v18 = vpop.f32.mrf.mxu0  ;;  %v1093_v22 = vadd.f32 %v1092_v13, %v1091_v7 }
 0x110   :  { %v1094_v19 = vpop.f32.mrf.mxu1  ;;  %v854_v20 = vadd.f32 %v965_v5, %v820_v16  ;;  %v776_v21 = vadd.f32 %v1065_v17, %v727_v14 }
 0x111   :  { %v1067_v24 = vpop.f32.mrf.mxu0 }
 0x112   :  { %v1095_v25 = vpop.f32.mrf.mxu1  ;;  %v858_v27 = vmax.f32 %v854_v20, 0.0  ;;  %v825_v28 = vadd.f32 %v1093_v22, %v776_v21  ;;  %v1068_v29 = vadd.f32 %v1067_v24, %v1066_v18 }
 0x113   :  { %v1096_v32 = vadd.f32 %v1095_v25, %v1094_v19 }
 0x114   :  { %v977_v30 = vpack.c.bf16 %v858_v27, %v857_v26  ;;  %v779_v31 = vadd.f32 %v1068_v29, %v730_v23  ;;  %v855_v33 = vadd.f32 %v965_v5, %v825_v28 }
 0x116   :  { %978 = vst [vmem:[%s1433_s3] sm:$0xff] %v977_v30   ;;  %v828_v34 = vadd.f32 %v1096_v32, %v779_v31  ;;  %v859_v36 = vmax.f32 %v855_v33, 0.0 }
 0x118   :  { %v856_v35 = vadd.f32 %v965_v5, %v828_v34 }
 0x11a   :  { %v860_v37 = vmax.f32 %v856_v35, 0.0 }
 0x11c   :  { %v982_v38 = vpack.c.bf16 %v860_v37, %v859_v36 }
 0x11e   :  { %984 = vst [vmem:[%s1433_s3 + $0x8] sm:$0xff] %v982_v38  }

// kernel: vae_forward.36
= control target key start
LH: loop header
LB: loop body
LE: loop exit
PB: predicated region body
PF: predicated region fallthrough
CT: control target
= control target key end

     0   :  { %vm19_vm0 = vcmask 523264   ;;  %vm849_vm1 = vcmask 519168   ;;  %s1506_s1 = inlined_call_operand.vmem [shape: bf16[512,64], index: 1, kind: input, shape index: {}]   ;;  %s1507_s0 = inlined_call_operand.vmem [shape: bf16[128,512], index: 0, kind: input, shape index: {}]   ;;  %s1508_s2 = inlined_call_operand.vmem [shape: f32[1,64], index: 2, kind: input, shape index: {}]   ;;  %s1509_s3 = inlined_call_operand.vmem [shape: bf16[128,64], index: 3, kind: output, shape index: {}]  }
   0x1   :  { %v1096_v0 = vld [vmem:[%s1506_s1 + $0x78] sm:$0xff]   ;;  %v1100_v4 = vld [vmem:[%s1506_s1 + $0x70] sm:$0xff]   ;;  %v1104_v8 = vld [vmem:[%s1506_s1 + $0x68] sm:$0xff]  }
   0x2   :  { %v1097_v1 = vld [vmem:[%s1506_s1 + $0xf8] sm:$0xff]   ;;  %967 = vmatprep.subr.bf16.mxu0 %v1096_v0  ;;  %v1101_v5 = vld [vmem:[%s1506_s1 + $0xf0] sm:$0xff]   ;;  %v1105_v9 = vld [vmem:[%s1506_s1 + $0xe8] sm:$0xff]   ;;  %v1176_v0 = vmov 0.0  }
   0x3   :  { %v1098_v2 = vld [vmem:[%s1506_s1 + $0x38] sm:$0xff]   ;;  %1031 = vmatprep.subr.bf16.mxu1 %v1097_v1  ;;  %v1102_v6 = vld [vmem:[%s1506_s1 + $0x30] sm:$0xff]   ;;  %v1106_v10 = vld [vmem:[%s1506_s1 + $0x28] sm:$0xff]   ;;  %20 = vst.msk [vmem:[#allocation2] sm:$0xff] %vm19_vm0, %v1176_v0 }
   0x4   :  { %v1099_v3 = vld [vmem:[%s1506_s1 + $0xb8] sm:$0xff]   ;;  %968 = vmatpush3.bf16.msra.mxu0 %v1098_v2  ;;  %v1103_v7 = vld [vmem:[%s1506_s1 + $0xb0] sm:$0xff]   ;;  %v1107_v11 = vld [vmem:[%s1506_s1 + $0xa8] sm:$0xff]   ;;  %21 = vst.msk [vmem:[#allocation2 + $0x8] sm:$0xff] %vm19_vm0, %v1176_v0 }
   0x5   :  { %1032 = vmatpush3.bf16.msra.mxu1 %v1099_v3  ;;  %969 = vmatprep.subr.bf16.mxu0 %v1100_v4  ;;  %v1108_v12 = vld [vmem:[%s1506_s1 + $0x60] sm:$0xff]   ;;  %v1112_v16 = vld [vmem:[%s1506_s1 + $0x58] sm:$0xff]   ;;  %v1116_v20 = vld [vmem:[%s1506_s1 + $0x50] sm:$0xff]   ;;  %22 = vst.msk [vmem:[#allocation2 + $0x10] sm:$0xff] %vm19_vm0, %v1176_v0 }
   0x6   :  { %1033 = vmatprep.subr.bf16.mxu1 %v1101_v5  ;;  %v1109_v13 = vld [vmem:[%s1506_s1 + $0xe0] sm:$0xff]   ;;  %v1113_v17 = vld [vmem:[%s1506_s1 + $0xd8] sm:$0xff]   ;;  %v1117_v21 = vld [vmem:[%s1506_s1 + $0xd0] sm:$0xff]   ;;  %23 = vst.msk [vmem:[#allocation2 + $0x18] sm:$0xff] %vm19_vm0, %v1176_v0 }
   0x7   :  { %v1110_v14 = vld [vmem:[%s1506_s1 + $0x20] sm:$0xff]   ;;  %v1114_v18 = vld [vmem:[%s1506_s1 + $0x18] sm:$0xff]   ;;  %v1118_v22 = vld [vmem:[%s1506_s1 + $0x10] sm:$0xff]   ;;  %24 = vst.msk [vmem:[#allocation2 + $0x20] sm:$0xff] %vm19_vm0, %v1176_v0 }
   0x8   :  { %970 = vmatpush3.bf16.msra.mxu0 %v1102_v6  ;;  %v1111_v15 = vld [vmem:[%s1506_s1 + $0xa0] sm:$0xff]   ;;  %v1115_v19 = vld [vmem:[%s1506_s1 + $0x98] sm:$0xff]   ;;  %v1119_v23 = vld [vmem:[%s1506_s1 + $0x90] sm:$0xff]   ;;  %25 = vst.msk [vmem:[#allocation2 + $0x28] sm:$0xff] %vm19_vm0, %v1176_v0 }
   0x9   :  { %1034 = vmatpush3.bf16.msra.mxu1 %v1103_v7  ;;  %971 = vmatprep.subr.bf16.mxu0 %v1104_v8  ;;  %v1120_v24 = vld [vmem:[%s1506_s1 + $0x48] sm:$0xff]   ;;  %v1124_v28 = vld [vmem:[%s1506_s1 + $0x40] sm:$0xff]   ;;  %26 = vst.msk [vmem:[#allocation2 + $0x30] sm:$0xff] %vm19_vm0, %v1176_v0  ;;  %27 = vst.msk [vmem:[#allocation2 + $0x38] sm:$0xff] %vm19_vm0, %v1176_v0 }
   0xa   :  { %1035 = vmatprep.subr.bf16.mxu1 %v1105_v9  ;;  %v1121_v25 = vld [vmem:[%s1506_s1 + $0xc8] sm:$0xff]   ;;  %v1125_v29 = vld [vmem:[%s1506_s1 + $0xc0] sm:$0xff]   ;;  %28 = vst.msk [vmem:[#allocation2 + $0x40] sm:$0xff] %vm19_vm0, %v1176_v0  ;;  %29 = vst.msk [vmem:[#allocation2 + $0x48] sm:$0xff] %vm19_vm0, %v1176_v0 }
   0xb   :  { %v1122_v26 = vld [vmem:[%s1506_s1 + $0x8] sm:$0xff]   ;;  %v1126_v30 = vld [vmem:[%s1506_s1] sm:$0xff]   ;;  %30 = vst.msk [vmem:[#allocation2 + $0x50] sm:$0xff] %vm19_vm0, %v1176_v0  ;;  %31 = vst.msk [vmem:[#allocation2 + $0x58] sm:$0xff] %vm19_vm0, %v1176_v0 }
   0xc   :  { %972 = vmatpush3.bf16.msra.mxu0 %v1106_v10  ;;  %v1123_v27 = vld [vmem:[%s1506_s1 + $0x88] sm:$0xff]   ;;  %v1127_v31 = vld [vmem:[%s1506_s1 + $0x80] sm:$0xff]   ;;  %32 = vst.msk [vmem:[#allocation2 + $0x60] sm:$0xff] %vm19_vm0, %v1176_v0  ;;  %33 = vst.msk [vmem:[#allocation2 + $0x68] sm:$0xff] %vm19_vm0, %v1176_v0 }
   0xd   :  { %1036 = vmatpush3.bf16.msra.mxu1 %v1107_v11  ;;  %973 = vmatprep.subr.bf16.mxu0 %v1108_v12  ;;  %v1128_v32 = vld [vmem:[%s1507_s0] ss:$16 sps:$4 sm:$0xff]   ;;  %v1130_v33 = vld [vmem:[%s1507_s0 + $0x4] ss:$16 sps:$4 sm:$0xff]   ;;  %v1131_v34 = vld [vmem:[%s1507_s0 + $0x8] ss:$16 sps:$4 sm:$0xff]  }
   0xe   :  { %1037 = vmatprep.subr.bf16.mxu1 %v1109_v13  ;;  %v1133_v35 = vld [vmem:[%s1507_s0 + $0xc] ss:$16 sps:$4 sm:$0xff]   ;;  %532 = vmatprep.mubr.bf16.mxu0 %v1130_v33  ;;  %v1134_v36 = vld [vmem:[%s1507_s0 + $0x24] ss:$16 sps:$4 sm:$0xff]   ;;  %v1138_v38 = vld [vmem:[%s1507_s0 + $0x20] ss:$16 sps:$4 sm:$0xff]  }
   0xf   :  { %629 = vmatprep.mubr.bf16.mxu1 %v1133_v35  ;;  %v1136_v37 = vld [vmem:[%s1507_s0 + $0x2c] ss:$16 sps:$4 sm:$0xff]   ;;  %v1139_v39 = vld [vmem:[%s1507_s0 + $0x28] ss:$16 sps:$4 sm:$0xff]   ;;  %v1140_v40 = vld [vmem:[%s1507_s0 + $0x44] ss:$16 sps:$4 sm:$0xff]  }
  0x10   :  { %974 = vmatpush3.bf16.msra.mxu0 %v1110_v14  ;;  %v1142_v41 = vld [vmem:[%s1507_s0 + $0x4c] ss:$16 sps:$4 sm:$0xff]   ;;  %v1144_v42 = vld [vmem:[%s1507_s0 + $0x40] ss:$16 sps:$4 sm:$0xff]   ;;  %v1145_v43 = vld [vmem:[%s1507_s0 + $0x48] ss:$16 sps:$4 sm:$0xff]  }
  0x11   :  { %1038 = vmatpush3.bf16.msra.mxu1 %v1111_v15  ;;  %975 = vmatprep.subr.bf16.mxu0 %v1112_v16  ;;  %v1146_v44 = vld [vmem:[%s1507_s0 + $0x64] ss:$16 sps:$4 sm:$0xff]   ;;  %v1148_v45 = vld [vmem:[%s1507_s0 + $0x6c] ss:$16 sps:$4 sm:$0xff]   ;;  %v1150_v46 = vld [vmem:[%s1507_s0 + $0x60] ss:$16 sps:$4 sm:$0xff]  }
  0x12   :  { %1039 = vmatprep.subr.bf16.mxu1 %v1113_v17  ;;  %v1151_v47 = vld [vmem:[%s1507_s0 + $0x68] ss:$16 sps:$4 sm:$0xff]   ;;  %v1152_v48 = vld [vmem:[%s1507_s0 + $0x84] ss:$16 sps:$4 sm:$0xff]   ;;  %v1154_v49 = vld [vmem:[%s1507_s0 + $0x8c] ss:$16 sps:$4 sm:$0xff]  }
  0x13   :  { %v1156_v50 = vld [vmem:[%s1507_s0 + $0x80] ss:$16 sps:$4 sm:$0xff]   ;;  %v1157_v51 = vld [vmem:[%s1507_s0 + $0x88] ss:$16 sps:$4 sm:$0xff]   ;;  %v1158_v52 = vld [vmem:[%s1507_s0 + $0xa4] ss:$16 sps:$4 sm:$0xff]  }
  0x14   :  { %976 = vmatpush3.bf16.msra.mxu0 %v1114_v18  ;;  %v1160_v53 = vld [vmem:[%s1507_s0 + $0xac] ss:$16 sps:$4 sm:$0xff]   ;;  %v1162_v54 = vld [vmem:[%s1507_s0 + $0xa0] ss:$16 sps:$4 sm:$0xff]   ;;  %v1163_v55 = vld [vmem:[%s1507_s0 + $0xa8] ss:$16 sps:$4 sm:$0xff]  }
  0x15   :  { %1040 = vmatpush3.bf16.msra.mxu1 %v1115_v19  ;;  %977 = vmatprep.subr.bf16.mxu0 %v1116_v20  ;;  %v1164_v56 = vld [vmem:[%s1507_s0 + $0xc4] ss:$16 sps:$4 sm:$0xff]   ;;  %v1166_v57 = vld [vmem:[%s1507_s0 + $0xcc] ss:$16 sps:$4 sm:$0xff]   ;;  %v1168_v58 = vld [vmem:[%s1507_s0 + $0xc0] ss:$16 sps:$4 sm:$0xff]  }
  0x16   :  { %1041 = vmatprep.subr.bf16.mxu1 %v1117_v21  ;;  %v1169_v59 = vld [vmem:[%s1507_s0 + $0xc8] ss:$16 sps:$4 sm:$0xff]   ;;  %v1170_v60 = vld [vmem:[%s1507_s0 + $0xe4] ss:$16 sps:$4 sm:$0xff]   ;;  %v1172_v61 = vld [vmem:[%s1507_s0 + $0xec] ss:$16 sps:$4 sm:$0xff]  }
  0x17   :  { %v1174_v62 = vld [vmem:[%s1507_s0 + $0xe0] ss:$16 sps:$4 sm:$0xff]   ;;  %v1175_v63 = vld [vmem:[%s1507_s0 + $0xe8] ss:$16 sps:$4 sm:$0xff]   ;;  %34 = vst.msk [vmem:[#allocation2 + $0x70] sm:$0xff] %vm19_vm0, %v1176_v0  ;;  %35 = vst.msk [vmem:[#allocation2 + $0x78] sm:$0xff] %vm19_vm0, %v1176_v0 }
  0x18   :  { %978 = vmatpush3.bf16.msra.mxu0 %v1118_v22  ;;  %v36_v8 = vld [vmem:[#allocation2] sm:$0xff]  ;;  %v37_v17 = vld [vmem:[#allocation2 + $0x8] sm:$0xff] }
  0x19   :  { %1042 = vmatpush3.bf16.msra.mxu1 %v1119_v23  ;;  %979 = vmatprep.subr.bf16.mxu0 %v1120_v24 }
  0x1a   :  { %1043 = vmatprep.subr.bf16.mxu1 %v1121_v25 }
  0x1c   :  { %980 = vmatpush3.bf16.msra.mxu0 %v1122_v26  ;;  %v38_v26 = vld [vmem:[#allocation2 + $0x10] sm:$0xff] }
  0x1d   :  { %1044 = vmatpush3.bf16.msra.mxu1 %v1123_v27  ;;  %981 = vmatprep.subr.bf16.mxu0 %v1124_v28 }
  0x1e   :  { %1045 = vmatprep.subr.bf16.mxu1 %v1125_v29 }
  0x20   :  { %982 = vmatpush3.bf16.msra.mxu0 %v1126_v30  ;;  %v1410_v30 = vld [vmem:[%s1508_s2] ss:$0 sm:$0xff] }
  0x21   :  { %1046 = vmatpush3.bf16.msra.mxu1 %v1127_v31 }
  0x23   :  { %533 = vmatmul.mubr.bf16.vlgmr.msra.gmra.mxu0 %v1128_v32 }
  0x24   :  { %630 = vmatmul.mubr.bf16.vlgmr.msra.gmra.mxu1 %v1131_v34  ;;  %540 = vmatprep.mubr.bf16.mxu0 %v1134_v36 }
  0x25   :  { %637 = vmatprep.mubr.bf16.mxu1 %v1136_v37  ;;  %v39_v37 = vld [vmem:[#allocation2 + $0x18] sm:$0xff] }
  0x2b   :  { %541 = vmatmul.mubr.bf16.gmra.mxu0 %v1138_v38 }
  0x2c   :  { %638 = vmatmul.mubr.bf16.gmra.mxu1 %v1139_v39  ;;  %548 = vmatprep.mubr.bf16.mxu0 %v1140_v40 }
  0x2d   :  { %645 = vmatprep.mubr.bf16.mxu1 %v1142_v41 }
  0x33   :  { %549 = vmatmul.mubr.bf16.gmra.mxu0 %v1144_v42 }
  0x34   :  { %646 = vmatmul.mubr.bf16.gmra.mxu1 %v1145_v43  ;;  %556 = vmatprep.mubr.bf16.mxu0 %v1146_v44 }
  0x35   :  { %653 = vmatprep.mubr.bf16.mxu1 %v1148_v45 }
  0x3b   :  { %557 = vmatmul.mubr.bf16.gmra.mxu0 %v1150_v46 }
  0x3c   :  { %654 = vmatmul.mubr.bf16.gmra.mxu1 %v1151_v47  ;;  %564 = vmatprep.mubr.bf16.mxu0 %v1152_v48 }
  0x3d   :  { %661 = vmatprep.mubr.bf16.mxu1 %v1154_v49  ;;  %v40_v49 = vld [vmem:[#allocation2 + $0x20] sm:$0xff] }
  0x43   :  { %565 = vmatmul.mubr.bf16.gmra.mxu0 %v1156_v50 }
  0x44   :  { %662 = vmatmul.mubr.bf16.gmra.mxu1 %v1157_v51  ;;  %572 = vmatprep.mubr.bf16.mxu0 %v1158_v52 }
  0x45   :  { %669 = vmatprep.mubr.bf16.mxu1 %v1160_v53 }
  0x4b   :  { %573 = vmatmul.mubr.bf16.gmra.mxu0 %v1162_v54 }
  0x4c   :  { %670 = vmatmul.mubr.bf16.gmra.mxu1 %v1163_v55  ;;  %580 = vmatprep.mubr.bf16.mxu0 %v1164_v56 }
  0x4d   :  { %677 = vmatprep.mubr.bf16.mxu1 %v1166_v57 }
  0x53   :  { %581 = vmatmul.mubr.bf16.gmra.mxu0 %v1168_v58 }
  0x54   :  { %678 = vmatmul.mubr.bf16.gmra.mxu1 %v1169_v59  ;;  %588 = vmatprep.mubr.bf16.mxu0 %v1170_v60 }
  0x55   :  { %685 = vmatprep.mubr.bf16.mxu1 %v1172_v61 }
  0x5b   :  { %589 = vmatmul.mubr.bf16.gmra.mxu0 %v1174_v62  ;;  %v41_v62 = vld [vmem:[#allocation2 + $0x28] sm:$0xff] }
  0x5c   :  { %686 = vmatmul.mubr.bf16.gmra.mxu1 %v1175_v63 }
  0xe3   :  { %v983_v1 = vpop.f32.mrf.mxu0 }
  0xe4   :  { %v1047_v2 = vpop.f32.mrf.mxu1 }
  0xe5   :  { %v984_v3 = vpop.f32.mrf.mxu0 }
  0xe6   :  { %v985_v4 = vadd.f32 %v984_v3, %v983_v1  ;;  %v1048_v5 = vpop.f32.mrf.mxu1 }
  0xe7   :  { %v1049_v6 = vadd.f32 %v1048_v5, %v1047_v2  ;;  %v986_v7 = vpop.f32.mrf.mxu0 }
  0xe8   :  { %v1050_v9 = vpop.f32.mrf.mxu1 }
  0xe9   :  { %v632_v10 = vadd.f32 %v1049_v6, %v985_v4  ;;  %v987_v11 = vpop.f32.mrf.mxu0 }
  0xea   :  { %v988_v12 = vadd.f32 %v987_v11, %v986_v7  ;;  %v1051_v13 = vpop.f32.mrf.mxu1  ;;  %v42_v11 = vld [vmem:[#allocation2 + $0x30] sm:$0xff] }
  0xeb   :  { %v694_v14 = vadd.f32 %v632_v10, %v36_v8  ;;  %v1052_v15 = vadd.f32 %v1051_v13, %v1050_v9  ;;  %v989_v16 = vpop.f32.mrf.mxu0 }
  0xec   :  { %v1053_v18 = vpop.f32.mrf.mxu1 }
  0xed   :  { %711 = vst.msk [vmem:[#allocation2] sm:$0xff] %vm19_vm0, %v694_v14  ;;  %v635_v19 = vadd.f32 %v1052_v15, %v988_v12  ;;  %v990_v20 = vpop.f32.mrf.mxu0 }
  0xee   :  { %v991_v21 = vadd.f32 %v990_v20, %v989_v16  ;;  %v1054_v22 = vpop.f32.mrf.mxu1 }
  0xef   :  { %v695_v23 = vadd.f32 %v635_v19, %v37_v17  ;;  %v1055_v24 = vadd.f32 %v1054_v22, %v1053_v18  ;;  %v992_v25 = vpop.f32.mrf.mxu0 }
  0xf0   :  { %v1056_v27 = vpop.f32.mrf.mxu1 }
  0xf1   :  { %712 = vst.msk [vmem:[#allocation2 + $0x8] sm:$0xff] %vm19_vm0, %v695_v23  ;;  %v640_v28 = vadd.f32 %v1055_v24, %v991_v21  ;;  %v993_v29 = vpop.f32.mrf.mxu0  ;;  %v43_v24 = vld [vmem:[#allocation2 + $0x38] sm:$0xff] }
  0xf2   :  { %v994_v31 = vadd.f32 %v993_v29, %v992_v25  ;;  %v1057_v32 = vpop.f32.mrf.mxu1 }
  0xf3   :  { %v696_v33 = vadd.f32 %v640_v28, %v38_v26  ;;  %v1058_v34 = vadd.f32 %v1057_v32, %v1056_v27  ;;  %v995_v35 = vpop.f32.mrf.mxu0 }
  0xf4   :  { %v730_v36 = vld [vmem:[#allocation2] sm:$0xff]  ;;  %v1059_v38 = vpop.f32.mrf.mxu1 }
  0xf5   :  { %v753_v39 = vadd.f32 %v1410_v30, %v730_v36  ;;  %713 = vst.msk [vmem:[#allocation2 + $0x10] sm:$0xff] %vm19_vm0, %v696_v33  ;;  %v643_v40 = vadd.f32 %v1058_v34, %v994_v31  ;;  %v996_v41 = vpop.f32.mrf.mxu0 }
  0xf6   :  { %v997_v42 = vadd.f32 %v996_v41, %v995_v35  ;;  %v1060_v43 = vpop.f32.mrf.mxu1 }
  0xf7   :  { %v769_v44 = vmax.f32 %v753_v39, 0.0  ;;  %v697_v45 = vadd.f32 %v643_v40, %v39_v37  ;;  %v1061_v46 = vadd.f32 %v1060_v43, %v1059_v38  ;;  %v998_v47 = vpop.f32.mrf.mxu0  ;;  %v44_v38 = vld [vmem:[#allocation2 + $0x40] sm:$0xff] }
  0xf8   :  { %v731_v48 = vld [vmem:[#allocation2 + $0x8] sm:$0xff]  ;;  %v1062_v50 = vpop.f32.mrf.mxu1 }
  0xf9   :  { %v951_v51 = vpack.c.bf16 %v769_v44, %v769_v44  ;;  %v754_v52 = vadd.f32 %v1410_v30, %v731_v48  ;;  %714 = vst.msk [vmem:[#allocation2 + $0x18] sm:$0xff] %vm19_vm0, %v697_v45  ;;  %v648_v53 = vadd.f32 %v1061_v46, %v997_v42  ;;  %v999_v54 = vpop.f32.mrf.mxu0 }
  0xfa   :  { %v1000_v55 = vadd.f32 %v999_v54, %v998_v47  ;;  %v1063_v56 = vpop.f32.mrf.mxu1 }
  0xfb   :  { %850 = vst.msk [vmem:[%s1509_s3] sm:$0xf] %vm849_vm1, %v951_v51  ;;  %v770_v57 = vmax.f32 %v754_v52, 0.0  ;;  %v698_v58 = vadd.f32 %v648_v53, %v40_v49  ;;  %v1064_v59 = vadd.f32 %v1063_v56, %v1062_v50  ;;  %v1001_v60 = vpop.f32.mrf.mxu0  ;;  %v45_v51 = vld [vmem:[#allocation2 + $0x48] sm:$0xff] }
  0xfc   :  { %v732_v61 = vld [vmem:[#allocation2 + $0x10] sm:$0xff]  ;;  %v1065_v63 = vpop.f32.mrf.mxu1 }
  0xfd   :  { %v952_v0 = vpack.c.bf16 %v770_v57, %v770_v57  ;;  %v755_v1 = vadd.f32 %v1410_v30, %v732_v61  ;;  %715 = vst.msk [vmem:[#allocation2 + $0x20] sm:$0xff] %vm19_vm0, %v698_v58  ;;  %v651_v2 = vadd.f32 %v1064_v59, %v1000_v55  ;;  %v1002_v3 = vpop.f32.mrf.mxu0 }
  0xfe   :  { %v1003_v4 = vadd.f32 %v1002_v3, %v1001_v60  ;;  %v1066_v5 = vpop.f32.mrf.mxu1 }
  0xff   :  { %851 = vst.msk [vmem:[%s1509_s3 + $0x4] sm:$0xf] %vm849_vm1, %v952_v0  ;;  %v771_v6 = vmax.f32 %v755_v1, 0.0  ;;  %v699_v7 = vadd.f32 %v651_v2, %v41_v62  ;;  %v1067_v8 = vadd.f32 %v1066_v5, %v1065_v63  ;;  %v1004_v9 = vpop.f32.mrf.mxu0  ;;  %v46_v0 = vld [vmem:[#allocation2 + $0x50] sm:$0xff] }
 0x100   :  { %v733_v10 = vld [vmem:[#allocation2 + $0x18] sm:$0xff]  ;;  %v1068_v12 = vpop.f32.mrf.mxu1 }
 0x101   :  { %v953_v13 = vpack.c.bf16 %v771_v6, %v771_v6  ;;  %v756_v14 = vadd.f32 %v1410_v30, %v733_v10  ;;  %716 = vst.msk [vmem:[#allocation2 + $0x28] sm:$0xff] %vm19_vm0, %v699_v7  ;;  %v656_v15 = vadd.f32 %v1067_v8, %v1003_v4  ;;  %v1005_v16 = vpop.f32.mrf.mxu0 }
 0x102   :  { %v1006_v17 = vadd.f32 %v1005_v16, %v1004_v9  ;;  %v1069_v18 = vpop.f32.mrf.mxu1 }
 0x103   :  { %852 = vst.msk [vmem:[%s1509_s3 + $0x8] sm:$0xf] %vm849_vm1, %v953_v13  ;;  %v772_v19 = vmax.f32 %v756_v14, 0.0  ;;  %v700_v20 = vadd.f32 %v656_v15, %v42_v11  ;;  %v1070_v21 = vadd.f32 %v1069_v18, %v1068_v12  ;;  %v1007_v22 = vpop.f32.mrf.mxu0  ;;  %v47_v13 = vld [vmem:[#allocation2 + $0x58] sm:$0xff] }
 0x104   :  { %v734_v23 = vld [vmem:[#allocation2 + $0x20] sm:$0xff]  ;;  %v1071_v25 = vpop.f32.mrf.mxu1 }
 0x105   :  { %v954_v26 = vpack.c.bf16 %v772_v19, %v772_v19  ;;  %v757_v27 = vadd.f32 %v1410_v30, %v734_v23  ;;  %717 = vst.msk [vmem:[#allocation2 + $0x30] sm:$0xff] %vm19_vm0, %v700_v20  ;;  %v659_v28 = vadd.f32 %v1070_v21, %v1006_v17  ;;  %v1008_v29 = vpop.f32.mrf.mxu0 }
 0x106   :  { %v1009_v31 = vadd.f32 %v1008_v29, %v1007_v22  ;;  %v1072_v32 = vpop.f32.mrf.mxu1 }
 0x107   :  { %853 = vst.msk [vmem:[%s1509_s3 + $0xc] sm:$0xf] %vm849_vm1, %v954_v26  ;;  %v773_v33 = vmax.f32 %v757_v27, 0.0  ;;  %v701_v34 = vadd.f32 %v659_v28, %v43_v24  ;;  %v1073_v35 = vadd.f32 %v1072_v32, %v1071_v25  ;;  %v1010_v36 = vpop.f32.mrf.mxu0  ;;  %v48_v26 = vld [vmem:[#allocation2 + $0x60] sm:$0xff] }
 0x108   :  { %v735_v37 = vld [vmem:[#allocation2 + $0x28] sm:$0xff]  ;;  %v1074_v39 = vpop.f32.mrf.mxu1 }
 0x109   :  { %v955_v40 = vpack.c.bf16 %v773_v33, %v773_v33  ;;  %v758_v41 = vadd.f32 %v1410_v30, %v735_v37  ;;  %718 = vst.msk [vmem:[#allocation2 + $0x38] sm:$0xff] %vm19_vm0, %v701_v34  ;;  %v664_v42 = vadd.f32 %v1073_v35, %v1009_v31  ;;  %v1011_v43 = vpop.f32.mrf.mxu0 }
 0x10a   :  { %v1012_v44 = vadd.f32 %v1011_v43, %v1010_v36  ;;  %v1075_v45 = vpop.f32.mrf.mxu1 }
 0x10b   :  { %854 = vst.msk [vmem:[%s1509_s3 + $0x10] sm:$0xf] %vm849_vm1, %v955_v40  ;;  %v774_v46 = vmax.f32 %v758_v41, 0.0  ;;  %v702_v47 = vadd.f32 %v664_v42, %v44_v38  ;;  %v1076_v48 = vadd.f32 %v1075_v45, %v1074_v39  ;;  %v1013_v49 = vpop.f32.mrf.mxu0  ;;  %v49_v40 = vld [vmem:[#allocation2 + $0x68] sm:$0xff] }
 0x10c   :  { %v736_v50 = vld [vmem:[#allocation2 + $0x30] sm:$0xff]  ;;  %v1077_v52 = vpop.f32.mrf.mxu1 }
 0x10d   :  { %v956_v53 = vpack.c.bf16 %v774_v46, %v774_v46  ;;  %v759_v54 = vadd.f32 %v1410_v30, %v736_v50  ;;  %719 = vst.msk [vmem:[#allocation2 + $0x40] sm:$0xff] %vm19_vm0, %v702_v47  ;;  %v667_v55 = vadd.f32 %v1076_v48, %v1012_v44  ;;  %v1014_v56 = vpop.f32.mrf.mxu0 }
 0x10e   :  { %v1015_v57 = vadd.f32 %v1014_v56, %v1013_v49  ;;  %v1078_v58 = vpop.f32.mrf.mxu1 }
 0x10f   :  { %855 = vst.msk [vmem:[%s1509_s3 + $0x14] sm:$0xf] %vm849_vm1, %v956_v53  ;;  %v775_v59 = vmax.f32 %v759_v54, 0.0  ;;  %v703_v60 = vadd.f32 %v667_v55, %v45_v51  ;;  %v1079_v61 = vadd.f32 %v1078_v58, %v1077_v52  ;;  %v1016_v62 = vpop.f32.mrf.mxu0  ;;  %v50_v53 = vld [vmem:[#allocation2 + $0x70] sm:$0xff] }
 0x110   :  { %v737_v63 = vld [vmem:[#allocation2 + $0x38] sm:$0xff]  ;;  %v1080_v1 = vpop.f32.mrf.mxu1 }
 0x111   :  { %v957_v2 = vpack.c.bf16 %v775_v59, %v775_v59  ;;  %v760_v3 = vadd.f32 %v1410_v30, %v737_v63  ;;  %720 = vst.msk [vmem:[#allocation2 + $0x48] sm:$0xff] %vm19_vm0, %v703_v60  ;;  %v672_v4 = vadd.f32 %v1079_v61, %v1015_v57  ;;  %v1017_v5 = vpop.f32.mrf.mxu0 }
 0x112   :  { %v1018_v6 = vadd.f32 %v1017_v5, %v1016_v62  ;;  %v1081_v7 = vpop.f32.mrf.mxu1 }
 0x113   :  { %856 = vst.msk [vmem:[%s1509_s3 + $0x18] sm:$0xf] %vm849_vm1, %v957_v2  ;;  %v776_v8 = vmax.f32 %v760_v3, 0.0  ;;  %v704_v9 = vadd.f32 %v672_v4, %v46_v0  ;;  %v1082_v10 = vadd.f32 %v1081_v7, %v1080_v1  ;;  %v1019_v11 = vpop.f32.mrf.mxu0  ;;  %v51_v1 = vld [vmem:[#allocation2 + $0x78] sm:$0xff] }
 0x114   :  { %v738_v12 = vld [vmem:[#allocation2 + $0x40] sm:$0xff]  ;;  %v1083_v14 = vpop.f32.mrf.mxu1 }
 0x115   :  { %v958_v15 = vpack.c.bf16 %v776_v8, %v776_v8  ;;  %v761_v16 = vadd.f32 %v1410_v30, %v738_v12  ;;  %721 = vst.msk [vmem:[#allocation2 + $0x50] sm:$0xff] %vm19_vm0, %v704_v9  ;;  %v675_v17 = vadd.f32 %v1082_v10, %v1018_v6  ;;  %v1020_v18 = vpop.f32.mrf.mxu0 }
 0x116   :  { %v1021_v19 = vadd.f32 %v1020_v18, %v1019_v11  ;;  %v1084_v20 = vpop.f32.mrf.mxu1 }
 0x117   :  { %857 = vst.msk [vmem:[%s1509_s3 + $0x1c] sm:$0xf] %vm849_vm1, %v958_v15  ;;  %v777_v21 = vmax.f32 %v761_v16, 0.0  ;;  %v705_v22 = vadd.f32 %v675_v17, %v47_v13  ;;  %v1085_v23 = vadd.f32 %v1084_v20, %v1083_v14  ;;  %v1022_v24 = vpop.f32.mrf.mxu0 }
 0x118   :  { %v739_v25 = vld [vmem:[#allocation2 + $0x48] sm:$0xff]  ;;  %v1086_v27 = vpop.f32.mrf.mxu1 }
 0x119   :  { %v959_v28 = vpack.c.bf16 %v777_v21, %v777_v21  ;;  %v762_v29 = vadd.f32 %v1410_v30, %v739_v25  ;;  %722 = vst.msk [vmem:[#allocation2 + $0x58] sm:$0xff] %vm19_vm0, %v705_v22  ;;  %v680_v31 = vadd.f32 %v1085_v23, %v1021_v19  ;;  %v1023_v32 = vpop.f32.mrf.mxu0 }
 0x11a   :  { %v1024_v33 = vadd.f32 %v1023_v32, %v1022_v24  ;;  %v1087_v34 = vpop.f32.mrf.mxu1 }
 0x11b   :  { %858 = vst.msk [vmem:[%s1509_s3 + $0x20] sm:$0xf] %vm849_vm1, %v959_v28  ;;  %v778_v35 = vmax.f32 %v762_v29, 0.0  ;;  %v706_v36 = vadd.f32 %v680_v31, %v48_v26  ;;  %v1088_v37 = vadd.f32 %v1087_v34, %v1086_v27  ;;  %v1025_v38 = vpop.f32.mrf.mxu0 }
 0x11c   :  { %v740_v39 = vld [vmem:[#allocation2 + $0x50] sm:$0xff]  ;;  %v1089_v41 = vpop.f32.mrf.mxu1 }
 0x11d   :  { %v960_v42 = vpack.c.bf16 %v778_v35, %v778_v35  ;;  %v763_v43 = vadd.f32 %v1410_v30, %v740_v39  ;;  %723 = vst.msk [vmem:[#allocation2 + $0x60] sm:$0xff] %vm19_vm0, %v706_v36  ;;  %v683_v44 = vadd.f32 %v1088_v37, %v1024_v33  ;;  %v1026_v45 = vpop.f32.mrf.mxu0 }
 0x11e   :  { %v1027_v46 = vadd.f32 %v1026_v45, %v1025_v38  ;;  %v1090_v47 = vpop.f32.mrf.mxu1 }
 0x11f   :  { %859 = vst.msk [vmem:[%s1509_s3 + $0x24] sm:$0xf] %vm849_vm1, %v960_v42  ;;  %v779_v48 = vmax.f32 %v763_v43, 0.0  ;;  %v707_v49 = vadd.f32 %v683_v44, %v49_v40  ;;  %v1091_v50 = vadd.f32 %v1090_v47, %v1089_v41  ;;  %v1028_v51 = vpop.f32.mrf.mxu0 }
 0x120   :  { %v741_v52 = vld [vmem:[#allocation2 + $0x58] sm:$0xff]  ;;  %v1092_v54 = vpop.f32.mrf.mxu1 }
 0x121   :  { %v961_v55 = vpack.c.bf16 %v779_v48, %v779_v48  ;;  %v764_v56 = vadd.f32 %v1410_v30, %v741_v52  ;;  %724 = vst.msk [vmem:[#allocation2 + $0x68] sm:$0xff] %vm19_vm0, %v707_v49  ;;  %v688_v57 = vadd.f32 %v1091_v50, %v1027_v46  ;;  %v1029_v58 = vpop.f32.mrf.mxu0 }
 0x122   :  { %v1030_v59 = vadd.f32 %v1029_v58, %v1028_v51  ;;  %v1093_v60 = vpop.f32.mrf.mxu1 }
 0x123   :  { %860 = vst.msk [vmem:[%s1509_s3 + $0x28] sm:$0xf] %vm849_vm1, %v961_v55  ;;  %v780_v61 = vmax.f32 %v764_v56, 0.0  ;;  %v708_v62 = vadd.f32 %v688_v57, %v50_v53  ;;  %v1094_v63 = vadd.f32 %v1093_v60, %v1092_v54 }
 0x124   :  { %v742_v0 = vld [vmem:[#allocation2 + $0x60] sm:$0xff] }
 0x125   :  { %v962_v2 = vpack.c.bf16 %v780_v61, %v780_v61  ;;  %v765_v3 = vadd.f32 %v1410_v30, %v742_v0  ;;  %725 = vst.msk [vmem:[#allocation2 + $0x70] sm:$0xff] %vm19_vm0, %v708_v62  ;;  %v691_v4 = vadd.f32 %v1094_v63, %v1030_v59 }
 0x127   :  { %861 = vst.msk [vmem:[%s1509_s3 + $0x2c] sm:$0xf] %vm849_vm1, %v962_v2  ;;  %v781_v5 = vmax.f32 %v765_v3, 0.0  ;;  %v709_v6 = vadd.f32 %v691_v4, %v51_v1 }
 0x128   :  { %v743_v7 = vld [vmem:[#allocation2 + $0x68] sm:$0xff] }
 0x129   :  { %v963_v8 = vpack.c.bf16 %v781_v5, %v781_v5  ;;  %v766_v9 = vadd.f32 %v1410_v30, %v743_v7  ;;  %726 = vst.msk [vmem:[#allocation2 + $0x78] sm:$0xff] %vm19_vm0, %v709_v6 }
 0x12b   :  { %862 = vst.msk [vmem:[%s1509_s3 + $0x30] sm:$0xf] %vm849_vm1, %v963_v8  ;;  %v782_v10 = vmax.f32 %v766_v9, 0.0 }
 0x12c   :  { %v744_v11 = vld [vmem:[#allocation2 + $0x70] sm:$0xff] }
 0x12d   :  { %v964_v12 = vpack.c.bf16 %v782_v10, %v782_v10  ;;  %v767_v13 = vadd.f32 %v1410_v30, %v744_v11 }
 0x12f   :  { %863 = vst.msk [vmem:[%s1509_s3 + $0x34] sm:$0xf] %vm849_vm1, %v964_v12  ;;  %v783_v14 = vmax.f32 %v767_v13, 0.0 }
 0x130   :  { %v745_v15 = vld [vmem:[#allocation2 + $0x78] sm:$0xff] }
 0x131   :  { %v965_v16 = vpack.c.bf16 %v783_v14, %v783_v14  ;;  %v768_v17 = vadd.f32 %v1410_v30, %v745_v15 }
 0x133   :  { %864 = vst.msk [vmem:[%s1509_s3 + $0x38] sm:$0xf] %vm849_vm1, %v965_v16  ;;  %v784_v18 = vmax.f32 %v768_v17, 0.0 }
 0x135   :  { %v966_v19 = vpack.c.bf16 %v784_v18, %v784_v18 }
 0x137   :  { %865 = vst.msk [vmem:[%s1509_s3 + $0x3c] sm:$0xf] %vm849_vm1, %v966_v19 }

// kernel: vae_forward.40
= control target key start
LH: loop header
LB: loop body
LE: loop exit
PB: predicated region body
PF: predicated region fallthrough
CT: control target
= control target key end

     0   :  { %v2216_v0 = vmov 0   ;;  %vm19_vm0 = vcmask 23552   ;;  %v2217_v19 = vmov 0.0   ;;  %s3036_s1 = inlined_call_operand.vmem [shape: bf16[256,3], index: 1, kind: input, shape index: {}]   ;;  %s3037_s0 = inlined_call_operand.vmem [shape: bf16[512,256], index: 0, kind: input, shape index: {}]   ;;  %s3038_s2 = inlined_call_operand.vmem [shape: f32[1,3], index: 2, kind: input, shape index: {}]   ;;  %s3039_s3 = inlined_call_operand.vmem [shape: f32[512,3], index: 3, kind: output, shape index: {}]  }
   0x1   :  { %660 = vmatprep.subr.bf16.mxu0 %v2216_v0  ;;  %1813 = vmatprep.subr.bf16.mxu1 %v2216_v0  ;;  %v1847_v1 = vld [vmem:[%s3036_s1 + $0x38] sm:$0xff]   ;;  %v1848_v2 = vld [vmem:[%s3036_s1 + $0x30] sm:$0xff]   ;;  %v1849_v3 = vld [vmem:[%s3036_s1 + $0x28] sm:$0xff]   ;;  %20 = vst.msk [vmem:[#allocation2] sm:$0xff] %vm19_vm0, %v2217_v19 }
   0x2   :  { %661 = vmatpush1.bf16.msra.mxu0 %v1847_v1  ;;  %1829 = vmatpush1.bf16.msra.mxu1 %v1847_v1  ;;  %v1850_v4 = vld [vmem:[%s3036_s1 + $0x20] sm:$0xff]   ;;  %v1851_v5 = vld [vmem:[%s3036_s1 + $0x18] sm:$0xff]   ;;  %v1852_v7 = vld [vmem:[%s3036_s1 + $0x10] sm:$0xff]   ;;  %21 = vst.msk [vmem:[#allocation2 + $0x8] sm:$0xff] %vm19_vm0, %v2217_v19 }
   0x3   :  { %662 = vmatprep.subr.bf16.mxu0 %v2216_v0  ;;  %1814 = vmatprep.subr.bf16.mxu1 %v2216_v0  ;;  %v1865_v6 = vld [vmem:[%s3037_s0 + $0x4] ss:$8 sps:$4 sm:$0xff]   ;;  %v1855_v11 = vld [vmem:[%s3036_s1 + $0x78] sm:$0xff]   ;;  %v1856_v12 = vld [vmem:[%s3036_s1 + $0x70] sm:$0xff]   ;;  %22 = vst.msk [vmem:[#allocation2 + $0x10] sm:$0xff] %vm19_vm0, %v2217_v19 }
   0x4   :  { %v1868_v8 = vld [vmem:[%s3037_s0 + $0x104] ss:$8 sps:$4 sm:$0xff]   ;;  %692 = vmatprep.mubr.bf16.mxu0 %v1865_v6  ;;  %v1859_v15 = vld [vmem:[%s3036_s1 + $0x58] sm:$0xff]   ;;  %v1860_v16 = vld [vmem:[%s3036_s1 + $0x50] sm:$0xff]   ;;  %23 = vst.msk [vmem:[#allocation2 + $0x18] sm:$0xff] %vm19_vm0, %v2217_v19 }
   0x5   :  { %820 = vmatprep.mubr.bf16.mxu1 %v1868_v8  ;;  %v1853_v9 = vld [vmem:[%s3036_s1 + $0x8] sm:$0xff]   ;;  %v1854_v10 = vld [vmem:[%s3036_s1] sm:$0xff]   ;;  %24 = vst.msk [vmem:[#allocation2 + $0x20] sm:$0xff] %vm19_vm0, %v2217_v19  ;;  %25 = vst.msk [vmem:[#allocation2 + $0x28] sm:$0xff] %vm19_vm0, %v2217_v19 }
   0x6   :  { %663 = vmatpush1.bf16.msra.mxu0 %v1848_v2  ;;  %1830 = vmatpush1.bf16.msra.mxu1 %v1848_v2  ;;  %v1857_v13 = vld [vmem:[%s3036_s1 + $0x68] sm:$0xff]   ;;  %v1858_v14 = vld [vmem:[%s3036_s1 + $0x60] sm:$0xff]   ;;  %26 = vst.msk [vmem:[#allocation2 + $0x30] sm:$0xff] %vm19_vm0, %v2217_v19  ;;  %27 = vst.msk [vmem:[#allocation2 + $0x38] sm:$0xff] %vm19_vm0, %v2217_v19 }
   0x7   :  { %664 = vmatprep.subr.bf16.mxu0 %v2216_v0  ;;  %1815 = vmatprep.subr.bf16.mxu1 %v2216_v0  ;;  %v1861_v17 = vld [vmem:[%s3036_s1 + $0x48] sm:$0xff]   ;;  %v2322_v18 = vld [vmem:[%s3036_s1 + $0x40] sm:$0xff]   ;;  %28 = vst.msk [vmem:[#allocation2 + $0x40] sm:$0xff] %vm19_vm0, %v2217_v19  ;;  %29 = vst.msk [vmem:[#allocation2 + $0x48] sm:$0xff] %vm19_vm0, %v2217_v19 }
   0x8   :  { %30 = vst.msk [vmem:[#allocation2 + $0x50] sm:$0xff] %vm19_vm0, %v2217_v19  ;;  %31 = vst.msk [vmem:[#allocation2 + $0x58] sm:$0xff] %vm19_vm0, %v2217_v19  ;;  %v1863_v20 = vld [vmem:[%s3037_s0] ss:$8 sps:$4 sm:$0xff]   ;;  %v1869_v22 = vld [vmem:[%s3037_s0 + $0x14] ss:$8 sps:$4 sm:$0xff]  }
   0x9   :  { %32 = vst.msk [vmem:[#allocation2 + $0x60] sm:$0xff] %vm19_vm0, %v2217_v19  ;;  %33 = vst.msk [vmem:[#allocation2 + $0x68] sm:$0xff] %vm19_vm0, %v2217_v19  ;;  %v1866_v21 = vld [vmem:[%s3037_s0 + $0x100] ss:$8 sps:$4 sm:$0xff]   ;;  %v1871_v23 = vld [vmem:[%s3037_s0 + $0x114] ss:$8 sps:$4 sm:$0xff]  }
   0xa   :  { %665 = vmatpush1.bf16.msra.mxu0 %v1849_v3  ;;  %1831 = vmatpush1.bf16.msra.mxu1 %v1849_v3  ;;  %34 = vst.msk [vmem:[#allocation2 + $0x70] sm:$0xff] %vm19_vm0, %v2217_v19  ;;  %35 = vst.msk [vmem:[#allocation2 + $0x78] sm:$0xff] %vm19_vm0, %v2217_v19  ;;  %v1873_v24 = vld [vmem:[%s3037_s0 + $0x10] ss:$8 sps:$4 sm:$0xff]   ;;  %v1875_v26 = vld [vmem:[%s3037_s0 + $0x24] ss:$8 sps:$4 sm:$0xff]  }
   0xb   :  { %666 = vmatprep.subr.bf16.mxu0 %v2216_v0  ;;  %1816 = vmatprep.subr.bf16.mxu1 %v2216_v0  ;;  %36 = vst.msk [vmem:[#allocation2 + $0x80] sm:$0xff] %vm19_vm0, %v2217_v19  ;;  %37 = vst.msk [vmem:[#allocation2 + $0x88] sm:$0xff] %vm19_vm0, %v2217_v19  ;;  %v1874_v25 = vld [vmem:[%s3037_s0 + $0x110] ss:$8 sps:$4 sm:$0xff]   ;;  %v1877_v27 = vld [vmem:[%s3037_s0 + $0x124] ss:$8 sps:$4 sm:$0xff]  }
   0xc   :  { %38 = vst.msk [vmem:[#allocation2 + $0x90] sm:$0xff] %vm19_vm0, %v2217_v19  ;;  %39 = vst.msk [vmem:[#allocation2 + $0x98] sm:$0xff] %vm19_vm0, %v2217_v19  ;;  %v1879_v28 = vld [vmem:[%s3037_s0 + $0x20] ss:$8 sps:$4 sm:$0xff]   ;;  %v1881_v30 = vld [vmem:[%s3037_s0 + $0x34] ss:$8 sps:$4 sm:$0xff]  }
   0xd   :  { %40 = vst.msk [vmem:[#allocation2 + $0xa0] sm:$0xff] %vm19_vm0, %v2217_v19  ;;  %41 = vst.msk [vmem:[#allocation2 + $0xa8] sm:$0xff] %vm19_vm0, %v2217_v19  ;;  %v1880_v29 = vld [vmem:[%s3037_s0 + $0x120] ss:$8 sps:$4 sm:$0xff]   ;;  %v1883_v31 = vld [vmem:[%s3037_s0 + $0x134] ss:$8 sps:$4 sm:$0xff]  }
   0xe   :  { %667 = vmatpush1.bf16.msra.mxu0 %v1850_v4  ;;  %1832 = vmatpush1.bf16.msra.mxu1 %v1850_v4  ;;  %42 = vst.msk [vmem:[#allocation2 + $0xb0] sm:$0xff] %vm19_vm0, %v2217_v19  ;;  %43 = vst.msk [vmem:[#allocation2 + $0xb8] sm:$0xff] %vm19_vm0, %v2217_v19  ;;  %v1885_v32 = vld [vmem:[%s3037_s0 + $0x30] ss:$8 sps:$4 sm:$0xff]   ;;  %v1887_v34 = vld [vmem:[%s3037_s0 + $0x44] ss:$8 sps:$4 sm:$0xff]  }
   0xf   :  { %668 = vmatprep.subr.bf16.mxu0 %v2216_v0  ;;  %1817 = vmatprep.subr.bf16.mxu1 %v2216_v0  ;;  %44 = vst.msk [vmem:[#allocation2 + $0xc0] sm:$0xff] %vm19_vm0, %v2217_v19  ;;  %45 = vst.msk [vmem:[#allocation2 + $0xc8] sm:$0xff] %vm19_vm0, %v2217_v19  ;;  %v1886_v33 = vld [vmem:[%s3037_s0 + $0x130] ss:$8 sps:$4 sm:$0xff]   ;;  %v1889_v35 = vld [vmem:[%s3037_s0 + $0x144] ss:$8 sps:$4 sm:$0xff]  }
  0x10   :  { %46 = vst.msk [vmem:[#allocation2 + $0xd0] sm:$0xff] %vm19_vm0, %v2217_v19  ;;  %47 = vst.msk [vmem:[#allocation2 + $0xd8] sm:$0xff] %vm19_vm0, %v2217_v19  ;;  %v1891_v36 = vld [vmem:[%s3037_s0 + $0x40] ss:$8 sps:$4 sm:$0xff]   ;;  %v1893_v38 = vld [vmem:[%s3037_s0 + $0x54] ss:$8 sps:$4 sm:$0xff]  }
  0x11   :  { %48 = vst.msk [vmem:[#allocation2 + $0xe0] sm:$0xff] %vm19_vm0, %v2217_v19  ;;  %49 = vst.msk [vmem:[#allocation2 + $0xe8] sm:$0xff] %vm19_vm0, %v2217_v19  ;;  %v1892_v37 = vld [vmem:[%s3037_s0 + $0x140] ss:$8 sps:$4 sm:$0xff]   ;;  %v1895_v39 = vld [vmem:[%s3037_s0 + $0x154] ss:$8 sps:$4 sm:$0xff]  }
  0x12   :  { %669 = vmatpush1.bf16.msra.mxu0 %v1851_v5  ;;  %1833 = vmatpush1.bf16.msra.mxu1 %v1851_v5  ;;  %50 = vst.msk [vmem:[#allocation2 + $0xf0] sm:$0xff] %vm19_vm0, %v2217_v19  ;;  %51 = vst.msk [vmem:[#allocation2 + $0xf8] sm:$0xff] %vm19_vm0, %v2217_v19  ;;  %v1897_v40 = vld [vmem:[%s3037_s0 + $0x50] ss:$8 sps:$4 sm:$0xff]   ;;  %v1899_v42 = vld [vmem:[%s3037_s0 + $0x64] ss:$8 sps:$4 sm:$0xff]  }
  0x13   :  { %670 = vmatprep.subr.bf16.mxu0 %v2216_v0  ;;  %1818 = vmatprep.subr.bf16.mxu1 %v2216_v0  ;;  %52 = vst.msk [vmem:[#allocation2 + $0x100] sm:$0xff] %vm19_vm0, %v2217_v19  ;;  %53 = vst.msk [vmem:[#allocation2 + $0x108] sm:$0xff] %vm19_vm0, %v2217_v19  ;;  %v1898_v41 = vld [vmem:[%s3037_s0 + $0x150] ss:$8 sps:$4 sm:$0xff]   ;;  %v1901_v43 = vld [vmem:[%s3037_s0 + $0x164] ss:$8 sps:$4 sm:$0xff]  }
  0x14   :  { %54 = vst.msk [vmem:[#allocation2 + $0x110] sm:$0xff] %vm19_vm0, %v2217_v19  ;;  %55 = vst.msk [vmem:[#allocation2 + $0x118] sm:$0xff] %vm19_vm0, %v2217_v19  ;;  %v1903_v44 = vld [vmem:[%s3037_s0 + $0x60] ss:$8 sps:$4 sm:$0xff]   ;;  %v1905_v46 = vld [vmem:[%s3037_s0 + $0x74] ss:$8 sps:$4 sm:$0xff]  }
  0x15   :  { %56 = vst.msk [vmem:[#allocation2 + $0x120] sm:$0xff] %vm19_vm0, %v2217_v19  ;;  %57 = vst.msk [vmem:[#allocation2 + $0x128] sm:$0xff] %vm19_vm0, %v2217_v19  ;;  %v1904_v45 = vld [vmem:[%s3037_s0 + $0x160] ss:$8 sps:$4 sm:$0xff]   ;;  %v1907_v47 = vld [vmem:[%s3037_s0 + $0x174] ss:$8 sps:$4 sm:$0xff]  }
  0x16   :  { %671 = vmatpush1.bf16.msra.mxu0 %v1852_v7  ;;  %1834 = vmatpush1.bf16.msra.mxu1 %v1852_v7  ;;  %58 = vst.msk [vmem:[#allocation2 + $0x130] sm:$0xff] %vm19_vm0, %v2217_v19  ;;  %59 = vst.msk [vmem:[#allocation2 + $0x138] sm:$0xff] %vm19_vm0, %v2217_v19  ;;  %v1909_v48 = vld [vmem:[%s3037_s0 + $0x70] ss:$8 sps:$4 sm:$0xff]   ;;  %v1911_v50 = vld [vmem:[%s3037_s0 + $0x84] ss:$8 sps:$4 sm:$0xff]  }
  0x17   :  { %672 = vmatprep.subr.bf16.mxu0 %v2216_v0  ;;  %1819 = vmatprep.subr.bf16.mxu1 %v2216_v0  ;;  %60 = vst.msk [vmem:[#allocation2 + $0x140] sm:$0xff] %vm19_vm0, %v2217_v19  ;;  %61 = vst.msk [vmem:[#allocation2 + $0x148] sm:$0xff] %vm19_vm0, %v2217_v19  ;;  %v1910_v49 = vld [vmem:[%s3037_s0 + $0x170] ss:$8 sps:$4 sm:$0xff]   ;;  %v1913_v51 = vld [vmem:[%s3037_s0 + $0x184] ss:$8 sps:$4 sm:$0xff]  }
  0x18   :  { %62 = vst.msk [vmem:[#allocation2 + $0x150] sm:$0xff] %vm19_vm0, %v2217_v19  ;;  %63 = vst.msk [vmem:[#allocation2 + $0x158] sm:$0xff] %vm19_vm0, %v2217_v19  ;;  %v1915_v52 = vld [vmem:[%s3037_s0 + $0x80] ss:$8 sps:$4 sm:$0xff]   ;;  %v1917_v54 = vld [vmem:[%s3037_s0 + $0x94] ss:$8 sps:$4 sm:$0xff]  }
  0x19   :  { %64 = vst.msk [vmem:[#allocation2 + $0x160] sm:$0xff] %vm19_vm0, %v2217_v19  ;;  %65 = vst.msk [vmem:[#allocation2 + $0x168] sm:$0xff] %vm19_vm0, %v2217_v19  ;;  %v1916_v53 = vld [vmem:[%s3037_s0 + $0x180] ss:$8 sps:$4 sm:$0xff]   ;;  %v1919_v55 = vld [vmem:[%s3037_s0 + $0x194] ss:$8 sps:$4 sm:$0xff]  }
  0x1a   :  { %673 = vmatpush1.bf16.msra.mxu0 %v1853_v9  ;;  %1835 = vmatpush1.bf16.msra.mxu1 %v1853_v9  ;;  %66 = vst.msk [vmem:[#allocation2 + $0x170] sm:$0xff] %vm19_vm0, %v2217_v19  ;;  %67 = vst.msk [vmem:[#allocation2 + $0x178] sm:$0xff] %vm19_vm0, %v2217_v19  ;;  %v1921_v56 = vld [vmem:[%s3037_s0 + $0x90] ss:$8 sps:$4 sm:$0xff]   ;;  %v1923_v58 = vld [vmem:[%s3037_s0 + $0xa4] ss:$8 sps:$4 sm:$0xff]  }
  0x1b   :  { %674 = vmatprep.subr.bf16.mxu0 %v2216_v0  ;;  %1820 = vmatprep.subr.bf16.mxu1 %v2216_v0  ;;  %68 = vst.msk [vmem:[#allocation2 + $0x180] sm:$0xff] %vm19_vm0, %v2217_v19  ;;  %69 = vst.msk [vmem:[#allocation2 + $0x188] sm:$0xff] %vm19_vm0, %v2217_v19  ;;  %v1922_v57 = vld [vmem:[%s3037_s0 + $0x190] ss:$8 sps:$4 sm:$0xff]   ;;  %v1925_v59 = vld [vmem:[%s3037_s0 + $0x1a4] ss:$8 sps:$4 sm:$0xff]  }
  0x1c   :  { %70 = vst.msk [vmem:[#allocation2 + $0x190] sm:$0xff] %vm19_vm0, %v2217_v19  ;;  %71 = vst.msk [vmem:[#allocation2 + $0x198] sm:$0xff] %vm19_vm0, %v2217_v19  ;;  %v1927_v60 = vld [vmem:[%s3037_s0 + $0xa0] ss:$8 sps:$4 sm:$0xff]   ;;  %v1929_v62 = vld [vmem:[%s3037_s0 + $0xb4] ss:$8 sps:$4 sm:$0xff]  }
  0x1d   :  { %72 = vst.msk [vmem:[#allocation2 + $0x1a0] sm:$0xff] %vm19_vm0, %v2217_v19  ;;  %73 = vst.msk [vmem:[#allocation2 + $0x1a8] sm:$0xff] %vm19_vm0, %v2217_v19  ;;  %v1928_v61 = vld [vmem:[%s3037_s0 + $0x1a0] ss:$8 sps:$4 sm:$0xff]   ;;  %v1931_v63 = vld [vmem:[%s3037_s0 + $0x1b4] ss:$8 sps:$4 sm:$0xff]  }
  0x1e   :  { %675 = vmatpush1.bf16.msra.mxu0 %v1854_v10  ;;  %1836 = vmatpush1.bf16.msra.mxu1 %v1854_v10  ;;  %74 = vst.msk [vmem:[#allocation2 + $0x1b0] sm:$0xff] %vm19_vm0, %v2217_v19  ;;  %75 = vst.msk [vmem:[#allocation2 + $0x1b8] sm:$0xff] %vm19_vm0, %v2217_v19  ;;  %v1934_v1 = vld [vmem:[%s3037_s0 + $0x1b0] ss:$8 sps:$4 sm:$0xff]   ;;  %v1935_v2 = vld [vmem:[%s3037_s0 + $0xc4] ss:$8 sps:$4 sm:$0xff]  }
  0x1f   :  { %676 = vmatprep.subr.bf16.mxu0 %v2216_v0  ;;  %1821 = vmatprep.subr.bf16.mxu1 %v2216_v0  ;;  %76 = vst.msk [vmem:[#allocation2 + $0x1c0] sm:$0xff] %vm19_vm0, %v2217_v19  ;;  %77 = vst.msk [vmem:[#allocation2 + $0x1c8] sm:$0xff] %vm19_vm0, %v2217_v19  ;;  %v1937_v3 = vld [vmem:[%s3037_s0 + $0x1c4] ss:$8 sps:$4 sm:$0xff]   ;;  %v1939_v4 = vld [vmem:[%s3037_s0 + $0xc0] ss:$8 sps:$4 sm:$0xff]  }
  0x20   :  { %78 = vst.msk [vmem:[#allocation2 + $0x1d0] sm:$0xff] %vm19_vm0, %v2217_v19  ;;  %79 = vst.msk [vmem:[#allocation2 + $0x1d8] sm:$0xff] %vm19_vm0, %v2217_v19  ;;  %v1940_v5 = vld [vmem:[%s3037_s0 + $0x1c0] ss:$8 sps:$4 sm:$0xff]   ;;  %v1941_v6 = vld [vmem:[%s3037_s0 + $0xd4] ss:$8 sps:$4 sm:$0xff]  }
  0x21   :  { %80 = vst.msk [vmem:[#allocation2 + $0x1e0] sm:$0xff] %vm19_vm0, %v2217_v19  ;;  %81 = vst.msk [vmem:[#allocation2 + $0x1e8] sm:$0xff] %vm19_vm0, %v2217_v19  ;;  %v1943_v7 = vld [vmem:[%s3037_s0 + $0x1d4] ss:$8 sps:$4 sm:$0xff]   ;;  %v1945_v8 = vld [vmem:[%s3037_s0 + $0xd0] ss:$8 sps:$4 sm:$0xff]  }
  0x22   :  { %677 = vmatpush2.bf16.msra.mxu0 %v1855_v11  ;;  %1837 = vmatpush2.bf16.msra.mxu1 %v1855_v11  ;;  %82 = vst.msk [vmem:[#allocation2 + $0x1f0] sm:$0xff] %vm19_vm0, %v2217_v19  ;;  %83 = vst.msk [vmem:[#allocation2 + $0x1f8] sm:$0xff] %vm19_vm0, %v2217_v19  ;;  %v1946_v9 = vld [vmem:[%s3037_s0 + $0x1d0] ss:$8 sps:$4 sm:$0xff]   ;;  %v1947_v10 = vld [vmem:[%s3037_s0 + $0xe4] ss:$8 sps:$4 sm:$0xff]  }
  0x23   :  { %678 = vmatprep.subr.bf16.mxu0 %v2216_v0  ;;  %1822 = vmatprep.subr.bf16.mxu1 %v2216_v0  ;;  %v1949_v11 = vld [vmem:[%s3037_s0 + $0x1e4] ss:$8 sps:$4 sm:$0xff]  }
  0x24   :  { %v116_v19 = vld [vmem:[#allocation2 + $0x100] sm:$0xff] }
  0x26   :  { %679 = vmatpush2.bf16.msra.mxu0 %v1856_v12  ;;  %1838 = vmatpush2.bf16.msra.mxu1 %v1856_v12  ;;  %v1951_v12 = vld [vmem:[%s3037_s0 + $0xe0] ss:$8 sps:$4 sm:$0xff]  }
  0x27   :  { %680 = vmatprep.subr.bf16.mxu0 %v2216_v0  ;;  %1823 = vmatprep.subr.bf16.mxu1 %v2216_v0 }
  0x2a   :  { %681 = vmatpush2.bf16.msra.mxu0 %v1857_v13  ;;  %1839 = vmatpush2.bf16.msra.mxu1 %v1857_v13  ;;  %v1952_v13 = vld [vmem:[%s3037_s0 + $0x1e0] ss:$8 sps:$4 sm:$0xff]  }
  0x2b   :  { %682 = vmatprep.subr.bf16.mxu0 %v2216_v0  ;;  %1824 = vmatprep.subr.bf16.mxu1 %v2216_v0 }
  0x2e   :  { %683 = vmatpush2.bf16.msra.mxu0 %v1858_v14  ;;  %1840 = vmatpush2.bf16.msra.mxu1 %v1858_v14  ;;  %v1953_v14 = vld [vmem:[%s3037_s0 + $0xf4] ss:$8 sps:$4 sm:$0xff]  }
  0x2f   :  { %684 = vmatprep.subr.bf16.mxu0 %v2216_v0  ;;  %1825 = vmatprep.subr.bf16.mxu1 %v2216_v0 }
  0x32   :  { %685 = vmatpush2.bf16.msra.mxu0 %v1859_v15  ;;  %1841 = vmatpush2.bf16.msra.mxu1 %v1859_v15  ;;  %v1955_v15 = vld [vmem:[%s3037_s0 + $0x1f4] ss:$8 sps:$4 sm:$0xff]  }
  0x33   :  { %686 = vmatprep.subr.bf16.mxu0 %v2216_v0  ;;  %1826 = vmatprep.subr.bf16.mxu1 %v2216_v0 }
  0x36   :  { %687 = vmatpush2.bf16.msra.mxu0 %v1860_v16  ;;  %1842 = vmatpush2.bf16.msra.mxu1 %v1860_v16  ;;  %v1957_v16 = vld [vmem:[%s3037_s0 + $0xf0] ss:$8 sps:$4 sm:$0xff]  }
  0x37   :  { %688 = vmatprep.subr.bf16.mxu0 %v2216_v0  ;;  %1827 = vmatprep.subr.bf16.mxu1 %v2216_v0 }
  0x3a   :  { %689 = vmatpush2.bf16.msra.mxu0 %v1861_v17  ;;  %1843 = vmatpush2.bf16.msra.mxu1 %v1861_v17  ;;  %v1958_v17 = vld [vmem:[%s3037_s0 + $0x1f0] ss:$8 sps:$4 sm:$0xff]  }
  0x3b   :  { %690 = vmatprep.subr.bf16.mxu0 %v2216_v0  ;;  %1828 = vmatprep.subr.bf16.mxu1 %v2216_v0  ;;  %v1933_v0 = vld [vmem:[%s3037_s0 + $0xb0] ss:$8 sps:$4 sm:$0xff]  }
  0x3e   :  { %691 = vmatpush2.bf16.msra.mxu0 %v2322_v18  ;;  %1844 = vmatpush2.bf16.msra.mxu1 %v2322_v18  ;;  %v84_v18 = vld [vmem:[#allocation2] sm:$0xff] }
  0x41   :  { %693 = vmatmul.mubr.bf16.vlgmr.msra.gmra.mxu0 %v1863_v20  ;;  %821 = vmatmul.mubr.bf16.vlgmr.msra.gmra.mxu1 %v1866_v21 }
  0x42   :  { %700 = vmatprep.mubr.bf16.mxu0 %v1869_v22  ;;  %828 = vmatprep.mubr.bf16.mxu1 %v1871_v23 }
  0x49   :  { %701 = vmatmul.mubr.bf16.gmra.mxu0 %v1873_v24  ;;  %829 = vmatmul.mubr.bf16.gmra.mxu1 %v1874_v25 }
  0x4a   :  { %708 = vmatprep.mubr.bf16.mxu0 %v1875_v26  ;;  %836 = vmatprep.mubr.bf16.mxu1 %v1877_v27  ;;  %v85_v26 = vld [vmem:[#allocation2 + $0x8] sm:$0xff] }
  0x4b   :  { %v117_v27 = vld [vmem:[#allocation2 + $0x108] sm:$0xff] }
  0x51   :  { %709 = vmatmul.mubr.bf16.gmra.mxu0 %v1879_v28  ;;  %837 = vmatmul.mubr.bf16.gmra.mxu1 %v1880_v29 }
  0x52   :  { %716 = vmatprep.mubr.bf16.mxu0 %v1881_v30  ;;  %844 = vmatprep.mubr.bf16.mxu1 %v1883_v31 }
  0x59   :  { %717 = vmatmul.mubr.bf16.gmra.mxu0 %v1885_v32  ;;  %845 = vmatmul.mubr.bf16.gmra.mxu1 %v1886_v33 }
  0x5a   :  { %724 = vmatprep.mubr.bf16.mxu0 %v1887_v34  ;;  %852 = vmatprep.mubr.bf16.mxu1 %v1889_v35  ;;  %v86_v34 = vld [vmem:[#allocation2 + $0x10] sm:$0xff] }
  0x5b   :  { %v118_v35 = vld [vmem:[#allocation2 + $0x110] sm:$0xff] }
  0x61   :  { %725 = vmatmul.mubr.bf16.gmra.mxu0 %v1891_v36  ;;  %853 = vmatmul.mubr.bf16.gmra.mxu1 %v1892_v37  ;;  %v2649_v36 = vld [vmem:[%s3038_s2] ss:$0 sm:$0xff] }
  0x62   :  { %732 = vmatprep.mubr.bf16.mxu0 %v1893_v38  ;;  %860 = vmatprep.mubr.bf16.mxu1 %v1895_v39 }
  0x69   :  { %733 = vmatmul.mubr.bf16.gmra.mxu0 %v1897_v40  ;;  %861 = vmatmul.mubr.bf16.gmra.mxu1 %v1898_v41  ;;  %v87_v41 = vld [vmem:[#allocation2 + $0x18] sm:$0xff] }
  0x6a   :  { %740 = vmatprep.mubr.bf16.mxu0 %v1899_v42  ;;  %868 = vmatprep.mubr.bf16.mxu1 %v1901_v43 }
  0x71   :  { %741 = vmatmul.mubr.bf16.gmra.mxu0 %v1903_v44  ;;  %869 = vmatmul.mubr.bf16.gmra.mxu1 %v1904_v45 }
  0x72   :  { %748 = vmatprep.mubr.bf16.mxu0 %v1905_v46  ;;  %876 = vmatprep.mubr.bf16.mxu1 %v1907_v47  ;;  %v119_v46 = vld [vmem:[#allocation2 + $0x118] sm:$0xff] }
  0x79   :  { %749 = vmatmul.mubr.bf16.gmra.mxu0 %v1909_v48  ;;  %877 = vmatmul.mubr.bf16.gmra.mxu1 %v1910_v49 }
  0x7a   :  { %756 = vmatprep.mubr.bf16.mxu0 %v1911_v50  ;;  %884 = vmatprep.mubr.bf16.mxu1 %v1913_v51 }
  0x81   :  { %757 = vmatmul.mubr.bf16.gmra.mxu0 %v1915_v52  ;;  %885 = vmatmul.mubr.bf16.gmra.mxu1 %v1916_v53 }
  0x82   :  { %764 = vmatprep.mubr.bf16.mxu0 %v1917_v54  ;;  %892 = vmatprep.mubr.bf16.mxu1 %v1919_v55  ;;  %v88_v55 = vld [vmem:[#allocation2 + $0x20] sm:$0xff] }
  0x89   :  { %765 = vmatmul.mubr.bf16.gmra.mxu0 %v1921_v56  ;;  %893 = vmatmul.mubr.bf16.gmra.mxu1 %v1922_v57 }
  0x8a   :  { %772 = vmatprep.mubr.bf16.mxu0 %v1923_v58  ;;  %900 = vmatprep.mubr.bf16.mxu1 %v1925_v59 }
  0x91   :  { %773 = vmatmul.mubr.bf16.gmra.mxu0 %v1927_v60  ;;  %901 = vmatmul.mubr.bf16.gmra.mxu1 %v1928_v61  ;;  %v120_v60 = vld [vmem:[#allocation2 + $0x120] sm:$0xff] }
  0x92   :  { %780 = vmatprep.mubr.bf16.mxu0 %v1929_v62  ;;  %908 = vmatprep.mubr.bf16.mxu1 %v1931_v63 }
  0x99   :  { %781 = vmatmul.mubr.bf16.gmra.mxu0 %v1933_v0  ;;  %909 = vmatmul.mubr.bf16.gmra.mxu1 %v1934_v1 }
  0x9a   :  { %788 = vmatprep.mubr.bf16.mxu0 %v1935_v2  ;;  %916 = vmatprep.mubr.bf16.mxu1 %v1937_v3 }
  0xa1   :  { %789 = vmatmul.mubr.bf16.gmra.mxu0 %v1939_v4  ;;  %917 = vmatmul.mubr.bf16.gmra.mxu1 %v1940_v5  ;;  %v89_v5 = vld [vmem:[#allocation2 + $0x28] sm:$0xff] }
  0xa2   :  { %796 = vmatprep.mubr.bf16.mxu0 %v1941_v6  ;;  %924 = vmatprep.mubr.bf16.mxu1 %v1943_v7 }
  0xa9   :  { %797 = vmatmul.mubr.bf16.gmra.mxu0 %v1945_v8  ;;  %925 = vmatmul.mubr.bf16.gmra.mxu1 %v1946_v9 }
  0xaa   :  { %804 = vmatprep.mubr.bf16.mxu0 %v1947_v10  ;;  %932 = vmatprep.mubr.bf16.mxu1 %v1949_v11  ;;  %v121_v10 = vld [vmem:[#allocation2 + $0x128] sm:$0xff] }
  0xb1   :  { %805 = vmatmul.mubr.bf16.gmra.mxu0 %v1951_v12  ;;  %933 = vmatmul.mubr.bf16.gmra.mxu1 %v1952_v13 }
  0xb2   :  { %812 = vmatprep.mubr.bf16.mxu0 %v1953_v14  ;;  %940 = vmatprep.mubr.bf16.mxu1 %v1955_v15 }
  0xb9   :  { %813 = vmatmul.mubr.bf16.gmra.mxu0 %v1957_v16  ;;  %941 = vmatmul.mubr.bf16.gmra.mxu1 %v1958_v17 }
 0x101   :  { %v694_v20 = vpop.f32.mrf.mxu0  ;;  %v822_v21 = vpop.f32.mrf.mxu1 }
 0x102   :  { %v949_v22 = vadd.f32 %v694_v20, %v84_v18  ;;  %v981_v23 = vadd.f32 %v822_v21, %v116_v19  ;;  %v90_v19 = vld [vmem:[#allocation2 + $0x30] sm:$0xff] }
 0x103   :  { %v696_v24 = vpop.f32.mrf.mxu0  ;;  %v824_v25 = vpop.f32.mrf.mxu1 }
 0x104   :  { %1014 = vst.msk [vmem:[#allocation2] sm:$0xff] %vm19_vm0, %v949_v22  ;;  %1046 = vst.msk [vmem:[#allocation2 + $0x100] sm:$0xff] %vm19_vm0, %v981_v23  ;;  %v122_v24 = vld [vmem:[#allocation2 + $0x130] sm:$0xff] }
 0x105   :  { %v697_v28 = vpop.f32.mrf.mxu0  ;;  %v825_v29 = vpop.f32.mrf.mxu1 }
 0x106   :  { %v950_v30 = vadd.f32 %v697_v28, %v85_v26  ;;  %v982_v31 = vadd.f32 %v825_v29, %v117_v27 }
 0x107   :  { %v699_v32 = vpop.f32.mrf.mxu0  ;;  %v827_v33 = vpop.f32.mrf.mxu1 }
 0x108   :  { %1015 = vst.msk [vmem:[#allocation2 + $0x8] sm:$0xff] %vm19_vm0, %v950_v30  ;;  %1047 = vst.msk [vmem:[#allocation2 + $0x108] sm:$0xff] %vm19_vm0, %v982_v31 }
 0x109   :  { %v702_v37 = vpop.f32.mrf.mxu0  ;;  %v830_v38 = vpop.f32.mrf.mxu1 }
 0x10a   :  { %v951_v39 = vadd.f32 %v702_v37, %v86_v34  ;;  %v983_v40 = vadd.f32 %v830_v38, %v118_v35  ;;  %v91_v38 = vld [vmem:[#allocation2 + $0x38] sm:$0xff] }
 0x10b   :  { %v1081_v42 = vld [vmem:[#allocation2] sm:$0xff]  ;;  %v704_v44 = vpop.f32.mrf.mxu0  ;;  %v832_v45 = vpop.f32.mrf.mxu1 }
 0x10c   :  { %v1113_v43 = vld [vmem:[#allocation2 + $0x100] sm:$0xff]  ;;  %v1152_v47 = vadd.f32 %v2649_v36, %v1081_v42  ;;  %1016 = vst.msk [vmem:[#allocation2 + $0x10] sm:$0xff] %vm19_vm0, %v951_v39  ;;  %1048 = vst.msk [vmem:[#allocation2 + $0x110] sm:$0xff] %vm19_vm0, %v983_v40 }
 0x10d   :  { %v1184_v48 = vadd.f32 %v2649_v36, %v1113_v43  ;;  %v705_v49 = vpop.f32.mrf.mxu0  ;;  %v833_v50 = vpop.f32.mrf.mxu1 }
 0x10e   :  { %v1749_v51 = vmul.f32 -1.442695, %v1152_v47  ;;  %v952_v53 = vadd.f32 %v705_v49, %v87_v41  ;;  %v984_v54 = vadd.f32 %v833_v50, %v119_v46  ;;  %v123_v41 = vld [vmem:[#allocation2 + $0x138] sm:$0xff] }
 0x10f   :  { %v1781_v52 = vmul.f32 -1.442695, %v1184_v48  ;;  %v1082_v56 = vld [vmem:[#allocation2 + $0x8] sm:$0xff]  ;;  %v707_v58 = vpop.f32.mrf.mxu0  ;;  %v835_v59 = vpop.f32.mrf.mxu1 }
 0x110   :  { %v1114_v57 = vld [vmem:[#allocation2 + $0x108] sm:$0xff]  ;;  %1959 = vpow2.f32 %v1749_v51  ;;  %v1153_v61 = vadd.f32 %v2649_v36, %v1082_v56  ;;  %1017 = vst.msk [vmem:[#allocation2 + $0x18] sm:$0xff] %vm19_vm0, %v952_v53  ;;  %1049 = vst.msk [vmem:[#allocation2 + $0x118] sm:$0xff] %vm19_vm0, %v984_v54  ;;  %v92_v58 = vld [vmem:[#allocation2 + $0x40] sm:$0xff] }
 0x111   :  { %v1185_v62 = vadd.f32 %v2649_v36, %v1114_v57  ;;  %1961 = vpow2.f32 %v1781_v52  ;;  %v710_v63 = vpop.f32.mrf.mxu0  ;;  %v838_v0 = vpop.f32.mrf.mxu1  ;;  %v124_v59 = vld [vmem:[#allocation2 + $0x140] sm:$0xff] }
 0x112   :  { %v1750_v1 = vmul.f32 -1.442695, %v1153_v61  ;;  %v953_v3 = vadd.f32 %v710_v63, %v88_v55  ;;  %v985_v4 = vadd.f32 %v838_v0, %v120_v60 }
 0x113   :  { %v1782_v2 = vmul.f32 -1.442695, %v1185_v62  ;;  %v1083_v6 = vld [vmem:[#allocation2 + $0x10] sm:$0xff]  ;;  %v712_v8 = vpop.f32.mrf.mxu0  ;;  %v840_v9 = vpop.f32.mrf.mxu1 }
 0x114   :  { %v1115_v7 = vld [vmem:[#allocation2 + $0x110] sm:$0xff]  ;;  %1963 = vpow2.f32 %v1750_v1  ;;  %v1154_v11 = vadd.f32 %v2649_v36, %v1083_v6  ;;  %1018 = vst.msk [vmem:[#allocation2 + $0x20] sm:$0xff] %vm19_vm0, %v953_v3  ;;  %1050 = vst.msk [vmem:[#allocation2 + $0x120] sm:$0xff] %vm19_vm0, %v985_v4 }
 0x115   :  { %v1186_v12 = vadd.f32 %v2649_v36, %v1115_v7  ;;  %1965 = vpow2.f32 %v1782_v2  ;;  %v713_v13 = vpop.f32.mrf.mxu0  ;;  %v841_v14 = vpop.f32.mrf.mxu1 }
 0x116   :  { %v1751_v15 = vmul.f32 -1.442695, %v1154_v11  ;;  %v954_v17 = vadd.f32 %v713_v13, %v89_v5  ;;  %v986_v18 = vadd.f32 %v841_v14, %v121_v10  ;;  %v125_v13 = vld [vmem:[#allocation2 + $0x148] sm:$0xff] }
 0x117   :  { %v1783_v16 = vmul.f32 -1.442695, %v1186_v12  ;;  %v1084_v20 = vld [vmem:[#allocation2 + $0x18] sm:$0xff]  ;;  %v715_v22 = vpop.f32.mrf.mxu0  ;;  %v843_v23 = vpop.f32.mrf.mxu1  ;;  %v93_v12 = vld [vmem:[#allocation2 + $0x48] sm:$0xff] }
 0x118   :  { %v1116_v21 = vld [vmem:[#allocation2 + $0x118] sm:$0xff]  ;;  %1967 = vpow2.f32 %v1751_v15  ;;  %v1155_v25 = vadd.f32 %v2649_v36, %v1084_v20  ;;  %1019 = vst.msk [vmem:[#allocation2 + $0x28] sm:$0xff] %vm19_vm0, %v954_v17  ;;  %1051 = vst.msk [vmem:[#allocation2 + $0x128] sm:$0xff] %vm19_vm0, %v986_v18 }
 0x119   :  { %v1187_v26 = vadd.f32 %v2649_v36, %v1116_v21  ;;  %1969 = vpow2.f32 %v1783_v16  ;;  %v718_v27 = vpop.f32.mrf.mxu0  ;;  %v846_v28 = vpop.f32.mrf.mxu1 }
 0x11a   :  { %v1752_v29 = vmul.f32 -1.442695, %v1155_v25  ;;  %v955_v31 = vadd.f32 %v718_v27, %v90_v19  ;;  %v987_v32 = vadd.f32 %v846_v28, %v122_v24  ;;  %v94_v27 = vld [vmem:[#allocation2 + $0x50] sm:$0xff] }
 0x11b   :  { %v1784_v30 = vmul.f32 -1.442695, %v1187_v26  ;;  %v1085_v33 = vld [vmem:[#allocation2 + $0x20] sm:$0xff]  ;;  %v720_v35 = vpop.f32.mrf.mxu0  ;;  %v848_v37 = vpop.f32.mrf.mxu1 }
 0x11c   :  { %v1117_v34 = vld [vmem:[#allocation2 + $0x120] sm:$0xff]  ;;  %1971 = vpow2.f32 %v1752_v29  ;;  %v1156_v39 = vadd.f32 %v2649_v36, %v1085_v33  ;;  %1020 = vst.msk [vmem:[#allocation2 + $0x30] sm:$0xff] %vm19_vm0, %v955_v31  ;;  %1052 = vst.msk [vmem:[#allocation2 + $0x130] sm:$0xff] %vm19_vm0, %v987_v32 }
 0x11d   :  { %v1188_v40 = vadd.f32 %v2649_v36, %v1117_v34  ;;  %v1960_v42 = vpop.eup %1959  ;;  %1973 = vpow2.f32 %v1784_v30  ;;  %v721_v43 = vpop.f32.mrf.mxu0  ;;  %v126_v30 = vld [vmem:[#allocation2 + $0x150] sm:$0xff] }
 0x11e   :  { %v849_v44 = vpop.f32.mrf.mxu1  ;;  %v1962_v45 = vpop.eup %1961  ;;  %v1408_v46 = vadd.f32 1.0, %v1960_v42  ;;  %v1753_v47 = vmul.f32 -1.442695, %v1156_v39  ;;  %v956_v48 = vadd.f32 %v721_v43, %v91_v38 }
 0x11f   :  { %v1440_v49 = vadd.f32 1.0, %v1962_v45  ;;  %v1785_v50 = vmul.f32 -1.442695, %v1188_v40  ;;  %v1086_v51 = vld [vmem:[#allocation2 + $0x28] sm:$0xff]  ;;  %v988_v53 = vadd.f32 %v849_v44, %v123_v41  ;;  %v723_v54 = vpop.f32.mrf.mxu0  ;;  %v95_v45 = vld [vmem:[#allocation2 + $0x58] sm:$0xff] }
 0x120   :  { %v1118_v52 = vld [vmem:[#allocation2 + $0x128] sm:$0xff]  ;;  %v851_v55 = vpop.f32.mrf.mxu1  ;;  %1975 = vrcp.f32 %v1408_v46  ;;  %v1157_v56 = vadd.f32 %v2649_v36, %v1086_v51  ;;  %1021 = vst.msk [vmem:[#allocation2 + $0x38] sm:$0xff] %vm19_vm0, %v956_v48  ;;  %v127_v46 = vld [vmem:[#allocation2 + $0x158] sm:$0xff] }
 0x121   :  { %v1189_v57 = vadd.f32 %v2649_v36, %v1118_v52  ;;  %v1964_v60 = vpop.eup %1963  ;;  %1977 = vrcp.f32 %v1440_v49  ;;  %1053 = vst.msk [vmem:[#allocation2 + $0x138] sm:$0xff] %vm19_vm0, %v988_v53  ;;  %v726_v61 = vpop.f32.mrf.mxu0 }
 0x122   :  { %v854_v62 = vpop.f32.mrf.mxu1  ;;  %v1966_v63 = vpop.eup %1965  ;;  %v1409_v0 = vadd.f32 1.0, %v1964_v60  ;;  %1979 = vpow2.f32 %v1753_v47  ;;  %v1754_v1 = vmul.f32 -1.442695, %v1157_v56  ;;  %v957_v6 = vadd.f32 %v726_v61, %v92_v58  ;;  %v96_v61 = vld [vmem:[#allocation2 + $0x60] sm:$0xff] }
 0x123   :  { %v1786_v2 = vmul.f32 -1.442695, %v1189_v57  ;;  %v1441_v3 = vadd.f32 1.0, %v1966_v63  ;;  %1981 = vpow2.f32 %v1785_v50  ;;  %v1087_v4 = vld [vmem:[#allocation2 + $0x30] sm:$0xff]  ;;  %v989_v7 = vadd.f32 %v854_v62, %v124_v59  ;;  %v728_v8 = vpop.f32.mrf.mxu0  ;;  %v128_v62 = vld [vmem:[#allocation2 + $0x160] sm:$0xff] }
 0x124   :  { %v1119_v5 = vld [vmem:[#allocation2 + $0x130] sm:$0xff]  ;;  %v856_v9 = vpop.f32.mrf.mxu1  ;;  %1983 = vrcp.f32 %v1409_v0  ;;  %v1158_v10 = vadd.f32 %v2649_v36, %v1087_v4  ;;  %1022 = vst.msk [vmem:[#allocation2 + $0x40] sm:$0xff] %vm19_vm0, %v957_v6 }
 0x125   :  { %v1190_v11 = vadd.f32 %v2649_v36, %v1119_v5  ;;  %v1968_v14 = vpop.eup %1967  ;;  %1985 = vrcp.f32 %v1441_v3  ;;  %1054 = vst.msk [vmem:[#allocation2 + $0x140] sm:$0xff] %vm19_vm0, %v989_v7  ;;  %v729_v15 = vpop.f32.mrf.mxu0 }
 0x126   :  { %v857_v16 = vpop.f32.mrf.mxu1  ;;  %v1970_v17 = vpop.eup %1969  ;;  %v1410_v18 = vadd.f32 1.0, %v1968_v14  ;;  %1987 = vpow2.f32 %v1754_v1  ;;  %v1755_v19 = vmul.f32 -1.442695, %v1158_v10  ;;  %v958_v23 = vadd.f32 %v729_v15, %v93_v12 }
 0x127   :  { %v1787_v20 = vmul.f32 -1.442695, %v1190_v11  ;;  %v1442_v21 = vadd.f32 1.0, %v1970_v17  ;;  %1989 = vpow2.f32 %v1786_v2  ;;  %v1088_v22 = vld [vmem:[#allocation2 + $0x38] sm:$0xff]  ;;  %v990_v24 = vadd.f32 %v857_v16, %v125_v13  ;;  %v731_v25 = vpop.f32.mrf.mxu0 }
 0x128   :  { %v859_v26 = vpop.f32.mrf.mxu1  ;;  %1991 = vrcp.f32 %v1410_v18  ;;  %v1159_v28 = vadd.f32 %v2649_v36, %v1088_v22  ;;  %v1120_v29 = vld [vmem:[#allocation2 + $0x138] sm:$0xff]  ;;  %1023 = vst.msk [vmem:[#allocation2 + $0x48] sm:$0xff] %vm19_vm0, %v958_v23  ;;  %v97_v18 = vld [vmem:[#allocation2 + $0x68] sm:$0xff] }
 0x129   :  { %v1972_v31 = vpop.eup %1971  ;;  %1993 = vrcp.f32 %v1442_v21  ;;  %v1191_v32 = vadd.f32 %v2649_v36, %v1120_v29  ;;  %1055 = vst.msk [vmem:[#allocation2 + $0x148] sm:$0xff] %vm19_vm0, %v990_v24  ;;  %v734_v33 = vpop.f32.mrf.mxu0 }
 0x12a   :  { %v862_v34 = vpop.f32.mrf.mxu1  ;;  %v1974_v35 = vpop.eup %1973  ;;  %v1411_v37 = vadd.f32 1.0, %v1972_v31  ;;  %1995 = vpow2.f32 %v1755_v19  ;;  %v1756_v38 = vmul.f32 -1.442695, %v1159_v28  ;;  %v959_v39 = vadd.f32 %v734_v33, %v94_v27  ;;  %v129_v19 = vld [vmem:[#allocation2 + $0x168] sm:$0xff] }
 0x12b   :  { %v1443_v40 = vadd.f32 1.0, %v1974_v35  ;;  %1997 = vpow2.f32 %v1787_v20  ;;  %v1788_v41 = vmul.f32 -1.442695, %v1191_v32  ;;  %v991_v42 = vadd.f32 %v862_v34, %v126_v30  ;;  %v736_v43 = vpop.f32.mrf.mxu0  ;;  %v1089_v47 = vld [vmem:[#allocation2 + $0x40] sm:$0xff] }
 0x12c   :  { %v864_v44 = vpop.f32.mrf.mxu1  ;;  %1999 = vrcp.f32 %v1411_v37  ;;  %v1121_v48 = vld [vmem:[#allocation2 + $0x140] sm:$0xff]  ;;  %1024 = vst.msk [vmem:[#allocation2 + $0x50] sm:$0xff] %vm19_vm0, %v959_v39  ;;  %v1160_v50 = vadd.f32 %v2649_v36, %v1089_v47 }
 0x12d   :  { %v1976_v49 = vpop.eup %1975  ;;  %2001 = vrcp.f32 %v1443_v40  ;;  %v1192_v51 = vadd.f32 %v2649_v36, %v1121_v48  ;;  %1056 = vst.msk [vmem:[#allocation2 + $0x150] sm:$0xff] %vm19_vm0, %v991_v42  ;;  %v737_v52 = vpop.f32.mrf.mxu0 }
 0x12e   :  { %v865_v53 = vpop.f32.mrf.mxu1  ;;  %v1978_v54 = vpop.eup %1977  ;;  %1600 = vst.msk [vmem:[%s3039_s3] sm:$0xff] %vm19_vm0, %v1976_v49  ;;  %2003 = vpow2.f32 %v1756_v38  ;;  %v960_v55 = vadd.f32 %v737_v52, %v95_v45  ;;  %v1757_v58 = vmul.f32 -1.442695, %v1160_v50 }
 0x12f   :  { %v992_v56 = vadd.f32 %v865_v53, %v127_v46  ;;  %v1980_v57 = vpop.eup %1979  ;;  %1632 = vst.msk [vmem:[%s3039_s3 + $0x100] sm:$0xff] %vm19_vm0, %v1978_v54  ;;  %2005 = vpow2.f32 %v1788_v41  ;;  %v739_v59 = vpop.f32.mrf.mxu0  ;;  %v1789_v1 = vmul.f32 -1.442695, %v1192_v51  ;;  %v1090_v2 = vld [vmem:[#allocation2 + $0x48] sm:$0xff]  ;;  %v98_v41 = vld [vmem:[#allocation2 + $0x70] sm:$0xff] }
 0x130   :  { %v867_v60 = vpop.f32.mrf.mxu1  ;;  %v1982_v63 = vpop.eup %1981  ;;  %v1412_v0 = vadd.f32 1.0, %v1980_v57  ;;  %v1122_v3 = vld [vmem:[#allocation2 + $0x148] sm:$0xff]  ;;  %1025 = vst.msk [vmem:[#allocation2 + $0x58] sm:$0xff] %vm19_vm0, %v960_v55  ;;  %2007 = vpow2.f32 %v1757_v58  ;;  %v1161_v6 = vadd.f32 %v2649_v36, %v1090_v2  ;;  %v130_v46 = vld [vmem:[#allocation2 + $0x170] sm:$0xff]  ;;  %v131_v2 = vld [vmem:[#allocation2 + $0x178] sm:$0xff] }
 0x131   :  { %1057 = vst.msk [vmem:[#allocation2 + $0x158] sm:$0xff] %vm19_vm0, %v992_v56  ;;  %v1984_v4 = vpop.eup %1983  ;;  %v1444_v5 = vadd.f32 1.0, %v1982_v63  ;;  %v1193_v7 = vadd.f32 %v2649_v36, %v1122_v3  ;;  %v742_v8 = vpop.f32.mrf.mxu0 }
 0x132   :  { %v870_v9 = vpop.f32.mrf.mxu1  ;;  %v1986_v10 = vpop.eup %1985  ;;  %1601 = vst.msk [vmem:[%s3039_s3 + $0x8] sm:$0xff] %vm19_vm0, %v1984_v4  ;;  %2009 = vrcp.f32 %v1412_v0  ;;  %v961_v11 = vadd.f32 %v742_v8, %v96_v61  ;;  %v1758_v14 = vmul.f32 -1.442695, %v1161_v6  ;;  %v99_v61 = vld [vmem:[#allocation2 + $0x78] sm:$0xff] }
 0x133   :  { %v993_v12 = vadd.f32 %v870_v9, %v128_v62  ;;  %v1988_v13 = vpop.eup %1987  ;;  %1633 = vst.msk [vmem:[%s3039_s3 + $0x108] sm:$0xff] %vm19_vm0, %v1986_v10  ;;  %2011 = vrcp.f32 %v1444_v5  ;;  %v1091_v15 = vld [vmem:[#allocation2 + $0x50] sm:$0xff]  ;;  %v744_v16 = vpop.f32.mrf.mxu0  ;;  %v1790_v22 = vmul.f32 -1.442695, %v1193_v7 }
 0x134   :  { %v872_v17 = vpop.f32.mrf.mxu1  ;;  %v1990_v20 = vpop.eup %1989  ;;  %v1413_v21 = vadd.f32 1.0, %v1988_v13  ;;  %2013 = vpow2.f32 %v1789_v1  ;;  %v1162_v23 = vadd.f32 %v2649_v36, %v1091_v15  ;;  %v1123_v24 = vld [vmem:[#allocation2 + $0x150] sm:$0xff]  ;;  %1026 = vst.msk [vmem:[#allocation2 + $0x60] sm:$0xff] %vm19_vm0, %v961_v11 }
 0x135   :  { %1058 = vst.msk [vmem:[#allocation2 + $0x160] sm:$0xff] %vm19_vm0, %v993_v12  ;;  %v1992_v25 = vpop.eup %1991  ;;  %v1445_v26 = vadd.f32 1.0, %v1990_v20  ;;  %2015 = vpow2.f32 %v1758_v14  ;;  %v1194_v27 = vadd.f32 %v2649_v36, %v1123_v24  ;;  %v745_v28 = vpop.f32.mrf.mxu0  ;;  %v100_v20 = vld [vmem:[#allocation2 + $0x80] sm:$0xff] }
 0x136   :  { %v873_v29 = vpop.f32.mrf.mxu1  ;;  %v1994_v30 = vpop.eup %1993  ;;  %1602 = vst.msk [vmem:[%s3039_s3 + $0x10] sm:$0xff] %vm19_vm0, %v1992_v25  ;;  %2017 = vrcp.f32 %v1413_v21  ;;  %v1759_v31 = vmul.f32 -1.442695, %v1162_v23  ;;  %v962_v32 = vadd.f32 %v745_v28, %v97_v18  ;;  %v132_v21 = vld [vmem:[#allocation2 + $0x180] sm:$0xff] }
 0x137   :  { %v994_v33 = vadd.f32 %v873_v29, %v129_v19  ;;  %v1996_v34 = vpop.eup %1995  ;;  %1634 = vst.msk [vmem:[%s3039_s3 + $0x110] sm:$0xff] %vm19_vm0, %v1994_v30  ;;  %2019 = vrcp.f32 %v1445_v26  ;;  %v1791_v35 = vmul.f32 -1.442695, %v1194_v27  ;;  %v1092_v37 = vld [vmem:[#allocation2 + $0x58] sm:$0xff]  ;;  %v747_v39 = vpop.f32.mrf.mxu0 }
 0x138   :  { %v1124_v38 = vld [vmem:[#allocation2 + $0x158] sm:$0xff]  ;;  %v875_v40 = vpop.f32.mrf.mxu1  ;;  %v1998_v42 = vpop.eup %1997  ;;  %v1414_v43 = vadd.f32 1.0, %v1996_v34  ;;  %2021 = vpow2.f32 %v1790_v22  ;;  %v1163_v44 = vadd.f32 %v2649_v36, %v1092_v37  ;;  %1027 = vst.msk [vmem:[#allocation2 + $0x68] sm:$0xff] %vm19_vm0, %v962_v32  ;;  %v101_v37 = vld [vmem:[#allocation2 + $0x88] sm:$0xff] }
 0x139   :  { %v1195_v45 = vadd.f32 %v2649_v36, %v1124_v38  ;;  %1059 = vst.msk [vmem:[#allocation2 + $0x168] sm:$0xff] %vm19_vm0, %v994_v33  ;;  %v2000_v47 = vpop.eup %1999  ;;  %v1446_v48 = vadd.f32 1.0, %v1998_v42  ;;  %2023 = vpow2.f32 %v1759_v31  ;;  %v750_v49 = vpop.f32.mrf.mxu0 }
 0x13a   :  { %v878_v50 = vpop.f32.mrf.mxu1  ;;  %v2002_v51 = vpop.eup %2001  ;;  %1603 = vst.msk [vmem:[%s3039_s3 + $0x18] sm:$0xff] %vm19_vm0, %v2000_v47  ;;  %2025 = vrcp.f32 %v1414_v43  ;;  %v1760_v52 = vmul.f32 -1.442695, %v1163_v44  ;;  %v963_v53 = vadd.f32 %v750_v49, %v98_v41  ;;  %v133_v41 = vld [vmem:[#allocation2 + $0x188] sm:$0xff] }
 0x13b   :  { %v2004_v54 = vpop.eup %2003  ;;  %1635 = vst.msk [vmem:[%s3039_s3 + $0x118] sm:$0xff] %vm19_vm0, %v2002_v51  ;;  %2027 = vrcp.f32 %v1446_v48  ;;  %v1792_v55 = vmul.f32 -1.442695, %v1195_v45  ;;  %v1093_v56 = vld [vmem:[#allocation2 + $0x60] sm:$0xff]  ;;  %v995_v58 = vadd.f32 %v878_v50, %v130_v46  ;;  %v752_v59 = vpop.f32.mrf.mxu0 }
 0x13c   :  { %v1125_v57 = vld [vmem:[#allocation2 + $0x160] sm:$0xff]  ;;  %v880_v60 = vpop.f32.mrf.mxu1  ;;  %v2006_v62 = vpop.eup %2005  ;;  %v1415_v63 = vadd.f32 1.0, %v2004_v54  ;;  %2029 = vpow2.f32 %v1791_v35  ;;  %v1164_v0 = vadd.f32 %v2649_v36, %v1093_v56  ;;  %1028 = vst.msk [vmem:[#allocation2 + $0x70] sm:$0xff] %vm19_vm0, %v963_v53 }
 0x13d   :  { %v1196_v1 = vadd.f32 %v2649_v36, %v1125_v57  ;;  %v1447_v3 = vadd.f32 1.0, %v2006_v62  ;;  %2031 = vpow2.f32 %v1760_v52  ;;  %1060 = vst.msk [vmem:[#allocation2 + $0x170] sm:$0xff] %vm19_vm0, %v995_v58  ;;  %v753_v4 = vpop.f32.mrf.mxu0  ;;  %v2008_v6 = vpop.eup %2007  ;;  %v102_v57 = vld [vmem:[#allocation2 + $0x90] sm:$0xff] }
 0x13e   :  { %v881_v5 = vpop.f32.mrf.mxu1  ;;  %2033 = vrcp.f32 %v1415_v63  ;;  %v1761_v7 = vmul.f32 -1.442695, %v1164_v0  ;;  %v964_v8 = vadd.f32 %v753_v4, %v99_v61  ;;  %v1416_v10 = vadd.f32 1.0, %v2008_v6  ;;  %v134_v61 = vld [vmem:[#allocation2 + $0x190] sm:$0xff] }
 0x13f   :  { %v2010_v9 = vpop.eup %2009  ;;  %2035 = vrcp.f32 %v1447_v3  ;;  %v1793_v11 = vmul.f32 -1.442695, %v1196_v1  ;;  %v1094_v12 = vld [vmem:[#allocation2 + $0x68] sm:$0xff]  ;;  %v996_v14 = vadd.f32 %v881_v5, %v131_v2  ;;  %v755_v15 = vpop.f32.mrf.mxu0 }
 0x140   :  { %v1126_v13 = vld [vmem:[#allocation2 + $0x168] sm:$0xff]  ;;  %v883_v16 = vpop.f32.mrf.mxu1  ;;  %v2012_v17 = vpop.eup %2011  ;;  %1604 = vst.msk [vmem:[%s3039_s3 + $0x20] sm:$0xff] %vm19_vm0, %v2010_v9  ;;  %2037 = vpow2.f32 %v1792_v55  ;;  %v1165_v18 = vadd.f32 %v2649_v36, %v1094_v12  ;;  %1029 = vst.msk [vmem:[#allocation2 + $0x78] sm:$0xff] %vm19_vm0, %v964_v8  ;;  %v103_v12 = vld [vmem:[#allocation2 + $0x98] sm:$0xff] }
 0x141   :  { %v1197_v19 = vadd.f32 %v2649_v36, %v1126_v13  ;;  %v2014_v22 = vpop.eup %2013  ;;  %1636 = vst.msk [vmem:[%s3039_s3 + $0x120] sm:$0xff] %vm19_vm0, %v2012_v17  ;;  %2039 = vrcp.f32 %v1416_v10  ;;  %1061 = vst.msk [vmem:[#allocation2 + $0x178] sm:$0xff] %vm19_vm0, %v996_v14  ;;  %v758_v23 = vpop.f32.mrf.mxu0  ;;  %v135_v13 = vld [vmem:[#allocation2 + $0x198] sm:$0xff] }
 0x142   :  { %v886_v24 = vpop.f32.mrf.mxu1  ;;  %v2016_v25 = vpop.eup %2015  ;;  %v1448_v26 = vadd.f32 1.0, %v2014_v22  ;;  %2041 = vpow2.f32 %v1761_v7  ;;  %v1762_v27 = vmul.f32 -1.442695, %v1165_v18  ;;  %v965_v32 = vadd.f32 %v758_v23, %v100_v20 }
 0x143   :  { %v1794_v28 = vmul.f32 -1.442695, %v1197_v19  ;;  %v2018_v29 = vpop.eup %2017  ;;  %v1417_v30 = vadd.f32 1.0, %v2016_v25  ;;  %2043 = vpow2.f32 %v1793_v11  ;;  %v1095_v31 = vld [vmem:[#allocation2 + $0x70] sm:$0xff]  ;;  %v997_v33 = vadd.f32 %v886_v24, %v132_v21  ;;  %v760_v34 = vpop.f32.mrf.mxu0 }
 0x144   :  { %v888_v35 = vpop.f32.mrf.mxu1  ;;  %v2020_v38 = vpop.eup %2019  ;;  %1605 = vst.msk [vmem:[%s3039_s3 + $0x28] sm:$0xff] %vm19_vm0, %v2018_v29  ;;  %2045 = vrcp.f32 %v1448_v26  ;;  %v1166_v39 = vadd.f32 %v2649_v36, %v1095_v31  ;;  %v1127_v40 = vld [vmem:[#allocation2 + $0x170] sm:$0xff]  ;;  %1030 = vst.msk [vmem:[#allocation2 + $0x80] sm:$0xff] %vm19_vm0, %v965_v32  ;;  %v104_v31 = vld [vmem:[#allocation2 + $0xa0] sm:$0xff] }
 0x145   :  { %v2022_v42 = vpop.eup %2021  ;;  %1637 = vst.msk [vmem:[%s3039_s3 + $0x128] sm:$0xff] %vm19_vm0, %v2020_v38  ;;  %2047 = vrcp.f32 %v1417_v30  ;;  %v1198_v43 = vadd.f32 %v2649_v36, %v1127_v40  ;;  %1062 = vst.msk [vmem:[#allocation2 + $0x180] sm:$0xff] %vm19_vm0, %v997_v33  ;;  %v761_v44 = vpop.f32.mrf.mxu0  ;;  %v136_v32 = vld [vmem:[#allocation2 + $0x1a0] sm:$0xff] }
 0x146   :  { %v889_v45 = vpop.f32.mrf.mxu1  ;;  %v2024_v46 = vpop.eup %2023  ;;  %v1449_v47 = vadd.f32 1.0, %v2022_v42  ;;  %2049 = vpow2.f32 %v1762_v27  ;;  %v1763_v48 = vmul.f32 -1.442695, %v1166_v39  ;;  %v966_v49 = vadd.f32 %v761_v44, %v101_v37 }
 0x147   :  { %v2026_v50 = vpop.eup %2025  ;;  %v1418_v51 = vadd.f32 1.0, %v2024_v46  ;;  %2051 = vpow2.f32 %v1794_v28  ;;  %v1795_v52 = vmul.f32 -1.442695, %v1198_v43  ;;  %v1096_v53 = vld [vmem:[#allocation2 + $0x78] sm:$0xff]  ;;  %v998_v54 = vadd.f32 %v889_v45, %v133_v41  ;;  %v763_v55 = vpop.f32.mrf.mxu0 }
 0x148   :  { %v891_v56 = vpop.f32.mrf.mxu1  ;;  %v2028_v58 = vpop.eup %2027  ;;  %1606 = vst.msk [vmem:[%s3039_s3 + $0x30] sm:$0xff] %vm19_vm0, %v2026_v50  ;;  %2053 = vrcp.f32 %v1449_v47  ;;  %v1167_v59 = vadd.f32 %v2649_v36, %v1096_v53  ;;  %v1128_v60 = vld [vmem:[#allocation2 + $0x178] sm:$0xff]  ;;  %1031 = vst.msk [vmem:[#allocation2 + $0x88] sm:$0xff] %vm19_vm0, %v966_v49  ;;  %v137_v53 = vld [vmem:[#allocation2 + $0x1a8] sm:$0xff] }
 0x149   :  { %v2030_v62 = vpop.eup %2029  ;;  %1638 = vst.msk [vmem:[%s3039_s3 + $0x130] sm:$0xff] %vm19_vm0, %v2028_v58  ;;  %2055 = vrcp.f32 %v1418_v51  ;;  %v1199_v63 = vadd.f32 %v2649_v36, %v1128_v60  ;;  %1063 = vst.msk [vmem:[#allocation2 + $0x188] sm:$0xff] %vm19_vm0, %v998_v54  ;;  %v766_v0 = vpop.f32.mrf.mxu0 }
 0x14a   :  { %v894_v1 = vpop.f32.mrf.mxu1  ;;  %v2032_v2 = vpop.eup %2031  ;;  %v1450_v3 = vadd.f32 1.0, %v2030_v62  ;;  %2057 = vpow2.f32 %v1763_v48  ;;  %v1764_v4 = vmul.f32 -1.442695, %v1167_v59  ;;  %v967_v5 = vadd.f32 %v766_v0, %v102_v57 }
 0x14b   :  { %v2034_v6 = vpop.eup %2033  ;;  %v1419_v7 = vadd.f32 1.0, %v2032_v2  ;;  %2059 = vpow2.f32 %v1795_v52  ;;  %v1796_v8 = vmul.f32 -1.442695, %v1199_v63  ;;  %v999_v9 = vadd.f32 %v894_v1, %v134_v61  ;;  %v768_v10 = vpop.f32.mrf.mxu0  ;;  %v1097_v15 = vld [vmem:[#allocation2 + $0x80] sm:$0xff]  ;;  %v105_v52 = vld [vmem:[#allocation2 + $0xa8] sm:$0xff] }
 0x14c   :  { %v896_v11 = vpop.f32.mrf.mxu1  ;;  %v2036_v14 = vpop.eup %2035  ;;  %1607 = vst.msk [vmem:[%s3039_s3 + $0x38] sm:$0xff] %vm19_vm0, %v2034_v6  ;;  %2061 = vrcp.f32 %v1450_v3  ;;  %v1129_v16 = vld [vmem:[#allocation2 + $0x180] sm:$0xff]  ;;  %1032 = vst.msk [vmem:[#allocation2 + $0x90] sm:$0xff] %vm19_vm0, %v967_v5  ;;  %v1168_v18 = vadd.f32 %v2649_v36, %v1097_v15  ;;  %v106_v10 = vld [vmem:[#allocation2 + $0xb0] sm:$0xff] }
 0x14d   :  { %v2038_v17 = vpop.eup %2037  ;;  %1639 = vst.msk [vmem:[%s3039_s3 + $0x138] sm:$0xff] %vm19_vm0, %v2036_v14  ;;  %2063 = vrcp.f32 %v1419_v7  ;;  %v1200_v19 = vadd.f32 %v2649_v36, %v1129_v16  ;;  %1064 = vst.msk [vmem:[#allocation2 + $0x190] sm:$0xff] %vm19_vm0, %v999_v9  ;;  %v769_v20 = vpop.f32.mrf.mxu0  ;;  %v138_v15 = vld [vmem:[#allocation2 + $0x1b0] sm:$0xff] }
 0x14e   :  { %v897_v21 = vpop.f32.mrf.mxu1  ;;  %v2040_v22 = vpop.eup %2039  ;;  %v1451_v23 = vadd.f32 1.0, %v2038_v17  ;;  %2065 = vpow2.f32 %v1764_v4  ;;  %v968_v24 = vadd.f32 %v769_v20, %v103_v12  ;;  %v1765_v27 = vmul.f32 -1.442695, %v1168_v18 }
 0x14f   :  { %v1000_v25 = vadd.f32 %v897_v21, %v135_v13  ;;  %v2042_v26 = vpop.eup %2041  ;;  %1608 = vst.msk [vmem:[%s3039_s3 + $0x40] sm:$0xff] %vm19_vm0, %v2040_v22  ;;  %2067 = vpow2.f32 %v1796_v8  ;;  %v1098_v28 = vld [vmem:[#allocation2 + $0x88] sm:$0xff]  ;;  %v771_v29 = vpop.f32.mrf.mxu0  ;;  %v1797_v35 = vmul.f32 -1.442695, %v1200_v19 }
 0x150   :  { %v899_v30 = vpop.f32.mrf.mxu1  ;;  %v2044_v33 = vpop.eup %2043  ;;  %2069 = vrcp.f32 %v1451_v23  ;;  %v1420_v34 = vadd.f32 1.0, %v2042_v26  ;;  %v1169_v37 = vadd.f32 %v2649_v36, %v1098_v28  ;;  %v1130_v38 = vld [vmem:[#allocation2 + $0x188] sm:$0xff]  ;;  %1033 = vst.msk [vmem:[#allocation2 + $0x98] sm:$0xff] %vm19_vm0, %v968_v24 }
 0x151   :  { %1065 = vst.msk [vmem:[#allocation2 + $0x198] sm:$0xff] %vm19_vm0, %v1000_v25  ;;  %v2046_v39 = vpop.eup %2045  ;;  %v1452_v40 = vadd.f32 1.0, %v2044_v33  ;;  %2071 = vpow2.f32 %v1765_v27  ;;  %v1201_v41 = vadd.f32 %v2649_v36, %v1130_v38  ;;  %v774_v42 = vpop.f32.mrf.mxu0  ;;  %v107_v30 = vld [vmem:[#allocation2 + $0xb8] sm:$0xff] }
 0x152   :  { %v902_v43 = vpop.f32.mrf.mxu1  ;;  %v2048_v44 = vpop.eup %2047  ;;  %1640 = vst.msk [vmem:[%s3039_s3 + $0x140] sm:$0xff] %vm19_vm0, %v2046_v39  ;;  %2073 = vrcp.f32 %v1420_v34  ;;  %v1766_v45 = vmul.f32 -1.442695, %v1169_v37  ;;  %v969_v46 = vadd.f32 %v774_v42, %v104_v31 }
 0x153   :  { %v1001_v47 = vadd.f32 %v902_v43, %v136_v32  ;;  %v2050_v48 = vpop.eup %2049  ;;  %1609 = vst.msk [vmem:[%s3039_s3 + $0x48] sm:$0xff] %vm19_vm0, %v2048_v44  ;;  %2075 = vrcp.f32 %v1452_v40  ;;  %v1099_v49 = vld [vmem:[#allocation2 + $0x90] sm:$0xff]  ;;  %v776_v50 = vpop.f32.mrf.mxu0  ;;  %v1798_v56 = vmul.f32 -1.442695, %v1201_v41 }
 0x154   :  { %v904_v51 = vpop.f32.mrf.mxu1  ;;  %v2052_v54 = vpop.eup %2051  ;;  %v1421_v55 = vadd.f32 1.0, %v2050_v48  ;;  %2077 = vpow2.f32 %v1797_v35  ;;  %v1170_v57 = vadd.f32 %v2649_v36, %v1099_v49  ;;  %v1131_v58 = vld [vmem:[#allocation2 + $0x190] sm:$0xff]  ;;  %1034 = vst.msk [vmem:[#allocation2 + $0xa0] sm:$0xff] %vm19_vm0, %v969_v46  ;;  %v139_v35 = vld [vmem:[#allocation2 + $0x1b8] sm:$0xff] }
 0x155   :  { %1066 = vst.msk [vmem:[#allocation2 + $0x1a0] sm:$0xff] %vm19_vm0, %v1001_v47  ;;  %v2054_v59 = vpop.eup %2053  ;;  %v1453_v60 = vadd.f32 1.0, %v2052_v54  ;;  %2079 = vpow2.f32 %v1766_v45  ;;  %v1202_v61 = vadd.f32 %v2649_v36, %v1131_v58  ;;  %v777_v62 = vpop.f32.mrf.mxu0 }
 0x156   :  { %v905_v63 = vpop.f32.mrf.mxu1  ;;  %v2056_v0 = vpop.eup %2055  ;;  %1641 = vst.msk [vmem:[%s3039_s3 + $0x148] sm:$0xff] %vm19_vm0, %v2054_v59  ;;  %2081 = vrcp.f32 %v1421_v55  ;;  %v1767_v1 = vmul.f32 -1.442695, %v1170_v57  ;;  %v970_v2 = vadd.f32 %v777_v62, %v105_v52  ;;  %v2838_v52 = vld [vmem:[%s3038_s2] ss:$0 sm:$0xff] }
 0x157   :  { %v1002_v3 = vadd.f32 %v905_v63, %v137_v53  ;;  %v2058_v4 = vpop.eup %2057  ;;  %1610 = vst.msk [vmem:[%s3039_s3 + $0x50] sm:$0xff] %vm19_vm0, %v2056_v0  ;;  %2083 = vrcp.f32 %v1453_v60  ;;  %v1799_v5 = vmul.f32 -1.442695, %v1202_v61  ;;  %v1100_v6 = vld [vmem:[#allocation2 + $0x98] sm:$0xff]  ;;  %v779_v8 = vpop.f32.mrf.mxu0  ;;  %v108_v55 = vld [vmem:[#allocation2 + $0xc0] sm:$0xff] }
 0x158   :  { %v1132_v7 = vld [vmem:[#allocation2 + $0x198] sm:$0xff]  ;;  %v907_v9 = vpop.f32.mrf.mxu1  ;;  %v2060_v11 = vpop.eup %2059  ;;  %v1422_v12 = vadd.f32 1.0, %v2058_v4  ;;  %2085 = vpow2.f32 %v1798_v56  ;;  %v1171_v13 = vadd.f32 %v2649_v36, %v1100_v6  ;;  %1035 = vst.msk [vmem:[#allocation2 + $0xa8] sm:$0xff] %vm19_vm0, %v970_v2  ;;  %v140_v56 = vld [vmem:[#allocation2 + $0x1c0] sm:$0xff] }
 0x159   :  { %v1203_v14 = vadd.f32 %v2649_v36, %v1132_v7  ;;  %1067 = vst.msk [vmem:[#allocation2 + $0x1a8] sm:$0xff] %vm19_vm0, %v1002_v3  ;;  %v2062_v16 = vpop.eup %2061  ;;  %v1454_v17 = vadd.f32 1.0, %v2060_v11  ;;  %2087 = vpow2.f32 %v1767_v1  ;;  %v782_v18 = vpop.f32.mrf.mxu0  ;;  %v109_v7 = vld [vmem:[#allocation2 + $0xc8] sm:$0xff] }
 0x15a   :  { %v910_v19 = vpop.f32.mrf.mxu1  ;;  %v2064_v20 = vpop.eup %2063  ;;  %1642 = vst.msk [vmem:[%s3039_s3 + $0x150] sm:$0xff] %vm19_vm0, %v2062_v16  ;;  %2089 = vrcp.f32 %v1422_v12  ;;  %v1768_v21 = vmul.f32 -1.442695, %v1171_v13  ;;  %v971_v22 = vadd.f32 %v782_v18, %v106_v10  ;;  %v141_v11 = vld [vmem:[#allocation2 + $0x1c8] sm:$0xff] }
 0x15b   :  { %v2066_v23 = vpop.eup %2065  ;;  %1611 = vst.msk [vmem:[%s3039_s3 + $0x58] sm:$0xff] %vm19_vm0, %v2064_v20  ;;  %2091 = vrcp.f32 %v1454_v17  ;;  %v1800_v24 = vmul.f32 -1.442695, %v1203_v14  ;;  %v1101_v25 = vld [vmem:[#allocation2 + $0xa0] sm:$0xff]  ;;  %v1003_v27 = vadd.f32 %v910_v19, %v138_v15  ;;  %v784_v28 = vpop.f32.mrf.mxu0 }
 0x15c   :  { %v1133_v26 = vld [vmem:[#allocation2 + $0x1a0] sm:$0xff]  ;;  %v912_v29 = vpop.f32.mrf.mxu1  ;;  %v2068_v31 = vpop.eup %2067  ;;  %v1423_v32 = vadd.f32 1.0, %v2066_v23  ;;  %2093 = vpow2.f32 %v1799_v5  ;;  %v1172_v33 = vadd.f32 %v2649_v36, %v1101_v25  ;;  %1036 = vst.msk [vmem:[#allocation2 + $0xb0] sm:$0xff] %vm19_vm0, %v971_v22 }
 0x15d   :  { %v1204_v34 = vadd.f32 %v2649_v36, %v1133_v26  ;;  %v2070_v37 = vpop.eup %2069  ;;  %v1455_v38 = vadd.f32 1.0, %v2068_v31  ;;  %2095 = vpow2.f32 %v1768_v21  ;;  %1068 = vst.msk [vmem:[#allocation2 + $0x1b0] sm:$0xff] %vm19_vm0, %v1003_v27  ;;  %v785_v39 = vpop.f32.mrf.mxu0  ;;  %v110_v27 = vld [vmem:[#allocation2 + $0xd0] sm:$0xff] }
 0x15e   :  { %v913_v40 = vpop.f32.mrf.mxu1  ;;  %v2072_v41 = vpop.eup %2071  ;;  %1643 = vst.msk [vmem:[%s3039_s3 + $0x158] sm:$0xff] %vm19_vm0, %v2070_v37  ;;  %2097 = vrcp.f32 %v1423_v32  ;;  %v1769_v42 = vmul.f32 -1.442695, %v1172_v33  ;;  %v972_v43 = vadd.f32 %v785_v39, %v107_v30  ;;  %v142_v31 = vld [vmem:[#allocation2 + $0x1d0] sm:$0xff] }
 0x15f   :  { %v2074_v36 = vpop.eup %2073  ;;  %2099 = vrcp.f32 %v1455_v38  ;;  %v1424_v44 = vadd.f32 1.0, %v2072_v41  ;;  %v1801_v45 = vmul.f32 -1.442695, %v1204_v34  ;;  %v1102_v46 = vld [vmem:[#allocation2 + $0xa8] sm:$0xff]  ;;  %v1004_v48 = vadd.f32 %v913_v40, %v139_v35  ;;  %v787_v49 = vpop.f32.mrf.mxu0 }
 0x160   :  { %v1134_v47 = vld [vmem:[#allocation2 + $0x1a8] sm:$0xff]  ;;  %v915_v50 = vpop.f32.mrf.mxu1  ;;  %v2076_v51 = vpop.eup %2075  ;;  %1612 = vst.msk [vmem:[%s3039_s3 + $0x60] sm:$0xff] %vm19_vm0, %v2074_v36  ;;  %2101 = vpow2.f32 %v1800_v24  ;;  %v1173_v53 = vadd.f32 %v2838_v52, %v1102_v46  ;;  %1037 = vst.msk [vmem:[#allocation2 + $0xb8] sm:$0xff] %vm19_vm0, %v972_v43  ;;  %v111_v46 = vld [vmem:[#allocation2 + $0xd8] sm:$0xff] }
 0x161   :  { %v1205_v54 = vadd.f32 %v2838_v52, %v1134_v47  ;;  %v2078_v57 = vpop.eup %2077  ;;  %1644 = vst.msk [vmem:[%s3039_s3 + $0x160] sm:$0xff] %vm19_vm0, %v2076_v51  ;;  %2103 = vrcp.f32 %v1424_v44  ;;  %1069 = vst.msk [vmem:[#allocation2 + $0x1b8] sm:$0xff] %vm19_vm0, %v1004_v48  ;;  %v790_v58 = vpop.f32.mrf.mxu0  ;;  %v143_v47 = vld [vmem:[#allocation2 + $0x1d8] sm:$0xff] }
 0x162   :  { %v918_v59 = vpop.f32.mrf.mxu1  ;;  %v2080_v60 = vpop.eup %2079  ;;  %v1456_v61 = vadd.f32 1.0, %v2078_v57  ;;  %2105 = vpow2.f32 %v1769_v42  ;;  %v1770_v62 = vmul.f32 -1.442695, %v1173_v53  ;;  %v973_v3 = vadd.f32 %v790_v58, %v108_v55 }
 0x163   :  { %v1802_v63 = vmul.f32 -1.442695, %v1205_v54  ;;  %v2082_v0 = vpop.eup %2081  ;;  %v1425_v1 = vadd.f32 1.0, %v2080_v60  ;;  %2107 = vpow2.f32 %v1801_v45  ;;  %v1103_v2 = vld [vmem:[#allocation2 + $0xb0] sm:$0xff]  ;;  %v1005_v4 = vadd.f32 %v918_v59, %v140_v56  ;;  %v792_v5 = vpop.f32.mrf.mxu0 }
 0x164   :  { %v920_v6 = vpop.f32.mrf.mxu1  ;;  %v2084_v8 = vpop.eup %2083  ;;  %1613 = vst.msk [vmem:[%s3039_s3 + $0x68] sm:$0xff] %vm19_vm0, %v2082_v0  ;;  %2109 = vrcp.f32 %v1456_v61  ;;  %v1174_v9 = vadd.f32 %v2838_v52, %v1103_v2  ;;  %v1135_v10 = vld [vmem:[#allocation2 + $0x1b0] sm:$0xff]  ;;  %1038 = vst.msk [vmem:[#allocation2 + $0xc0] sm:$0xff] %vm19_vm0, %v973_v3  ;;  %v112_v2 = vld [vmem:[#allocation2 + $0xe0] sm:$0xff] }
 0x165   :  { %v2086_v12 = vpop.eup %2085  ;;  %1645 = vst.msk [vmem:[%s3039_s3 + $0x168] sm:$0xff] %vm19_vm0, %v2084_v8  ;;  %2111 = vrcp.f32 %v1425_v1  ;;  %v1206_v13 = vadd.f32 %v2838_v52, %v1135_v10  ;;  %1070 = vst.msk [vmem:[#allocation2 + $0x1c0] sm:$0xff] %vm19_vm0, %v1005_v4  ;;  %v793_v14 = vpop.f32.mrf.mxu0  ;;  %v144_v3 = vld [vmem:[#allocation2 + $0x1e0] sm:$0xff] }
 0x166   :  { %v921_v15 = vpop.f32.mrf.mxu1  ;;  %v2088_v16 = vpop.eup %2087  ;;  %v1457_v17 = vadd.f32 1.0, %v2086_v12  ;;  %2113 = vpow2.f32 %v1770_v62  ;;  %v1771_v18 = vmul.f32 -1.442695, %v1174_v9  ;;  %v974_v19 = vadd.f32 %v793_v14, %v109_v7 }
 0x167   :  { %v2090_v20 = vpop.eup %2089  ;;  %v1426_v21 = vadd.f32 1.0, %v2088_v16  ;;  %2115 = vpow2.f32 %v1802_v63  ;;  %v1803_v22 = vmul.f32 -1.442695, %v1206_v13  ;;  %v1104_v23 = vld [vmem:[#allocation2 + $0xb8] sm:$0xff]  ;;  %v1006_v24 = vadd.f32 %v921_v15, %v141_v11  ;;  %v795_v25 = vpop.f32.mrf.mxu0 }
 0x168   :  { %v923_v26 = vpop.f32.mrf.mxu1  ;;  %v2092_v28 = vpop.eup %2091  ;;  %1614 = vst.msk [vmem:[%s3039_s3 + $0x70] sm:$0xff] %vm19_vm0, %v2090_v20  ;;  %2117 = vrcp.f32 %v1457_v17  ;;  %v1175_v29 = vadd.f32 %v2838_v52, %v1104_v23  ;;  %v1136_v30 = vld [vmem:[#allocation2 + $0x1b8] sm:$0xff]  ;;  %1039 = vst.msk [vmem:[#allocation2 + $0xc8] sm:$0xff] %vm19_vm0, %v974_v19  ;;  %v145_v23 = vld [vmem:[#allocation2 + $0x1e8] sm:$0xff] }
 0x169   :  { %v2094_v32 = vpop.eup %2093  ;;  %1646 = vst.msk [vmem:[%s3039_s3 + $0x170] sm:$0xff] %vm19_vm0, %v2092_v28  ;;  %2119 = vrcp.f32 %v1426_v21  ;;  %v1207_v33 = vadd.f32 %v2838_v52, %v1136_v30  ;;  %1071 = vst.msk [vmem:[#allocation2 + $0x1c8] sm:$0xff] %vm19_vm0, %v1006_v24  ;;  %v798_v34 = vpop.f32.mrf.mxu0 }
 0x16a   :  { %v926_v35 = vpop.f32.mrf.mxu1  ;;  %v2096_v37 = vpop.eup %2095  ;;  %v1458_v38 = vadd.f32 1.0, %v2094_v32  ;;  %2121 = vpow2.f32 %v1771_v18  ;;  %v1772_v39 = vmul.f32 -1.442695, %v1175_v29  ;;  %v975_v40 = vadd.f32 %v798_v34, %v110_v27 }
 0x16b   :  { %v2098_v41 = vpop.eup %2097  ;;  %v1427_v42 = vadd.f32 1.0, %v2096_v37  ;;  %2123 = vpow2.f32 %v1803_v22  ;;  %v1804_v43 = vmul.f32 -1.442695, %v1207_v33  ;;  %v1007_v36 = vadd.f32 %v926_v35, %v142_v31  ;;  %v800_v44 = vpop.f32.mrf.mxu0  ;;  %v1105_v49 = vld [vmem:[#allocation2 + $0xc0] sm:$0xff]  ;;  %v113_v22 = vld [vmem:[#allocation2 + $0xe8] sm:$0xff] }
 0x16c   :  { %v928_v45 = vpop.f32.mrf.mxu1  ;;  %v2100_v48 = vpop.eup %2099  ;;  %1615 = vst.msk [vmem:[%s3039_s3 + $0x78] sm:$0xff] %vm19_vm0, %v2098_v41  ;;  %2125 = vrcp.f32 %v1458_v38  ;;  %v1137_v50 = vld [vmem:[#allocation2 + $0x1c0] sm:$0xff]  ;;  %1040 = vst.msk [vmem:[#allocation2 + $0xd0] sm:$0xff] %vm19_vm0, %v975_v40  ;;  %v1176_v53 = vadd.f32 %v2838_v52, %v1105_v49  ;;  %v114_v44 = vld [vmem:[#allocation2 + $0xf0] sm:$0xff] }
 0x16d   :  { %v2102_v51 = vpop.eup %2101  ;;  %1647 = vst.msk [vmem:[%s3039_s3 + $0x178] sm:$0xff] %vm19_vm0, %v2100_v48  ;;  %2127 = vrcp.f32 %v1427_v42  ;;  %v1208_v54 = vadd.f32 %v2838_v52, %v1137_v50  ;;  %1072 = vst.msk [vmem:[#allocation2 + $0x1d0] sm:$0xff] %vm19_vm0, %v1007_v36  ;;  %v801_v55 = vpop.f32.mrf.mxu0  ;;  %v146_v49 = vld [vmem:[#allocation2 + $0x1f0] sm:$0xff] }
 0x16e   :  { %v929_v56 = vpop.f32.mrf.mxu1  ;;  %v2104_v57 = vpop.eup %2103  ;;  %v1459_v58 = vadd.f32 1.0, %v2102_v51  ;;  %2129 = vpow2.f32 %v1772_v39  ;;  %v976_v59 = vadd.f32 %v801_v55, %v111_v46  ;;  %v1773_v62 = vmul.f32 -1.442695, %v1176_v53 }
 0x16f   :  { %v1008_v60 = vadd.f32 %v929_v56, %v143_v47  ;;  %v2106_v61 = vpop.eup %2105  ;;  %1616 = vst.msk [vmem:[%s3039_s3 + $0x80] sm:$0xff] %vm19_vm0, %v2104_v57  ;;  %2131 = vpow2.f32 %v1804_v43  ;;  %v1106_v63 = vld [vmem:[#allocation2 + $0xc8] sm:$0xff]  ;;  %v803_v0 = vpop.f32.mrf.mxu0  ;;  %v1805_v6 = vmul.f32 -1.442695, %v1208_v54 }
 0x170   :  { %v931_v1 = vpop.f32.mrf.mxu1  ;;  %v2108_v4 = vpop.eup %2107  ;;  %2133 = vrcp.f32 %v1459_v58  ;;  %v1428_v5 = vadd.f32 1.0, %v2106_v61  ;;  %v1177_v7 = vadd.f32 %v2838_v52, %v1106_v63  ;;  %v1138_v8 = vld [vmem:[#allocation2 + $0x1c8] sm:$0xff]  ;;  %1041 = vst.msk [vmem:[#allocation2 + $0xd8] sm:$0xff] %vm19_vm0, %v976_v59 }
 0x171   :  { %1073 = vst.msk [vmem:[#allocation2 + $0x1d8] sm:$0xff] %vm19_vm0, %v1008_v60  ;;  %v2110_v9 = vpop.eup %2109  ;;  %v1460_v10 = vadd.f32 1.0, %v2108_v4  ;;  %2135 = vpow2.f32 %v1773_v62  ;;  %v1209_v11 = vadd.f32 %v2838_v52, %v1138_v8  ;;  %v806_v12 = vpop.f32.mrf.mxu0  ;;  %v115_v1 = vld [vmem:[#allocation2 + $0xf8] sm:$0xff] }
 0x172   :  { %v934_v13 = vpop.f32.mrf.mxu1  ;;  %v2112_v14 = vpop.eup %2111  ;;  %1648 = vst.msk [vmem:[%s3039_s3 + $0x180] sm:$0xff] %vm19_vm0, %v2110_v9  ;;  %2137 = vrcp.f32 %v1428_v5  ;;  %v1774_v15 = vmul.f32 -1.442695, %v1177_v7  ;;  %v977_v16 = vadd.f32 %v806_v12, %v112_v2 }
 0x173   :  { %v1009_v17 = vadd.f32 %v934_v13, %v144_v3  ;;  %v2114_v18 = vpop.eup %2113  ;;  %1617 = vst.msk [vmem:[%s3039_s3 + $0x88] sm:$0xff] %vm19_vm0, %v2112_v14  ;;  %2139 = vrcp.f32 %v1460_v10  ;;  %v1107_v19 = vld [vmem:[#allocation2 + $0xd0] sm:$0xff]  ;;  %v808_v20 = vpop.f32.mrf.mxu0  ;;  %v1806_v26 = vmul.f32 -1.442695, %v1209_v11 }
 0x174   :  { %v936_v21 = vpop.f32.mrf.mxu1  ;;  %v2116_v24 = vpop.eup %2115  ;;  %v1429_v25 = vadd.f32 1.0, %v2114_v18  ;;  %2141 = vpow2.f32 %v1805_v6  ;;  %v1178_v27 = vadd.f32 %v2838_v52, %v1107_v19  ;;  %v1139_v28 = vld [vmem:[#allocation2 + $0x1d0] sm:$0xff]  ;;  %1042 = vst.msk [vmem:[#allocation2 + $0xe0] sm:$0xff] %vm19_vm0, %v977_v16  ;;  %v147_v6 = vld [vmem:[#allocation2 + $0x1f8] sm:$0xff] }
 0x175   :  { %1074 = vst.msk [vmem:[#allocation2 + $0x1e0] sm:$0xff] %vm19_vm0, %v1009_v17  ;;  %v2118_v29 = vpop.eup %2117  ;;  %v1461_v30 = vadd.f32 1.0, %v2116_v24  ;;  %2143 = vpow2.f32 %v1774_v15  ;;  %v1210_v31 = vadd.f32 %v2838_v52, %v1139_v28  ;;  %v809_v32 = vpop.f32.mrf.mxu0 }
 0x176   :  { %v937_v33 = vpop.f32.mrf.mxu1  ;;  %v2120_v34 = vpop.eup %2119  ;;  %1649 = vst.msk [vmem:[%s3039_s3 + $0x188] sm:$0xff] %vm19_vm0, %v2118_v29  ;;  %2145 = vrcp.f32 %v1429_v25  ;;  %v1775_v35 = vmul.f32 -1.442695, %v1178_v27  ;;  %v978_v37 = vadd.f32 %v809_v32, %v113_v22 }
 0x177   :  { %v1010_v38 = vadd.f32 %v937_v33, %v145_v23  ;;  %v2122_v39 = vpop.eup %2121  ;;  %1618 = vst.msk [vmem:[%s3039_s3 + $0x90] sm:$0xff] %vm19_vm0, %v2120_v34  ;;  %2147 = vrcp.f32 %v1461_v30  ;;  %v1807_v40 = vmul.f32 -1.442695, %v1210_v31  ;;  %v1108_v41 = vld [vmem:[#allocation2 + $0xd8] sm:$0xff]  ;;  %v811_v43 = vpop.f32.mrf.mxu0 }
 0x178   :  { %v1140_v42 = vld [vmem:[#allocation2 + $0x1d8] sm:$0xff]  ;;  %v939_v36 = vpop.f32.mrf.mxu1  ;;  %v2124_v45 = vpop.eup %2123  ;;  %v1430_v46 = vadd.f32 1.0, %v2122_v39  ;;  %2149 = vpow2.f32 %v1806_v26  ;;  %v1179_v47 = vadd.f32 %v2838_v52, %v1108_v41  ;;  %1043 = vst.msk [vmem:[#allocation2 + $0xe8] sm:$0xff] %vm19_vm0, %v978_v37 }
 0x179   :  { %v1211_v48 = vadd.f32 %v2838_v52, %v1140_v42  ;;  %1075 = vst.msk [vmem:[#allocation2 + $0x1e8] sm:$0xff] %vm19_vm0, %v1010_v38  ;;  %v2126_v50 = vpop.eup %2125  ;;  %v1462_v51 = vadd.f32 1.0, %v2124_v45  ;;  %2151 = vpow2.f32 %v1775_v35  ;;  %v814_v53 = vpop.f32.mrf.mxu0 }
 0x17a   :  { %v942_v54 = vpop.f32.mrf.mxu1  ;;  %v2128_v55 = vpop.eup %2127  ;;  %1650 = vst.msk [vmem:[%s3039_s3 + $0x190] sm:$0xff] %vm19_vm0, %v2126_v50  ;;  %2153 = vrcp.f32 %v1430_v46  ;;  %v1776_v56 = vmul.f32 -1.442695, %v1179_v47  ;;  %v979_v57 = vadd.f32 %v814_v53, %v114_v44 }
 0x17b   :  { %v2130_v58 = vpop.eup %2129  ;;  %1619 = vst.msk [vmem:[%s3039_s3 + $0x98] sm:$0xff] %vm19_vm0, %v2128_v55  ;;  %2155 = vrcp.f32 %v1462_v51  ;;  %v1808_v59 = vmul.f32 -1.442695, %v1211_v48  ;;  %v1109_v60 = vld [vmem:[#allocation2 + $0xe0] sm:$0xff]  ;;  %v1011_v62 = vadd.f32 %v942_v54, %v146_v49  ;;  %v816_v63 = vpop.f32.mrf.mxu0 }
 0x17c   :  { %v1141_v61 = vld [vmem:[#allocation2 + $0x1e0] sm:$0xff]  ;;  %v944_v0 = vpop.f32.mrf.mxu1  ;;  %v2132_v2 = vpop.eup %2131  ;;  %v1431_v3 = vadd.f32 1.0, %v2130_v58  ;;  %2157 = vpow2.f32 %v1807_v40  ;;  %v1180_v4 = vadd.f32 %v2838_v52, %v1109_v60  ;;  %1044 = vst.msk [vmem:[#allocation2 + $0xf0] sm:$0xff] %vm19_vm0, %v979_v57 }
 0x17d   :  { %v1212_v5 = vadd.f32 %v2838_v52, %v1141_v61  ;;  %v2134_v7 = vpop.eup %2133  ;;  %v1463_v8 = vadd.f32 1.0, %v2132_v2  ;;  %2159 = vpow2.f32 %v1776_v56  ;;  %1076 = vst.msk [vmem:[#allocation2 + $0x1f0] sm:$0xff] %vm19_vm0, %v1011_v62  ;;  %v817_v9 = vpop.f32.mrf.mxu0 }
 0x17e   :  { %v945_v10 = vpop.f32.mrf.mxu1  ;;  %v2136_v11 = vpop.eup %2135  ;;  %1651 = vst.msk [vmem:[%s3039_s3 + $0x198] sm:$0xff] %vm19_vm0, %v2134_v7  ;;  %2161 = vrcp.f32 %v1431_v3  ;;  %v1777_v12 = vmul.f32 -1.442695, %v1180_v4  ;;  %v980_v13 = vadd.f32 %v817_v9, %v115_v1 }
 0x17f   :  { %v2138_v14 = vpop.eup %2137  ;;  %2163 = vrcp.f32 %v1463_v8  ;;  %v1432_v15 = vadd.f32 1.0, %v2136_v11  ;;  %v1809_v16 = vmul.f32 -1.442695, %v1212_v5  ;;  %v1110_v17 = vld [vmem:[#allocation2 + $0xe8] sm:$0xff]  ;;  %v1012_v19 = vadd.f32 %v945_v10, %v147_v6  ;;  %v819_v20 = vpop.f32.mrf.mxu0 }
 0x180   :  { %v1142_v18 = vld [vmem:[#allocation2 + $0x1e8] sm:$0xff]  ;;  %v947_v21 = vpop.f32.mrf.mxu1  ;;  %v2140_v22 = vpop.eup %2139  ;;  %1620 = vst.msk [vmem:[%s3039_s3 + $0xa0] sm:$0xff] %vm19_vm0, %v2138_v14  ;;  %2165 = vpow2.f32 %v1808_v59  ;;  %v1181_v23 = vadd.f32 %v2838_v52, %v1110_v17  ;;  %1045 = vst.msk [vmem:[#allocation2 + $0xf8] sm:$0xff] %vm19_vm0, %v980_v13 }
 0x181   :  { %v1213_v24 = vadd.f32 %v2838_v52, %v1142_v18  ;;  %v2142_v25 = vpop.eup %2141  ;;  %1652 = vst.msk [vmem:[%s3039_s3 + $0x1a0] sm:$0xff] %vm19_vm0, %v2140_v22  ;;  %2167 = vrcp.f32 %v1432_v15  ;;  %1077 = vst.msk [vmem:[#allocation2 + $0x1f8] sm:$0xff] %vm19_vm0, %v1012_v19 }
 0x182   :  { %v2144_v26 = vpop.eup %2143  ;;  %v1464_v27 = vadd.f32 1.0, %v2142_v25  ;;  %2169 = vpow2.f32 %v1777_v12  ;;  %v1778_v28 = vmul.f32 -1.442695, %v1181_v23 }
 0x183   :  { %v2146_v29 = vpop.eup %2145  ;;  %v1433_v30 = vadd.f32 1.0, %v2144_v26  ;;  %2171 = vpow2.f32 %v1809_v16  ;;  %v1810_v31 = vmul.f32 -1.442695, %v1213_v24  ;;  %v1111_v32 = vld [vmem:[#allocation2 + $0xf0] sm:$0xff] }
 0x184   :  { %v2148_v33 = vpop.eup %2147  ;;  %1621 = vst.msk [vmem:[%s3039_s3 + $0xa8] sm:$0xff] %vm19_vm0, %v2146_v29  ;;  %2173 = vrcp.f32 %v1464_v27  ;;  %v1182_v34 = vadd.f32 %v2838_v52, %v1111_v32  ;;  %v1143_v35 = vld [vmem:[#allocation2 + $0x1f0] sm:$0xff] }
 0x185   :  { %v2150_v37 = vpop.eup %2149  ;;  %1653 = vst.msk [vmem:[%s3039_s3 + $0x1a8] sm:$0xff] %vm19_vm0, %v2148_v33  ;;  %2175 = vrcp.f32 %v1433_v30  ;;  %v1214_v38 = vadd.f32 %v2838_v52, %v1143_v35 }
 0x186   :  { %v2152_v39 = vpop.eup %2151  ;;  %v1465_v40 = vadd.f32 1.0, %v2150_v37  ;;  %2177 = vpow2.f32 %v1778_v28  ;;  %v1779_v41 = vmul.f32 -1.442695, %v1182_v34 }
 0x187   :  { %v2154_v42 = vpop.eup %2153  ;;  %v1434_v43 = vadd.f32 1.0, %v2152_v39  ;;  %2179 = vpow2.f32 %v1810_v31  ;;  %v1811_v36 = vmul.f32 -1.442695, %v1214_v38  ;;  %v1112_v44 = vld [vmem:[#allocation2 + $0xf8] sm:$0xff] }
 0x188   :  { %v2156_v45 = vpop.eup %2155  ;;  %1622 = vst.msk [vmem:[%s3039_s3 + $0xb0] sm:$0xff] %vm19_vm0, %v2154_v42  ;;  %2181 = vrcp.f32 %v1465_v40  ;;  %v1183_v46 = vadd.f32 %v2838_v52, %v1112_v44  ;;  %v1144_v47 = vld [vmem:[#allocation2 + $0x1f8] sm:$0xff] }
 0x189   :  { %v2158_v48 = vpop.eup %2157  ;;  %1654 = vst.msk [vmem:[%s3039_s3 + $0x1b0] sm:$0xff] %vm19_vm0, %v2156_v45  ;;  %2183 = vrcp.f32 %v1434_v43  ;;  %v1215_v49 = vadd.f32 %v2838_v52, %v1144_v47 }
 0x18a   :  { %v2160_v50 = vpop.eup %2159  ;;  %v1466_v51 = vadd.f32 1.0, %v2158_v48  ;;  %2185 = vpow2.f32 %v1779_v41  ;;  %v1780_v53 = vmul.f32 -1.442695, %v1183_v46 }
 0x18b   :  { %v2162_v54 = vpop.eup %2161  ;;  %v1435_v55 = vadd.f32 1.0, %v2160_v50  ;;  %2187 = vpow2.f32 %v1811_v36  ;;  %v1812_v56 = vmul.f32 -1.442695, %v1215_v49 }
 0x18c   :  { %v2164_v57 = vpop.eup %2163  ;;  %1623 = vst.msk [vmem:[%s3039_s3 + $0xb8] sm:$0xff] %vm19_vm0, %v2162_v54  ;;  %2189 = vrcp.f32 %v1466_v51 }
 0x18d   :  { %v2166_v58 = vpop.eup %2165  ;;  %1655 = vst.msk [vmem:[%s3039_s3 + $0x1b8] sm:$0xff] %vm19_vm0, %v2164_v57  ;;  %2191 = vrcp.f32 %v1435_v55 }
 0x18e   :  { %v2168_v52 = vpop.eup %2167  ;;  %v1467_v59 = vadd.f32 1.0, %v2166_v58  ;;  %2193 = vpow2.f32 %v1780_v53 }
 0x18f   :  { %v2170_v60 = vpop.eup %2169  ;;  %1624 = vst.msk [vmem:[%s3039_s3 + $0xc0] sm:$0xff] %vm19_vm0, %v2168_v52  ;;  %2195 = vpow2.f32 %v1812_v56 }
 0x190   :  { %v2172_v61 = vpop.eup %2171  ;;  %2197 = vrcp.f32 %v1467_v59  ;;  %v1436_v62 = vadd.f32 1.0, %v2170_v60 }
 0x191   :  { %v2174_v63 = vpop.eup %2173  ;;  %v1468_v0 = vadd.f32 1.0, %v2172_v61 }
 0x192   :  { %v2176_v1 = vpop.eup %2175  ;;  %1656 = vst.msk [vmem:[%s3039_s3 + $0x1c0] sm:$0xff] %vm19_vm0, %v2174_v63  ;;  %2199 = vrcp.f32 %v1436_v62 }
 0x193   :  { %v2178_v2 = vpop.eup %2177  ;;  %1625 = vst.msk [vmem:[%s3039_s3 + $0xc8] sm:$0xff] %vm19_vm0, %v2176_v1  ;;  %2201 = vrcp.f32 %v1468_v0 }
 0x194   :  { %v2180_v3 = vpop.eup %2179  ;;  %v1437_v4 = vadd.f32 1.0, %v2178_v2 }
 0x195   :  { %v2182_v5 = vpop.eup %2181  ;;  %v1469_v6 = vadd.f32 1.0, %v2180_v3 }
 0x196   :  { %v2184_v7 = vpop.eup %2183  ;;  %1657 = vst.msk [vmem:[%s3039_s3 + $0x1c8] sm:$0xff] %vm19_vm0, %v2182_v5  ;;  %2203 = vrcp.f32 %v1437_v4 }
 0x197   :  { %v2186_v8 = vpop.eup %2185  ;;  %1626 = vst.msk [vmem:[%s3039_s3 + $0xd0] sm:$0xff] %vm19_vm0, %v2184_v7  ;;  %2205 = vrcp.f32 %v1469_v6 }
 0x198   :  { %v2188_v9 = vpop.eup %2187  ;;  %v1438_v10 = vadd.f32 1.0, %v2186_v8 }
 0x199   :  { %v2190_v11 = vpop.eup %2189  ;;  %v1470_v12 = vadd.f32 1.0, %v2188_v9 }
 0x19a   :  { %v2192_v13 = vpop.eup %2191  ;;  %1658 = vst.msk [vmem:[%s3039_s3 + $0x1d0] sm:$0xff] %vm19_vm0, %v2190_v11  ;;  %2207 = vrcp.f32 %v1438_v10 }
 0x19b   :  { %v2194_v14 = vpop.eup %2193  ;;  %1627 = vst.msk [vmem:[%s3039_s3 + $0xd8] sm:$0xff] %vm19_vm0, %v2192_v13  ;;  %2209 = vrcp.f32 %v1470_v12 }
 0x19c   :  { %v2196_v15 = vpop.eup %2195  ;;  %v1439_v16 = vadd.f32 1.0, %v2194_v14 }
 0x19d   :  { %v2198_v17 = vpop.eup %2197  ;;  %v1471_v18 = vadd.f32 1.0, %v2196_v15 }
 0x19e   :  { %1659 = vst.msk [vmem:[%s3039_s3 + $0x1d8] sm:$0xff] %vm19_vm0, %v2198_v17  ;;  %2211 = vrcp.f32 %v1439_v16 }
 0x19f   :  { %v2200_v19 = vpop.eup %2199  ;;  %2213 = vrcp.f32 %v1471_v18 }
 0x1a0   :  { %v2202_v20 = vpop.eup %2201  ;;  %1628 = vst.msk [vmem:[%s3039_s3 + $0xe0] sm:$0xff] %vm19_vm0, %v2200_v19 }
 0x1a1   :  { %1660 = vst.msk [vmem:[%s3039_s3 + $0x1e0] sm:$0xff] %vm19_vm0, %v2202_v20 }
 0x1a3   :  { %v2204_v21 = vpop.eup %2203 }
 0x1a4   :  { %v2206_v22 = vpop.eup %2205  ;;  %1629 = vst.msk [vmem:[%s3039_s3 + $0xe8] sm:$0xff] %vm19_vm0, %v2204_v21 }
 0x1a5   :  { %1661 = vst.msk [vmem:[%s3039_s3 + $0x1e8] sm:$0xff] %vm19_vm0, %v2206_v22 }
 0x1a7   :  { %v2208_v23 = vpop.eup %2207 }
 0x1a8   :  { %v2210_v24 = vpop.eup %2209  ;;  %1630 = vst.msk [vmem:[%s3039_s3 + $0xf0] sm:$0xff] %vm19_vm0, %v2208_v23 }
 0x1a9   :  { %1662 = vst.msk [vmem:[%s3039_s3 + $0x1f0] sm:$0xff] %vm19_vm0, %v2210_v24 }
 0x1ab   :  { %v2212_v25 = vpop.eup %2211 }
 0x1ac   :  { %v2214_v26 = vpop.eup %2213  ;;  %1631 = vst.msk [vmem:[%s3039_s3 + $0xf8] sm:$0xff] %vm19_vm0, %v2212_v25 }
 0x1ad   :  { %1663 = vst.msk [vmem:[%s3039_s3 + $0x1f8] sm:$0xff] %vm19_vm0, %v2214_v26 }

</bundles_post_ra>
